<compile_context>
chip_gen: v7x
topology: tpu7x:2x2x1
jax: 0.10.0
libtpu: 0.0.40
codegen_flags: <defaults>
</compile_context>

<pallas_src>
import functools
from math import sqrt

import jax
import jax.numpy as jnp
from jax.experimental import pallas as pl
from jax.experimental.pallas import tpu as pltpu

INV_SQRT2 = 1.0 / sqrt(2.0)
LN_EPS = 1e-5
FILTER_DIM = 130  # 5 letters x 26


# --------------------------------------------------------------------------
# small helpers
# --------------------------------------------------------------------------
def _round_up(x, m):
    return (x + m - 1) // m * m


def _pad_to(a, shape, dtype):
    a = a.astype(dtype)
    pads = [(0, t - s) for s, t in zip(a.shape, shape)]
    return jnp.pad(a, pads)


def _out_cols(vocab):
    """Width of the merged logits+value output: guarantee >=1 spare padded lane."""
    vp = _round_up(vocab, 128)
    return vp + 128 if vp == vocab else vp


def _vmem_limit_cap_bytes():
    """Per-generation VMEM cap with headroom for compiler-internal scratch."""
    try:
        cap = int(getattr(pltpu.get_tpu_info(), "vmem_capacity_bytes", 128 << 20))
    except Exception:
        cap = 128 << 20
    return max(32 << 20, cap - max(4 << 20, cap // 10))


def _probe_copy_kernel(w_ref, o_ref):
    o_ref[...] = w_ref[...]


@functools.lru_cache(maxsize=None)
def _single_buffered_weights_supported():
    """Narrow version gate for BlockSpec(pipeline_mode=pl.Buffered(1)).

    Probed on a tiny dummy kernel (lower + compile) BEFORE the real kernel is
    built, so runtime failures of the real kernel (e.g. VMEM OOM) are never
    silently masked by a fallback.
    """
    if not hasattr(pl, "Buffered"):
        return False
    try:
        spec = pl.BlockSpec((8, 128), lambda i: (0, 0), pipeline_mode=pl.Buffered(1))
    except (TypeError, ValueError):
        return False
    try:
        probe = pl.pallas_call(
            _probe_copy_kernel,
            out_shape=jax.ShapeDtypeStruct((8, 128), jnp.float32),
            grid=(1,),
            in_specs=[spec],
            out_specs=pl.BlockSpec((8, 128), lambda i: (0, 0)),
        )
        jax.jit(probe).lower(jax.ShapeDtypeStruct((8, 128), jnp.float32)).compile()
        return True
    except Exception:
        return False


# --------------------------------------------------------------------------
# Kernel
# --------------------------------------------------------------------------
def _ln(y, g, b, inv_n):
    # Masked LayerNorm over the *real* feature count: padded lanes of y are
    # exactly zero (padded W columns / biases / gamma / beta are zero), so
    # sum(y) and sum(y*y) only see real features; divide by the real count.
    # (One-pass E[y^2]-mu^2 form, clamped >= 0; fine at these tolerances.)
    mu = jnp.sum(y, axis=-1, keepdims=True) * inv_n
    ms = jnp.sum(y * y, axis=-1, keepdims=True) * inv_n
    var = jnp.maximum(ms - mu * mu, 0.0)
    return (y - mu) * jax.lax.rsqrt(var + LN_EPS) * g + b


def _silu(y):
    return y * jax.nn.sigmoid(y)


def guess_state_kernel(
    # inputs
    x_ref,
    w_e, p_e,            # embed weight + rows [b_e; g_e; be_e; w_v_row]
    w_p, p_p,            # pre stack   [L,Hp,Hp] / [L,3,Hp]
    w_fi, p_fi,          # filter_in   (Hp -> Fp)
    w_gfo, p_fo,         # folded guess_filter.T @ filter_out.weight (Fp -> Hp)
    w_fc1, w_fc2, p_fc,  # filter_combine (concat weight pre-split)
    w_q, p_q,            # post stack
    w_l, head,           # logit weight [Hp,Vo]; head[0]=b_l (+b_v at value col), head[1]=one-hot(value col)
    # output: logits with the value merged into the spare padded column `vocab`
    out_ref,
    *, n_layers, inv_h, inv_f,
):
    def block(h, w, p, inv_n):
        """Linear (bf16 operands, f32 acc) -> masked LayerNorm -> SiLU (dropout=id)."""
        y = jnp.dot(h.astype(jnp.bfloat16), w,
                    preferred_element_type=jnp.float32) + p[0:1, :]
        return _silu(_ln(y, p[1:2, :], p[2:3, :], inv_n))

    x = x_ref[...]                      # bf16 rows (streamed as bf16 from HBM)
    pe = p_e[...]                       # (4, Hp): [b_e; g_e; be_e; w_v_row]

    # embed
    sc_pre = block(x, w_e[...], pe, inv_h)

    # pre residual stack
    x_pre = sc_pre
    for l in range(n_layers):
        x_pre = (x_pre + block(x_pre, w_p[l], p_p[l], inv_h)) * INV_SQRT2
    x_pre = (x_pre + sc_pre) * INV_SQRT2

    # filter path: filter_in -> folded (guess_filter.T @ filter_out.weight)
    # No vocab-wide intermediate: the fold is exact (no nonlinearity between dots).
    x_f = block(x_pre, w_fi[...], p_fi[...], inv_f)
    x_f = block(x_f, w_gfo[...], p_fo[...], inv_h)

    # filter_combine on concat(x_pre, x_f): two dots with the pre-split weight
    pfc = p_fc[...]
    y = (jnp.dot(x_pre.astype(jnp.bfloat16), w_fc1[...],
                 preferred_element_type=jnp.float32)
         + jnp.dot(x_f.astype(jnp.bfloat16), w_fc2[...],
                   preferred_element_type=jnp.float32)
         + pfc[0:1, :])
    x_post = _silu(_ln(y, pfc[1:2, :], pfc[2:3, :], inv_h))

    # post residual stack
    sc_post = x_post
    for l in range(n_layers):
        x_post = (x_post + block(x_post, w_q[l], p_q[l], inv_h)) * INV_SQRT2
    x_post = (x_post + sc_post) * INV_SQRT2

    # value head: VPU broadcast-multiply + lane reduce over x_pre (no N=1 MXU pass)
    val = jnp.sum(x_pre * pe[3:4, :], axis=-1, keepdims=True)        # [rows, 1]

    # logits head on the MXU; value merged into the spare padded column:
    #   head[0] = b_l with b_v at the value column, head[1] = one-hot(value column)
    # TODO(synk): for production vocab on v7x, stream w_l over Vo tiles here.
    logits = jnp.dot(x_post.astype(jnp.bfloat16), w_l[...],
                     preferred_element_type=jnp.float32)
    # (keep f32 output for exact-parity heads; emit bf16 here if downstream allows)
    out_ref[...] = logits + head[0:1, :] + val * head[1:2, :]


# --------------------------------------------------------------------------
# Parameter preparation: lane-dense zero padding, bf16 matmul weights,
# gfT@w_fo fold, fused small-parameter blocks.
# --------------------------------------------------------------------------
def prepare_params(params):
    (w_e, b_e, g_e, be_e,
     w_p, b_p, g_p, be_p,
     w_fi, b_fi, g_fi, be_fi,
     gfT,
     w_fo, b_fo, g_fo, be_fo,
     w_fc, b_fc, g_fc, be_fc,
     w_q, b_q, g_q, be_q,
     w_l, b_l,
     w_v, b_v) = params

    in_dim, hidden = w_e.shape
    L = w_p.shape[0]
    filt = w_fi.shape[1]
    vocab = w_l.shape[1]
    Ip, Hp, Fp = (_round_up(d, 128) for d in (in_dim, hidden, filt))
    Vo = _out_cols(vocab)
    bf, f32 = jnp.bfloat16, jnp.float32

    # Fold guess_filter.T @ filter_out.weight in f32 (exact: no nonlinearity in
    # between), cast to bf16 afterwards.
    w_gfo = gfT.astype(f32) @ w_fo.astype(f32)          # [130, hidden]

    # Split the concat weight of filter_combine once, outside the kernel.
    w_fc1 = w_fc[:hidden, :]
    w_fc2 = w_fc[hidden:, :]

    def stack3(b, g, be, width):
        return _pad_to(jnp.concatenate([b, g, be], axis=0), (3, width), f32)

    def stack3_l(b, g, be, width):
        return _pad_to(jnp.concatenate([b, g, be], axis=1), (L, 3, width), f32)

    # embed LN params + the value-head row vector share one small block
    p_e = _pad_to(jnp.concatenate([b_e, g_e, be_e, w_v.T], axis=0), (4, Hp), f32)

    # logits-head rows: row 0 = b_l with b_v folded into the value column,
    # row 1 = one-hot selector of the value column.
    b_l_row = jnp.zeros((1, Vo), f32).at[0, :vocab].set(b_l[0].astype(f32))
    b_l_row = b_l_row.at[0, vocab].set(b_v[0, 0].astype(f32))
    v_sel = jnp.zeros((1, Vo), f32).at[0, vocab].set(1.0)
    head = jnp.concatenate([b_l_row, v_sel], axis=0)     # (2, Vo)

    return (
        _pad_to(w_e, (Ip, Hp), bf), p_e,
        _pad_to(w_p, (L, Hp, Hp), bf), stack3_l(b_p, g_p, be_p, Hp),
        _pad_to(w_fi, (Hp, Fp), bf), stack3(b_fi, g_fi, be_fi, Fp),
        _pad_to(w_gfo, (Fp, Hp), bf), stack3(b_fo, g_fo, be_fo, Hp),
        _pad_to(w_fc1, (Hp, Hp), bf), _pad_to(w_fc2, (Hp, Hp), bf),
        stack3(b_fc, g_fc, be_fc, Hp),
        _pad_to(w_q, (L, Hp, Hp), bf), stack3_l(b_q, g_q, be_q, Hp),
        _pad_to(w_l, (Hp, Vo), bf), head,
    )


# --------------------------------------------------------------------------
# Wrapper
# --------------------------------------------------------------------------
def guess_state_forward(x, params, *, n_layers, hidden_dim, block_rows=None):
    """x: [batch, *, input_dim] -> (logits [batch, *, V], value [batch, *, 1])."""
    *lead, in_dim = x.shape
    n = 1
    for d in lead:
        n *= d

    filt = params[8].shape[1]            # w_fi is [H, 130]
    vocab = params[-4].shape[1]          # w_l  is [H, V]

    Ip = _round_up(in_dim, 128)
    Hp = _round_up(hidden_dim, 128)
    Fp = _round_up(filt, 128)
    Vo = _out_cols(vocab)

    padded = prepare_params(params)

    cap = _vmem_limit_cap_bytes()
    if block_rows is None:
        # 128 MiB v5e/v6e comfortably hold a 512-row activation tile;
        # keep 256 on v7x (64 MiB VMEM) as headroom for the resident weights.
        block_rows = 512 if cap >= (100 << 20) else 256

    # Row tile: multiple of 128 (bf16 MXU LHS sublane packing), clamped to the
    # problem size for tiny inputs.
    n128 = _round_up(max(n, 1), 128)
    br = max(128, min(_round_up(block_rows, 128), n128))
    # v7x shards the "parallel" grid axis over its 2 TensorCores: give mid/large
    # inputs at least 2 grid steps so both cores get work.
    if n128 >= 256 and n128 <= br:
        br = _round_up(n128 // 2, 128)
    n_pad = _round_up(n, br)

    # x is only ever consumed as a bf16 MXU operand -> stream it as bf16.
    x2d = jnp.zeros((n_pad, Ip), jnp.bfloat16)
    x2d = x2d.at[:n, :in_dim].set(x.reshape(n, in_dim).astype(jnp.bfloat16))

    kernel = functools.partial(
        guess_state_kernel, n_layers=n_layers,
        inv_h=1.0 / hidden_dim, inv_f=1.0 / filt,
    )

    # Weights never change across grid steps -> single-buffer them when the
    # jax version supports it (gated by a narrow lowering probe, done before
    # the real kernel is built — no broad exception fallback around the run).
    single_buf = _single_buffered_weights_supported()

    weight_bytes = sum(int(p.size) * p.dtype.itemsize for p in padded)
    act_bytes = br * (2 * 2 * Ip + 4 * (10 * Hp + 2 * Fp) + 4 * 3 * Vo)
    budget = (1 if single_buf else 2) * weight_bytes + act_bytes + (2 << 20)
    vmem_limit = int(min(cap, max(32 << 20, budget)))

    w_kwargs = {"pipeline_mode": pl.Buffered(1)} if single_buf else {}
    w_specs = [
        pl.BlockSpec(p.shape, lambda i, nd=p.ndim: (0,) * nd, **w_kwargs)
        for p in padded
    ]

    out_p = pl.pallas_call(
        kernel,
        out_shape=jax.ShapeDtypeStruct((n_pad, Vo), jnp.float32),
        grid_spec=pltpu.PrefetchScalarGridSpec(
            num_scalar_prefetch=0,
            grid=(n_pad // br,),
            in_specs=[pl.BlockSpec((br, Ip), lambda i: (i, 0))] + w_specs,
            out_specs=pl.BlockSpec((br, Vo), lambda i: (i, 0)),
        ),
        compiler_params=pltpu.CompilerParams(
            dimension_semantics=("parallel",),
            vmem_limit_bytes=vmem_limit,
        ),
    )(x2d, *padded)

    logits = out_p[:n, :vocab].reshape(*lead, vocab)
    value = out_p[:n, vocab:vocab + 1].reshape(*lead, 1)
    return logits, value


# --------------------------------------------------------------------------
# Deterministic parameter construction (natural, unpadded shapes)
# --------------------------------------------------------------------------
def _linear(key, din, dout, scale=0.1):
    kw, kb = jax.random.split(key)
    w = scale * jax.random.normal(kw, (din, dout), jnp.float32)   # [in, out]
    b = scale * jax.random.normal(kb, (1, dout), jnp.float32)
    return w, b


def _layernorm(key, d):
    kg, kb = jax.random.split(key)
    g = 1.0 + 0.05 * jax.random.normal(kg, (1, d), jnp.float32)
    be = 0.05 * jax.random.normal(kb, (1, d), jnp.float32)
    return g, be


def init_params(key, input_dim, hidden_dim, vocab_size, n_layers):
    keys = iter(jax.random.split(key, 64))

    def block_params(din, dout):
        w, b = _linear(next(keys), din, dout)
        g, be = _layernorm(next(keys), dout)
        return w, b, g, be

    def stacked_block_params(n, d):
        ws, bs, gs, bes = [], [], [], []
        for _ in range(n):
            w, b, g, be = block_params(d, d)
            ws.append(w); bs.append(b); gs.append(g); bes.append(be)
        return (jnp.stack(ws), jnp.stack(bs), jnp.stack(gs), jnp.stack(bes))

    w_e, b_e, g_e, be_e = block_params(input_dim, hidden_dim)
    w_p, b_p, g_p, be_p = stacked_block_params(n_layers, hidden_dim)
    w_fi, b_fi, g_fi, be_fi = block_params(hidden_dim, FILTER_DIM)
    w_fo, b_fo, g_fo, be_fo = block_params(vocab_size, hidden_dim)
    w_fc, b_fc, g_fc, be_fc = block_params(2 * hidden_dim, hidden_dim)
    w_q, b_q, g_q, be_q = stacked_block_params(n_layers, hidden_dim)
    w_l, b_l = _linear(next(keys), hidden_dim, vocab_size)
    w_v, b_v = _linear(next(keys), hidden_dim, 1)

    # guess_filter buffer: one_hot(tvt, 26) [V,5,26] -> permute(0,2,1) [V,26,5]
    # -> reshape [V,130]; kernel path uses its transpose [130, V].
    tvt = jax.random.randint(next(keys), (vocab_size, 5), 0, 26)
    gf = jax.nn.one_hot(tvt, 26, dtype=jnp.float32)               # [V, 5, 26]
    gf = jnp.transpose(gf, (0, 2, 1)).reshape(vocab_size, -1)     # [V, 130]
    gfT = gf.T                                                    # [130, V]

    return (
        w_e, b_e, g_e, be_e,
        w_p, b_p, g_p, be_p,
        w_fi, b_fi, g_fi, be_fi,
        gfT,
        w_fo, b_fo, g_fo, be_fo,
        w_fc, b_fc, g_fc, be_fc,
        w_q, b_q, g_q, be_q,
        w_l, b_l,
        w_v, b_v,
    )


# --------------------------------------------------------------------------
# Pure-JAX reference (mirrors the PyTorch forward in eval mode, f32)
# --------------------------------------------------------------------------
def reference_forward(x, params, n_layers, hidden_dim):
    (w_e, b_e, g_e, be_e,
     w_p, b_p, g_p, be_p,
     w_fi, b_fi, g_fi, be_fi,
     gfT,
     w_fo, b_fo, g_fo, be_fo,
     w_fc, b_fc, g_fc, be_fc,
     w_q, b_q, g_q, be_q,
     w_l, b_l,
     w_v, b_v) = params

    def blk(h, w, b, g, be):
        y = h @ w + b
        mu = y.mean(-1, keepdims=True)
        var = ((y - mu) ** 2).mean(-1, keepdims=True)
        y = (y - mu) / jnp.sqrt(var + LN_EPS) * g + be
        return y * jax.nn.sigmoid(y)

    sc_pre = blk(x, w_e, b_e, g_e, be_e)
    x_pre = sc_pre
    for l in range(n_layers):
        x_pre = (x_pre + blk(x_pre, w_p[l], b_p[l], g_p[l], be_p[l])) / sqrt(2)
    x_pre = (x_pre + sc_pre) / sqrt(2)

    x_f = blk(x_pre, w_fi, b_fi, g_fi, be_fi)
    x_f = x_f @ gfT
    x_f = blk(x_f, w_fo, b_fo, g_fo, be_fo)

    x_post = blk(jnp.concatenate([x_pre, x_f], axis=-1), w_fc, b_fc, g_fc, be_fc)
    sc_post = x_post
    for l in range(n_layers):
        x_post = (x_post + blk(x_post, w_q[l], b_q[l], g_q[l], be_q[l])) / sqrt(2)
    x_post = (x_post + sc_post) / sqrt(2)

    value = x_pre @ w_v + b_v
    logits = x_post @ w_l + b_l
    return logits, value


# --------------------------------------------------------------------------
if __name__ == "__main__":
    batch, seq = 2, 8
    input_dim, hidden_dim = 32, 32
    vocab_size = 256          # output_dim = total_vocab_tensor.shape[0]
    n_layers = 3

    key = jax.random.PRNGKey(0)
    k_x, k_p = jax.random.split(key)
    x = jax.random.normal(k_x, (batch, seq, input_dim), jnp.float32)
    params = init_params(k_p, input_dim, hidden_dim, vocab_size, n_layers)

    logits, value = guess_state_forward(
        x, params, n_layers=n_layers, hidden_dim=hidden_dim
    )
    jax.block_until_ready((logits, value))

    # correctness check against the pure-f32 reference of the PyTorch forward
    # (kernel uses bf16 matmul operands with f32 accumulation -> loose-ish tolerance)
    ref_logits, ref_value = reference_forward(
        x.reshape(-1, input_dim), params, n_layers, hidden_dim
    )
    ref_logits = ref_logits.reshape(batch, seq, vocab_size)
    ref_value = ref_value.reshape(batch, seq, 1)

    assert logits.shape == (batch, seq, vocab_size)
    assert value.shape == (batch, seq, 1)
    assert jnp.allclose(logits, ref_logits, rtol=5e-2, atol=1e-1)
    assert jnp.allclose(value, ref_value, rtol=5e-2, atol=1e-1)

    print("KERNEL_OK")
</pallas_src>

<mosaic_0001>
module attributes {stable_mosaic.version = 11 : i64} {
  func.func @guess_state_kernel(%arg0: i32, %arg1: memref<128x128xbf16, #tpu.memory_space<vmem>>, %arg2: memref<128x128xbf16, #tpu.memory_space<vmem>>, %arg3: memref<4x128xf32, #tpu.memory_space<vmem>>, %arg4: memref<3x128x128xbf16, #tpu.memory_space<vmem>>, %arg5: memref<3x3x128xf32, #tpu.memory_space<vmem>>, %arg6: memref<128x256xbf16, #tpu.memory_space<vmem>>, %arg7: memref<3x256xf32, #tpu.memory_space<vmem>>, %arg8: memref<256x128xbf16, #tpu.memory_space<vmem>>, %arg9: memref<3x128xf32, #tpu.memory_space<vmem>>, %arg10: memref<128x128xbf16, #tpu.memory_space<vmem>>, %arg11: memref<128x128xbf16, #tpu.memory_space<vmem>>, %arg12: memref<3x128xf32, #tpu.memory_space<vmem>>, %arg13: memref<3x128x128xbf16, #tpu.memory_space<vmem>>, %arg14: memref<3x3x128xf32, #tpu.memory_space<vmem>>, %arg15: memref<128x384xbf16, #tpu.memory_space<vmem>>, %arg16: memref<2x384xf32, #tpu.memory_space<vmem>>, %arg17: memref<128x384xf32, #tpu.memory_space<vmem>>) attributes {dimension_semantics = [#tpu.dimension_semantics<parallel>], iteration_bounds = array<i64: 1>, scalar_prefetch = 0 : i64, scratch_operands = 0 : i64, tpu.core_type = #tpu.core_type<tc>, window_params = [{transform_indices = @transform_0, window_bounds = array<i64: 128, 128>}, {pipeline_mode = #tpu.pipeline_mode<synchronous>, transform_indices = @transform_1, window_bounds = array<i64: 128, 128>}, {pipeline_mode = #tpu.pipeline_mode<synchronous>, transform_indices = @transform_2, window_bounds = array<i64: 4, 128>}, {pipeline_mode = #tpu.pipeline_mode<synchronous>, transform_indices = @transform_3, window_bounds = array<i64: 3, 128, 128>}, {pipeline_mode = #tpu.pipeline_mode<synchronous>, transform_indices = @transform_4, window_bounds = array<i64: 3, 3, 128>}, {pipeline_mode = #tpu.pipeline_mode<synchronous>, transform_indices = @transform_5, window_bounds = array<i64: 128, 256>}, {pipeline_mode = #tpu.pipeline_mode<synchronous>, transform_indices = @transform_6, window_bounds = array<i64: 3, 256>}, {pipeline_mode = #tpu.pipeline_mode<synchronous>, transform_indices = @transform_7, window_bounds = array<i64: 256, 128>}, {pipeline_mode = #tpu.pipeline_mode<synchronous>, transform_indices = @transform_8, window_bounds = array<i64: 3, 128>}, {pipeline_mode = #tpu.pipeline_mode<synchronous>, transform_indices = @transform_9, window_bounds = array<i64: 128, 128>}, {pipeline_mode = #tpu.pipeline_mode<synchronous>, transform_indices = @transform_10, window_bounds = array<i64: 128, 128>}, {pipeline_mode = #tpu.pipeline_mode<synchronous>, transform_indices = @transform_11, window_bounds = array<i64: 3, 128>}, {pipeline_mode = #tpu.pipeline_mode<synchronous>, transform_indices = @transform_12, window_bounds = array<i64: 3, 128, 128>}, {pipeline_mode = #tpu.pipeline_mode<synchronous>, transform_indices = @transform_13, window_bounds = array<i64: 3, 3, 128>}, {pipeline_mode = #tpu.pipeline_mode<synchronous>, transform_indices = @transform_14, window_bounds = array<i64: 128, 384>}, {pipeline_mode = #tpu.pipeline_mode<synchronous>, transform_indices = @transform_15, window_bounds = array<i64: 2, 384>}, {transform_indices = @transform_16, window_bounds = array<i64: 128, 384>}]} {
    %c0 = arith.constant 0 : index
    %c0_0 = arith.constant 0 : index
    %0 = vector.load %arg1[%c0, %c0_0] : memref<128x128xbf16, #tpu.memory_space<vmem>>, vector<128x128xbf16>
    %c0_1 = arith.constant 0 : index
    %c0_2 = arith.constant 0 : index
    %1 = vector.load %arg3[%c0_1, %c0_2] : memref<4x128xf32, #tpu.memory_space<vmem>>, vector<4x128xf32>
    %c0_3 = arith.constant 0 : index
    %c0_4 = arith.constant 0 : index
    %2 = vector.load %arg2[%c0_3, %c0_4] : memref<128x128xbf16, #tpu.memory_space<vmem>>, vector<128x128xbf16>
    %cst = arith.constant dense<0.000000e+00> : vector<128x128xf32>
    %3 = tpu.matmul %0, %2, %cst {dimension_numbers = #tpu.dot_dimension_numbers<[1], [0], [0], [1], [0, 0, 1, 1], [], []>} : vector<128x128xbf16>, vector<128x128xbf16>, vector<128x128xf32> -> vector<128x128xf32>
    %4 = vector.extract_strided_slice %1 {offsets = [0, 0], sizes = [1, 128], strides = [1, 1]} : vector<4x128xf32> to vector<1x128xf32>
    %5 = vector.broadcast %4 : vector<1x128xf32> to vector<128x128xf32>
    %6 = arith.addf %3, %5 : vector<128x128xf32>
    %7 = vector.extract_strided_slice %1 {offsets = [1, 0], sizes = [1, 128], strides = [1, 1]} : vector<4x128xf32> to vector<1x128xf32>
    %8 = vector.extract_strided_slice %1 {offsets = [2, 0], sizes = [1, 128], strides = [1, 1]} : vector<4x128xf32> to vector<1x128xf32>
    %cst_5 = arith.constant dense<0.000000e+00> : vector<128xf32>
    %9 = vector.multi_reduction <add>, %6, %cst_5 [1] : vector<128x128xf32> to vector<128xf32>
    %10 = vector.shape_cast %9 : vector<128xf32> to vector<128x1xf32>
    %cst_6 = arith.constant 3.125000e-02 : f32
    %11 = vector.broadcast %cst_6 : f32 to vector<128x1xf32>
    %12 = arith.mulf %10, %11 : vector<128x1xf32>
    %13 = arith.mulf %6, %6 : vector<128x128xf32>
    %cst_7 = arith.constant dense<0.000000e+00> : vector<128xf32>
    %14 = vector.multi_reduction <add>, %13, %cst_7 [1] : vector<128x128xf32> to vector<128xf32>
    %15 = vector.shape_cast %14 : vector<128xf32> to vector<128x1xf32>
    %cst_8 = arith.constant 3.125000e-02 : f32
    %16 = vector.broadcast %cst_8 : f32 to vector<128x1xf32>
    %17 = arith.mulf %15, %16 : vector<128x1xf32>
    %18 = arith.mulf %12, %12 : vector<128x1xf32>
    %19 = arith.subf %17, %18 : vector<128x1xf32>
    %cst_9 = arith.constant 0.000000e+00 : f32
    %20 = vector.broadcast %cst_9 : f32 to vector<128x1xf32>
    %21 = arith.maximumf %19, %20 : vector<128x1xf32>
    %22 = vector.broadcast %12 : vector<128x1xf32> to vector<128x128xf32>
    %23 = arith.subf %6, %22 : vector<128x128xf32>
    %cst_10 = arith.constant 9.99999974E-6 : f32
    %24 = vector.broadcast %cst_10 : f32 to vector<128x1xf32>
    %25 = arith.addf %21, %24 : vector<128x1xf32>
    %26 = math.rsqrt %25 : vector<128x1xf32>
    %27 = vector.broadcast %26 : vector<128x1xf32> to vector<128x128xf32>
    %28 = arith.mulf %23, %27 : vector<128x128xf32>
    %29 = vector.broadcast %7 : vector<1x128xf32> to vector<128x128xf32>
    %30 = arith.mulf %28, %29 : vector<128x128xf32>
    %31 = vector.broadcast %8 : vector<1x128xf32> to vector<128x128xf32>
    %32 = arith.addf %30, %31 : vector<128x128xf32>
    %33 = arith.negf %32 : vector<128x128xf32>
    %34 = math.exp %33 : vector<128x128xf32>
    %cst_11 = arith.constant 1.000000e+00 : f32
    %35 = vector.broadcast %cst_11 : f32 to vector<128x128xf32>
    %36 = arith.addf %35, %34 : vector<128x128xf32>
    %37 = arith.divf %35, %36 : vector<128x128xf32>
    %38 = arith.mulf %32, %37 : vector<128x128xf32>
    %c0_12 = arith.constant 0 : index
    %c0_13 = arith.constant 0 : index
    %c0_14 = arith.constant 0 : index
    %39 = vector.load %arg4[%c0_12, %c0_13, %c0_14] : memref<3x128x128xbf16, #tpu.memory_space<vmem>>, vector<1x128x128xbf16>
    %40 = vector.shape_cast %39 : vector<1x128x128xbf16> to vector<128x128xbf16>
    %c0_15 = arith.constant 0 : index
    %c0_16 = arith.constant 0 : index
    %c0_17 = arith.constant 0 : index
    %41 = vector.load %arg5[%c0_15, %c0_16, %c0_17] : memref<3x3x128xf32, #tpu.memory_space<vmem>>, vector<1x3x128xf32>
    %42 = vector.shape_cast %41 : vector<1x3x128xf32> to vector<3x128xf32>
    %43 = arith.truncf %38 : vector<128x128xf32> to vector<128x128xbf16>
    %cst_18 = arith.constant dense<0.000000e+00> : vector<128x128xf32>
    %44 = tpu.matmul %43, %40, %cst_18 {dimension_numbers = #tpu.dot_dimension_numbers<[1], [0], [0], [1], [0, 0, 1, 1], [], []>} : vector<128x128xbf16>, vector<128x128xbf16>, vector<128x128xf32> -> vector<128x128xf32>
    %45 = vector.extract_strided_slice %42 {offsets = [0, 0], sizes = [1, 128], strides = [1, 1]} : vector<3x128xf32> to vector<1x128xf32>
    %46 = vector.broadcast %45 : vector<1x128xf32> to vector<128x128xf32>
    %47 = arith.addf %44, %46 : vector<128x128xf32>
    %48 = vector.extract_strided_slice %42 {offsets = [1, 0], sizes = [1, 128], strides = [1, 1]} : vector<3x128xf32> to vector<1x128xf32>
    %49 = vector.extract_strided_slice %42 {offsets = [2, 0], sizes = [1, 128], strides = [1, 1]} : vector<3x128xf32> to vector<1x128xf32>
    %cst_19 = arith.constant dense<0.000000e+00> : vector<128xf32>
    %50 = vector.multi_reduction <add>, %47, %cst_19 [1] : vector<128x128xf32> to vector<128xf32>
    %51 = vector.shape_cast %50 : vector<128xf32> to vector<128x1xf32>
    %cst_20 = arith.constant 3.125000e-02 : f32
    %52 = vector.broadcast %cst_20 : f32 to vector<128x1xf32>
    %53 = arith.mulf %51, %52 : vector<128x1xf32>
    %54 = arith.mulf %47, %47 : vector<128x128xf32>
    %cst_21 = arith.constant dense<0.000000e+00> : vector<128xf32>
    %55 = vector.multi_reduction <add>, %54, %cst_21 [1] : vector<128x128xf32> to vector<128xf32>
    %56 = vector.shape_cast %55 : vector<128xf32> to vector<128x1xf32>
    %cst_22 = arith.constant 3.125000e-02 : f32
    %57 = vector.broadcast %cst_22 : f32 to vector<128x1xf32>
    %58 = arith.mulf %56, %57 : vector<128x1xf32>
    %59 = arith.mulf %53, %53 : vector<128x1xf32>
    %60 = arith.subf %58, %59 : vector<128x1xf32>
    %cst_23 = arith.constant 0.000000e+00 : f32
    %61 = vector.broadcast %cst_23 : f32 to vector<128x1xf32>
    %62 = arith.maximumf %60, %61 : vector<128x1xf32>
    %63 = vector.broadcast %53 : vector<128x1xf32> to vector<128x128xf32>
    %64 = arith.subf %47, %63 : vector<128x128xf32>
    %cst_24 = arith.constant 9.99999974E-6 : f32
    %65 = vector.broadcast %cst_24 : f32 to vector<128x1xf32>
    %66 = arith.addf %62, %65 : vector<128x1xf32>
    %67 = math.rsqrt %66 : vector<128x1xf32>
    %68 = vector.broadcast %67 : vector<128x1xf32> to vector<128x128xf32>
    %69 = arith.mulf %64, %68 : vector<128x128xf32>
    %70 = vector.broadcast %48 : vector<1x128xf32> to vector<128x128xf32>
    %71 = arith.mulf %69, %70 : vector<128x128xf32>
    %72 = vector.broadcast %49 : vector<1x128xf32> to vector<128x128xf32>
    %73 = arith.addf %71, %72 : vector<128x128xf32>
    %74 = arith.negf %73 : vector<128x128xf32>
    %75 = math.exp %74 : vector<128x128xf32>
    %cst_25 = arith.constant 1.000000e+00 : f32
    %76 = vector.broadcast %cst_25 : f32 to vector<128x128xf32>
    %77 = arith.addf %76, %75 : vector<128x128xf32>
    %78 = arith.divf %76, %77 : vector<128x128xf32>
    %79 = arith.mulf %73, %78 : vector<128x128xf32>
    %80 = arith.addf %38, %79 : vector<128x128xf32>
    %cst_26 = arith.constant 0.707106769 : f32
    %81 = vector.broadcast %cst_26 : f32 to vector<128x128xf32>
    %82 = arith.mulf %80, %81 : vector<128x128xf32>
    %c1 = arith.constant 1 : index
    %c0_27 = arith.constant 0 : index
    %c0_28 = arith.constant 0 : index
    %83 = vector.load %arg4[%c1, %c0_27, %c0_28] : memref<3x128x128xbf16, #tpu.memory_space<vmem>>, vector<1x128x128xbf16>
    %84 = vector.shape_cast %83 : vector<1x128x128xbf16> to vector<128x128xbf16>
    %c1_29 = arith.constant 1 : index
    %c0_30 = arith.constant 0 : index
    %c0_31 = arith.constant 0 : index
    %85 = vector.load %arg5[%c1_29, %c0_30, %c0_31] : memref<3x3x128xf32, #tpu.memory_space<vmem>>, vector<1x3x128xf32>
    %86 = vector.shape_cast %85 : vector<1x3x128xf32> to vector<3x128xf32>
    %87 = arith.truncf %82 : vector<128x128xf32> to vector<128x128xbf16>
    %cst_32 = arith.constant dense<0.000000e+00> : vector<128x128xf32>
    %88 = tpu.matmul %87, %84, %cst_32 {dimension_numbers = #tpu.dot_dimension_numbers<[1], [0], [0], [1], [0, 0, 1, 1], [], []>} : vector<128x128xbf16>, vector<128x128xbf16>, vector<128x128xf32> -> vector<128x128xf32>
    %89 = vector.extract_strided_slice %86 {offsets = [0, 0], sizes = [1, 128], strides = [1, 1]} : vector<3x128xf32> to vector<1x128xf32>
    %90 = vector.broadcast %89 : vector<1x128xf32> to vector<128x128xf32>
    %91 = arith.addf %88, %90 : vector<128x128xf32>
    %92 = vector.extract_strided_slice %86 {offsets = [1, 0], sizes = [1, 128], strides = [1, 1]} : vector<3x128xf32> to vector<1x128xf32>
    %93 = vector.extract_strided_slice %86 {offsets = [2, 0], sizes = [1, 128], strides = [1, 1]} : vector<3x128xf32> to vector<1x128xf32>
    %cst_33 = arith.constant dense<0.000000e+00> : vector<128xf32>
    %94 = vector.multi_reduction <add>, %91, %cst_33 [1] : vector<128x128xf32> to vector<128xf32>
    %95 = vector.shape_cast %94 : vector<128xf32> to vector<128x1xf32>
    %cst_34 = arith.constant 3.125000e-02 : f32
    %96 = vector.broadcast %cst_34 : f32 to vector<128x1xf32>
    %97 = arith.mulf %95, %96 : vector<128x1xf32>
    %98 = arith.mulf %91, %91 : vector<128x128xf32>
    %cst_35 = arith.constant dense<0.000000e+00> : vector<128xf32>
    %99 = vector.multi_reduction <add>, %98, %cst_35 [1] : vector<128x128xf32> to vector<128xf32>
    %100 = vector.shape_cast %99 : vector<128xf32> to vector<128x1xf32>
    %cst_36 = arith.constant 3.125000e-02 : f32
    %101 = vector.broadcast %cst_36 : f32 to vector<128x1xf32>
    %102 = arith.mulf %100, %101 : vector<128x1xf32>
    %103 = arith.mulf %97, %97 : vector<128x1xf32>
    %104 = arith.subf %102, %103 : vector<128x1xf32>
    %cst_37 = arith.constant 0.000000e+00 : f32
    %105 = vector.broadcast %cst_37 : f32 to vector<128x1xf32>
    %106 = arith.maximumf %104, %105 : vector<128x1xf32>
    %107 = vector.broadcast %97 : vector<128x1xf32> to vector<128x128xf32>
    %108 = arith.subf %91, %107 : vector<128x128xf32>
    %cst_38 = arith.constant 9.99999974E-6 : f32
    %109 = vector.broadcast %cst_38 : f32 to vector<128x1xf32>
    %110 = arith.addf %106, %109 : vector<128x1xf32>
    %111 = math.rsqrt %110 : vector<128x1xf32>
    %112 = vector.broadcast %111 : vector<128x1xf32> to vector<128x128xf32>
    %113 = arith.mulf %108, %112 : vector<128x128xf32>
    %114 = vector.broadcast %92 : vector<1x128xf32> to vector<128x128xf32>
    %115 = arith.mulf %113, %114 : vector<128x128xf32>
    %116 = vector.broadcast %93 : vector<1x128xf32> to vector<128x128xf32>
    %117 = arith.addf %115, %116 : vector<128x128xf32>
    %118 = arith.negf %117 : vector<128x128xf32>
    %119 = math.exp %118 : vector<128x128xf32>
    %cst_39 = arith.constant 1.000000e+00 : f32
    %120 = vector.broadcast %cst_39 : f32 to vector<128x128xf32>
    %121 = arith.addf %120, %119 : vector<128x128xf32>
    %122 = arith.divf %120, %121 : vector<128x128xf32>
    %123 = arith.mulf %117, %122 : vector<128x128xf32>
    %124 = arith.addf %82, %123 : vector<128x128xf32>
    %cst_40 = arith.constant 0.707106769 : f32
    %125 = vector.broadcast %cst_40 : f32 to vector<128x128xf32>
    %126 = arith.mulf %124, %125 : vector<128x128xf32>
    %c2 = arith.constant 2 : index
    %c0_41 = arith.constant 0 : index
    %c0_42 = arith.constant 0 : index
    %127 = vector.load %arg4[%c2, %c0_41, %c0_42] : memref<3x128x128xbf16, #tpu.memory_space<vmem>>, vector<1x128x128xbf16>
    %128 = vector.shape_cast %127 : vector<1x128x128xbf16> to vector<128x128xbf16>
    %c2_43 = arith.constant 2 : index
    %c0_44 = arith.constant 0 : index
    %c0_45 = arith.constant 0 : index
    %129 = vector.load %arg5[%c2_43, %c0_44, %c0_45] : memref<3x3x128xf32, #tpu.memory_space<vmem>>, vector<1x3x128xf32>
    %130 = vector.shape_cast %129 : vector<1x3x128xf32> to vector<3x128xf32>
    %131 = arith.truncf %126 : vector<128x128xf32> to vector<128x128xbf16>
    %cst_46 = arith.constant dense<0.000000e+00> : vector<128x128xf32>
    %132 = tpu.matmul %131, %128, %cst_46 {dimension_numbers = #tpu.dot_dimension_numbers<[1], [0], [0], [1], [0, 0, 1, 1], [], []>} : vector<128x128xbf16>, vector<128x128xbf16>, vector<128x128xf32> -> vector<128x128xf32>
    %133 = vector.extract_strided_slice %130 {offsets = [0, 0], sizes = [1, 128], strides = [1, 1]} : vector<3x128xf32> to vector<1x128xf32>
    %134 = vector.broadcast %133 : vector<1x128xf32> to vector<128x128xf32>
    %135 = arith.addf %132, %134 : vector<128x128xf32>
    %136 = vector.extract_strided_slice %130 {offsets = [1, 0], sizes = [1, 128], strides = [1, 1]} : vector<3x128xf32> to vector<1x128xf32>
    %137 = vector.extract_strided_slice %130 {offsets = [2, 0], sizes = [1, 128], strides = [1, 1]} : vector<3x128xf32> to vector<1x128xf32>
    %cst_47 = arith.constant dense<0.000000e+00> : vector<128xf32>
    %138 = vector.multi_reduction <add>, %135, %cst_47 [1] : vector<128x128xf32> to vector<128xf32>
    %139 = vector.shape_cast %138 : vector<128xf32> to vector<128x1xf32>
    %cst_48 = arith.constant 3.125000e-02 : f32
    %140 = vector.broadcast %cst_48 : f32 to vector<128x1xf32>
    %141 = arith.mulf %139, %140 : vector<128x1xf32>
    %142 = arith.mulf %135, %135 : vector<128x128xf32>
    %cst_49 = arith.constant dense<0.000000e+00> : vector<128xf32>
    %143 = vector.multi_reduction <add>, %142, %cst_49 [1] : vector<128x128xf32> to vector<128xf32>
    %144 = vector.shape_cast %143 : vector<128xf32> to vector<128x1xf32>
    %cst_50 = arith.constant 3.125000e-02 : f32
    %145 = vector.broadcast %cst_50 : f32 to vector<128x1xf32>
    %146 = arith.mulf %144, %145 : vector<128x1xf32>
    %147 = arith.mulf %141, %141 : vector<128x1xf32>
    %148 = arith.subf %146, %147 : vector<128x1xf32>
    %cst_51 = arith.constant 0.000000e+00 : f32
    %149 = vector.broadcast %cst_51 : f32 to vector<128x1xf32>
    %150 = arith.maximumf %148, %149 : vector<128x1xf32>
    %151 = vector.broadcast %141 : vector<128x1xf32> to vector<128x128xf32>
    %152 = arith.subf %135, %151 : vector<128x128xf32>
    %cst_52 = arith.constant 9.99999974E-6 : f32
    %153 = vector.broadcast %cst_52 : f32 to vector<128x1xf32>
    %154 = arith.addf %150, %153 : vector<128x1xf32>
    %155 = math.rsqrt %154 : vector<128x1xf32>
    %156 = vector.broadcast %155 : vector<128x1xf32> to vector<128x128xf32>
    %157 = arith.mulf %152, %156 : vector<128x128xf32>
    %158 = vector.broadcast %136 : vector<1x128xf32> to vector<128x128xf32>
    %159 = arith.mulf %157, %158 : vector<128x128xf32>
    %160 = vector.broadcast %137 : vector<1x128xf32> to vector<128x128xf32>
    %161 = arith.addf %159, %160 : vector<128x128xf32>
    %162 = arith.negf %161 : vector<128x128xf32>
    %163 = math.exp %162 : vector<128x128xf32>
    %cst_53 = arith.constant 1.000000e+00 : f32
    %164 = vector.broadcast %cst_53 : f32 to vector<128x128xf32>
    %165 = arith.addf %164, %163 : vector<128x128xf32>
    %166 = arith.divf %164, %165 : vector<128x128xf32>
    %167 = arith.mulf %161, %166 : vector<128x128xf32>
    %168 = arith.addf %126, %167 : vector<128x128xf32>
    %cst_54 = arith.constant 0.707106769 : f32
    %169 = vector.broadcast %cst_54 : f32 to vector<128x128xf32>
    %170 = arith.mulf %168, %169 : vector<128x128xf32>
    %171 = arith.addf %170, %38 : vector<128x128xf32>
    %cst_55 = arith.constant 0.707106769 : f32
    %172 = vector.broadcast %cst_55 : f32 to vector<128x128xf32>
    %173 = arith.mulf %171, %172 : vector<128x128xf32>
    %c0_56 = arith.constant 0 : index
    %c0_57 = arith.constant 0 : index
    %174 = vector.load %arg6[%c0_56, %c0_57] : memref<128x256xbf16, #tpu.memory_space<vmem>>, vector<128x256xbf16>
    %c0_58 = arith.constant 0 : index
    %c0_59 = arith.constant 0 : index
    %175 = vector.load %arg7[%c0_58, %c0_59] : memref<3x256xf32, #tpu.memory_space<vmem>>, vector<3x256xf32>
    %176 = arith.truncf %173 : vector<128x128xf32> to vector<128x128xbf16>
    %cst_60 = arith.constant dense<0.000000e+00> : vector<128x256xf32>
    %177 = tpu.matmul %176, %174, %cst_60 {dimension_numbers = #tpu.dot_dimension_numbers<[1], [0], [0], [1], [0, 0, 1, 1], [], []>} : vector<128x128xbf16>, vector<128x256xbf16>, vector<128x256xf32> -> vector<128x256xf32>
    %178 = vector.extract_strided_slice %175 {offsets = [0, 0], sizes = [1, 256], strides = [1, 1]} : vector<3x256xf32> to vector<1x256xf32>
    %179 = vector.broadcast %178 : vector<1x256xf32> to vector<128x256xf32>
    %180 = arith.addf %177, %179 : vector<128x256xf32>
    %181 = vector.extract_strided_slice %175 {offsets = [1, 0], sizes = [1, 256], strides = [1, 1]} : vector<3x256xf32> to vector<1x256xf32>
    %182 = vector.extract_strided_slice %175 {offsets = [2, 0], sizes = [1, 256], strides = [1, 1]} : vector<3x256xf32> to vector<1x256xf32>
    %cst_61 = arith.constant dense<0.000000e+00> : vector<128xf32>
    %183 = vector.multi_reduction <add>, %180, %cst_61 [1] : vector<128x256xf32> to vector<128xf32>
    %184 = vector.shape_cast %183 : vector<128xf32> to vector<128x1xf32>
    %cst_62 = arith.constant 0.0076923077 : f32
    %185 = vector.broadcast %cst_62 : f32 to vector<128x1xf32>
    %186 = arith.mulf %184, %185 : vector<128x1xf32>
    %187 = arith.mulf %180, %180 : vector<128x256xf32>
    %cst_63 = arith.constant dense<0.000000e+00> : vector<128xf32>
    %188 = vector.multi_reduction <add>, %187, %cst_63 [1] : vector<128x256xf32> to vector<128xf32>
    %189 = vector.shape_cast %188 : vector<128xf32> to vector<128x1xf32>
    %cst_64 = arith.constant 0.0076923077 : f32
    %190 = vector.broadcast %cst_64 : f32 to vector<128x1xf32>
    %191 = arith.mulf %189, %190 : vector<128x1xf32>
    %192 = arith.mulf %186, %186 : vector<128x1xf32>
    %193 = arith.subf %191, %192 : vector<128x1xf32>
    %cst_65 = arith.constant 0.000000e+00 : f32
    %194 = vector.broadcast %cst_65 : f32 to vector<128x1xf32>
    %195 = arith.maximumf %193, %194 : vector<128x1xf32>
    %196 = vector.broadcast %186 : vector<128x1xf32> to vector<128x256xf32>
    %197 = arith.subf %180, %196 : vector<128x256xf32>
    %cst_66 = arith.constant 9.99999974E-6 : f32
    %198 = vector.broadcast %cst_66 : f32 to vector<128x1xf32>
    %199 = arith.addf %195, %198 : vector<128x1xf32>
    %200 = math.rsqrt %199 : vector<128x1xf32>
    %201 = vector.broadcast %200 : vector<128x1xf32> to vector<128x256xf32>
    %202 = arith.mulf %197, %201 : vector<128x256xf32>
    %203 = vector.broadcast %181 : vector<1x256xf32> to vector<128x256xf32>
    %204 = arith.mulf %202, %203 : vector<128x256xf32>
    %205 = vector.broadcast %182 : vector<1x256xf32> to vector<128x256xf32>
    %206 = arith.addf %204, %205 : vector<128x256xf32>
    %207 = arith.negf %206 : vector<128x256xf32>
    %208 = math.exp %207 : vector<128x256xf32>
    %cst_67 = arith.constant 1.000000e+00 : f32
    %209 = vector.broadcast %cst_67 : f32 to vector<128x256xf32>
    %210 = arith.addf %209, %208 : vector<128x256xf32>
    %211 = arith.divf %209, %210 : vector<128x256xf32>
    %212 = arith.mulf %206, %211 : vector<128x256xf32>
    %c0_68 = arith.constant 0 : index
    %c0_69 = arith.constant 0 : index
    %213 = vector.load %arg8[%c0_68, %c0_69] : memref<256x128xbf16, #tpu.memory_space<vmem>>, vector<256x128xbf16>
    %c0_70 = arith.constant 0 : index
    %c0_71 = arith.constant 0 : index
    %214 = vector.load %arg9[%c0_70, %c0_71] : memref<3x128xf32, #tpu.memory_space<vmem>>, vector<3x128xf32>
    %215 = arith.truncf %212 : vector<128x256xf32> to vector<128x256xbf16>
    %cst_72 = arith.constant dense<0.000000e+00> : vector<128x128xf32>
    %216 = tpu.matmul %215, %213, %cst_72 {dimension_numbers = #tpu.dot_dimension_numbers<[1], [0], [0], [1], [0, 0, 1, 1], [], []>} : vector<128x256xbf16>, vector<256x128xbf16>, vector<128x128xf32> -> vector<128x128xf32>
    %217 = vector.extract_strided_slice %214 {offsets = [0, 0], sizes = [1, 128], strides = [1, 1]} : vector<3x128xf32> to vector<1x128xf32>
    %218 = vector.broadcast %217 : vector<1x128xf32> to vector<128x128xf32>
    %219 = arith.addf %216, %218 : vector<128x128xf32>
    %220 = vector.extract_strided_slice %214 {offsets = [1, 0], sizes = [1, 128], strides = [1, 1]} : vector<3x128xf32> to vector<1x128xf32>
    %221 = vector.extract_strided_slice %214 {offsets = [2, 0], sizes = [1, 128], strides = [1, 1]} : vector<3x128xf32> to vector<1x128xf32>
    %cst_73 = arith.constant dense<0.000000e+00> : vector<128xf32>
    %222 = vector.multi_reduction <add>, %219, %cst_73 [1] : vector<128x128xf32> to vector<128xf32>
    %223 = vector.shape_cast %222 : vector<128xf32> to vector<128x1xf32>
    %cst_74 = arith.constant 3.125000e-02 : f32
    %224 = vector.broadcast %cst_74 : f32 to vector<128x1xf32>
    %225 = arith.mulf %223, %224 : vector<128x1xf32>
    %226 = arith.mulf %219, %219 : vector<128x128xf32>
    %cst_75 = arith.constant dense<0.000000e+00> : vector<128xf32>
    %227 = vector.multi_reduction <add>, %226, %cst_75 [1] : vector<128x128xf32> to vector<128xf32>
    %228 = vector.shape_cast %227 : vector<128xf32> to vector<128x1xf32>
    %cst_76 = arith.constant 3.125000e-02 : f32
    %229 = vector.broadcast %cst_76 : f32 to vector<128x1xf32>
    %230 = arith.mulf %228, %229 : vector<128x1xf32>
    %231 = arith.mulf %225, %225 : vector<128x1xf32>
    %232 = arith.subf %230, %231 : vector<128x1xf32>
    %cst_77 = arith.constant 0.000000e+00 : f32
    %233 = vector.broadcast %cst_77 : f32 to vector<128x1xf32>
    %234 = arith.maximumf %232, %233 : vector<128x1xf32>
    %235 = vector.broadcast %225 : vector<128x1xf32> to vector<128x128xf32>
    %236 = arith.subf %219, %235 : vector<128x128xf32>
    %cst_78 = arith.constant 9.99999974E-6 : f32
    %237 = vector.broadcast %cst_78 : f32 to vector<128x1xf32>
    %238 = arith.addf %234, %237 : vector<128x1xf32>
    %239 = math.rsqrt %238 : vector<128x1xf32>
    %240 = vector.broadcast %239 : vector<128x1xf32> to vector<128x128xf32>
    %241 = arith.mulf %236, %240 : vector<128x128xf32>
    %242 = vector.broadcast %220 : vector<1x128xf32> to vector<128x128xf32>
    %243 = arith.mulf %241, %242 : vector<128x128xf32>
    %244 = vector.broadcast %221 : vector<1x128xf32> to vector<128x128xf32>
    %245 = arith.addf %243, %244 : vector<128x128xf32>
    %246 = arith.negf %245 : vector<128x128xf32>
    %247 = math.exp %246 : vector<128x128xf32>
    %cst_79 = arith.constant 1.000000e+00 : f32
    %248 = vector.broadcast %cst_79 : f32 to vector<128x128xf32>
    %249 = arith.addf %248, %247 : vector<128x128xf32>
    %250 = arith.divf %248, %249 : vector<128x128xf32>
    %251 = arith.mulf %245, %250 : vector<128x128xf32>
    %c0_80 = arith.constant 0 : index
    %c0_81 = arith.constant 0 : index
    %252 = vector.load %arg12[%c0_80, %c0_81] : memref<3x128xf32, #tpu.memory_space<vmem>>, vector<3x128xf32>
    %253 = arith.truncf %173 : vector<128x128xf32> to vector<128x128xbf16>
    %c0_82 = arith.constant 0 : index
    %c0_83 = arith.constant 0 : index
    %254 = vector.load %arg10[%c0_82, %c0_83] : memref<128x128xbf16, #tpu.memory_space<vmem>>, vector<128x128xbf16>
    %cst_84 = arith.constant dense<0.000000e+00> : vector<128x128xf32>
    %255 = tpu.matmul %253, %254, %cst_84 {dimension_numbers = #tpu.dot_dimension_numbers<[1], [0], [0], [1], [0, 0, 1, 1], [], []>} : vector<128x128xbf16>, vector<128x128xbf16>, vector<128x128xf32> -> vector<128x128xf32>
    %256 = arith.truncf %251 : vector<128x128xf32> to vector<128x128xbf16>
    %c0_85 = arith.constant 0 : index
    %c0_86 = arith.constant 0 : index
    %257 = vector.load %arg11[%c0_85, %c0_86] : memref<128x128xbf16, #tpu.memory_space<vmem>>, vector<128x128xbf16>
    %cst_87 = arith.constant dense<0.000000e+00> : vector<128x128xf32>
    %258 = tpu.matmul %256, %257, %cst_87 {dimension_numbers = #tpu.dot_dimension_numbers<[1], [0], [0], [1], [0, 0, 1, 1], [], []>} : vector<128x128xbf16>, vector<128x128xbf16>, vector<128x128xf32> -> vector<128x128xf32>
    %259 = arith.addf %255, %258 : vector<128x128xf32>
    %260 = vector.extract_strided_slice %252 {offsets = [0, 0], sizes = [1, 128], strides = [1, 1]} : vector<3x128xf32> to vector<1x128xf32>
    %261 = vector.broadcast %260 : vector<1x128xf32> to vector<128x128xf32>
    %262 = arith.addf %259, %261 : vector<128x128xf32>
    %263 = vector.extract_strided_slice %252 {offsets = [1, 0], sizes = [1, 128], strides = [1, 1]} : vector<3x128xf32> to vector<1x128xf32>
    %264 = vector.extract_strided_slice %252 {offsets = [2, 0], sizes = [1, 128], strides = [1, 1]} : vector<3x128xf32> to vector<1x128xf32>
    %cst_88 = arith.constant dense<0.000000e+00> : vector<128xf32>
    %265 = vector.multi_reduction <add>, %262, %cst_88 [1] : vector<128x128xf32> to vector<128xf32>
    %266 = vector.shape_cast %265 : vector<128xf32> to vector<128x1xf32>
    %cst_89 = arith.constant 3.125000e-02 : f32
    %267 = vector.broadcast %cst_89 : f32 to vector<128x1xf32>
    %268 = arith.mulf %266, %267 : vector<128x1xf32>
    %269 = arith.mulf %262, %262 : vector<128x128xf32>
    %cst_90 = arith.constant dense<0.000000e+00> : vector<128xf32>
    %270 = vector.multi_reduction <add>, %269, %cst_90 [1] : vector<128x128xf32> to vector<128xf32>
    %271 = vector.shape_cast %270 : vector<128xf32> to vector<128x1xf32>
    %cst_91 = arith.constant 3.125000e-02 : f32
    %272 = vector.broadcast %cst_91 : f32 to vector<128x1xf32>
    %273 = arith.mulf %271, %272 : vector<128x1xf32>
    %274 = arith.mulf %268, %268 : vector<128x1xf32>
    %275 = arith.subf %273, %274 : vector<128x1xf32>
    %cst_92 = arith.constant 0.000000e+00 : f32
    %276 = vector.broadcast %cst_92 : f32 to vector<128x1xf32>
    %277 = arith.maximumf %275, %276 : vector<128x1xf32>
    %278 = vector.broadcast %268 : vector<128x1xf32> to vector<128x128xf32>
    %279 = arith.subf %262, %278 : vector<128x128xf32>
    %cst_93 = arith.constant 9.99999974E-6 : f32
    %280 = vector.broadcast %cst_93 : f32 to vector<128x1xf32>
    %281 = arith.addf %277, %280 : vector<128x1xf32>
    %282 = math.rsqrt %281 : vector<128x1xf32>
    %283 = vector.broadcast %282 : vector<128x1xf32> to vector<128x128xf32>
    %284 = arith.mulf %279, %283 : vector<128x128xf32>
    %285 = vector.broadcast %263 : vector<1x128xf32> to vector<128x128xf32>
    %286 = arith.mulf %284, %285 : vector<128x128xf32>
    %287 = vector.broadcast %264 : vector<1x128xf32> to vector<128x128xf32>
    %288 = arith.addf %286, %287 : vector<128x128xf32>
    %289 = arith.negf %288 : vector<128x128xf32>
    %290 = math.exp %289 : vector<128x128xf32>
    %cst_94 = arith.constant 1.000000e+00 : f32
    %291 = vector.broadcast %cst_94 : f32 to vector<128x128xf32>
    %292 = arith.addf %291, %290 : vector<128x128xf32>
    %293 = arith.divf %291, %292 : vector<128x128xf32>
    %294 = arith.mulf %288, %293 : vector<128x128xf32>
    %c0_95 = arith.constant 0 : index
    %c0_96 = arith.constant 0 : index
    %c0_97 = arith.constant 0 : index
    %295 = vector.load %arg13[%c0_95, %c0_96, %c0_97] : memref<3x128x128xbf16, #tpu.memory_space<vmem>>, vector<1x128x128xbf16>
    %296 = vector.shape_cast %295 : vector<1x128x128xbf16> to vector<128x128xbf16>
    %c0_98 = arith.constant 0 : index
    %c0_99 = arith.constant 0 : index
    %c0_100 = arith.constant 0 : index
    %297 = vector.load %arg14[%c0_98, %c0_99, %c0_100] : memref<3x3x128xf32, #tpu.memory_space<vmem>>, vector<1x3x128xf32>
    %298 = vector.shape_cast %297 : vector<1x3x128xf32> to vector<3x128xf32>
    %299 = arith.truncf %294 : vector<128x128xf32> to vector<128x128xbf16>
    %cst_101 = arith.constant dense<0.000000e+00> : vector<128x128xf32>
    %300 = tpu.matmul %299, %296, %cst_101 {dimension_numbers = #tpu.dot_dimension_numbers<[1], [0], [0], [1], [0, 0, 1, 1], [], []>} : vector<128x128xbf16>, vector<128x128xbf16>, vector<128x128xf32> -> vector<128x128xf32>
    %301 = vector.extract_strided_slice %298 {offsets = [0, 0], sizes = [1, 128], strides = [1, 1]} : vector<3x128xf32> to vector<1x128xf32>
    %302 = vector.broadcast %301 : vector<1x128xf32> to vector<128x128xf32>
    %303 = arith.addf %300, %302 : vector<128x128xf32>
    %304 = vector.extract_strided_slice %298 {offsets = [1, 0], sizes = [1, 128], strides = [1, 1]} : vector<3x128xf32> to vector<1x128xf32>
    %305 = vector.extract_strided_slice %298 {offsets = [2, 0], sizes = [1, 128], strides = [1, 1]} : vector<3x128xf32> to vector<1x128xf32>
    %cst_102 = arith.constant dense<0.000000e+00> : vector<128xf32>
    %306 = vector.multi_reduction <add>, %303, %cst_102 [1] : vector<128x128xf32> to vector<128xf32>
    %307 = vector.shape_cast %306 : vector<128xf32> to vector<128x1xf32>
    %cst_103 = arith.constant 3.125000e-02 : f32
    %308 = vector.broadcast %cst_103 : f32 to vector<128x1xf32>
    %309 = arith.mulf %307, %308 : vector<128x1xf32>
    %310 = arith.mulf %303, %303 : vector<128x128xf32>
    %cst_104 = arith.constant dense<0.000000e+00> : vector<128xf32>
    %311 = vector.multi_reduction <add>, %310, %cst_104 [1] : vector<128x128xf32> to vector<128xf32>
    %312 = vector.shape_cast %311 : vector<128xf32> to vector<128x1xf32>
    %cst_105 = arith.constant 3.125000e-02 : f32
    %313 = vector.broadcast %cst_105 : f32 to vector<128x1xf32>
    %314 = arith.mulf %312, %313 : vector<128x1xf32>
    %315 = arith.mulf %309, %309 : vector<128x1xf32>
    %316 = arith.subf %314, %315 : vector<128x1xf32>
    %cst_106 = arith.constant 0.000000e+00 : f32
    %317 = vector.broadcast %cst_106 : f32 to vector<128x1xf32>
    %318 = arith.maximumf %316, %317 : vector<128x1xf32>
    %319 = vector.broadcast %309 : vector<128x1xf32> to vector<128x128xf32>
    %320 = arith.subf %303, %319 : vector<128x128xf32>
    %cst_107 = arith.constant 9.99999974E-6 : f32
    %321 = vector.broadcast %cst_107 : f32 to vector<128x1xf32>
    %322 = arith.addf %318, %321 : vector<128x1xf32>
    %323 = math.rsqrt %322 : vector<128x1xf32>
    %324 = vector.broadcast %323 : vector<128x1xf32> to vector<128x128xf32>
    %325 = arith.mulf %320, %324 : vector<128x128xf32>
    %326 = vector.broadcast %304 : vector<1x128xf32> to vector<128x128xf32>
    %327 = arith.mulf %325, %326 : vector<128x128xf32>
    %328 = vector.broadcast %305 : vector<1x128xf32> to vector<128x128xf32>
    %329 = arith.addf %327, %328 : vector<128x128xf32>
    %330 = arith.negf %329 : vector<128x128xf32>
    %331 = math.exp %330 : vector<128x128xf32>
    %cst_108 = arith.constant 1.000000e+00 : f32
    %332 = vector.broadcast %cst_108 : f32 to vector<128x128xf32>
    %333 = arith.addf %332, %331 : vector<128x128xf32>
    %334 = arith.divf %332, %333 : vector<128x128xf32>
    %335 = arith.mulf %329, %334 : vector<128x128xf32>
    %336 = arith.addf %294, %335 : vector<128x128xf32>
    %cst_109 = arith.constant 0.707106769 : f32
    %337 = vector.broadcast %cst_109 : f32 to vector<128x128xf32>
    %338 = arith.mulf %336, %337 : vector<128x128xf32>
    %c1_110 = arith.constant 1 : index
    %c0_111 = arith.constant 0 : index
    %c0_112 = arith.constant 0 : index
    %339 = vector.load %arg13[%c1_110, %c0_111, %c0_112] : memref<3x128x128xbf16, #tpu.memory_space<vmem>>, vector<1x128x128xbf16>
    %340 = vector.shape_cast %339 : vector<1x128x128xbf16> to vector<128x128xbf16>
    %c1_113 = arith.constant 1 : index
    %c0_114 = arith.constant 0 : index
    %c0_115 = arith.constant 0 : index
    %341 = vector.load %arg14[%c1_113, %c0_114, %c0_115] : memref<3x3x128xf32, #tpu.memory_space<vmem>>, vector<1x3x128xf32>
    %342 = vector.shape_cast %341 : vector<1x3x128xf32> to vector<3x128xf32>
    %343 = arith.truncf %338 : vector<128x128xf32> to vector<128x128xbf16>
    %cst_116 = arith.constant dense<0.000000e+00> : vector<128x128xf32>
    %344 = tpu.matmul %343, %340, %cst_116 {dimension_numbers = #tpu.dot_dimension_numbers<[1], [0], [0], [1], [0, 0, 1, 1], [], []>} : vector<128x128xbf16>, vector<128x128xbf16>, vector<128x128xf32> -> vector<128x128xf32>
    %345 = vector.extract_strided_slice %342 {offsets = [0, 0], sizes = [1, 128], strides = [1, 1]} : vector<3x128xf32> to vector<1x128xf32>
    %346 = vector.broadcast %345 : vector<1x128xf32> to vector<128x128xf32>
    %347 = arith.addf %344, %346 : vector<128x128xf32>
    %348 = vector.extract_strided_slice %342 {offsets = [1, 0], sizes = [1, 128], strides = [1, 1]} : vector<3x128xf32> to vector<1x128xf32>
    %349 = vector.extract_strided_slice %342 {offsets = [2, 0], sizes = [1, 128], strides = [1, 1]} : vector<3x128xf32> to vector<1x128xf32>
    %cst_117 = arith.constant dense<0.000000e+00> : vector<128xf32>
    %350 = vector.multi_reduction <add>, %347, %cst_117 [1] : vector<128x128xf32> to vector<128xf32>
    %351 = vector.shape_cast %350 : vector<128xf32> to vector<128x1xf32>
    %cst_118 = arith.constant 3.125000e-02 : f32
    %352 = vector.broadcast %cst_118 : f32 to vector<128x1xf32>
    %353 = arith.mulf %351, %352 : vector<128x1xf32>
    %354 = arith.mulf %347, %347 : vector<128x128xf32>
    %cst_119 = arith.constant dense<0.000000e+00> : vector<128xf32>
    %355 = vector.multi_reduction <add>, %354, %cst_119 [1] : vector<128x128xf32> to vector<128xf32>
    %356 = vector.shape_cast %355 : vector<128xf32> to vector<128x1xf32>
    %cst_120 = arith.constant 3.125000e-02 : f32
    %357 = vector.broadcast %cst_120 : f32 to vector<128x1xf32>
    %358 = arith.mulf %356, %357 : vector<128x1xf32>
    %359 = arith.mulf %353, %353 : vector<128x1xf32>
    %360 = arith.subf %358, %359 : vector<128x1xf32>
    %cst_121 = arith.constant 0.000000e+00 : f32
    %361 = vector.broadcast %cst_121 : f32 to vector<128x1xf32>
    %362 = arith.maximumf %360, %361 : vector<128x1xf32>
    %363 = vector.broadcast %353 : vector<128x1xf32> to vector<128x128xf32>
    %364 = arith.subf %347, %363 : vector<128x128xf32>
    %cst_122 = arith.constant 9.99999974E-6 : f32
    %365 = vector.broadcast %cst_122 : f32 to vector<128x1xf32>
    %366 = arith.addf %362, %365 : vector<128x1xf32>
    %367 = math.rsqrt %366 : vector<128x1xf32>
    %368 = vector.broadcast %367 : vector<128x1xf32> to vector<128x128xf32>
    %369 = arith.mulf %364, %368 : vector<128x128xf32>
    %370 = vector.broadcast %348 : vector<1x128xf32> to vector<128x128xf32>
    %371 = arith.mulf %369, %370 : vector<128x128xf32>
    %372 = vector.broadcast %349 : vector<1x128xf32> to vector<128x128xf32>
    %373 = arith.addf %371, %372 : vector<128x128xf32>
    %374 = arith.negf %373 : vector<128x128xf32>
    %375 = math.exp %374 : vector<128x128xf32>
    %cst_123 = arith.constant 1.000000e+00 : f32
    %376 = vector.broadcast %cst_123 : f32 to vector<128x128xf32>
    %377 = arith.addf %376, %375 : vector<128x128xf32>
    %378 = arith.divf %376, %377 : vector<128x128xf32>
    %379 = arith.mulf %373, %378 : vector<128x128xf32>
    %380 = arith.addf %338, %379 : vector<128x128xf32>
    %cst_124 = arith.constant 0.707106769 : f32
    %381 = vector.broadcast %cst_124 : f32 to vector<128x128xf32>
    %382 = arith.mulf %380, %381 : vector<128x128xf32>
    %c2_125 = arith.constant 2 : index
    %c0_126 = arith.constant 0 : index
    %c0_127 = arith.constant 0 : index
    %383 = vector.load %arg13[%c2_125, %c0_126, %c0_127] : memref<3x128x128xbf16, #tpu.memory_space<vmem>>, vector<1x128x128xbf16>
    %384 = vector.shape_cast %383 : vector<1x128x128xbf16> to vector<128x128xbf16>
    %c2_128 = arith.constant 2 : index
    %c0_129 = arith.constant 0 : index
    %c0_130 = arith.constant 0 : index
    %385 = vector.load %arg14[%c2_128, %c0_129, %c0_130] : memref<3x3x128xf32, #tpu.memory_space<vmem>>, vector<1x3x128xf32>
    %386 = vector.shape_cast %385 : vector<1x3x128xf32> to vector<3x128xf32>
    %387 = arith.truncf %382 : vector<128x128xf32> to vector<128x128xbf16>
    %cst_131 = arith.constant dense<0.000000e+00> : vector<128x128xf32>
    %388 = tpu.matmul %387, %384, %cst_131 {dimension_numbers = #tpu.dot_dimension_numbers<[1], [0], [0], [1], [0, 0, 1, 1], [], []>} : vector<128x128xbf16>, vector<128x128xbf16>, vector<128x128xf32> -> vector<128x128xf32>
    %389 = vector.extract_strided_slice %386 {offsets = [0, 0], sizes = [1, 128], strides = [1, 1]} : vector<3x128xf32> to vector<1x128xf32>
    %390 = vector.broadcast %389 : vector<1x128xf32> to vector<128x128xf32>
    %391 = arith.addf %388, %390 : vector<128x128xf32>
    %392 = vector.extract_strided_slice %386 {offsets = [1, 0], sizes = [1, 128], strides = [1, 1]} : vector<3x128xf32> to vector<1x128xf32>
    %393 = vector.extract_strided_slice %386 {offsets = [2, 0], sizes = [1, 128], strides = [1, 1]} : vector<3x128xf32> to vector<1x128xf32>
    %cst_132 = arith.constant dense<0.000000e+00> : vector<128xf32>
    %394 = vector.multi_reduction <add>, %391, %cst_132 [1] : vector<128x128xf32> to vector<128xf32>
    %395 = vector.shape_cast %394 : vector<128xf32> to vector<128x1xf32>
    %cst_133 = arith.constant 3.125000e-02 : f32
    %396 = vector.broadcast %cst_133 : f32 to vector<128x1xf32>
    %397 = arith.mulf %395, %396 : vector<128x1xf32>
    %398 = arith.mulf %391, %391 : vector<128x128xf32>
    %cst_134 = arith.constant dense<0.000000e+00> : vector<128xf32>
    %399 = vector.multi_reduction <add>, %398, %cst_134 [1] : vector<128x128xf32> to vector<128xf32>
    %400 = vector.shape_cast %399 : vector<128xf32> to vector<128x1xf32>
    %cst_135 = arith.constant 3.125000e-02 : f32
    %401 = vector.broadcast %cst_135 : f32 to vector<128x1xf32>
    %402 = arith.mulf %400, %401 : vector<128x1xf32>
    %403 = arith.mulf %397, %397 : vector<128x1xf32>
    %404 = arith.subf %402, %403 : vector<128x1xf32>
    %cst_136 = arith.constant 0.000000e+00 : f32
    %405 = vector.broadcast %cst_136 : f32 to vector<128x1xf32>
    %406 = arith.maximumf %404, %405 : vector<128x1xf32>
    %407 = vector.broadcast %397 : vector<128x1xf32> to vector<128x128xf32>
    %408 = arith.subf %391, %407 : vector<128x128xf32>
    %cst_137 = arith.constant 9.99999974E-6 : f32
    %409 = vector.broadcast %cst_137 : f32 to vector<128x1xf32>
    %410 = arith.addf %406, %409 : vector<128x1xf32>
    %411 = math.rsqrt %410 : vector<128x1xf32>
    %412 = vector.broadcast %411 : vector<128x1xf32> to vector<128x128xf32>
    %413 = arith.mulf %408, %412 : vector<128x128xf32>
    %414 = vector.broadcast %392 : vector<1x128xf32> to vector<128x128xf32>
    %415 = arith.mulf %413, %414 : vector<128x128xf32>
    %416 = vector.broadcast %393 : vector<1x128xf32> to vector<128x128xf32>
    %417 = arith.addf %415, %416 : vector<128x128xf32>
    %418 = arith.negf %417 : vector<128x128xf32>
    %419 = math.exp %418 : vector<128x128xf32>
    %cst_138 = arith.constant 1.000000e+00 : f32
    %420 = vector.broadcast %cst_138 : f32 to vector<128x128xf32>
    %421 = arith.addf %420, %419 : vector<128x128xf32>
    %422 = arith.divf %420, %421 : vector<128x128xf32>
    %423 = arith.mulf %417, %422 : vector<128x128xf32>
    %424 = arith.addf %382, %423 : vector<128x128xf32>
    %cst_139 = arith.constant 0.707106769 : f32
    %425 = vector.broadcast %cst_139 : f32 to vector<128x128xf32>
    %426 = arith.mulf %424, %425 : vector<128x128xf32>
    %427 = arith.addf %426, %294 : vector<128x128xf32>
    %cst_140 = arith.constant 0.707106769 : f32
    %428 = vector.broadcast %cst_140 : f32 to vector<128x128xf32>
    %429 = arith.mulf %427, %428 : vector<128x128xf32>
    %430 = vector.extract_strided_slice %1 {offsets = [3, 0], sizes = [1, 128], strides = [1, 1]} : vector<4x128xf32> to vector<1x128xf32>
    %431 = vector.broadcast %430 : vector<1x128xf32> to vector<128x128xf32>
    %432 = arith.mulf %173, %431 : vector<128x128xf32>
    %cst_141 = arith.constant dense<0.000000e+00> : vector<128xf32>
    %433 = vector.multi_reduction <add>, %432, %cst_141 [1] : vector<128x128xf32> to vector<128xf32>
    %434 = vector.shape_cast %433 : vector<128xf32> to vector<128x1xf32>
    %435 = arith.truncf %429 : vector<128x128xf32> to vector<128x128xbf16>
    %c0_142 = arith.constant 0 : index
    %c0_143 = arith.constant 0 : index
    %436 = vector.load %arg15[%c0_142, %c0_143] : memref<128x384xbf16, #tpu.memory_space<vmem>>, vector<128x384xbf16>
    %cst_144 = arith.constant dense<0.000000e+00> : vector<128x384xf32>
    %437 = tpu.matmul %435, %436, %cst_144 {dimension_numbers = #tpu.dot_dimension_numbers<[1], [0], [0], [1], [0, 0, 1, 1], [], []>} : vector<128x128xbf16>, vector<128x384xbf16>, vector<128x384xf32> -> vector<128x384xf32>
    %c0_145 = arith.constant 0 : index
    %c0_146 = arith.constant 0 : index
    %438 = vector.load %arg16[%c0_145, %c0_146] : memref<2x384xf32, #tpu.memory_space<vmem>>, vector<1x384xf32>
    %439 = vector.broadcast %438 : vector<1x384xf32> to vector<128x384xf32>
    %440 = arith.addf %437, %439 : vector<128x384xf32>
    %c1_147 = arith.constant 1 : index
    %c0_148 = arith.constant 0 : index
    %441 = vector.load %arg16[%c1_147, %c0_148] : memref<2x384xf32, #tpu.memory_space<vmem>>, vector<1x384xf32>
    %442 = vector.broadcast %434 : vector<128x1xf32> to vector<128x384xf32>
    %443 = vector.broadcast %441 : vector<1x384xf32> to vector<128x384xf32>
    %444 = arith.mulf %442, %443 : vector<128x384xf32>
    %445 = arith.addf %440, %444 : vector<128x384xf32>
    %c0_149 = arith.constant 0 : index
    %c0_150 = arith.constant 0 : index
    %446 = vector.load %arg17[%c0_149, %c0_150] : memref<128x384xf32, #tpu.memory_space<vmem>>, vector<128x384xf32>
    tpu.vector_store %arg17[%c0_149, %c0_150], %445 {strides = array<i32>} : memref<128x384xf32, #tpu.memory_space<vmem>>, vector<128x384xf32>,
    return
  }
  func.func @transform_0(%arg0: i32) -> (i32, i32) {
    %c0_i32 = arith.constant 0 : i32
    %c0_i32_0 = arith.constant 0 : i32
    return %arg0, %c0_i32 : i32, i32
  }
  func.func @transform_1(%arg0: i32) -> (i32, i32) {
    %c0_i32 = arith.constant 0 : i32
    %c0_i32_0 = arith.constant 0 : i32
    %c0_i32_1 = arith.constant 0 : i32
    return %c0_i32, %c0_i32_0 : i32, i32
  }
  func.func @transform_2(%arg0: i32) -> (i32, i32) {
    %c0_i32 = arith.constant 0 : i32
    %c0_i32_0 = arith.constant 0 : i32
    %c0_i32_1 = arith.constant 0 : i32
    return %c0_i32, %c0_i32_0 : i32, i32
  }
  func.func @transform_3(%arg0: i32) -> (i32, i32, i32) {
    %c0_i32 = arith.constant 0 : i32
    %c0_i32_0 = arith.constant 0 : i32
    %c0_i32_1 = arith.constant 0 : i32
    %c0_i32_2 = arith.constant 0 : i32
    return %c0_i32, %c0_i32_0, %c0_i32_1 : i32, i32, i32
  }
  func.func @transform_4(%arg0: i32) -> (i32, i32, i32) {
    %c0_i32 = arith.constant 0 : i32
    %c0_i32_0 = arith.constant 0 : i32
    %c0_i32_1 = arith.constant 0 : i32
    %c0_i32_2 = arith.constant 0 : i32
    return %c0_i32, %c0_i32_0, %c0_i32_1 : i32, i32, i32
  }
  func.func @transform_5(%arg0: i32) -> (i32, i32) {
    %c0_i32 = arith.constant 0 : i32
    %c0_i32_0 = arith.constant 0 : i32
    %c0_i32_1 = arith.constant 0 : i32
    return %c0_i32, %c0_i32_0 : i32, i32
  }
  func.func @transform_6(%arg0: i32) -> (i32, i32) {
    %c0_i32 = arith.constant 0 : i32
    %c0_i32_0 = arith.constant 0 : i32
    %c0_i32_1 = arith.constant 0 : i32
    return %c0_i32, %c0_i32_0 : i32, i32
  }
  func.func @transform_7(%arg0: i32) -> (i32, i32) {
    %c0_i32 = arith.constant 0 : i32
    %c0_i32_0 = arith.constant 0 : i32
    %c0_i32_1 = arith.constant 0 : i32
    return %c0_i32, %c0_i32_0 : i32, i32
  }
  func.func @transform_8(%arg0: i32) -> (i32, i32) {
    %c0_i32 = arith.constant 0 : i32
    %c0_i32_0 = arith.constant 0 : i32
    %c0_i32_1 = arith.constant 0 : i32
    return %c0_i32, %c0_i32_0 : i32, i32
  }
  func.func @transform_9(%arg0: i32) -> (i32, i32) {
    %c0_i32 = arith.constant 0 : i32
    %c0_i32_0 = arith.constant 0 : i32
    %c0_i32_1 = arith.constant 0 : i32
    return %c0_i32, %c0_i32_0 : i32, i32
  }
  func.func @transform_10(%arg0: i32) -> (i32, i32) {
    %c0_i32 = arith.constant 0 : i32
    %c0_i32_0 = arith.constant 0 : i32
    %c0_i32_1 = arith.constant 0 : i32
    return %c0_i32, %c0_i32_0 : i32, i32
  }
  func.func @transform_11(%arg0: i32) -> (i32, i32) {
    %c0_i32 = arith.constant 0 : i32
    %c0_i32_0 = arith.constant 0 : i32
    %c0_i32_1 = arith.constant 0 : i32
    return %c0_i32, %c0_i32_0 : i32, i32
  }
  func.func @transform_12(%arg0: i32) -> (i32, i32, i32) {
    %c0_i32 = arith.constant 0 : i32
    %c0_i32_0 = arith.constant 0 : i32
    %c0_i32_1 = arith.constant 0 : i32
    %c0_i32_2 = arith.constant 0 : i32
    return %c0_i32, %c0_i32_0, %c0_i32_1 : i32, i32, i32
  }
  func.func @transform_13(%arg0: i32) -> (i32, i32, i32) {
    %c0_i32 = arith.constant 0 : i32
    %c0_i32_0 = arith.constant 0 : i32
    %c0_i32_1 = arith.constant 0 : i32
    %c0_i32_2 = arith.constant 0 : i32
    return %c0_i32, %c0_i32_0, %c0_i32_1 : i32, i32, i32
  }
  func.func @transform_14(%arg0: i32) -> (i32, i32) {
    %c0_i32 = arith.constant 0 : i32
    %c0_i32_0 = arith.constant 0 : i32
    %c0_i32_1 = arith.constant 0 : i32
    return %c0_i32, %c0_i32_0 : i32, i32
  }
  func.func @transform_15(%arg0: i32) -> (i32, i32) {
    %c0_i32 = arith.constant 0 : i32
    %c0_i32_0 = arith.constant 0 : i32
    %c0_i32_1 = arith.constant 0 : i32
    return %c0_i32, %c0_i32_0 : i32, i32
  }
  func.func @transform_16(%arg0: i32) -> (i32, i32) {
    %c0_i32 = arith.constant 0 : i32
    %c0_i32_0 = arith.constant 0 : i32
    return %arg0, %c0_i32 : i32, i32
  }
}

</mosaic_0001>

<bundles_post_ra>
// kernel: tpu_custom_call.1
= control target key start
LH: loop header
LB: loop body
LE: loop exit
PB: predicated region body
PF: predicated region fallthrough
CT: control target
= control target key end

     0   :  { %s13772_s0 = inlined_call_operand.hbm [shape: bf16[128,128], index: 0, kind: input, shape index: {}]   ;;  %s13773_s1 = inlined_call_operand.hbm [shape: bf16[128,128], index: 1, kind: input, shape index: {}]   ;;  %s13774_s2 = inlined_call_operand.hbm [shape: f32[4,128], index: 2, kind: input, shape index: {}]   ;;  %s13775_s3 = inlined_call_operand.hbm [shape: bf16[3,128,128], index: 3, kind: input, shape index: {}]   ;;  %s13776_s4 = inlined_call_operand.vmem [shape: f32[3,3,128], index: 4, kind: input, shape index: {}]   ;;  %s13777_s5 = inlined_call_operand.hbm [shape: bf16[128,256], index: 5, kind: input, shape index: {}]   ;;  %s13778_s6 = inlined_call_operand.hbm [shape: f32[3,256], index: 6, kind: input, shape index: {}]   ;;  %s13779_s7 = inlined_call_operand.hbm [shape: bf16[256,128], index: 7, kind: input, shape index: {}]   ;;  %s13780_s8 = inlined_call_operand.hbm [shape: f32[3,128], index: 8, kind: input, shape index: {}]   ;;  %s13781_s9 = inlined_call_operand.hbm [shape: bf16[128,128], index: 9, kind: input, shape index: {}]   ;;  %s13782_s10 = inlined_call_operand.hbm [shape: bf16[128,128], index: 10, kind: input, shape index: {}]   ;;  %s13783_s11 = inlined_call_operand.vmem [shape: f32[3,128], index: 11, kind: input, shape index: {}]   ;;  %s13784_s12 = inlined_call_operand.hbm [shape: bf16[3,128,128], index: 12, kind: input, shape index: {}]   ;;  %s13785_s13 = inlined_call_operand.vmem [shape: f32[3,3,128], index: 13, kind: input, shape index: {}]   ;;  %s13786_s14 = inlined_call_operand.hbm [shape: bf16[128,384], index: 14, kind: input, shape index: {}]   ;;  %s13787_s15 = inlined_call_operand.vmem [shape: f32[2,384], index: 15, kind: input, shape index: {}]   ;;  %s13788_s16 = inlined_call_operand.hbm [shape: f32[128,384], index: 16, kind: output, shape index: {}]  }
   0x1   :  { %13864 = sst [smem:[#allocation67_spill]] %s13772_s0 }
   0x2   :  { %21 = vsyncpa [#allocation3], 0 }
   0x3   :  { %22 = vsyncpa [#allocation6], 0 }
   0x4   :  { %23 = vsyncpa [#allocation9], 0 }
   0x5   :  { %24 = vsyncpa [#allocation12], 0 }
   0x6   :  { %25 = vsyncpa [#allocation15], 0 }
   0x7   :  { %26 = vsyncpa [#allocation18], 0 }
   0x8   :  { %27 = vsyncpa [#allocation21], 0 }
   0x9   :  { %28 = vsyncpa [#allocation4], 0  ;;  %s9606_s21 = smov [#allocation5]   ;;  %s9607_s23 = smov [#allocation8]  }
   0xa   :  { %s46_s22 = sshll.u32 %s9606_s21, 4  ;;  %s68_s24 = sshll.u32 %s9607_s23, 4  ;;  %s47_s22 = int_to_ptr.vmem [resolvable:$true] %s46_s22  ;;  %s9713_s24 = int_to_ptr.vmem [resolvable:$true] %s68_s24 }
   0xb   :  { %s9304_s27 = scalar_lea.hbm %s13773_s1, 1024 }
   0xc   :  { %p9305_p0 = scmp.ne.s32.totalorder %s13773_s1, %s9304_s27  ;;  %p9308_p1 = scmp.lt.u32.totalorder %s9304_s27, %s13773_s1 }
   0xe   :  { %p9310_p2 = pnand %p9308_p1, %p9305_p0 }
  0x10   :  { %9313 = shalt.err (!%p9310_p2)
}
  0x11   :  { %s9314_s17 = scalar_lea.vmem %s47_s22, 1024  ;;  %p9319_p4 = scmp.lt.s32.totalorder %s47_s22, %s47_s22 }
  0x12   :  { %p9315_p3 = scmp.ne.s32.totalorder %s47_s22, %s9314_s17  ;;  %p9320_p5 = scmp.lt.s32.totalorder %s9314_s17, %s9314_s17 }
  0x14   :  { %p9321_p6 = por %p9320_p5, %p9319_p4 }
  0x16   :  { %p9322_p7 = pnand %p9321_p6, %p9315_p3 }
  0x18   :  { %9325 = shalt.err (!%p9322_p7)
}
  0x19   :  { %s9608_s18 = smov 64   ;;  %s9609_s19 = smov 4  }
  0x1a   :  { %52 = dma.hbm_to_vmem [thread:$0]  %s13773_s1, 1024, %s47_s22, [#allocation6], %s9608_s18, %s9608_s18, %s9609_s19  }
  0x1b   :  { %s9326_s26 = scalar_lea.hbm %s13775_s3, 3072 }
  0x1c   :  { %p9327_p8 = scmp.ne.s32.totalorder %s13775_s3, %s9326_s26  ;;  %p9330_p9 = scmp.lt.u32.totalorder %s9326_s26, %s13775_s3 }
  0x1e   :  { %p9332_p10 = pnand %p9330_p9, %p9327_p8 }
  0x20   :  { %9335 = shalt.err (!%p9332_p10)
}
  0x21   :  { %s9336_s0 = scalar_lea.vmem %s9713_s24, 3072  ;;  %p9341_p12 = scmp.lt.s32.totalorder %s9713_s24, %s9713_s24 }
  0x22   :  { %p9337_p11 = scmp.ne.s32.totalorder %s9713_s24, %s9336_s0  ;;  %p9342_p13 = scmp.lt.s32.totalorder %s9336_s0, %s9336_s0 }
  0x24   :  { %p9343_p0 = por %p9342_p13, %p9341_p12 }
  0x26   :  { %p9344_p1 = pnand %p9343_p0, %p9337_p11 }
  0x28   :  { %9347 = shalt.err (!%p9344_p1)
}
  0x29   :  { %74 = dma.hbm_to_vmem [thread:$0]  %s13775_s3, 3072, %s9713_s24, [#allocation9], %s9608_s18, %s9608_s18, %s9609_s19  }
  0x2a   :  { %s9610_s17 = smov [#allocation11]   ;;  %s9611_s21 = smov [#allocation14]  }
  0x2b   :  { %s95_s20 = sshll.u32 %s9610_s17, 4  ;;  %s117_s23 = sshll.u32 %s9611_s21, 4  ;;  %s96_s20 = int_to_ptr.vmem [resolvable:$true] %s95_s20  ;;  %s118_s23 = int_to_ptr.vmem [resolvable:$true] %s117_s23 }
  0x2c   :  { %s9348_s27 = scalar_lea.hbm %s13778_s6, 128 }
  0x2d   :  { %p9349_p2 = scmp.ne.s32.totalorder %s13778_s6, %s9348_s27  ;;  %p9352_p3 = scmp.lt.u32.totalorder %s9348_s27, %s13778_s6 }
  0x2f   :  { %p9354_p4 = pnand %p9352_p3, %p9349_p2 }
  0x31   :  { %9357 = shalt.err (!%p9354_p4)
}
  0x32   :  { %s9358_s3 = scalar_lea.vmem %s96_s20, 128  ;;  %p9363_p6 = scmp.lt.s32.totalorder %s96_s20, %s96_s20 }
  0x33   :  { %p9359_p5 = scmp.ne.s32.totalorder %s96_s20, %s9358_s3  ;;  %p9364_p7 = scmp.lt.s32.totalorder %s9358_s3, %s9358_s3 }
  0x35   :  { %p9365_p8 = por %p9364_p7, %p9363_p6 }
  0x37   :  { %p9366_p9 = pnand %p9365_p8, %p9359_p5 }
  0x39   :  { %9369 = shalt.err (!%p9366_p9)
}
  0x3a   :  { %98 = dma.hbm_to_vmem [thread:$0]  %s13778_s6, 128, %s96_s20, [#allocation12]  }
  0x3b   :  { %s9370_s21 = scalar_lea.hbm %s13780_s8, 64 }
  0x3c   :  { %p9371_p10 = scmp.ne.s32.totalorder %s13780_s8, %s9370_s21  ;;  %p9374_p11 = scmp.lt.u32.totalorder %s9370_s21, %s13780_s8 }
  0x3e   :  { %p9376_p12 = pnand %p9374_p11, %p9371_p10 }
  0x40   :  { %9379 = shalt.err (!%p9376_p12)
}
  0x41   :  { %s9380_s29 = scalar_lea.vmem %s118_s23, 64  ;;  %p9385_p0 = scmp.lt.s32.totalorder %s118_s23, %s118_s23 }
  0x42   :  { %p9381_p13 = scmp.ne.s32.totalorder %s118_s23, %s9380_s29  ;;  %p9386_p1 = scmp.lt.s32.totalorder %s9380_s29, %s9380_s29 }
  0x44   :  { %p9387_p2 = por %p9386_p1, %p9385_p0 }
  0x46   :  { %p9388_p3 = pnand %p9387_p2, %p9381_p13 }
  0x48   :  { %9391 = shalt.err (!%p9388_p3)
}
  0x49   :  { %120 = dma.hbm_to_vmem [thread:$0]  %s13780_s8, 64, %s118_s23, [#allocation15]  }
  0x4a   :  { %s9612_s30 = smov [#allocation17]   ;;  %s9613_s3 = smov [#allocation2]  }
  0x4b   :  { %s138_s0 = sshll.u32 %s9612_s30, 4  ;;  %s34_s24 = sshll.u32 %s9613_s3, 4  ;;  %s139_s0 = int_to_ptr.vmem [resolvable:$true] %s138_s0  ;;  %s9774_s24 = int_to_ptr.vmem [resolvable:$true] %s34_s24 }
  0x4c   :  { %s9392_s17 = scalar_lea.hbm %s13782_s10, 1024 }
  0x4d   :  { %p9393_p4 = scmp.ne.s32.totalorder %s13782_s10, %s9392_s17  ;;  %p9396_p5 = scmp.lt.u32.totalorder %s9392_s17, %s13782_s10 }
  0x4f   :  { %p9398_p6 = pnand %p9396_p5, %p9393_p4 }
  0x51   :  { %9401 = shalt.err (!%p9398_p6)
}
  0x52   :  { %s9402_s8 = scalar_lea.vmem %s139_s0, 1024  ;;  %p9407_p8 = scmp.lt.s32.totalorder %s139_s0, %s139_s0 }
  0x53   :  { %p9403_p7 = scmp.ne.s32.totalorder %s139_s0, %s9402_s8  ;;  %p9408_p9 = scmp.lt.s32.totalorder %s9402_s8, %s9402_s8 }
  0x55   :  { %p9409_p10 = por %p9408_p9, %p9407_p8 }
  0x57   :  { %p9410_p11 = pnand %p9409_p10, %p9403_p7 }
  0x59   :  { %9413 = shalt.err (!%p9410_p11)
}
  0x5a   :  { %144 = dma.hbm_to_vmem [thread:$0]  %s13782_s10, 1024, %s139_s0, [#allocation18], %s9608_s18, %s9608_s18, %s9609_s19  }
  0x5b   :  { %s13865_s20 = sld [smem:[#allocation67_spill]] }
  0x61   :  { %s9414_s30 = scalar_lea.hbm %s13865_s20, 1024 }
  0x62   :  { %p9415_p12 = scmp.ne.s32.totalorder %s13865_s20, %s9414_s30  ;;  %p9418_p13 = scmp.lt.u32.totalorder %s9414_s30, %s13865_s20 }
  0x64   :  { %p9420_p0 = pnand %p9418_p13, %p9415_p12 }
  0x66   :  { %9423 = shalt.err (!%p9420_p0)
}
  0x67   :  { %s9424_s21 = scalar_lea.vmem %s9774_s24, 1024  ;;  %p9429_p2 = scmp.lt.s32.totalorder %s9774_s24, %s9774_s24 }
  0x68   :  { %p9425_p1 = scmp.ne.s32.totalorder %s9774_s24, %s9424_s21  ;;  %p9430_p3 = scmp.lt.s32.totalorder %s9424_s21, %s9424_s21 }
  0x6a   :  { %p9431_p4 = por %p9430_p3, %p9429_p2 }
  0x6c   :  { %p9432_p5 = pnand %p9431_p4, %p9425_p1 }
  0x6e   :  { %9435 = shalt.err (!%p9432_p5)
}
  0x6f   :  { %40 = dma.hbm_to_vmem [thread:$0]  %s13865_s20, 1024, %s9774_s24, [#allocation3], %s9608_s18, %s9608_s18, %s9609_s19  }
  0x70   :  { %s9614_s25 = smov [#allocation7]   ;;  %s9615_s27 = smov [#allocation10]  }
  0x71   :  { %s59_s26 = sshll.u32 %s9614_s25, 4  ;;  %s82_s8 = sshll.u32 %s9615_s27, 4  ;;  %s60_s26 = int_to_ptr.vmem [resolvable:$true] %s59_s26  ;;  %s9811_s8 = int_to_ptr.vmem [resolvable:$true] %s82_s8 }
  0x72   :  { %s9436_s29 = scalar_lea.hbm %s13774_s2, 64 }
  0x73   :  { %p9437_p6 = scmp.ne.s32.totalorder %s13774_s2, %s9436_s29  ;;  %p9440_p7 = scmp.lt.u32.totalorder %s9436_s29, %s13774_s2 }
  0x75   :  { %p9442_p8 = pnand %p9440_p7, %p9437_p6 }
  0x77   :  { %9445 = shalt.err (!%p9442_p8)
}
  0x78   :  { %s9446_s24 = scalar_lea.vmem %s60_s26, 64  ;;  %p9451_p10 = scmp.lt.s32.totalorder %s60_s26, %s60_s26 }
  0x79   :  { %p9447_p9 = scmp.ne.s32.totalorder %s60_s26, %s9446_s24  ;;  %p9452_p11 = scmp.lt.s32.totalorder %s9446_s24, %s9446_s24 }
  0x7b   :  { %p9453_p12 = por %p9452_p11, %p9451_p10 }
  0x7d   :  { %p9454_p13 = pnand %p9453_p12, %p9447_p9 }
  0x7f   :  { %9457 = shalt.err (!%p9454_p13)
}
  0x80   :  { %62 = dma.hbm_to_vmem [thread:$0]  %s13774_s2, 64, %s60_s26, [#allocation6]  }
  0x81   :  { %s9458_s10 = scalar_lea.hbm %s13777_s5, 2048 }
  0x82   :  { %p9459_p0 = scmp.ne.s32.totalorder %s13777_s5, %s9458_s10  ;;  %p9462_p1 = scmp.lt.u32.totalorder %s9458_s10, %s13777_s5 }
  0x84   :  { %p9464_p2 = pnand %p9462_p1, %p9459_p0 }
  0x86   :  { %9467 = shalt.err (!%p9464_p2)
}
  0x87   :  { %s9468_s28 = scalar_lea.vmem %s9811_s8, 2048  ;;  %p9473_p4 = scmp.lt.s32.totalorder %s9811_s8, %s9811_s8 }
  0x88   :  { %p9469_p3 = scmp.ne.s32.totalorder %s9811_s8, %s9468_s28  ;;  %p9474_p5 = scmp.lt.s32.totalorder %s9468_s28, %s9468_s28 }
  0x8a   :  { %p9475_p6 = por %p9474_p5, %p9473_p4 }
  0x8c   :  { %p9476_p7 = pnand %p9475_p6, %p9469_p3 }
  0x8e   :  { %9479 = shalt.err (!%p9476_p7)
}
  0x8f   :  { %s9616_s2 = smov 128   ;;  %s9617_s26 = smov 8  }
  0x90   :  { %88 = dma.hbm_to_vmem [thread:$0]  %s13777_s5, 2048, %s9811_s8, [#allocation9], %s9616_s2, %s9616_s2, %s9617_s26  }
  0x91   :  { %s9618_s30 = smov [#allocation13]   ;;  %s9619_s1 = smov [#allocation16]  }
  0x92   :  { %s104_s3 = sshll.u32 %s9618_s30, 4  ;;  %s126_s24 = sshll.u32 %s9619_s1, 4  ;;  %s105_s3 = int_to_ptr.vmem [resolvable:$true] %s104_s3  ;;  %s9842_s24 = int_to_ptr.vmem [resolvable:$true] %s126_s24 }
  0x93   :  { %s9480_s17 = scalar_lea.hbm %s13779_s7, 2048 }
  0x94   :  { %p9481_p8 = scmp.ne.s32.totalorder %s13779_s7, %s9480_s17  ;;  %p9484_p9 = scmp.lt.u32.totalorder %s9480_s17, %s13779_s7 }
  0x96   :  { %p9486_p10 = pnand %p9484_p9, %p9481_p8 }
  0x98   :  { %9489 = shalt.err (!%p9486_p10)
}
  0x99   :  { %s9490_s5 = scalar_lea.vmem %s105_s3, 2048  ;;  %p9495_p12 = scmp.lt.s32.totalorder %s105_s3, %s105_s3 }
  0x9a   :  { %p9491_p11 = scmp.ne.s32.totalorder %s105_s3, %s9490_s5  ;;  %p9496_p13 = scmp.lt.s32.totalorder %s9490_s5, %s9490_s5 }
  0x9c   :  { %p9497_p0 = por %p9496_p13, %p9495_p12 }
  0x9e   :  { %p9498_p1 = pnand %p9497_p0, %p9491_p11 }
  0xa0   :  { %9501 = shalt.err (!%p9498_p1)
}
  0xa1   :  { %110 = dma.hbm_to_vmem [thread:$0]  %s13779_s7, 2048, %s105_s3, [#allocation12], %s9608_s18, %s9608_s18, %s9609_s19  }
  0xa2   :  { %s9502_s2 = scalar_lea.hbm %s13781_s9, 1024 }
  0xa3   :  { %p9503_p2 = scmp.ne.s32.totalorder %s13781_s9, %s9502_s2  ;;  %p9506_p3 = scmp.lt.u32.totalorder %s9502_s2, %s13781_s9 }
  0xa5   :  { %p9508_p4 = pnand %p9506_p3, %p9503_p2 }
  0xa7   :  { %9511 = shalt.err (!%p9508_p4)
}
  0xa8   :  { %s9512_s1 = scalar_lea.vmem %s9842_s24, 1024  ;;  %p9517_p6 = scmp.lt.s32.totalorder %s9842_s24, %s9842_s24 }
  0xa9   :  { %p9513_p5 = scmp.ne.s32.totalorder %s9842_s24, %s9512_s1  ;;  %p9518_p7 = scmp.lt.s32.totalorder %s9512_s1, %s9512_s1 }
  0xab   :  { %p9519_p8 = por %p9518_p7, %p9517_p6 }
  0xad   :  { %p9520_p9 = pnand %p9519_p8, %p9513_p5 }
  0xaf   :  { %9523 = shalt.err (!%p9520_p9)
}
  0xb0   :  { %132 = dma.hbm_to_vmem [thread:$0]  %s13781_s9, 1024, %s9842_s24, [#allocation15], %s9608_s18, %s9608_s18, %s9609_s19  }
  0xb1   :  { %s9620_s20 = smov [#allocation19]   ;;  %s9621_s17 = smov [#allocation20]  }
  0xb2   :  { %s152_s22 = sshll.u32 %s9620_s20, 4  ;;  %s166_s21 = sshll.u32 %s9621_s17, 4  ;;  %s153_s22 = int_to_ptr.vmem [resolvable:$true] %s152_s22  ;;  %s9879_s21 = int_to_ptr.vmem [resolvable:$true] %s166_s21 }
  0xb3   :  { %s9524_s25 = scalar_lea.hbm %s13784_s12, 3072 }
  0xb4   :  { %p9525_p10 = scmp.ne.s32.totalorder %s13784_s12, %s9524_s25  ;;  %p9528_p11 = scmp.lt.u32.totalorder %s9524_s25, %s13784_s12 }
  0xb6   :  { %p9530_p12 = pnand %p9528_p11, %p9525_p10 }
  0xb8   :  { %9533 = shalt.err (!%p9530_p12)
}
  0xb9   :  { %s9534_s9 = scalar_lea.vmem %s153_s22, 3072  ;;  %p9539_p0 = scmp.lt.s32.totalorder %s153_s22, %s153_s22 }
  0xba   :  { %p9535_p13 = scmp.ne.s32.totalorder %s153_s22, %s9534_s9  ;;  %p9540_p1 = scmp.lt.s32.totalorder %s9534_s9, %s9534_s9 }
  0xbc   :  { %p9541_p2 = por %p9540_p1, %p9539_p0 }
  0xbe   :  { %p9542_p3 = pnand %p9541_p2, %p9535_p13 }
  0xc0   :  { %9545 = shalt.err (!%p9542_p3)
}
  0xc1   :  { %158 = dma.hbm_to_vmem [thread:$0]  %s13784_s12, 3072, %s153_s22, [#allocation18], %s9608_s18, %s9608_s18, %s9609_s19  }
  0xc2   :  { %s9546_s29 = scalar_lea.hbm %s13786_s14, 3072 }
  0xc3   :  { %p9547_p4 = scmp.ne.s32.totalorder %s13786_s14, %s9546_s29  ;;  %p9550_p5 = scmp.lt.u32.totalorder %s9546_s29, %s13786_s14 }
  0xc5   :  { %p9552_p6 = pnand %p9550_p5, %p9547_p4 }
  0xc7   :  { %9555 = shalt.err (!%p9552_p6)
}
  0xc8   :  { %s9556_s3 = scalar_lea.vmem %s9879_s21, 3072  ;;  %p9561_p8 = scmp.lt.s32.totalorder %s9879_s21, %s9879_s21 }
  0xc9   :  { %p9557_p7 = scmp.ne.s32.totalorder %s9879_s21, %s9556_s3  ;;  %p9562_p9 = scmp.lt.s32.totalorder %s9556_s3, %s9556_s3 }
  0xcb   :  { %p9563_p10 = por %p9562_p9, %p9561_p8 }
  0xcd   :  { %p9564_p11 = pnand %p9563_p10, %p9557_p7 }
  0xcf   :  { %9567 = shalt.err (!%p9564_p11)
}
  0xd0   :  { %s9622_s12 = smov 192   ;;  %s9623_s18 = smov 12  }
  0xd1   :  { %172 = dma.hbm_to_vmem [thread:$0]  %s13786_s14, 3072, %s9879_s21, [#allocation21], %s9622_s12, %s9622_s12, %s9623_s18  }
  0xd2   :  { %9590 = dma.done.wait [#allocation3], 1024  }
  0xd3   :  { %9591 = vsyncadd [#allocation3], 4294966272 }
  0xd4   :  { %9592 = dma.done.wait [#allocation6], 1088  }
  0xd5   :  { %9593 = vsyncadd [#allocation6], 4294966208 }
  0xd6   :  { %9594 = dma.done.wait [#allocation9], 5120  }
  0xd7   :  { %9595 = vsyncadd [#allocation9], 4294962176 }
  0xd8   :  { %9596 = dma.done.wait [#allocation12], 2176  }
  0xd9   :  { %9597 = vsyncadd [#allocation12], 4294965120 }
  0xda   :  { %9598 = dma.done.wait [#allocation15], 1088  }
  0xdb   :  { %9599 = vsyncadd [#allocation15], 4294966208 }
  0xdc   :  { %9600 = dma.done.wait [#allocation18], 4096  }
  0xdd   :  { %9601 = vsyncadd [#allocation18], 4294963200 }
  0xde   :  { %9602 = dma.done.wait [#allocation21], 3072  }
  0xdf   :  { %9603 = vsyncadd [#allocation21], 4294964224  ;;  %v8127_v0 = vld [vmem:[#allocation5] sm:$0xff]   ;;  %v8128_v1 = vld [vmem:[#allocation5 + $0x8] sm:$0xff]   ;;  %v245_v16 = vlaneseq }
  0xe0   :  { %7769 = vmatprep.subr.bf16.mxu0 %v8127_v0  ;;  %v8129_v2 = vld [vmem:[#allocation5 + $0x10] sm:$0xff]   ;;  %v8130_v3 = vld [vmem:[#allocation5 + $0x18] sm:$0xff]   ;;  %v8135_v4 = vld [vmem:[#allocation2] sm:$0xff]  }
  0xe1   :  { %7770 = vmatpush3.bf16.msra.mxu0 %v8127_v0  ;;  %7785 = vmatprep.mubr.bf16.mxu0 %v8135_v4  ;;  %v8131_v5 = vld [vmem:[#allocation5 + $0x20] sm:$0xff]   ;;  %v8132_v6 = vld [vmem:[#allocation5 + $0x28] sm:$0xff]   ;;  %v8133_v7 = vld [vmem:[#allocation5 + $0x30] sm:$0xff]   ;;  %v9913_v17 = vshrl.u32 %v245_v16, 7 }
  0xe2   :  { %7771 = vmatprep.subr.bf16.mxu0 %v8128_v1  ;;  %v8134_v8 = vld [vmem:[#allocation5 + $0x38] sm:$0xff]   ;;  %v8136_v9 = vld [vmem:[#allocation2 + $0x8] sm:$0xff]   ;;  %v8137_v10 = vld [vmem:[#allocation2 + $0x10] sm:$0xff]  }
  0xe3   :  { %v8138_v11 = vld [vmem:[#allocation2 + $0x18] sm:$0xff]   ;;  %v8139_v12 = vld [vmem:[#allocation2 + $0x20] sm:$0xff]   ;;  %v8140_v13 = vld [vmem:[#allocation2 + $0x28] sm:$0xff]   ;;  %13866 = vst [vmem:[#allocation31_spill] sm:$0xff] %v9913_v17  ;;  %v9916_v18 = vsub.s32 0, %v9913_v17 }
  0xe4   :  { %v8141_v14 = vld [vmem:[#allocation2 + $0x30] sm:$0xff]   ;;  %v8142_v15 = vld [vmem:[#allocation2 + $0x38] sm:$0xff]   ;;  %v9918_v19 = vld [vmem:[#allocation7] sm:$0xf] }
  0xe5   :  { %7772 = vmatpush3.bf16.msra.mxu0 %v8128_v1  ;;  %13867 = vst [vmem:[#allocation32_spill] sm:$0xff] %v9916_v18  ;;  %v9922_v20 = vrot.slane %v9918_v19, %v9916_v18  ;;  %v8143_v63 = vld [vmem:[#allocation8] sm:$0xff]  }
  0xe6   :  { %7773 = vmatprep.subr.bf16.mxu0 %v8129_v2  ;;  %7801 = vmatprep.subr.bf16.mxu1 %v8143_v63 }
  0xe7   :  { %7802 = vmatpush3.bf16.msra.mxu1 %v8143_v63 }
  0xe9   :  { %7774 = vmatpush3.bf16.msra.mxu0 %v8129_v2  ;;  %v8144_v2 = vld [vmem:[#allocation8 + $0x8] sm:$0xff]  }
  0xea   :  { %7775 = vmatprep.subr.bf16.mxu0 %v8130_v3  ;;  %7803 = vmatprep.subr.bf16.mxu1 %v8144_v2 }
  0xeb   :  { %7804 = vmatpush3.bf16.msra.mxu1 %v8144_v2 }
  0xed   :  { %7776 = vmatpush3.bf16.msra.mxu0 %v8130_v3 }
  0xee   :  { %7777 = vmatprep.subr.bf16.mxu0 %v8131_v5 }
  0xf1   :  { %7778 = vmatpush3.bf16.msra.mxu0 %v8131_v5  ;;  %v8145_v5 = vld [vmem:[#allocation8 + $0x10] sm:$0xff]  }
  0xf2   :  { %7779 = vmatprep.subr.bf16.mxu0 %v8132_v6  ;;  %7805 = vmatprep.subr.bf16.mxu1 %v8145_v5 }
  0xf3   :  { %7806 = vmatpush3.bf16.msra.mxu1 %v8145_v5  ;;  %v10035_v5 = vsub.s32 1, %v9913_v17 }
  0xf5   :  { %7780 = vmatpush3.bf16.msra.mxu0 %v8132_v6  ;;  %13868 = vst [vmem:[#allocation33_spill] sm:$0xff] %v10035_v5 }
  0xf6   :  { %7781 = vmatprep.subr.bf16.mxu0 %v8133_v7 }
  0xf9   :  { %7782 = vmatpush3.bf16.msra.mxu0 %v8133_v7 }
  0xfa   :  { %7783 = vmatprep.subr.bf16.mxu0 %v8134_v8 }
  0xfd   :  { %7784 = vmatpush3.bf16.msra.mxu0 %v8134_v8  ;;  %v8146_v8 = vld [vmem:[#allocation8 + $0x18] sm:$0xff]  }
  0xfe   :  { %7807 = vmatprep.subr.bf16.mxu1 %v8146_v8 }
  0xff   :  { %7808 = vmatpush3.bf16.msra.mxu1 %v8146_v8  ;;  %v10040_v8 = vsub.s32 2, %v9913_v17 }
 0x100   :  { %7786 = vmatmul.mubr.bf16.vlgmr.msra.gmra.mrb[0].mxu0 %v8136_v9  ;;  %v8147_v9 = vld [vmem:[#allocation8 + $0x20] sm:$0xff]  }
 0x101   :  { %7789 = vmatprep.mubr.bf16.mxu0 %v8137_v10  ;;  %7809 = vmatprep.subr.bf16.mxu1 %v8147_v9  ;;  %v8148_v10 = vld [vmem:[#allocation8 + $0x28] sm:$0xff]   ;;  %13869 = vst [vmem:[#allocation34_spill] sm:$0xff] %v10040_v8 }
 0x103   :  { %7810 = vmatpush3.bf16.msra.mxu1 %v8147_v9 }
 0x104   :  { %7811 = vmatprep.subr.bf16.mxu1 %v8148_v10 }
 0x107   :  { %7812 = vmatpush3.bf16.msra.mxu1 %v8148_v10 }
 0x108   :  { %7790 = vmatmul.mubr.bf16.gmra.mrb[4].mxu0 %v8138_v11  ;;  %v8149_v11 = vld [vmem:[#allocation8 + $0x30] sm:$0xff]  }
 0x109   :  { %7793 = vmatprep.mubr.bf16.mxu0 %v8139_v12  ;;  %7813 = vmatprep.subr.bf16.mxu1 %v8149_v11  ;;  %v8150_v12 = vld [vmem:[#allocation8 + $0x38] sm:$0xff]  }
 0x10b   :  { %7814 = vmatpush3.bf16.msra.mxu1 %v8149_v11 }
 0x10c   :  { %7815 = vmatprep.subr.bf16.mxu1 %v8150_v12 }
 0x10f   :  { %7816 = vmatpush3.bf16.msra.mxu1 %v8150_v12 }
 0x110   :  { %7794 = vmatmul.mubr.bf16.gmra.mrb[8].mxu0 %v8140_v13 }
 0x111   :  { %7797 = vmatprep.mubr.bf16.mxu0 %v8141_v14 }
 0x118   :  { %7798 = vmatmul.mubr.bf16.gmra.mrb[12].mxu0 %v8142_v15 }
 0x1d3   :  { %v7787_v21 = vpop.f32.mrb[0].mxu0 }
 0x1d4   :  { %v9925_v22 = vadd.f32 %v7787_v21, %v9922_v20  ;;  %v379_v23 = vpop.f32.mrb[1].mxu0 }
 0x1d5   :  { %v9928_v24 = vadd.f32 %v379_v23, %v9922_v20  ;;  %v7788_v25 = vpop.f32.mrb[2].mxu0 }
 0x1d6   :  { %446 = vadd.xlane.f32.xlu1 %v9925_v22  ;;  %v382_v26 = vpop.f32.mrb[3].mxu0  ;;  %v9933_v27 = vadd.f32 %v7788_v25, %v9922_v20  ;;  %v492_v36 = vmul.f32 %v9925_v22, %v9925_v22 }
 0x1d7   :  { %442 = vadd.xlane.f32.xlu0 %v9928_v24  ;;  %v9936_v28 = vadd.f32 %v382_v26, %v9922_v20  ;;  %v490_v32 = vmul.f32 %v9928_v24, %v9928_v24 }
 0x1d8   :  { %v493_v35 = vmul.f32 %v9933_v27, %v9933_v27 }
 0x1d9   :  { %v491_v30 = vmul.f32 %v9936_v28, %v9936_v28 }
 0x1da   :  { %448 = vadd.xlane.f32.xlu1 %v9933_v27 }
 0x1db   :  { %444 = vadd.xlane.f32.xlu0 %v9936_v28  ;;  %v7791_v29 = vpop.f32.mrb[4].mxu0 }
 0x1dc   :  { %v395_v31 = vpop.f32.mrb[5].mxu0  ;;  %v9952_v40 = vadd.f32 %v7791_v29, %v9922_v20 }
 0x1dd   :  { %v7792_v33 = vpop.f32.mrb[6].mxu0  ;;  %v9960_v44 = vadd.f32 %v395_v31, %v9922_v20 }
 0x1de   :  { %508 = vadd.xlane.f32.xlu1 %v491_v30  ;;  %v398_v34 = vpop.f32.mrb[7].mxu0  ;;  %v9949_v37 = vadd.f32 %v7792_v33, %v9922_v20  ;;  %v496_v52 = vmul.f32 %v9952_v40, %v9952_v40 }
 0x1df   :  { %506 = vadd.xlane.f32.xlu0 %v490_v32  ;;  %v9957_v43 = vadd.f32 %v398_v34, %v9922_v20  ;;  %v494_v48 = vmul.f32 %v9960_v44, %v9960_v44 }
 0x1e0   :  { %v497_v51 = vmul.f32 %v9949_v37, %v9949_v37 }
 0x1e1   :  { %v495_v46 = vmul.f32 %v9957_v43, %v9957_v43 }
 0x1e2   :  { %512 = vadd.xlane.f32.xlu1 %v493_v35 }
 0x1e3   :  { %510 = vadd.xlane.f32.xlu0 %v492_v36  ;;  %v7795_v38 = vpop.f32.mrb[8].mxu0 }
 0x1e4   :  { %v411_v39 = vpop.f32.mrb[9].mxu0  ;;  %v9976_v54 = vadd.f32 %v7795_v38, %v9922_v20 }
 0x1e5   :  { %v7796_v41 = vpop.f32.mrb[10].mxu0  ;;  %v9984_v56 = vadd.f32 %v411_v39, %v9922_v20 }
 0x1e6   :  { %456 = vadd.xlane.f32.xlu1 %v9949_v37  ;;  %v414_v42 = vpop.f32.mrb[11].mxu0  ;;  %v9973_v53 = vadd.f32 %v7796_v41, %v9922_v20  ;;  %v500_v60 = vmul.f32 %v9976_v54, %v9976_v54 }
 0x1e7   :  { %454 = vadd.xlane.f32.xlu0 %v9952_v40  ;;  %v9981_v55 = vadd.f32 %v414_v42, %v9922_v20  ;;  %v498_v58 = vmul.f32 %v9984_v56, %v9984_v56 }
 0x1e8   :  { %v501_v59 = vmul.f32 %v9973_v53, %v9973_v53 }
 0x1e9   :  { %v499_v57 = vmul.f32 %v9981_v55, %v9981_v55 }
 0x1ea   :  { %452 = vadd.xlane.f32.xlu1 %v9957_v43 }
 0x1eb   :  { %450 = vadd.xlane.f32.xlu0 %v9960_v44  ;;  %v7799_v45 = vpop.f32.mrb[12].mxu0 }
 0x1ec   :  { %v427_v47 = vpop.f32.mrb[13].mxu0  ;;  %v10000_v62 = vadd.f32 %v7799_v45, %v9922_v20 }
 0x1ed   :  { %v7800_v49 = vpop.f32.mrb[14].mxu0  ;;  %v10008_v1 = vadd.f32 %v427_v47, %v9922_v20 }
 0x1ee   :  { %516 = vadd.xlane.f32.xlu1 %v495_v46  ;;  %v430_v50 = vpop.f32.mrb[15].mxu0  ;;  %v9997_v61 = vadd.f32 %v7800_v49, %v9922_v20  ;;  %v504_v7 = vmul.f32 %v10000_v62, %v10000_v62 }
 0x1ef   :  { %514 = vadd.xlane.f32.xlu0 %v494_v48  ;;  %v10005_v0 = vadd.f32 %v430_v50, %v9922_v20  ;;  %v502_v4 = vmul.f32 %v10008_v1, %v10008_v1 }
 0x1f0   :  { %v505_v6 = vmul.f32 %v9997_v61, %v9997_v61 }
 0x1f1   :  { %v503_v3 = vmul.f32 %v10005_v0, %v10005_v0 }
 0x1f2   :  { %520 = vadd.xlane.f32.xlu1 %v497_v51 }
 0x1f3   :  { %518 = vadd.xlane.f32.xlu0 %v496_v52 }
 0x1f6   :  { %464 = vadd.xlane.f32.xlu1 %v9973_v53 }
 0x1f7   :  { %462 = vadd.xlane.f32.xlu0 %v9976_v54 }
 0x1fa   :  { %460 = vadd.xlane.f32.xlu1 %v9981_v55 }
 0x1fb   :  { %458 = vadd.xlane.f32.xlu0 %v9984_v56 }
 0x1fe   :  { %524 = vadd.xlane.f32.xlu1 %v499_v57 }
 0x1ff   :  { %522 = vadd.xlane.f32.xlu0 %v498_v58 }
 0x202   :  { %528 = vadd.xlane.f32.xlu1 %v501_v59 }
 0x203   :  { %526 = vadd.xlane.f32.xlu0 %v500_v60 }
 0x206   :  { %472 = vadd.xlane.f32.xlu1 %v9997_v61 }
 0x207   :  { %470 = vadd.xlane.f32.xlu0 %v10000_v62 }
 0x20a   :  { %468 = vadd.xlane.f32.xlu1 %v10005_v0 }
 0x20b   :  { %466 = vadd.xlane.f32.xlu0 %v10008_v1 }
 0x20e   :  { %532 = vadd.xlane.f32.xlu1 %v503_v3 }
 0x20f   :  { %530 = vadd.xlane.f32.xlu0 %v502_v4 }
 0x212   :  { %536 = vadd.xlane.f32.xlu1 %v505_v6 }
 0x213   :  { %534 = vadd.xlane.f32.xlu0 %v504_v7 }
 0x263   :  { %v447_v13 = vpop.xlane.xlu1 %446 }
 0x264   :  { %v443_v14 = vpop.xlane.xlu0 %442  ;;  %v10024_v31 = vmul.f32 0.03125, %v447_v13  ;;  %v10048_v13 = vrot.slane %v9918_v19, %v10035_v5 }
 0x265   :  { %v10020_v20 = vmul.f32 0.03125, %v443_v14 }
 0x266   :  { %v556_v45 = vmul.f32 %v10024_v31, %v10024_v31 }
 0x267   :  { %v449_v15 = vpop.xlane.xlu1 %448  ;;  %v554_v32 = vmul.f32 %v10020_v20, %v10020_v20 }
 0x268   :  { %v445_v16 = vpop.xlane.xlu0 %444  ;;  %v10022_v26 = vmul.f32 0.03125, %v449_v15 }
 0x269   :  { %v475_v21 = vmul.f32 0.03125, %v445_v16 }
 0x26a   :  { %v557_v38 = vmul.f32 %v10022_v26, %v10022_v26 }
 0x26b   :  { %v555_v23 = vmul.f32 %v475_v21, %v475_v21  ;;  %v509_v25 = vpop.xlane.xlu1 %508  ;;  %v603_v14 = vsub.f32 %v9936_v28, %v475_v21 }
 0x26c   :  { %v539_v29 = vmul.f32 0.03125, %v509_v25  ;;  %v507_v30 = vpop.xlane.xlu0 %506 }
 0x26d   :  { %v538_v33 = vmul.f32 0.03125, %v507_v30 }
 0x26e   :  { %v571_v34 = vsub.f32 %v539_v29, %v555_v23  ;;  %v602_v29 = vsub.f32 %v9928_v24, %v10020_v20 }
 0x26f   :  { %v570_v35 = vsub.f32 %v538_v33, %v554_v32  ;;  %v513_v36 = vpop.xlane.xlu1 %512 }
 0x270   :  { %v587_v39 = vmax.f32 %v571_v34, 0.0  ;;  %v541_v41 = vmul.f32 0.03125, %v513_v36  ;;  %v511_v42 = vpop.xlane.xlu0 %510  ;;  %v10059_v36 = vrot.slane %v9918_v19, %v10040_v8 }
 0x271   :  { %v586_v46 = vmax.f32 %v570_v35, 0.0  ;;  %v540_v47 = vmul.f32 0.03125, %v511_v42 }
 0x272   :  { %v619_v48 = vadd.f32 1e-05, %v587_v39  ;;  %v573_v49 = vsub.f32 %v541_v41, %v557_v38 }
 0x273   :  { %v618_v50 = vadd.f32 1e-05, %v586_v46  ;;  %v572_v51 = vsub.f32 %v540_v47, %v556_v45  ;;  %v457_v52 = vpop.xlane.xlu1 %456  ;;  %v605_v47 = vsub.f32 %v9933_v27, %v10022_v26 }
 0x274   :  { %8279 = vrsqrt.f32 %v619_v48  ;;  %v589_v57 = vmax.f32 %v573_v49, 0.0  ;;  %v455_v58 = vpop.xlane.xlu0 %454  ;;  %v10042_v9 = vmul.f32 0.03125, %v457_v52 }
 0x275   :  { %8281 = vrsqrt.f32 %v618_v50  ;;  %v588_v59 = vmax.f32 %v572_v51, 0.0  ;;  %v10051_v15 = vmul.f32 0.03125, %v455_v58 }
 0x276   :  { %v621_v60 = vadd.f32 1e-05, %v589_v57  ;;  %v561_v28 = vmul.f32 %v10042_v9, %v10042_v9 }
 0x277   :  { %v620_v63 = vadd.f32 1e-05, %v588_v59  ;;  %v453_v2 = vpop.xlane.xlu1 %452  ;;  %v560_v42 = vmul.f32 %v10051_v15, %v10051_v15 }
 0x278   :  { %8283 = vrsqrt.f32 %v621_v60  ;;  %v10032_v3 = vmul.f32 0.03125, %v453_v2  ;;  %v451_v4 = vpop.xlane.xlu0 %450 }
 0x279   :  { %v10037_v6 = vmul.f32 0.03125, %v451_v4  ;;  %8285 = vrsqrt.f32 %v620_v63  ;;  %v604_v4 = vsub.f32 %v9925_v22, %v10024_v31 }
 0x27a   :  { %v559_v10 = vmul.f32 %v10032_v3, %v10032_v3  ;;  %v607_v22 = vsub.f32 %v9957_v43, %v10032_v3 }
 0x27b   :  { %v517_v7 = vpop.xlane.xlu1 %516  ;;  %v558_v16 = vmul.f32 %v10037_v6, %v10037_v6 }
 0x27c   :  { %v543_v11 = vmul.f32 0.03125, %v517_v7  ;;  %v515_v12 = vpop.xlane.xlu0 %514 }
 0x27d   :  { %v542_v23 = vmul.f32 0.03125, %v515_v12 }
 0x27e   :  { %v8280_v25 = vpop.eup %8279  ;;  %v575_v30 = vsub.f32 %v543_v11, %v559_v10 }
 0x27f   :  { %v8282_v32 = vpop.eup %8281  ;;  %v574_v33 = vsub.f32 %v542_v23, %v558_v16  ;;  %v521_v34 = vpop.xlane.xlu1 %520  ;;  %v651_v35 = vmul.f32 %v8280_v25, %v603_v14 }
 0x280   :  { %v591_v21 = vmax.f32 %v575_v30, 0.0  ;;  %v545_v38 = vmul.f32 0.03125, %v521_v34  ;;  %v519_v39 = vpop.xlane.xlu0 %518  ;;  %v650_v41 = vmul.f32 %v8282_v32, %v602_v29 }
 0x281   :  { %v590_v24 = vmax.f32 %v574_v33, 0.0  ;;  %v544_v20 = vmul.f32 0.03125, %v519_v39  ;;  %v671_v45 = vmul.f32 %v10048_v13, %v651_v35 }
 0x282   :  { %v8284_v46 = vpop.eup %8283  ;;  %v623_v19 = vadd.f32 1e-05, %v591_v21  ;;  %v577_v48 = vsub.f32 %v545_v38, %v561_v28  ;;  %v670_v49 = vmul.f32 %v10048_v13, %v650_v41 }
 0x283   :  { %v622_v50 = vadd.f32 1e-05, %v590_v24  ;;  %v576_v51 = vsub.f32 %v544_v20, %v560_v42  ;;  %v465_v52 = vpop.xlane.xlu1 %464  ;;  %v10070_v57 = vadd.f32 %v10059_v36, %v671_v45  ;;  %v653_v63 = vmul.f32 %v8284_v46, %v605_v47  ;;  %v8286_v2 = vpop.eup %8285 }
 0x284   :  { %8287 = vrsqrt.f32 %v623_v19  ;;  %v593_v58 = vmax.f32 %v577_v48, 0.0  ;;  %v463_v59 = vpop.xlane.xlu0 %462  ;;  %v10073_v60 = vadd.f32 %v10059_v36, %v670_v49  ;;  %v652_v23 = vmul.f32 %v8286_v2, %v604_v4 }
 0x285   :  { %8289 = vrsqrt.f32 %v622_v50  ;;  %v592_v27 = vmax.f32 %v576_v51, 0.0  ;;  %v7245_v26 = vmul.f32 -1.442695, %v10070_v57  ;;  %v673_v25 = vmul.f32 %v10048_v13, %v653_v63 }
 0x286   :  { %v625_v7 = vadd.f32 1e-05, %v593_v58  ;;  %v7244_v10 = vmul.f32 -1.442695, %v10073_v60  ;;  %v672_v30 = vmul.f32 %v10048_v13, %v652_v23  ;;  %v10087_v31 = vmul.f32 0.03125, %v465_v52 }
 0x287   :  { %v624_v11 = vadd.f32 1e-05, %v592_v27  ;;  %v461_v12 = vpop.xlane.xlu1 %460  ;;  %8291 = vpow2.f32 %v7245_v26  ;;  %v10090_v33 = vadd.f32 %v10059_v36, %v673_v25  ;;  %v10097_v38 = vmul.f32 0.03125, %v463_v59 }
 0x288   :  { %8293 = vrsqrt.f32 %v625_v7  ;;  %v10079_v14 = vmul.f32 0.03125, %v461_v12  ;;  %v459_v16 = vpop.xlane.xlu0 %458  ;;  %v10095_v21 = vadd.f32 %v10059_v36, %v672_v30  ;;  %v606_v42 = vsub.f32 %v9960_v44, %v10037_v6 }
 0x289   :  { %v10082_v29 = vmul.f32 0.03125, %v459_v16  ;;  %8295 = vpow2.f32 %v7244_v10  ;;  %v7247_v39 = vmul.f32 -1.442695, %v10090_v33  ;;  %v565_v46 = vmul.f32 %v10087_v31, %v10087_v31 }
 0x28a   :  { %8297 = vrsqrt.f32 %v624_v11  ;;  %v563_v34 = vmul.f32 %v10079_v14, %v10079_v14  ;;  %v7246_v20 = vmul.f32 -1.442695, %v10095_v21  ;;  %v564_v44 = vmul.f32 %v10097_v38, %v10097_v38 }
 0x28b   :  { %v525_v32 = vpop.xlane.xlu1 %524  ;;  %v562_v43 = vmul.f32 %v10082_v29, %v10082_v29  ;;  %8299 = vpow2.f32 %v7247_v39  ;;  %v609_v10 = vsub.f32 %v9949_v37, %v10042_v9  ;;  %v608_v37 = vsub.f32 %v9952_v40, %v10051_v15 }
 0x28c   :  { %v547_v35 = vmul.f32 0.03125, %v525_v32  ;;  %v523_v28 = vpop.xlane.xlu0 %522  ;;  %8301 = vpow2.f32 %v7246_v20  ;;  %v613_v9 = vsub.f32 %v9973_v53, %v10087_v31 }
 0x28d   :  { %v546_v3 = vmul.f32 0.03125, %v523_v28 }
 0x28e   :  { %v8288_v41 = vpop.eup %8287  ;;  %v579_v24 = vsub.f32 %v547_v35, %v563_v34 }
 0x28f   :  { %v8290_v45 = vpop.eup %8289  ;;  %v578_v47 = vsub.f32 %v546_v3, %v562_v43  ;;  %v529_v19 = vpop.xlane.xlu1 %528  ;;  %v655_v48 = vmul.f32 %v8288_v41, %v607_v22 }
 0x290   :  { %v595_v49 = vmax.f32 %v579_v24, 0.0  ;;  %v549_v50 = vmul.f32 0.03125, %v529_v19  ;;  %v527_v51 = vpop.xlane.xlu0 %526  ;;  %v654_v52 = vmul.f32 %v8290_v45, %v606_v42 }
 0x291   :  { %v8292_v58 = vpop.eup %8291  ;;  %v594_v6 = vmax.f32 %v578_v47, 0.0  ;;  %v548_v59 = vmul.f32 0.03125, %v527_v51  ;;  %v675_v63 = vmul.f32 %v10048_v13, %v655_v48  ;;  %v612_v48 = vsub.f32 %v9976_v54, %v10097_v38 }
 0x292   :  { %v8294_v2 = vpop.eup %8293  ;;  %v627_v27 = vadd.f32 1e-05, %v595_v49  ;;  %v581_v26 = vsub.f32 %v549_v50, %v565_v46  ;;  %v755_v4 = vadd.f32 1.0, %v8292_v58  ;;  %v674_v7 = vmul.f32 %v10048_v13, %v654_v52 }
 0x293   :  { %v626_v11 = vadd.f32 1e-05, %v594_v6  ;;  %v580_v12 = vsub.f32 %v548_v59, %v564_v44  ;;  %v473_v16 = vpop.xlane.xlu1 %472  ;;  %v8296_v23 = vpop.eup %8295  ;;  %v10117_v32 = vadd.f32 %v10059_v36, %v675_v63  ;;  %v657_v28 = vmul.f32 %v8294_v2, %v609_v10 }
 0x294   :  { %8303 = vrsqrt.f32 %v627_v27  ;;  %v597_v25 = vmax.f32 %v581_v26, 0.0  ;;  %v471_v30 = vpop.xlane.xlu0 %470  ;;  %v10114_v22 = vadd.f32 %v10059_v36, %v674_v7  ;;  %v754_v35 = vadd.f32 1.0, %v8296_v23  ;;  %v8298_v43 = vpop.eup %8297 }
 0x295   :  { %8305 = vrsqrt.f32 %v626_v11  ;;  %v596_v34 = vmax.f32 %v580_v12, 0.0  ;;  %v7249_v45 = vmul.f32 -1.442695, %v10117_v32  ;;  %v8300_v46 = vpop.eup %8299  ;;  %v656_v19 = vmul.f32 %v8298_v43, %v608_v37 }
 0x296   :  { %v629_v3 = vadd.f32 1e-05, %v597_v25  ;;  %8307 = vrcp.f32 %v755_v4  ;;  %v7248_v20 = vmul.f32 -1.442695, %v10114_v22  ;;  %v677_v40 = vmul.f32 %v10048_v13, %v657_v28  ;;  %v8302_v15 = vpop.eup %8301 }
 0x297   :  { %v628_v39 = vadd.f32 1e-05, %v596_v34  ;;  %v469_v41 = vpop.xlane.xlu1 %468  ;;  %8309 = vrcp.f32 %v754_v35  ;;  %v10132_v49 = vmul.f32 0.03125, %v473_v16  ;;  %v757_v50 = vadd.f32 1.0, %v8300_v46 }
 0x298   :  { %8311 = vrsqrt.f32 %v629_v3  ;;  %v10123_v42 = vmul.f32 0.03125, %v469_v41  ;;  %v467_v24 = vpop.xlane.xlu0 %466  ;;  %v10134_v51 = vmul.f32 0.03125, %v471_v30  ;;  %v756_v44 = vadd.f32 1.0, %v8302_v15 }
 0x299   :  { %8313 = vrsqrt.f32 %v628_v39  ;;  %v10127_v47 = vmul.f32 0.03125, %v467_v24  ;;  %v676_v63 = vmul.f32 %v10048_v13, %v656_v19  ;;  %v10140_v2 = vadd.f32 %v10059_v36, %v677_v40 }
 0x29a   :  { %8315 = vpow2.f32 %v7248_v20  ;;  %v567_v52 = vmul.f32 %v10123_v42, %v10123_v42  ;;  %v611_v54 = vsub.f32 %v9981_v55, %v10079_v14  ;;  %v610_v4 = vsub.f32 %v9984_v56, %v10082_v29 }
 0x29b   :  { %v533_v58 = vpop.xlane.xlu1 %532  ;;  %8317 = vpow2.f32 %v7249_v45  ;;  %v566_v38 = vmul.f32 %v10127_v47, %v10127_v47  ;;  %v10149_v10 = vadd.f32 %v10059_v36, %v676_v63  ;;  %v7251_v11 = vmul.f32 -1.442695, %v10140_v2 }
 0x29c   :  { %v551_v6 = vmul.f32 0.03125, %v533_v58  ;;  %v531_v59 = vpop.xlane.xlu0 %530  ;;  %8319 = vrcp.f32 %v757_v50  ;;  %v569_v16 = vmul.f32 %v10132_v49, %v10132_v49  ;;  %v568_v55 = vmul.f32 %v10134_v51, %v10134_v51 }
 0x29d   :  { %v550_v27 = vmul.f32 0.03125, %v531_v59  ;;  %8321 = vrcp.f32 %v756_v44  ;;  %v7250_v29 = vmul.f32 -1.442695, %v10149_v10 }
 0x29e   :  { %v8304_v26 = vpop.eup %8303  ;;  %v583_v7 = vsub.f32 %v551_v6, %v567_v52  ;;  %8323 = vpow2.f32 %v7251_v11 }
 0x29f   :  { %v8306_v12 = vpop.eup %8305  ;;  %v582_v14 = vsub.f32 %v550_v27, %v566_v38  ;;  %v537_v23 = vpop.xlane.xlu1 %536  ;;  %v659_v25 = vmul.f32 %v8304_v26, %v611_v54  ;;  %8325 = vpow2.f32 %v7250_v29 }
 0x2a0   :  { %v8308_v30 = vpop.eup %8307  ;;  %v599_v34 = vmax.f32 %v583_v7, 0.0  ;;  %v553_v35 = vmul.f32 0.03125, %v537_v23  ;;  %v535_v56 = vpop.xlane.xlu0 %534  ;;  %v658_v39 = vmul.f32 %v8306_v12, %v610_v4 }
 0x2a1   :  { %v8310_v28 = vpop.eup %8309  ;;  %v598_v43 = vmax.f32 %v582_v14, 0.0  ;;  %v552_v3 = vmul.f32 0.03125, %v535_v56  ;;  %v10158_v37 = vmul.f32 %v8308_v30, %v10070_v57  ;;  %v679_v50 = vmul.f32 %v10048_v13, %v659_v25 }
 0x2a2   :  { %v8312_v41 = vpop.eup %8311  ;;  %v631_v24 = vadd.f32 1e-05, %v599_v34  ;;  %v585_v20 = vsub.f32 %v553_v35, %v569_v16  ;;  %v10161_v45 = vmul.f32 %v8310_v28, %v10073_v60  ;;  %v678_v15 = vmul.f32 %v10048_v13, %v658_v39 }
 0x2a3   :  { %13870 = vst [vmem:[#allocation35_spill] sm:$0xff] %v10158_v37  ;;  %v8314_v46 = vpop.eup %8313  ;;  %v630_v19 = vadd.f32 1e-05, %v598_v43  ;;  %v584_v40 = vsub.f32 %v552_v3, %v568_v55  ;;  %v10171_v26 = vadd.f32 %v10059_v36, %v679_v50  ;;  %v661_v4 = vmul.f32 %v8312_v41, %v613_v9 }
 0x2a4   :  { %13871 = vst [vmem:[#allocation36_spill] sm:$0xff] %v10161_v45  ;;  %v8316_v52 = vpop.eup %8315  ;;  %8327 = vrsqrt.f32 %v631_v24  ;;  %v601_v58 = vmax.f32 %v585_v20, 0.0  ;;  %v835_v57 = vpack.c.bf16 %v10158_v37, %v10161_v45  ;;  %v660_v44 = vmul.f32 %v8314_v46, %v612_v48 }
 0x2a5   :  { %v8318_v6 = vpop.eup %8317  ;;  %8329 = vrsqrt.f32 %v630_v19  ;;  %v600_v59 = vmax.f32 %v584_v40, 0.0  ;;  %v758_v60 = vadd.f32 1.0, %v8316_v52  ;;  %v10168_v63 = vadd.f32 %v10059_v36, %v678_v15 }
 0x2a6   :  { %v8320_v54 = vpop.eup %8319  ;;  %v633_v38 = vadd.f32 1e-05, %v601_v58  ;;  %7817 = vmatprep.mubr.bf16.mxu1 %v835_v57  ;;  %v759_v27 = vadd.f32 1.0, %v8318_v6  ;;  %v7253_v55 = vmul.f32 -1.442695, %v10171_v26  ;;  %v680_v14 = vmul.f32 %v10048_v13, %v660_v44 }
 0x2a7   :  { %v8322_v7 = vpop.eup %8321  ;;  %v632_v48 = vadd.f32 1e-05, %v600_v59  ;;  %v10177_v11 = vmul.f32 %v8320_v54, %v10090_v33  ;;  %8331 = vrcp.f32 %v758_v60  ;;  %v7252_v12 = vmul.f32 -1.442695, %v10168_v63 }
 0x2a8   :  { %8333 = vrsqrt.f32 %v633_v38  ;;  %v10181_v16 = vmul.f32 %v8322_v7, %v10095_v21  ;;  %v681_v53 = vmul.f32 %v10048_v13, %v661_v4  ;;  %v8324_v31 = vpop.eup %8323  ;;  %v10189_v33 = vadd.f32 %v10059_v36, %v680_v14 }
 0x2a9   :  { %13872 = vst [vmem:[#allocation37_spill] sm:$0xff] %v10177_v11  ;;  %8335 = vrsqrt.f32 %v632_v48  ;;  %v761_v23 = vadd.f32 1.0, %v8324_v31  ;;  %v8326_v25 = vpop.eup %8325  ;;  %v615_v34 = vsub.f32 %v10005_v0, %v10123_v42  ;;  %v614_v28 = vsub.f32 %v10008_v1, %v10127_v47 }
 0x2aa   :  { %13873 = vst [vmem:[#allocation38_spill] sm:$0xff] %v10181_v16  ;;  %v836_v9 = vpack.c.bf16 %v10177_v11, %v10181_v16  ;;  %8337 = vrcp.f32 %v759_v27  ;;  %v10192_v21 = vadd.f32 %v10059_v36, %v681_v53  ;;  %v7254_v30 = vmul.f32 -1.442695, %v10189_v33 }
 0x2ab   :  { %8339 = vpow2.f32 %v7252_v12  ;;  %v760_v35 = vadd.f32 1.0, %v8326_v25  ;;  %v617_v24 = vsub.f32 %v9997_v61, %v10132_v49  ;;  %v616_v20 = vsub.f32 %v10000_v62, %v10134_v51 }
 0x2ac   :  { %7818 = vmatmul.mubr.bf16.vlgmr.msra.gmra.mrb[0].mxu1 %v836_v9  ;;  %8341 = vpow2.f32 %v7253_v55  ;;  %v7255_v56 = vmul.f32 -1.442695, %v10192_v21 }
 0x2ad   :  { %8343 = vrcp.f32 %v761_v23 }
 0x2ae   :  { %v8328_v29 = vpop.eup %8327  ;;  %8345 = vpow2.f32 %v7254_v30 }
 0x2af   :  { %v8330_v43 = vpop.eup %8329  ;;  %8347 = vrcp.f32 %v760_v35  ;;  %v663_v3 = vmul.f32 %v8328_v29, %v615_v34 }
 0x2b0   :  { %8349 = vpow2.f32 %v7255_v56  ;;  %v662_v39 = vmul.f32 %v8330_v43, %v614_v28 }
 0x2b1   :  { %v8332_v41 = vpop.eup %8331  ;;  %v683_v0 = vmul.f32 %v10048_v13, %v663_v3 }
 0x2b2   :  { %v8334_v42 = vpop.eup %8333  ;;  %v682_v46 = vmul.f32 %v10048_v13, %v662_v39  ;;  %v10207_v1 = vmul.f32 %v8332_v41, %v10114_v22 }
 0x2b3   :  { %v8336_v19 = vpop.eup %8335  ;;  %v10210_v47 = vadd.f32 %v10059_v36, %v683_v0  ;;  %v665_v40 = vmul.f32 %v8334_v42, %v617_v24 }
 0x2b4   :  { %13874 = vst [vmem:[#allocation39_spill] sm:$0xff] %v10207_v1  ;;  %v8338_v15 = vpop.eup %8337  ;;  %v702_v50 = vadd.f32 %v10059_v36, %v682_v46  ;;  %v664_v61 = vmul.f32 %v8336_v19, %v616_v20 }
 0x2b5   :  { %v8340_v49 = vpop.eup %8339  ;;  %v10214_v52 = vmul.f32 %v8338_v15, %v10117_v32  ;;  %v7257_v62 = vmul.f32 -1.442695, %v10210_v47  ;;  %v685_v51 = vmul.f32 %v10048_v13, %v665_v40 }
 0x2b6   :  { %v8342_v58 = vpop.eup %8341  ;;  %v762_v57 = vadd.f32 1.0, %v8340_v49  ;;  %v7256_v22 = vmul.f32 -1.442695, %v702_v50  ;;  %v684_v44 = vmul.f32 %v10048_v13, %v664_v61 }
 0x2b7   :  { %13875 = vst [vmem:[#allocation40_spill] sm:$0xff] %v10214_v52  ;;  %v8344_v6 = vpop.eup %8343  ;;  %v837_v59 = vpack.c.bf16 %v10214_v52, %v10207_v1  ;;  %v763_v60 = vadd.f32 1.0, %v8342_v58  ;;  %8351 = vpow2.f32 %v7257_v62  ;;  %v705_v54 = vadd.f32 %v10059_v36, %v685_v51 }
 0x2b8   :  { %v8346_v38 = vpop.eup %8345  ;;  %v10223_v32 = vmul.f32 %v8344_v6, %v10140_v2  ;;  %8353 = vrcp.f32 %v762_v57  ;;  %v704_v27 = vadd.f32 %v10059_v36, %v684_v44 }
 0x2b9   :  { %v8348_v4 = vpop.eup %8347  ;;  %7821 = vmatprep.mubr.bf16.mxu1 %v837_v59  ;;  %8355 = vrcp.f32 %v763_v60  ;;  %v764_v7 = vadd.f32 1.0, %v8346_v38  ;;  %v7259_v55 = vmul.f32 -1.442695, %v705_v54 }
 0x2ba   :  { %13876 = vst [vmem:[#allocation41_spill] sm:$0xff] %v10223_v32  ;;  %v8350_v13 = vpop.eup %8349  ;;  %v10227_v48 = vmul.f32 %v8348_v4, %v10149_v10  ;;  %8357 = vpow2.f32 %v7256_v22  ;;  %v7258_v12 = vmul.f32 -1.442695, %v704_v27 }
 0x2bb   :  { %v765_v14 = vadd.f32 1.0, %v8350_v13  ;;  %8359 = vrcp.f32 %v764_v7 }
 0x2bc   :  { %13877 = vst [vmem:[#allocation42_spill] sm:$0xff] %v10227_v48  ;;  %v838_v2 = vpack.c.bf16 %v10223_v32, %v10227_v48  ;;  %8361 = vpow2.f32 %v7258_v12 }
 0x2bd   :  { %8363 = vrcp.f32 %v765_v14 }
 0x2be   :  { %7822 = vmatmul.mubr.bf16.gmra.mrb[4].mxu1 %v838_v2  ;;  %8365 = vpow2.f32 %v7259_v55 }
 0x2c1   :  { %v8352_v36 = vpop.eup %8351 }
 0x2c2   :  { %v8354_v53 = vpop.eup %8353  ;;  %v767_v31 = vadd.f32 1.0, %v8352_v36 }
 0x2c3   :  { %v8356_v9 = vpop.eup %8355  ;;  %v10232_v23 = vmul.f32 %v8354_v53, %v10168_v63 }
 0x2c4   :  { %v8358_v10 = vpop.eup %8357  ;;  %v10235_v25 = vmul.f32 %v8356_v9, %v10171_v26  ;;  %8367 = vrcp.f32 %v767_v31 }
 0x2c5   :  { %13878 = vst [vmem:[#allocation43_spill] sm:$0xff] %v10232_v23  ;;  %v8360_v30 = vpop.eup %8359  ;;  %v766_v34 = vadd.f32 1.0, %v8358_v10 }
 0x2c6   :  { %13879 = vst [vmem:[#allocation44_spill] sm:$0xff] %v10235_v25  ;;  %v8362_v35 = vpop.eup %8361  ;;  %v839_v56 = vpack.c.bf16 %v10235_v25, %v10232_v23  ;;  %v10240_v29 = vmul.f32 %v8360_v30, %v10189_v33 }
 0x2c7   :  { %v8364_v28 = vpop.eup %8363  ;;  %8369 = vrcp.f32 %v766_v34  ;;  %v768_v43 = vadd.f32 1.0, %v8362_v35 }
 0x2c8   :  { %13880 = vst [vmem:[#allocation45_spill] sm:$0xff] %v10240_v29  ;;  %v8366_v3 = vpop.eup %8365  ;;  %7825 = vmatprep.mubr.bf16.mxu1 %v839_v56  ;;  %v10243_v63 = vmul.f32 %v8364_v28, %v10192_v21 }
 0x2c9   :  { %v769_v26 = vadd.f32 1.0, %v8366_v3  ;;  %8371 = vrcp.f32 %v768_v43 }
 0x2ca   :  { %13881 = vst [vmem:[#allocation46_spill] sm:$0xff] %v10243_v63  ;;  %v840_v39 = vpack.c.bf16 %v10243_v63, %v10240_v29 }
 0x2cb   :  { %8373 = vrcp.f32 %v769_v26 }
 0x2cc   :  { %7826 = vmatmul.mubr.bf16.gmra.mrb[8].mxu1 %v840_v39 }
 0x2ce   :  { %v8368_v41 = vpop.eup %8367 }
 0x2cf   :  { %v10248_v24 = vmul.f32 %v8368_v41, %v10210_v47  ;;  %v10263_v47 = vld [vmem:[%s13776_s4] sm:$0x7] }
 0x2d0   :  { %v10267_v15 = vrot.slane %v10263_v47, %v9916_v18 }
 0x2d1   :  { %13882 = vst [vmem:[#allocation47_spill] sm:$0xff] %v10248_v24  ;;  %v8370_v33 = vpop.eup %8369 }
 0x2d2   :  { %v10250_v0 = vmul.f32 %v8370_v33, %v702_v50 }
 0x2d3   :  { %v8372_v42 = vpop.eup %8371 }
 0x2d4   :  { %13883 = vst [vmem:[#allocation48_spill] sm:$0xff] %v10250_v0  ;;  %v841_v20 = vpack.c.bf16 %v10248_v24, %v10250_v0  ;;  %v10254_v21 = vmul.f32 %v8372_v42, %v704_v27 }
 0x2d5   :  { %v8374_v46 = vpop.eup %8373 }
 0x2d6   :  { %13884 = vst [vmem:[#allocation49_spill] sm:$0xff] %v10254_v21  ;;  %7829 = vmatprep.mubr.bf16.mxu1 %v841_v20  ;;  %v10256_v19 = vmul.f32 %v8374_v46, %v705_v54 }
 0x2d8   :  { %13885 = vst [vmem:[#allocation50_spill] sm:$0xff] %v10256_v19  ;;  %v842_v40 = vpack.c.bf16 %v10256_v19, %v10254_v21 }
 0x2da   :  { %7830 = vmatmul.mubr.bf16.gmra.mrb[12].mxu1 %v842_v40 }
 0x37f   :  { %v7819_v50 = vpop.f32.mrb[0].mxu1 }
 0x380   :  { %v10270_v61 = vadd.f32 %v7819_v50, %v10267_v15  ;;  %v929_v49 = vpop.f32.mrb[1].mxu1 }
 0x381   :  { %v7820_v62 = vpop.f32.mrb[2].mxu1  ;;  %v10277_v57 = vadd.f32 %v929_v49, %v10267_v15 }
 0x382   :  { %v10273_v51 = vadd.f32 %v7820_v62, %v10267_v15  ;;  %996 = vadd.xlane.f32.xlu0 %v10270_v61  ;;  %v932_v58 = vpop.f32.mrb[3].mxu1  ;;  %v1042_v59 = vmul.f32 %v10270_v61, %v10270_v61 }
 0x383   :  { %v10281_v22 = vadd.f32 %v932_v58, %v10267_v15  ;;  %v1040_v44 = vmul.f32 %v10277_v57, %v10277_v57  ;;  %v8151_v58 = vld [vmem:[#allocation8 + $0x40] sm:$0xff]  }
 0x384   :  { %998 = vadd.xlane.f32.xlu1 %v10273_v51  ;;  %v1043_v60 = vmul.f32 %v10273_v51, %v10273_v51  ;;  %7833 = vmatprep.subr.bf16.mxu0 %v8151_v58 }
 0x385   :  { %v1041_v6 = vmul.f32 %v10281_v22, %v10281_v22  ;;  %7834 = vmatpush3.bf16.msra.mxu0 %v8151_v58 }
 0x386   :  { %992 = vadd.xlane.f32.xlu0 %v10277_v57 }
 0x388   :  { %994 = vadd.xlane.f32.xlu1 %v10281_v22 }
 0x38a   :  { %1056 = vadd.xlane.f32.xlu0 %v1040_v44 }
 0x38c   :  { %1058 = vadd.xlane.f32.xlu1 %v1041_v6 }
 0x38e   :  { %1060 = vadd.xlane.f32.xlu0 %v1042_v59 }
 0x390   :  { %1062 = vadd.xlane.f32.xlu1 %v1043_v60  ;;  %v8153_v60 = vld [vmem:[#allocation8 + $0x50] sm:$0xff]  }
 0x391   :  { %v7823_v54 = vpop.f32.mrb[4].mxu1 }
 0x392   :  { %v10294_v38 = vadd.f32 %v7823_v54, %v10267_v15  ;;  %v945_v27 = vpop.f32.mrb[5].mxu1  ;;  %v8154_v54 = vld [vmem:[#allocation8 + $0x58] sm:$0xff]  }
 0x393   :  { %v7824_v4 = vpop.f32.mrb[6].mxu1  ;;  %v10301_v12 = vadd.f32 %v945_v27, %v10267_v15  ;;  %v8155_v27 = vld [vmem:[#allocation8 + $0x60] sm:$0xff]  }
 0x394   :  { %v10297_v7 = vadd.f32 %v7824_v4, %v10267_v15  ;;  %1004 = vadd.xlane.f32.xlu0 %v10294_v38  ;;  %v948_v13 = vpop.f32.mrb[7].mxu1  ;;  %v1046_v36 = vmul.f32 %v10294_v38, %v10294_v38  ;;  %v8156_v4 = vld [vmem:[#allocation8 + $0x68] sm:$0xff]  }
 0x395   :  { %v10305_v55 = vadd.f32 %v948_v13, %v10267_v15  ;;  %v1044_v14 = vmul.f32 %v10301_v12, %v10301_v12  ;;  %v8157_v13 = vld [vmem:[#allocation8 + $0x70] sm:$0xff]  }
 0x396   :  { %1006 = vadd.xlane.f32.xlu1 %v10297_v7  ;;  %v1047_v9 = vmul.f32 %v10297_v7, %v10297_v7 }
 0x397   :  { %v1045_v2 = vmul.f32 %v10305_v55, %v10305_v55 }
 0x398   :  { %1000 = vadd.xlane.f32.xlu0 %v10301_v12 }
 0x39a   :  { %1002 = vadd.xlane.f32.xlu1 %v10305_v55 }
 0x39c   :  { %1064 = vadd.xlane.f32.xlu0 %v1044_v14  ;;  %v8158_v14 = vld [vmem:[#allocation8 + $0x78] sm:$0xff]  }
 0x39e   :  { %1066 = vadd.xlane.f32.xlu1 %v1045_v2 }
 0x39f   :  { %v7827_v53 = vpop.f32.mrb[8].mxu1 }
 0x3a0   :  { %1068 = vadd.xlane.f32.xlu0 %v1046_v36  ;;  %v10316_v31 = vadd.f32 %v7827_v53, %v10267_v15  ;;  %v961_v10 = vpop.f32.mrb[9].mxu1 }
 0x3a1   :  { %v7828_v30 = vpop.f32.mrb[10].mxu1  ;;  %v10325_v56 = vadd.f32 %v961_v10, %v10267_v15 }
 0x3a2   :  { %1070 = vadd.xlane.f32.xlu1 %v1047_v9  ;;  %v10321_v34 = vadd.f32 %v7828_v30, %v10267_v15  ;;  %v964_v35 = vpop.f32.mrb[11].mxu1  ;;  %v1050_v39 = vmul.f32 %v10316_v31, %v10316_v31 }
 0x3a3   :  { %v10329_v28 = vadd.f32 %v964_v35, %v10267_v15  ;;  %v1048_v43 = vmul.f32 %v10325_v56, %v10325_v56 }
 0x3a4   :  { %1012 = vadd.xlane.f32.xlu0 %v10316_v31  ;;  %v1051_v20 = vmul.f32 %v10321_v34, %v10321_v34 }
 0x3a5   :  { %v1049_v3 = vmul.f32 %v10329_v28, %v10329_v28 }
 0x3a6   :  { %1014 = vadd.xlane.f32.xlu1 %v10321_v34 }
 0x3a8   :  { %1008 = vadd.xlane.f32.xlu0 %v10325_v56 }
 0x3aa   :  { %1010 = vadd.xlane.f32.xlu1 %v10329_v28 }
 0x3ac   :  { %1072 = vadd.xlane.f32.xlu0 %v1048_v43 }
 0x3ad   :  { %v7831_v26 = vpop.f32.mrb[12].mxu1 }
 0x3ae   :  { %1074 = vadd.xlane.f32.xlu1 %v1049_v3  ;;  %v977_v41 = vpop.f32.mrb[13].mxu1  ;;  %v10340_v42 = vadd.f32 %v7831_v26, %v10267_v15 }
 0x3af   :  { %v7832_v33 = vpop.f32.mrb[14].mxu1  ;;  %v10349_v50 = vadd.f32 %v977_v41, %v10267_v15 }
 0x3b0   :  { %1076 = vadd.xlane.f32.xlu0 %v1050_v39  ;;  %v980_v46 = vpop.f32.mrb[15].mxu1  ;;  %v10345_v40 = vadd.f32 %v7832_v33, %v10267_v15  ;;  %v1054_v6 = vmul.f32 %v10340_v42, %v10340_v42 }
 0x3b1   :  { %v10353_v49 = vadd.f32 %v980_v46, %v10267_v15  ;;  %v1052_v62 = vmul.f32 %v10349_v50, %v10349_v50  ;;  %v8152_v15 = vld [vmem:[#allocation8 + $0x48] sm:$0xff]  }
 0x3b2   :  { %1078 = vadd.xlane.f32.xlu1 %v1051_v20  ;;  %v1055_v59 = vmul.f32 %v10345_v40, %v10345_v40  ;;  %7835 = vmatprep.subr.bf16.mxu0 %v8152_v15 }
 0x3b3   :  { %v1053_v44 = vmul.f32 %v10353_v49, %v10353_v49  ;;  %7836 = vmatpush3.bf16.msra.mxu0 %v8152_v15 }
 0x3b4   :  { %1020 = vadd.xlane.f32.xlu0 %v10340_v42  ;;  %7837 = vmatprep.subr.bf16.mxu0 %v8153_v60 }
 0x3b6   :  { %1022 = vadd.xlane.f32.xlu1 %v10345_v40 }
 0x3b7   :  { %7838 = vmatpush3.bf16.msra.mxu0 %v8153_v60 }
 0x3b8   :  { %1016 = vadd.xlane.f32.xlu0 %v10349_v50  ;;  %7839 = vmatprep.subr.bf16.mxu0 %v8154_v54 }
 0x3ba   :  { %1018 = vadd.xlane.f32.xlu1 %v10353_v49 }
 0x3bb   :  { %7840 = vmatpush3.bf16.msra.mxu0 %v8154_v54 }
 0x3bc   :  { %1080 = vadd.xlane.f32.xlu0 %v1052_v62  ;;  %7841 = vmatprep.subr.bf16.mxu0 %v8155_v27 }
 0x3be   :  { %1082 = vadd.xlane.f32.xlu1 %v1053_v44 }
 0x3bf   :  { %7842 = vmatpush3.bf16.msra.mxu0 %v8155_v27 }
 0x3c0   :  { %1084 = vadd.xlane.f32.xlu0 %v1054_v6  ;;  %7843 = vmatprep.subr.bf16.mxu0 %v8156_v4 }
 0x3c2   :  { %1086 = vadd.xlane.f32.xlu1 %v1055_v59 }
 0x3c3   :  { %7844 = vmatpush3.bf16.msra.mxu0 %v8156_v4 }
 0x3c4   :  { %7845 = vmatprep.subr.bf16.mxu0 %v8157_v13 }
 0x3c7   :  { %7846 = vmatpush3.bf16.msra.mxu0 %v8157_v13 }
 0x3c8   :  { %7847 = vmatprep.subr.bf16.mxu0 %v8158_v14 }
 0x3cb   :  { %7848 = vmatpush3.bf16.msra.mxu0 %v8158_v14 }
 0x40f   :  { %v997_v2 = vpop.xlane.xlu0 %996 }
 0x410   :  { %v1026_v43 = vmul.f32 0.03125, %v997_v2 }
 0x411   :  { %v999_v36 = vpop.xlane.xlu1 %998 }
 0x412   :  { %v10365_v39 = vmul.f32 0.03125, %v999_v36  ;;  %v1106_v58 = vmul.f32 %v1026_v43, %v1026_v43 }
 0x413   :  { %v993_v53 = vpop.xlane.xlu0 %992 }
 0x414   :  { %v1024_v9 = vmul.f32 0.03125, %v993_v53  ;;  %v1107_v59 = vmul.f32 %v10365_v39, %v10365_v39 }
 0x415   :  { %v995_v10 = vpop.xlane.xlu1 %994 }
 0x416   :  { %v1025_v30 = vmul.f32 0.03125, %v995_v10  ;;  %v1104_v3 = vmul.f32 %v1024_v9, %v1024_v9 }
 0x417   :  { %v1057_v35 = vpop.xlane.xlu0 %1056 }
 0x418   :  { %v1088_v26 = vmul.f32 0.03125, %v1057_v35  ;;  %v1105_v33 = vmul.f32 %v1025_v30, %v1025_v30 }
 0x419   :  { %v1059_v41 = vpop.xlane.xlu1 %1058 }
 0x41a   :  { %v1120_v20 = vsub.f32 %v1088_v26, %v1104_v3  ;;  %v1089_v46 = vmul.f32 0.03125, %v1059_v41 }
 0x41b   :  { %v1061_v62 = vpop.xlane.xlu0 %1060 }
 0x41c   :  { %v1136_v44 = vmax.f32 %v1120_v20, 0.0  ;;  %v1121_v6 = vsub.f32 %v1089_v46, %v1105_v33  ;;  %v1090_v15 = vmul.f32 0.03125, %v1061_v62  ;;  %v10375_v62 = vrot.slane %v10263_v47, %v10035_v5 }
 0x41d   :  { %v1063_v60 = vpop.xlane.xlu1 %1062 }
 0x41e   :  { %v1168_v54 = vadd.f32 1e-05, %v1136_v44  ;;  %v1137_v27 = vmax.f32 %v1121_v6, 0.0  ;;  %v1122_v4 = vsub.f32 %v1090_v15, %v1106_v58  ;;  %v1091_v13 = vmul.f32 0.03125, %v1063_v60 }
 0x41f   :  { %v1152_v58 = vsub.f32 %v10277_v57, %v1024_v9 }
 0x420   :  { %8375 = vrsqrt.f32 %v1168_v54  ;;  %v1169_v14 = vadd.f32 1e-05, %v1137_v27  ;;  %v1138_v2 = vmax.f32 %v1122_v4, 0.0  ;;  %v1123_v36 = vsub.f32 %v1091_v13, %v1107_v59 }
 0x421   :  { %v1005_v53 = vpop.xlane.xlu0 %1004  ;;  %v10384_v54 = vrot.slane %v10263_v47, %v10040_v8  ;;  %v1153_v27 = vsub.f32 %v10281_v22, %v1025_v30 }
 0x422   :  { %8377 = vrsqrt.f32 %v1169_v14  ;;  %v1170_v10 = vadd.f32 1e-05, %v1138_v2  ;;  %v1139_v35 = vmax.f32 %v1123_v36, 0.0  ;;  %v10378_v15 = vmul.f32 0.03125, %v1005_v53 }
 0x423   :  { %v1007_v3 = vpop.xlane.xlu1 %1006  ;;  %v1154_v53 = vsub.f32 %v10270_v61, %v1026_v43 }
 0x424   :  { %8379 = vrsqrt.f32 %v1170_v10  ;;  %v1171_v26 = vadd.f32 1e-05, %v1139_v35  ;;  %v10387_v4 = vmul.f32 0.03125, %v1007_v3  ;;  %v1155_v10 = vsub.f32 %v10273_v51, %v10365_v39 }
 0x425   :  { %v1001_v41 = vpop.xlane.xlu0 %1000  ;;  %v1110_v30 = vmul.f32 %v10378_v15, %v10378_v15 }
 0x426   :  { %8381 = vrsqrt.f32 %v1171_v26  ;;  %v10369_v33 = vmul.f32 0.03125, %v1001_v41 }
 0x427   :  { %v1003_v20 = vpop.xlane.xlu1 %1002 }
 0x428   :  { %v10371_v46 = vmul.f32 0.03125, %v1003_v20  ;;  %v1108_v59 = vmul.f32 %v10369_v33, %v10369_v33 }
 0x429   :  { %v1065_v44 = vpop.xlane.xlu0 %1064 }
 0x42a   :  { %v8376_v6 = vpop.eup %8375  ;;  %v1092_v60 = vmul.f32 0.03125, %v1065_v44  ;;  %v1109_v57 = vmul.f32 %v10371_v46, %v10371_v46  ;;  %v1111_v44 = vmul.f32 %v10387_v4, %v10387_v4 }
 0x42b   :  { %v1067_v13 = vpop.xlane.xlu1 %1066  ;;  %v1200_v14 = vmul.f32 %v8376_v6, %v1152_v58 }
 0x42c   :  { %v8378_v2 = vpop.eup %8377  ;;  %v1124_v9 = vsub.f32 %v1092_v60, %v1108_v59  ;;  %v1093_v36 = vmul.f32 0.03125, %v1067_v13 }
 0x42d   :  { %v1069_v35 = vpop.xlane.xlu0 %1068  ;;  %v1201_v47 = vmul.f32 %v8378_v2, %v1153_v27  ;;  %v1220_v26 = vmul.f32 %v10375_v62, %v1200_v14 }
 0x42e   :  { %v8380_v22 = vpop.eup %8379  ;;  %v1140_v3 = vmax.f32 %v1124_v9, 0.0  ;;  %v1125_v41 = vsub.f32 %v1093_v36, %v1109_v57  ;;  %v1094_v20 = vmul.f32 0.03125, %v1069_v35 }
 0x42f   :  { %v1202_v58 = vmul.f32 %v8380_v22, %v1154_v53  ;;  %v1071_v6 = vpop.xlane.xlu1 %1070  ;;  %v1221_v61 = vmul.f32 %v10375_v62, %v1201_v47  ;;  %v10401_v51 = vadd.f32 %v10384_v54, %v1220_v26 }
 0x430   :  { %v8382_v43 = vpop.eup %8381  ;;  %v1172_v39 = vadd.f32 1e-05, %v1140_v3  ;;  %v1141_v59 = vmax.f32 %v1125_v41, 0.0  ;;  %v1126_v60 = vsub.f32 %v1094_v20, %v1110_v30  ;;  %v1095_v27 = vmul.f32 0.03125, %v1071_v6 }
 0x431   :  { %v1222_v13 = vmul.f32 %v10375_v62, %v1202_v58  ;;  %v1203_v14 = vmul.f32 %v8382_v43, %v1155_v10  ;;  %v1013_v2 = vpop.xlane.xlu0 %1012  ;;  %v10405_v57 = vadd.f32 %v10384_v54, %v1221_v61  ;;  %v7268_v9 = vmul.f32 -1.442695, %v10401_v51 }
 0x432   :  { %8383 = vrsqrt.f32 %v1172_v39  ;;  %v1173_v36 = vadd.f32 1e-05, %v1141_v59  ;;  %v1142_v53 = vmax.f32 %v1126_v60, 0.0  ;;  %v1127_v35 = vsub.f32 %v1095_v27, %v1111_v44 }
 0x433   :  { %v1223_v47 = vmul.f32 %v10375_v62, %v1203_v14  ;;  %v1015_v26 = vpop.xlane.xlu1 %1014  ;;  %8385 = vpow2.f32 %v7268_v9  ;;  %v7269_v22 = vmul.f32 -1.442695, %v10405_v57  ;;  %v10411_v41 = vadd.f32 %v10384_v54, %v1222_v13 }
 0x434   :  { %8387 = vrsqrt.f32 %v1173_v36  ;;  %v1174_v30 = vadd.f32 1e-05, %v1142_v53  ;;  %v1143_v3 = vmax.f32 %v1127_v35, 0.0  ;;  %v10421_v39 = vmul.f32 0.03125, %v1013_v2 }
 0x435   :  { %v1009_v10 = vpop.xlane.xlu0 %1008  ;;  %8389 = vpow2.f32 %v7269_v22  ;;  %v10416_v44 = vadd.f32 %v10384_v54, %v1223_v47  ;;  %v7270_v61 = vmul.f32 -1.442695, %v10411_v41  ;;  %v1156_v14 = vsub.f32 %v10301_v12, %v10369_v33 }
 0x436   :  { %v1175_v20 = vadd.f32 1e-05, %v1143_v3  ;;  %v10413_v58 = vmul.f32 0.03125, %v1009_v10  ;;  %8391 = vrsqrt.f32 %v1174_v30  ;;  %v10428_v9 = vmul.f32 0.03125, %v1015_v26 }
 0x437   :  { %v1011_v6 = vpop.xlane.xlu1 %1010  ;;  %8393 = vpow2.f32 %v7270_v61  ;;  %v7271_v60 = vmul.f32 -1.442695, %v10416_v44  ;;  %v1157_v30 = vsub.f32 %v10305_v55, %v10371_v46  ;;  %v1114_v3 = vmul.f32 %v10421_v39, %v10421_v39 }
 0x438   :  { %v10419_v43 = vmul.f32 0.03125, %v1011_v6  ;;  %8395 = vrsqrt.f32 %v1175_v20  ;;  %v1112_v27 = vmul.f32 %v10413_v58, %v10413_v58 }
 0x439   :  { %v1073_v59 = vpop.xlane.xlu0 %1072  ;;  %8397 = vpow2.f32 %v7271_v60  ;;  %v1115_v60 = vmul.f32 %v10428_v9, %v10428_v9 }
 0x43a   :  { %v1096_v13 = vmul.f32 0.03125, %v1073_v59  ;;  %v1113_v2 = vmul.f32 %v10419_v43, %v10419_v43 }
 0x43b   :  { %v1075_v36 = vpop.xlane.xlu1 %1074 }
 0x43c   :  { %v8384_v53 = vpop.eup %8383  ;;  %v1128_v35 = vsub.f32 %v1096_v13, %v1112_v27  ;;  %v1097_v47 = vmul.f32 0.03125, %v1075_v36 }
 0x43d   :  { %v8386_v22 = vpop.eup %8385  ;;  %v1077_v10 = vpop.xlane.xlu0 %1076  ;;  %v1204_v20 = vmul.f32 %v8384_v53, %v1156_v14 }
 0x43e   :  { %v8388_v12 = vpop.eup %8387  ;;  %v1144_v33 = vmax.f32 %v1128_v35, 0.0  ;;  %v1129_v26 = vsub.f32 %v1097_v47, %v1113_v2  ;;  %v1098_v6 = vmul.f32 0.03125, %v1077_v10  ;;  %v1304_v61 = vadd.f32 1.0, %v8386_v22 }
 0x43f   :  { %v8390_v59 = vpop.eup %8389  ;;  %v1079_v27 = vpop.xlane.xlu1 %1078  ;;  %v1205_v13 = vmul.f32 %v8388_v12, %v1157_v30  ;;  %v1224_v36 = vmul.f32 %v10375_v62, %v1204_v20 }
 0x440   :  { %v1176_v17 = vadd.f32 1e-05, %v1144_v33  ;;  %v1145_v55 = vmax.f32 %v1129_v26, 0.0  ;;  %v1130_v46 = vsub.f32 %v1098_v6, %v1114_v3  ;;  %v1099_v8 = vmul.f32 0.03125, %v1079_v27  ;;  %v8392_v2 = vpop.eup %8391 }
 0x441   :  { %v1021_v5 = vpop.xlane.xlu0 %1020  ;;  %v1305_v18 = vadd.f32 1.0, %v8390_v59  ;;  %8399 = vrcp.f32 %v1304_v61  ;;  %v1225_v14 = vmul.f32 %v10375_v62, %v1205_v13  ;;  %v10441_v53 = vadd.f32 %v10384_v54, %v1224_v36  ;;  %v8394_v30 = vpop.eup %8393 }
 0x442   :  { %8401 = vrsqrt.f32 %v1176_v17  ;;  %v1177_v35 = vadd.f32 1e-05, %v1145_v55  ;;  %v1146_v47 = vmax.f32 %v1130_v46, 0.0  ;;  %v1131_v22 = vsub.f32 %v1099_v8, %v1115_v60  ;;  %v8396_v12 = vpop.eup %8395 }
 0x443   :  { %v1023_v10 = vpop.xlane.xlu1 %1022  ;;  %8403 = vrcp.f32 %v1305_v18  ;;  %v10444_v20 = vadd.f32 %v10384_v54, %v1225_v14  ;;  %v7272_v3 = vmul.f32 -1.442695, %v10441_v53  ;;  %v8398_v6 = vpop.eup %8397  ;;  %v1158_v61 = vsub.f32 %v10294_v38, %v10378_v15 }
 0x444   :  { %8405 = vrsqrt.f32 %v1177_v35  ;;  %v1178_v33 = vadd.f32 1e-05, %v1146_v47  ;;  %v1147_v26 = vmax.f32 %v1131_v22, 0.0  ;;  %v1306_v59 = vadd.f32 1.0, %v8394_v30 }
 0x445   :  { %v1017_v17 = vpop.xlane.xlu0 %1016  ;;  %8407 = vpow2.f32 %v7272_v3  ;;  %v1159_v8 = vsub.f32 %v10297_v7, %v10387_v4  ;;  %v10453_v27 = vmul.f32 0.03125, %v1021_v5  ;;  %v1307_v55 = vadd.f32 1.0, %v8398_v6 }
 0x446   :  { %v1179_v60 = vadd.f32 1e-05, %v1147_v26  ;;  %v10455_v13 = vmul.f32 0.03125, %v1017_v17  ;;  %8409 = vrcp.f32 %v1306_v59  ;;  %v7273_v46 = vmul.f32 -1.442695, %v10444_v20 }
 0x447   :  { %v1019_v36 = vpop.xlane.xlu1 %1018  ;;  %8411 = vrsqrt.f32 %v1178_v33  ;;  %v1206_v15 = vmul.f32 %v8392_v2, %v1158_v61  ;;  %v1207_v14 = vmul.f32 %v8396_v12, %v1159_v8  ;;  %v1160_v4 = vsub.f32 %v10325_v56, %v10413_v58 }
 0x448   :  { %v10458_v38 = vmul.f32 0.03125, %v1019_v36  ;;  %v10464_v5 = vmul.f32 0.03125, %v1023_v10  ;;  %8413 = vrcp.f32 %v1307_v55  ;;  %v1161_v47 = vsub.f32 %v10329_v28, %v10419_v43 }
 0x449   :  { %v1081_v35 = vpop.xlane.xlu0 %1080  ;;  %v1116_v22 = vmul.f32 %v10455_v13, %v10455_v13  ;;  %8415 = vpow2.f32 %v7273_v46  ;;  %v1118_v3 = vmul.f32 %v10453_v27, %v10453_v27  ;;  %v1226_v56 = vmul.f32 %v10375_v62, %v1206_v15 }
 0x44a   :  { %v1100_v30 = vmul.f32 0.03125, %v1081_v35  ;;  %8417 = vrsqrt.f32 %v1179_v60  ;;  %v1227_v58 = vmul.f32 %v10375_v62, %v1207_v14  ;;  %v1117_v33 = vmul.f32 %v10458_v38, %v10458_v38 }
 0x44b   :  { %v8400_v2 = vpop.eup %8399  ;;  %v1083_v12 = vpop.xlane.xlu1 %1082  ;;  %v1119_v61 = vmul.f32 %v10464_v5, %v10464_v5  ;;  %v10480_v59 = vadd.f32 %v10384_v54, %v1226_v56 }
 0x44c   :  { %v8402_v10 = vpop.eup %8401  ;;  %v1132_v28 = vsub.f32 %v1100_v30, %v1116_v22  ;;  %v1101_v43 = vmul.f32 0.03125, %v1083_v12  ;;  %v1352_v26 = vmul.f32 %v8400_v2, %v10401_v51  ;;  %v10483_v8 = vadd.f32 %v10384_v54, %v1227_v58 }
 0x44d   :  { %v8404_v6 = vpop.eup %8403  ;;  %v1085_v17 = vpop.xlane.xlu0 %1084  ;;  %v1208_v60 = vmul.f32 %v8402_v10, %v1160_v4  ;;  %v7274_v30 = vmul.f32 -1.442695, %v10480_v59 }
 0x44e   :  { %v8406_v36 = vpop.eup %8405  ;;  %v1148_v55 = vmax.f32 %v1132_v28, 0.0  ;;  %v1133_v46 = vsub.f32 %v1101_v43, %v1117_v33  ;;  %v1102_v15 = vmul.f32 0.03125, %v1085_v17  ;;  %v1353_v14 = vmul.f32 %v8404_v6, %v10405_v57 }
 0x44f   :  { %v8408_v35 = vpop.eup %8407  ;;  %v1087_v51 = vpop.xlane.xlu1 %1086  ;;  %v1368_v22 = vadd.f32 %v1352_v26, %v10161_v45  ;;  %v7275_v2 = vmul.f32 -1.442695, %v10483_v8  ;;  %v1209_v12 = vmul.f32 %v8406_v36, %v1161_v47  ;;  %8419 = vpow2.f32 %v7274_v30 }
 0x450   :  { %v1180_v56 = vadd.f32 1e-05, %v1148_v55  ;;  %v1149_v7 = vmax.f32 %v1133_v46, 0.0  ;;  %v1134_v58 = vsub.f32 %v1102_v15, %v1118_v3  ;;  %v1103_v18 = vmul.f32 0.03125, %v1087_v51  ;;  %v8410_v4 = vpop.eup %8409 }
 0x451   :  { %v1369_v10 = vadd.f32 %v1353_v14, %v10158_v37  ;;  %v10490_v33 = vmul.f32 0.70710677, %v1368_v22  ;;  %v1308_v28 = vadd.f32 1.0, %v8408_v35  ;;  %v8412_v57 = vpop.eup %8411  ;;  %v1354_v47 = vmul.f32 %v8410_v4, %v10411_v41 }
 0x452   :  { %8421 = vrsqrt.f32 %v1180_v56  ;;  %v1181_v43 = vadd.f32 1e-05, %v1149_v7  ;;  %v1150_v26 = vmax.f32 %v1134_v58, 0.0  ;;  %v1135_v6 = vsub.f32 %v1103_v18, %v1119_v61  ;;  %v8414_v17 = vpop.eup %8413 }
 0x453   :  { %v10492_v45 = vmul.f32 0.70710677, %v1369_v10  ;;  %8423 = vrcp.f32 %v1308_v28  ;;  %v1228_v3 = vmul.f32 %v10375_v62, %v1208_v60  ;;  %v8416_v36 = vpop.eup %8415  ;;  %v1355_v15 = vmul.f32 %v8414_v17, %v10416_v44 }
 0x454   :  { %8425 = vrsqrt.f32 %v1181_v43  ;;  %v1182_v55 = vadd.f32 1e-05, %v1150_v26  ;;  %v1151_v46 = vmax.f32 %v1135_v6, 0.0  ;;  %v8418_v14 = vpop.eup %8417  ;;  %v1370_v18 = vadd.f32 %v1354_v47, %v10181_v16 }
 0x455   :  { %v1419_v7 = vpack.c.bf16 %v10492_v45, %v10490_v33  ;;  %v1309_v61 = vadd.f32 1.0, %v8416_v36  ;;  %8427 = vpow2.f32 %v7275_v2  ;;  %v1371_v41 = vadd.f32 %v1355_v15, %v10177_v11 }
 0x456   :  { %8429 = vrsqrt.f32 %v1182_v55  ;;  %v1183_v35 = vadd.f32 1e-05, %v1151_v46  ;;  %v1229_v60 = vmul.f32 %v10375_v62, %v1209_v12  ;;  %v10502_v51 = vmul.f32 0.70710677, %v1370_v18 }
 0x457   :  { %7849 = vmatprep.mubr.bf16.mxu0 %v1419_v7  ;;  %8431 = vrcp.f32 %v1309_v61  ;;  %v10505_v44 = vadd.f32 %v10384_v54, %v1228_v3  ;;  %v13886_v22 = vsub.f32 %v10316_v31, %v10421_v39  ;;  %v10510_v56 = vmul.f32 0.70710677, %v1371_v41 }
 0x458   :  { %8433 = vrsqrt.f32 %v1183_v35  ;;  %v10513_v2 = vadd.f32 %v10384_v54, %v1229_v60  ;;  %v13887_v12 = vsub.f32 %v10321_v34, %v10428_v9  ;;  %v1164_v43 = vsub.f32 %v10349_v50, %v10455_v13 }
 0x459   :  { %v1210_v30 = vmul.f32 %v8412_v57, %v13886_v22  ;;  %v7276_v4 = vmul.f32 -1.442695, %v10505_v44  ;;  %v1420_v28 = vpack.c.bf16 %v10510_v56, %v10502_v51  ;;  %v8420_v57 = vpop.eup %8419  ;;  %v1165_v47 = vsub.f32 %v10353_v49, %v10458_v38 }
 0x45a   :  { %v1211_v58 = vmul.f32 %v8418_v14, %v13887_v12  ;;  %v7277_v31 = vmul.f32 -1.442695, %v10513_v2  ;;  %v1310_v9 = vadd.f32 1.0, %v8420_v57  ;;  %v1166_v15 = vsub.f32 %v10340_v42, %v10453_v27 }
 0x45b   :  { %v1230_v10 = vmul.f32 %v10375_v62, %v1210_v30  ;;  %8435 = vpow2.f32 %v7276_v4  ;;  %7850 = vmatmul.mubr.bf16.vlgmr.msra.gmra.mrb[16].mxu0 %v1420_v28  ;;  %v1167_v38 = vsub.f32 %v10345_v40, %v10464_v5 }
 0x45c   :  { %v1231_v39 = vmul.f32 %v10375_v62, %v1211_v58  ;;  %v8422_v34 = vpop.eup %8421  ;;  %8437 = vpow2.f32 %v7277_v31 }
 0x45d   :  { %v10527_v26 = vadd.f32 %v10384_v54, %v1230_v10  ;;  %v8424_v17 = vpop.eup %8423  ;;  %v1212_v36 = vmul.f32 %v8422_v34, %v1164_v43  ;;  %8439 = vrcp.f32 %v1310_v9 }
 0x45e   :  { %v10530_v6 = vadd.f32 %v10384_v54, %v1231_v39  ;;  %v8426_v55 = vpop.eup %8425  ;;  %v1356_v50 = vmul.f32 %v8424_v17, %v10441_v53 }
 0x45f   :  { %v7278_v3 = vmul.f32 -1.442695, %v10527_v26  ;;  %v8428_v46 = vpop.eup %8427  ;;  %v1213_v14 = vmul.f32 %v8426_v55, %v1165_v47  ;;  %v1232_v7 = vmul.f32 %v10375_v62, %v1212_v36 }
 0x460   :  { %v7279_v13 = vmul.f32 -1.442695, %v10530_v6  ;;  %v8430_v18 = vpop.eup %8429  ;;  %v1311_v61 = vadd.f32 1.0, %v8428_v46  ;;  %v1372_v27 = vadd.f32 %v1356_v50, %v10207_v1 }
 0x461   :  { %8441 = vpow2.f32 %v7278_v3  ;;  %v8432_v49 = vpop.eup %8431  ;;  %v1233_v53 = vmul.f32 %v10375_v62, %v1213_v14  ;;  %v10544_v35 = vadd.f32 %v10384_v54, %v1232_v7  ;;  %v1214_v41 = vmul.f32 %v8430_v18, %v1166_v15 }
 0x462   :  { %8443 = vpow2.f32 %v7279_v13  ;;  %v8434_v60 = vpop.eup %8433  ;;  %v1357_v42 = vmul.f32 %v8432_v49, %v10444_v20  ;;  %v10559_v31 = vmul.f32 0.70710677, %v1372_v27 }
 0x463   :  { %8445 = vrcp.f32 %v1311_v61  ;;  %v10549_v22 = vadd.f32 %v10384_v54, %v1233_v53  ;;  %v7280_v30 = vmul.f32 -1.442695, %v10544_v35  ;;  %v1215_v12 = vmul.f32 %v8434_v60, %v1167_v38 }
 0x464   :  { %v1234_v40 = vmul.f32 %v10375_v62, %v1214_v41  ;;  %v1373_v5 = vadd.f32 %v1357_v42, %v10214_v52 }
 0x465   :  { %v8436_v58 = vpop.eup %8435  ;;  %8447 = vpow2.f32 %v7280_v30  ;;  %v7281_v4 = vmul.f32 -1.442695, %v10549_v22  ;;  %v1235_v10 = vmul.f32 %v10375_v62, %v1215_v12 }
 0x466   :  { %v10557_v20 = vadd.f32 %v10384_v54, %v1234_v40  ;;  %v8438_v28 = vpop.eup %8437  ;;  %v10561_v39 = vmul.f32 0.70710677, %v1373_v5  ;;  %v1312_v57 = vadd.f32 1.0, %v8436_v58 }
 0x467   :  { %v1313_v43 = vadd.f32 1.0, %v8438_v28  ;;  %8449 = vpow2.f32 %v7281_v4  ;;  %v10564_v34 = vadd.f32 %v10384_v54, %v1235_v10  ;;  %v8440_v17 = vpop.eup %8439 }
 0x468   :  { %v7282_v9 = vmul.f32 -1.442695, %v10557_v20  ;;  %v1421_v62 = vpack.c.bf16 %v10561_v39, %v10559_v31  ;;  %8451 = vrcp.f32 %v1312_v57  ;;  %v1358_v3 = vmul.f32 %v8440_v17, %v10480_v59 }
 0x469   :  { %8453 = vrcp.f32 %v1313_v43  ;;  %v7283_v36 = vmul.f32 -1.442695, %v10564_v34 }
 0x46a   :  { %7853 = vmatprep.mubr.bf16.mxu0 %v1421_v62  ;;  %8455 = vpow2.f32 %v7282_v9  ;;  %v1374_v15 = vadd.f32 %v1358_v3, %v10227_v48 }
 0x46b   :  { %v8442_v47 = vpop.eup %8441  ;;  %8457 = vpow2.f32 %v7283_v36 }
 0x46c   :  { %v8444_v55 = vpop.eup %8443  ;;  %v1314_v50 = vadd.f32 1.0, %v8442_v47  ;;  %v10574_v61 = vmul.f32 0.70710677, %v1374_v15 }
 0x46d   :  { %v1315_v13 = vadd.f32 1.0, %v8444_v55  ;;  %v8446_v54 = vpop.eup %8445 }
 0x46e   :  { %8459 = vrcp.f32 %v1314_v50  ;;  %v1359_v46 = vmul.f32 %v8446_v54, %v10483_v8 }
 0x46f   :  { %8461 = vrcp.f32 %v1315_v13  ;;  %v8448_v14 = vpop.eup %8447 }
 0x470   :  { %v1375_v7 = vadd.f32 %v1359_v46, %v10223_v32  ;;  %v1316_v59 = vadd.f32 1.0, %v8448_v14 }
 0x471   :  { %v8450_v18 = vpop.eup %8449 }
 0x472   :  { %v10576_v49 = vmul.f32 0.70710677, %v1375_v7  ;;  %v8452_v38 = vpop.eup %8451  ;;  %v1317_v53 = vadd.f32 1.0, %v8450_v18  ;;  %8463 = vrcp.f32 %v1316_v59 }
 0x473   :  { %v8454_v41 = vpop.eup %8453  ;;  %v1360_v8 = vmul.f32 %v8452_v38, %v10505_v44 }
 0x474   :  { %v1422_v60 = vpack.c.bf16 %v10576_v49, %v10574_v61  ;;  %v8456_v42 = vpop.eup %8455  ;;  %v1361_v27 = vmul.f32 %v8454_v41, %v10513_v2  ;;  %8465 = vrcp.f32 %v1317_v53  ;;  %v13888_v41 = vld [vmem:[#allocation32_spill] sm:$0xff] }
 0x475   :  { %v8458_v30 = vpop.eup %8457  ;;  %v1376_v12 = vadd.f32 %v1360_v8, %v10232_v23  ;;  %v1318_v40 = vadd.f32 1.0, %v8456_v42 }
 0x476   :  { %7854 = vmatmul.mubr.bf16.gmra.mrb[20].mxu0 %v1422_v60  ;;  %v1377_v58 = vadd.f32 %v1361_v27, %v10235_v25  ;;  %v1319_v4 = vadd.f32 1.0, %v8458_v30 }
 0x477   :  { %8467 = vrcp.f32 %v1318_v40  ;;  %v10585_v57 = vmul.f32 0.70710677, %v1376_v12 }
 0x478   :  { %v8460_v5 = vpop.eup %8459  ;;  %v10587_v44 = vmul.f32 0.70710677, %v1377_v58  ;;  %8469 = vrcp.f32 %v1319_v4 }
 0x479   :  { %v8462_v10 = vpop.eup %8461  ;;  %v1362_v28 = vmul.f32 %v8460_v5, %v10527_v26 }
 0x47a   :  { %v1363_v2 = vmul.f32 %v8462_v10, %v10530_v6  ;;  %v1423_v9 = vpack.c.bf16 %v10587_v44, %v10585_v57 }
 0x47b   :  { %v1378_v43 = vadd.f32 %v1362_v28, %v10240_v29 }
 0x47c   :  { %v1379_v17 = vadd.f32 %v1363_v2, %v10243_v63  ;;  %v8464_v62 = vpop.eup %8463  ;;  %7857 = vmatprep.mubr.bf16.mxu0 %v1423_v9 }
 0x47d   :  { %v10594_v47 = vmul.f32 0.70710677, %v1378_v43  ;;  %v1364_v3 = vmul.f32 %v8464_v62, %v10544_v35 }
 0x47e   :  { %v10596_v26 = vmul.f32 0.70710677, %v1379_v17  ;;  %v8466_v36 = vpop.eup %8465 }
 0x47f   :  { %v1365_v55 = vmul.f32 %v8466_v36, %v10549_v22  ;;  %v1380_v50 = vadd.f32 %v1364_v3, %v10250_v0 }
 0x480   :  { %v1424_v6 = vpack.c.bf16 %v10596_v26, %v10594_v47 }
 0x481   :  { %v8468_v13 = vpop.eup %8467  ;;  %v1381_v54 = vadd.f32 %v1365_v55, %v10248_v24  ;;  %v10605_v14 = vmul.f32 0.70710677, %v1380_v50 }
 0x482   :  { %7858 = vmatmul.mubr.bf16.gmra.mrb[24].mxu0 %v1424_v6  ;;  %v8470_v46 = vpop.eup %8469  ;;  %v1366_v15 = vmul.f32 %v8468_v13, %v10557_v20 }
 0x483   :  { %v10607_v7 = vmul.f32 0.70710677, %v1381_v54  ;;  %v1367_v35 = vmul.f32 %v8470_v46, %v10564_v34  ;;  %v10623_v34 = vld [vmem:[%s13776_s4 + $0x4] sm:$0x7] }
 0x484   :  { %v1382_v59 = vadd.f32 %v1366_v15, %v10254_v21  ;;  %v10627_v60 = vrot.slane %v10623_v34, %v13888_v41 }
 0x485   :  { %v1425_v22 = vpack.c.bf16 %v10607_v7, %v10605_v14  ;;  %v1383_v18 = vadd.f32 %v1367_v35, %v10256_v19 }
 0x486   :  { %v10614_v38 = vmul.f32 0.70710677, %v1382_v59 }
 0x487   :  { %7861 = vmatprep.mubr.bf16.mxu0 %v1425_v22  ;;  %v10616_v53 = vmul.f32 0.70710677, %v1383_v18 }
 0x489   :  { %v1426_v20 = vpack.c.bf16 %v10616_v53, %v10614_v38 }
 0x48b   :  { %7862 = vmatmul.mubr.bf16.gmra.mrb[28].mxu0 %v1426_v20 }
 0x52e   :  { %v7851_v8 = vpop.f32.mrb[16].mxu0 }
 0x52f   :  { %v10630_v42 = vadd.f32 %v7851_v8, %v10627_v60  ;;  %v1513_v27 = vpop.f32.mrb[17].mxu0 }
 0x530   :  { %v7852_v30 = vpop.f32.mrb[18].mxu0  ;;  %v10637_v5 = vadd.f32 %v1513_v27, %v10627_v60 }
 0x531   :  { %v10633_v12 = vadd.f32 %v7852_v30, %v10627_v60  ;;  %1580 = vadd.xlane.f32.xlu0 %v10630_v42  ;;  %v1516_v40 = vpop.f32.mrb[19].mxu0  ;;  %v1626_v28 = vmul.f32 %v10630_v42, %v10630_v42 }
 0x532   :  { %v10641_v58 = vadd.f32 %v1516_v40, %v10627_v60  ;;  %v1624_v4 = vmul.f32 %v10637_v5, %v10637_v5 }
 0x533   :  { %1582 = vadd.xlane.f32.xlu1 %v10633_v12  ;;  %v1627_v2 = vmul.f32 %v10633_v12, %v10633_v12 }
 0x534   :  { %v1625_v10 = vmul.f32 %v10641_v58, %v10641_v58 }
 0x535   :  { %1576 = vadd.xlane.f32.xlu0 %v10637_v5 }
 0x537   :  { %1578 = vadd.xlane.f32.xlu1 %v10641_v58 }
 0x539   :  { %1640 = vadd.xlane.f32.xlu0 %v1624_v4 }
 0x53b   :  { %1642 = vadd.xlane.f32.xlu1 %v1625_v10 }
 0x53d   :  { %1644 = vadd.xlane.f32.xlu0 %v1626_v28 }
 0x53f   :  { %1646 = vadd.xlane.f32.xlu1 %v1627_v2 }
 0x549   :  { %v7855_v43 = vpop.f32.mrb[20].mxu0 }
 0x54a   :  { %v10654_v9 = vadd.f32 %v7855_v43, %v10627_v60  ;;  %v1529_v17 = vpop.f32.mrb[21].mxu0 }
 0x54b   :  { %v7856_v62 = vpop.f32.mrb[22].mxu0  ;;  %v10661_v6 = vadd.f32 %v1529_v17, %v10627_v60 }
 0x54c   :  { %v10657_v3 = vadd.f32 %v7856_v62, %v10627_v60  ;;  %1588 = vadd.xlane.f32.xlu0 %v10654_v9  ;;  %v1532_v36 = vpop.f32.mrb[23].mxu0  ;;  %v1630_v15 = vmul.f32 %v10654_v9, %v10654_v9 }
 0x54d   :  { %v10665_v55 = vadd.f32 %v1532_v36, %v10627_v60  ;;  %v1628_v50 = vmul.f32 %v10661_v6, %v10661_v6 }
 0x54e   :  { %1590 = vadd.xlane.f32.xlu1 %v10657_v3  ;;  %v1631_v18 = vmul.f32 %v10657_v3, %v10657_v3 }
 0x54f   :  { %v1629_v13 = vmul.f32 %v10665_v55, %v10665_v55 }
 0x550   :  { %1584 = vadd.xlane.f32.xlu0 %v10661_v6 }
 0x552   :  { %1586 = vadd.xlane.f32.xlu1 %v10665_v55 }
 0x554   :  { %1648 = vadd.xlane.f32.xlu0 %v1628_v50 }
 0x555   :  { %v7859_v54 = vpop.f32.mrb[24].mxu0 }
 0x556   :  { %v1545_v46 = vpop.f32.mrb[25].mxu0  ;;  %1650 = vadd.xlane.f32.xlu1 %v1629_v13  ;;  %v10676_v22 = vadd.f32 %v7859_v54, %v10627_v60 }
 0x557   :  { %v7860_v35 = vpop.f32.mrb[26].mxu0  ;;  %v10685_v8 = vadd.f32 %v1545_v46, %v10627_v60  ;;  %v8159_v46 = vld [vmem:[#allocation8 + $0x80] sm:$0xff]  }
 0x558   :  { %v1548_v59 = vpop.f32.mrb[27].mxu0  ;;  %1652 = vadd.xlane.f32.xlu0 %v1630_v15  ;;  %v10681_v20 = vadd.f32 %v7860_v35, %v10627_v60  ;;  %v1634_v17 = vmul.f32 %v10676_v22, %v10676_v22  ;;  %7865 = vmatprep.subr.bf16.mxu1 %v8159_v46  ;;  %v8160_v35 = vld [vmem:[#allocation8 + $0x88] sm:$0xff]  }
 0x559   :  { %v10689_v30 = vadd.f32 %v1548_v59, %v10627_v60  ;;  %v1632_v10 = vmul.f32 %v10685_v8, %v10685_v8  ;;  %7866 = vmatpush3.bf16.msra.mxu1 %v8159_v46 }
 0x55a   :  { %1654 = vadd.xlane.f32.xlu1 %v1631_v18  ;;  %v1635_v36 = vmul.f32 %v10681_v20, %v10681_v20  ;;  %7867 = vmatprep.subr.bf16.mxu1 %v8160_v35  ;;  %v8161_v18 = vld [vmem:[#allocation8 + $0x90] sm:$0xff]  }
 0x55b   :  { %v1633_v43 = vmul.f32 %v10689_v30, %v10689_v30 }
 0x55c   :  { %1596 = vadd.xlane.f32.xlu0 %v10676_v22 }
 0x55d   :  { %7868 = vmatpush3.bf16.msra.mxu1 %v8160_v35 }
 0x55e   :  { %1598 = vadd.xlane.f32.xlu1 %v10681_v20  ;;  %v7863_v27 = vpop.f32.mrb[28].mxu0  ;;  %7869 = vmatprep.subr.bf16.mxu1 %v8161_v18 }
 0x55f   :  { %v1561_v40 = vpop.f32.mrb[29].mxu0  ;;  %v10703_v62 = vadd.f32 %v7863_v27, %v10627_v60  ;;  %v8162_v27 = vld [vmem:[#allocation8 + $0x98] sm:$0xff]  }
 0x560   :  { %1592 = vadd.xlane.f32.xlu0 %v10685_v8  ;;  %v7864_v4 = vpop.f32.mrb[30].mxu0  ;;  %v10712_v13 = vadd.f32 %v1561_v40, %v10627_v60  ;;  %v8163_v40 = vld [vmem:[#allocation8 + $0xa0] sm:$0xff]  }
 0x561   :  { %v1564_v28 = vpop.f32.mrb[31].mxu0  ;;  %v10708_v50 = vadd.f32 %v7864_v4, %v10627_v60  ;;  %7870 = vmatpush3.bf16.msra.mxu1 %v8161_v18  ;;  %v8164_v4 = vld [vmem:[#allocation8 + $0xa8] sm:$0xff]  }
 0x562   :  { %1594 = vadd.xlane.f32.xlu1 %v10689_v30  ;;  %v10696_v2 = vadd.f32 %v1564_v28, %v10627_v60  ;;  %v1636_v54 = vmul.f32 %v10712_v13, %v10712_v13  ;;  %v1638_v60 = vmul.f32 %v10703_v62, %v10703_v62  ;;  %7871 = vmatprep.subr.bf16.mxu1 %v8162_v27  ;;  %v8166_v28 = vld [vmem:[#allocation8 + $0xb8] sm:$0xff]  }
 0x563   :  { %v1639_v59 = vmul.f32 %v10708_v50, %v10708_v50 }
 0x564   :  { %1656 = vadd.xlane.f32.xlu0 %v1632_v10  ;;  %v1637_v15 = vmul.f32 %v10696_v2, %v10696_v2  ;;  %v8165_v10 = vld [vmem:[#allocation8 + $0xb0] sm:$0xff]  }
 0x565   :  { %7872 = vmatpush3.bf16.msra.mxu1 %v8162_v27 }
 0x566   :  { %1658 = vadd.xlane.f32.xlu1 %v1633_v43  ;;  %7873 = vmatprep.subr.bf16.mxu1 %v8163_v40 }
 0x568   :  { %1660 = vadd.xlane.f32.xlu0 %v1634_v17 }
 0x569   :  { %7874 = vmatpush3.bf16.msra.mxu1 %v8163_v40 }
 0x56a   :  { %1662 = vadd.xlane.f32.xlu1 %v1635_v36  ;;  %7875 = vmatprep.subr.bf16.mxu1 %v8164_v4 }
 0x56c   :  { %1604 = vadd.xlane.f32.xlu0 %v10703_v62 }
 0x56d   :  { %7876 = vmatpush3.bf16.msra.mxu1 %v8164_v4 }
 0x56e   :  { %1606 = vadd.xlane.f32.xlu1 %v10708_v50  ;;  %7877 = vmatprep.subr.bf16.mxu1 %v8165_v10 }
 0x570   :  { %1600 = vadd.xlane.f32.xlu0 %v10712_v13 }
 0x571   :  { %7878 = vmatpush3.bf16.msra.mxu1 %v8165_v10 }
 0x572   :  { %1602 = vadd.xlane.f32.xlu1 %v10696_v2  ;;  %7879 = vmatprep.subr.bf16.mxu1 %v8166_v28 }
 0x574   :  { %1664 = vadd.xlane.f32.xlu0 %v1636_v54 }
 0x575   :  { %7880 = vmatpush3.bf16.msra.mxu1 %v8166_v28 }
 0x576   :  { %1666 = vadd.xlane.f32.xlu1 %v1637_v15 }
 0x578   :  { %1668 = vadd.xlane.f32.xlu0 %v1638_v60 }
 0x57a   :  { %1670 = vadd.xlane.f32.xlu1 %v1639_v59 }
 0x5be   :  { %v1581_v43 = vpop.xlane.xlu0 %1580 }
 0x5bf   :  { %v1610_v35 = vmul.f32 0.03125, %v1581_v43 }
 0x5c0   :  { %v1583_v17 = vpop.xlane.xlu1 %1582 }
 0x5c1   :  { %v1611_v27 = vmul.f32 0.03125, %v1583_v17  ;;  %v1690_v10 = vmul.f32 %v1610_v35, %v1610_v35 }
 0x5c2   :  { %v1577_v36 = vpop.xlane.xlu0 %1576 }
 0x5c3   :  { %v1608_v54 = vmul.f32 0.03125, %v1577_v36  ;;  %v1691_v63 = vmul.f32 %v1611_v27, %v1611_v27 }
 0x5c4   :  { %v1579_v46 = vpop.xlane.xlu1 %1578 }
 0x5c5   :  { %v1609_v15 = vmul.f32 0.03125, %v1579_v46  ;;  %v1688_v59 = vmul.f32 %v1608_v54, %v1608_v54 }
 0x5c6   :  { %v1641_v60 = vpop.xlane.xlu0 %1640 }
 0x5c7   :  { %v1672_v18 = vmul.f32 0.03125, %v1641_v60  ;;  %v1689_v21 = vmul.f32 %v1609_v15, %v1609_v15 }
 0x5c8   :  { %v1643_v40 = vpop.xlane.xlu1 %1642 }
 0x5c9   :  { %v1704_v4 = vsub.f32 %v1672_v18, %v1688_v59  ;;  %v1673_v19 = vmul.f32 0.03125, %v1643_v40 }
 0x5ca   :  { %v1645_v0 = vpop.xlane.xlu0 %1644 }
 0x5cb   :  { %v1720_v24 = vmax.f32 %v1704_v4, 0.0  ;;  %v1705_v29 = vsub.f32 %v1673_v19, %v1689_v21  ;;  %v1674_v28 = vmul.f32 0.03125, %v1645_v0  ;;  %v1736_v21 = vsub.f32 %v10637_v5, %v1608_v54  ;;  %v13889_v19 = vld [vmem:[#allocation33_spill] sm:$0xff] }
 0x5cc   :  { %v1647_v25 = vpop.xlane.xlu1 %1646 }
 0x5cd   :  { %v1752_v23 = vadd.f32 1e-05, %v1720_v24  ;;  %v1721_v36 = vmax.f32 %v1705_v29, 0.0  ;;  %v1706_v32 = vsub.f32 %v1674_v28, %v1690_v10  ;;  %v1675_v46 = vmul.f32 0.03125, %v1647_v25 }
 0x5ce   :  { %v10728_v24 = vrot.slane %v10623_v34, %v13889_v19 }
 0x5cf   :  { %8471 = vrsqrt.f32 %v1752_v23  ;;  %v1753_v43 = vadd.f32 1e-05, %v1721_v36  ;;  %v1722_v48 = vmax.f32 %v1706_v32, 0.0  ;;  %v1707_v60 = vsub.f32 %v1675_v46, %v1691_v63  ;;  %v13890_v63 = vld [vmem:[#allocation34_spill] sm:$0xff] }
 0x5d0   :  { %v1737_v23 = vsub.f32 %v10641_v58, %v1609_v15  ;;  %v1739_v36 = vsub.f32 %v10633_v12, %v1611_v27 }
 0x5d1   :  { %8473 = vrsqrt.f32 %v1753_v43  ;;  %v1754_v17 = vadd.f32 1e-05, %v1722_v48  ;;  %v1723_v52 = vmax.f32 %v1707_v60, 0.0  ;;  %v10733_v48 = vrot.slane %v10623_v34, %v13890_v63 }
 0x5d3   :  { %8475 = vrsqrt.f32 %v1754_v17  ;;  %v1755_v59 = vadd.f32 1e-05, %v1723_v52  ;;  %v1738_v52 = vsub.f32 %v10630_v42, %v1610_v35 }
 0x5d5   :  { %8477 = vrsqrt.f32 %v1755_v59 }
 0x5d9   :  { %v1589_v18 = vpop.xlane.xlu0 %1588  ;;  %v8472_v0 = vpop.eup %8471 }
 0x5da   :  { %v1784_v25 = vmul.f32 %v8472_v0, %v1736_v21  ;;  %v10742_v43 = vmul.f32 0.03125, %v1589_v18 }
 0x5db   :  { %v1591_v29 = vpop.xlane.xlu1 %1590  ;;  %v8474_v32 = vpop.eup %8473 }
 0x5dc   :  { %v1785_v4 = vmul.f32 %v8474_v32, %v1737_v23  ;;  %v1804_v28 = vmul.f32 %v10728_v24, %v1784_v25  ;;  %v10749_v59 = vmul.f32 0.03125, %v1591_v29  ;;  %v1694_v29 = vmul.f32 %v10742_v43, %v10742_v43 }
 0x5dd   :  { %v1585_v40 = vpop.xlane.xlu0 %1584  ;;  %v8476_v10 = vpop.eup %8475 }
 0x5de   :  { %v10736_v5 = vmul.f32 0.03125, %v1585_v40  ;;  %v1786_v46 = vmul.f32 %v8476_v10, %v1738_v52  ;;  %v1805_v60 = vmul.f32 %v10728_v24, %v1785_v4  ;;  %v10746_v42 = vadd.f32 %v10733_v48, %v1804_v28 }
 0x5df   :  { %v1587_v54 = vpop.xlane.xlu1 %1586  ;;  %v8478_v15 = vpop.eup %8477 }
 0x5e0   :  { %v10740_v58 = vmul.f32 0.03125, %v1587_v54  ;;  %v1806_v35 = vmul.f32 %v10728_v24, %v1786_v46  ;;  %v1787_v17 = vmul.f32 %v8478_v15, %v1739_v36  ;;  %v1692_v12 = vmul.f32 %v10736_v5, %v10736_v5 }
 0x5e1   :  { %v1649_v34 = vpop.xlane.xlu0 %1648  ;;  %v10754_v0 = vadd.f32 %v10733_v48, %v1805_v60  ;;  %v7293_v18 = vmul.f32 -1.442695, %v10746_v42  ;;  %v1695_v15 = vmul.f32 %v10749_v59, %v10749_v59 }
 0x5e2   :  { %v1676_v27 = vmul.f32 0.03125, %v1649_v34  ;;  %v1807_v23 = vmul.f32 %v10728_v24, %v1787_v17  ;;  %v1693_v25 = vmul.f32 %v10740_v58, %v10740_v58  ;;  %v10761_v40 = vadd.f32 %v10733_v48, %v1806_v35 }
 0x5e3   :  { %v1651_v21 = vpop.xlane.xlu1 %1650  ;;  %8479 = vpow2.f32 %v7293_v18  ;;  %v7294_v10 = vmul.f32 -1.442695, %v10754_v0 }
 0x5e4   :  { %v1677_v32 = vmul.f32 0.03125, %v1651_v21  ;;  %v1708_v52 = vsub.f32 %v1676_v27, %v1692_v12  ;;  %v10767_v36 = vadd.f32 %v10733_v48, %v1807_v23  ;;  %v7295_v46 = vmul.f32 -1.442695, %v10761_v40 }
 0x5e5   :  { %v1653_v4 = vpop.xlane.xlu0 %1652  ;;  %8481 = vpow2.f32 %v7294_v10 }
 0x5e6   :  { %v1709_v54 = vsub.f32 %v1677_v32, %v1693_v25  ;;  %v1678_v28 = vmul.f32 0.03125, %v1653_v4  ;;  %v1724_v34 = vmax.f32 %v1708_v52, 0.0  ;;  %8483 = vpow2.f32 %v7295_v46 }
 0x5e7   :  { %v1655_v60 = vpop.xlane.xlu1 %1654  ;;  %v7296_v18 = vmul.f32 -1.442695, %v10767_v36 }
 0x5e8   :  { %v1725_v35 = vmax.f32 %v1709_v54, 0.0  ;;  %v1710_v17 = vsub.f32 %v1678_v28, %v1694_v29  ;;  %v1679_v12 = vmul.f32 0.03125, %v1655_v60  ;;  %v1756_v27 = vadd.f32 1e-05, %v1724_v34 }
 0x5e9   :  { %v1597_v21 = vpop.xlane.xlu0 %1596 }
 0x5ea   :  { %v1757_v25 = vadd.f32 1e-05, %v1725_v35  ;;  %v1726_v32 = vmax.f32 %v1710_v17, 0.0  ;;  %v1711_v23 = vsub.f32 %v1679_v12, %v1695_v15  ;;  %8485 = vrsqrt.f32 %v1756_v27 }
 0x5eb   :  { %v1599_v4 = vpop.xlane.xlu1 %1598  ;;  %v10777_v34 = vmul.f32 0.03125, %v1597_v21 }
 0x5ec   :  { %8487 = vrsqrt.f32 %v1757_v25  ;;  %v1727_v1 = vmax.f32 %v1711_v23, 0.0  ;;  %v1758_v11 = vadd.f32 1e-05, %v1726_v32 }
 0x5ed   :  { %v1593_v16 = vpop.xlane.xlu0 %1592  ;;  %8489 = vpow2.f32 %v7296_v18  ;;  %v8480_v29 = vpop.eup %8479 }
 0x5ee   :  { %v1759_v52 = vadd.f32 1e-05, %v1727_v1  ;;  %v10773_v10 = vmul.f32 0.03125, %v1593_v16  ;;  %8491 = vrsqrt.f32 %v1758_v11  ;;  %v1888_v15 = vadd.f32 1.0, %v8480_v29 }
 0x5ef   :  { %v1595_v54 = vpop.xlane.xlu1 %1594  ;;  %v8482_v46 = vpop.eup %8481  ;;  %v1740_v16 = vsub.f32 %v10661_v6, %v10736_v5  ;;  %v10783_v1 = vmul.f32 0.03125, %v1599_v4  ;;  %v1698_v29 = vmul.f32 %v10777_v34, %v10777_v34 }
 0x5f0   :  { %v10775_v28 = vmul.f32 0.03125, %v1595_v54  ;;  %v8484_v35 = vpop.eup %8483  ;;  %8493 = vrsqrt.f32 %v1759_v52  ;;  %v1696_v17 = vmul.f32 %v10773_v10, %v10773_v10  ;;  %v1889_v27 = vadd.f32 1.0, %v8482_v46 }
 0x5f1   :  { %v1657_v60 = vpop.xlane.xlu0 %1656  ;;  %8495 = vrcp.f32 %v1888_v15  ;;  %v1890_v25 = vadd.f32 1.0, %v8484_v35  ;;  %v1741_v52 = vsub.f32 %v10665_v55, %v10740_v58  ;;  %v1742_v35 = vsub.f32 %v10654_v9, %v10742_v43 }
 0x5f2   :  { %v1680_v12 = vmul.f32 0.03125, %v1657_v60  ;;  %v1697_v11 = vmul.f32 %v10775_v28, %v10775_v28  ;;  %8497 = vrcp.f32 %v1889_v27 }
 0x5f3   :  { %v1659_v18 = vpop.xlane.xlu1 %1658  ;;  %8499 = vrcp.f32 %v1890_v25  ;;  %v1743_v25 = vsub.f32 %v10657_v3, %v10749_v59 }
 0x5f4   :  { %v1712_v21 = vsub.f32 %v1680_v12, %v1696_v17  ;;  %v1681_v32 = vmul.f32 0.03125, %v1659_v18  ;;  %v8486_v23 = vpop.eup %8485  ;;  %v1699_v17 = vmul.f32 %v10783_v1, %v10783_v1 }
 0x5f5   :  { %v1661_v54 = vpop.xlane.xlu0 %1660  ;;  %v1788_v60 = vmul.f32 %v8486_v23, %v1740_v16 }
 0x5f6   :  { %v8488_v6 = vpop.eup %8487  ;;  %v1728_v5 = vmax.f32 %v1712_v21, 0.0  ;;  %v1713_v4 = vsub.f32 %v1681_v32, %v1697_v11  ;;  %v1682_v46 = vmul.f32 0.03125, %v1661_v54 }
 0x5f7   :  { %v8490_v15 = vpop.eup %8489  ;;  %v1663_v12 = vpop.xlane.xlu1 %1662  ;;  %v1789_v27 = vmul.f32 %v8488_v6, %v1741_v52  ;;  %v1808_v16 = vmul.f32 %v10728_v24, %v1788_v60  ;;  %v1746_v52 = vsub.f32 %v10676_v22, %v10777_v34  ;;  %v1744_v60 = vsub.f32 %v10685_v8, %v10773_v10 }
 0x5f8   :  { %v1760_v55 = vadd.f32 1e-05, %v1728_v5  ;;  %v1729_v58 = vmax.f32 %v1713_v4, 0.0  ;;  %v1714_v18 = vsub.f32 %v1682_v46, %v1698_v29  ;;  %v1683_v37 = vmul.f32 0.03125, %v1663_v12  ;;  %v8492_v54 = vpop.eup %8491 }
 0x5f9   :  { %v1605_v21 = vpop.xlane.xlu0 %1604  ;;  %v1891_v11 = vadd.f32 1.0, %v8490_v15  ;;  %v1809_v32 = vmul.f32 %v10728_v24, %v1789_v27  ;;  %v10802_v29 = vadd.f32 %v10733_v48, %v1808_v16  ;;  %v1790_v16 = vmul.f32 %v8492_v54, %v1742_v35 }
 0x5fa   :  { %8501 = vrsqrt.f32 %v1760_v55  ;;  %v1761_v9 = vadd.f32 1e-05, %v1729_v58  ;;  %v1730_v43 = vmax.f32 %v1714_v18, 0.0  ;;  %v1715_v23 = vsub.f32 %v1683_v37, %v1699_v17  ;;  %v8494_v59 = vpop.eup %8493 }
 0x5fb   :  { %v1607_v6 = vpop.xlane.xlu1 %1606  ;;  %8503 = vrcp.f32 %v1891_v11  ;;  %v10805_v3 = vadd.f32 %v10733_v48, %v1809_v32  ;;  %v8496_v37 = vpop.eup %8495  ;;  %v10811_v15 = vmul.f32 0.03125, %v1605_v21  ;;  %v7297_v27 = vmul.f32 -1.442695, %v10802_v29 }
 0x5fc   :  { %8505 = vrsqrt.f32 %v1761_v9  ;;  %v1762_v4 = vadd.f32 1e-05, %v1730_v43  ;;  %v1731_v46 = vmax.f32 %v1715_v23, 0.0  ;;  %v10813_v17 = vmul.f32 0.03125, %v1607_v6  ;;  %v8498_v55 = vpop.eup %8497 }
 0x5fd   :  { %v1601_v12 = vpop.xlane.xlu0 %1600  ;;  %v1745_v58 = vsub.f32 %v10689_v30, %v10775_v28  ;;  %v7298_v11 = vmul.f32 -1.442695, %v10805_v3  ;;  %v8500_v32 = vpop.eup %8499  ;;  %v1936_v8 = vmul.f32 %v8496_v37, %v10746_v42  ;;  %v1937_v10 = vmul.f32 %v8498_v55, %v10754_v0 }
 0x5fe   :  { %v1763_v18 = vadd.f32 1e-05, %v1731_v46  ;;  %v10819_v9 = vmul.f32 0.03125, %v1601_v12  ;;  %8507 = vpow2.f32 %v7297_v27  ;;  %v1938_v23 = vmul.f32 %v8500_v32, %v10761_v40 }
 0x5ff   :  { %v1603_v43 = vpop.xlane.xlu1 %1602  ;;  %8509 = vrsqrt.f32 %v1762_v4  ;;  %v1791_v6 = vmul.f32 %v8494_v59, %v1743_v25  ;;  %v1702_v30 = vmul.f32 %v10811_v15, %v10811_v15  ;;  %v1703_v28 = vmul.f32 %v10813_v17, %v10813_v17 }
 0x600   :  { %v10823_v21 = vmul.f32 0.03125, %v1603_v43  ;;  %v1952_v54 = vadd.f32 %v1936_v8, %v10490_v33  ;;  %v1953_v42 = vadd.f32 %v1937_v10, %v10492_v45  ;;  %8511 = vrsqrt.f32 %v1763_v18 }
 0x601   :  { %v1665_v35 = vpop.xlane.xlu0 %1664  ;;  %v1700_v0 = vmul.f32 %v10819_v9, %v10819_v9  ;;  %v1954_v46 = vadd.f32 %v1938_v23, %v10502_v51  ;;  %8513 = vpow2.f32 %v7298_v11  ;;  %v1810_v37 = vmul.f32 %v10728_v24, %v1790_v16 }
 0x602   :  { %v1684_v4 = vmul.f32 0.03125, %v1665_v35  ;;  %v10835_v25 = vmul.f32 0.70710677, %v1952_v54  ;;  %v10837_v59 = vmul.f32 0.70710677, %v1953_v42  ;;  %v1701_v33 = vmul.f32 %v10823_v21, %v10823_v21 }
 0x603   :  { %v1667_v40 = vpop.xlane.xlu1 %1666  ;;  %v1811_v55 = vmul.f32 %v10728_v24, %v1791_v6  ;;  %v10845_v43 = vmul.f32 0.70710677, %v1954_v46  ;;  %v10848_v8 = vadd.f32 %v10733_v48, %v1810_v37 }
 0x604   :  { %v8502_v12 = vpop.eup %8501  ;;  %v1716_v45 = vsub.f32 %v1684_v4, %v1700_v0  ;;  %v1685_v27 = vmul.f32 0.03125, %v1667_v40  ;;  %v2003_v51 = vpack.c.bf16 %v10837_v59, %v10835_v25 }
 0x605   :  { %v8504_v18 = vpop.eup %8503  ;;  %v1669_v32 = vpop.xlane.xlu0 %1668  ;;  %v1792_v11 = vmul.f32 %v8502_v12, %v1744_v60  ;;  %v10852_v6 = vadd.f32 %v10733_v48, %v1811_v55  ;;  %v7299_v0 = vmul.f32 -1.442695, %v10848_v8 }
 0x606   :  { %v8506_v16 = vpop.eup %8505  ;;  %v1732_v10 = vmax.f32 %v1716_v45, 0.0  ;;  %v1717_v23 = vsub.f32 %v1685_v27, %v1701_v33  ;;  %v1686_v35 = vmul.f32 0.03125, %v1669_v32  ;;  %v1939_v54 = vmul.f32 %v8504_v18, %v10767_v36  ;;  %7881 = vmatprep.mubr.bf16.mxu1 %v2003_v51 }
 0x607   :  { %v1671_v42 = vpop.xlane.xlu1 %1670  ;;  %v1793_v4 = vmul.f32 %v8506_v16, %v1745_v58  ;;  %v1812_v46 = vmul.f32 %v10728_v24, %v1792_v11  ;;  %8515 = vpow2.f32 %v7299_v0  ;;  %v7300_v36 = vmul.f32 -1.442695, %v10852_v6 }
 0x608   :  { %v1764_v40 = vadd.f32 1e-05, %v1732_v10  ;;  %v1733_v37 = vmax.f32 %v1717_v23, 0.0  ;;  %v1718_v5 = vsub.f32 %v1686_v35, %v1702_v30  ;;  %v1687_v60 = vmul.f32 0.03125, %v1671_v42  ;;  %v8508_v12 = vpop.eup %8507 }
 0x609   :  { %v1955_v33 = vadd.f32 %v1939_v54, %v10510_v56  ;;  %v1813_v45 = vmul.f32 %v10728_v24, %v1793_v4  ;;  %v8510_v27 = vpop.eup %8509  ;;  %v1892_v51 = vadd.f32 1.0, %v8508_v12  ;;  %v10862_v30 = vadd.f32 %v10733_v48, %v1812_v46 }
 0x60a   :  { %8517 = vrsqrt.f32 %v1764_v40  ;;  %v1765_v55 = vadd.f32 1e-05, %v1733_v37  ;;  %v1734_v18 = vmax.f32 %v1718_v5, 0.0  ;;  %v1719_v32 = vsub.f32 %v1687_v60, %v1703_v28  ;;  %v8512_v11 = vpop.eup %8511 }
 0x60b   :  { %v10859_v58 = vmul.f32 0.70710677, %v1955_v33  ;;  %8519 = vpow2.f32 %v7300_v36  ;;  %v10865_v10 = vadd.f32 %v10733_v48, %v1813_v45  ;;  %v8514_v23 = vpop.eup %8513  ;;  %v7301_v5 = vmul.f32 -1.442695, %v10862_v30 }
 0x60c   :  { %8521 = vrsqrt.f32 %v1765_v55  ;;  %v1766_v56 = vadd.f32 1e-05, %v1734_v18  ;;  %v1735_v16 = vmax.f32 %v1719_v32, 0.0  ;;  %v1794_v28 = vmul.f32 %v8510_v27, %v1746_v52 }
 0x60d   :  { %v2004_v35 = vpack.c.bf16 %v10859_v58, %v10845_v43  ;;  %8523 = vrcp.f32 %v1892_v51  ;;  %v1893_v42 = vadd.f32 1.0, %v8514_v23  ;;  %v7302_v0 = vmul.f32 -1.442695, %v10865_v10 }
 0x60e   :  { %8525 = vrsqrt.f32 %v1766_v56  ;;  %v1767_v54 = vadd.f32 1e-05, %v1735_v16  ;;  %v13891_v4 = vsub.f32 %v10681_v20, %v10783_v1  ;;  %v1814_v40 = vmul.f32 %v10728_v24, %v1794_v28 }
 0x60f   :  { %7882 = vmatmul.mubr.bf16.vlgmr.msra.gmra.mrb[16].mxu1 %v2004_v35  ;;  %8527 = vpow2.f32 %v7301_v5  ;;  %v1748_v52 = vsub.f32 %v10712_v13, %v10819_v9  ;;  %v1749_v36 = vsub.f32 %v10696_v2, %v10823_v21  ;;  %v1750_v13 = vsub.f32 %v10703_v62, %v10811_v15 }
 0x610   :  { %v1795_v46 = vmul.f32 %v8512_v11, %v13891_v4  ;;  %8529 = vrsqrt.f32 %v1767_v54  ;;  %v10880_v22 = vadd.f32 %v10733_v48, %v1814_v40  ;;  %v1751_v21 = vsub.f32 %v10708_v50, %v10813_v17 }
 0x611   :  { %8531 = vrcp.f32 %v1893_v42  ;;  %v8516_v34 = vpop.eup %8515 }
 0x612   :  { %v1815_v37 = vmul.f32 %v10728_v24, %v1795_v46  ;;  %8533 = vpow2.f32 %v7302_v0  ;;  %v7303_v20 = vmul.f32 -1.442695, %v10880_v22  ;;  %v1894_v12 = vadd.f32 1.0, %v8516_v34 }
 0x614   :  { %v10885_v60 = vadd.f32 %v10733_v48, %v1815_v37  ;;  %v8518_v1 = vpop.eup %8517  ;;  %8535 = vpow2.f32 %v7303_v20 }
 0x615   :  { %v8520_v33 = vpop.eup %8519  ;;  %v1796_v27 = vmul.f32 %v8518_v1, %v1748_v52  ;;  %8537 = vrcp.f32 %v1894_v12 }
 0x616   :  { %v7304_v45 = vmul.f32 -1.442695, %v10885_v60  ;;  %v8522_v55 = vpop.eup %8521  ;;  %v1895_v18 = vadd.f32 1.0, %v8520_v33 }
 0x617   :  { %v8524_v32 = vpop.eup %8523  ;;  %v1797_v9 = vmul.f32 %v8522_v55, %v1749_v36  ;;  %v1816_v51 = vmul.f32 %v10728_v24, %v1796_v27 }
 0x618   :  { %8539 = vpow2.f32 %v7304_v45  ;;  %v8526_v11 = vpop.eup %8525  ;;  %v1940_v56 = vmul.f32 %v8524_v32, %v10802_v29 }
 0x619   :  { %8541 = vrcp.f32 %v1895_v18  ;;  %v8528_v2 = vpop.eup %8527  ;;  %v1817_v16 = vmul.f32 %v10728_v24, %v1797_v9  ;;  %v10899_v23 = vadd.f32 %v10733_v48, %v1816_v51  ;;  %v1798_v35 = vmul.f32 %v8526_v11, %v1750_v13 }
 0x61a   :  { %v8530_v5 = vpop.eup %8529  ;;  %v1956_v62 = vadd.f32 %v1940_v56, %v10559_v31  ;;  %v1896_v15 = vadd.f32 1.0, %v8528_v2 }
 0x61b   :  { %v8532_v28 = vpop.eup %8531  ;;  %v10903_v54 = vadd.f32 %v10733_v48, %v1817_v16  ;;  %v7305_v29 = vmul.f32 -1.442695, %v10899_v23  ;;  %v1799_v42 = vmul.f32 %v8530_v5, %v1751_v21  ;;  %v1818_v0 = vmul.f32 %v10728_v24, %v1798_v35 }
 0x61c   :  { %v8534_v50 = vpop.eup %8533  ;;  %v1941_v17 = vmul.f32 %v8532_v28, %v10805_v3  ;;  %8543 = vrcp.f32 %v1896_v15  ;;  %v10914_v52 = vmul.f32 0.70710677, %v1956_v62 }
 0x61d   :  { %v1897_v4 = vadd.f32 1.0, %v8534_v50  ;;  %8545 = vpow2.f32 %v7305_v29  ;;  %v7306_v46 = vmul.f32 -1.442695, %v10903_v54  ;;  %v1819_v31 = vmul.f32 %v10728_v24, %v1799_v42 }
 0x61e   :  { %v1957_v40 = vadd.f32 %v1941_v17, %v10561_v39  ;;  %v10912_v37 = vadd.f32 %v10733_v48, %v1818_v0  ;;  %v8536_v34 = vpop.eup %8535 }
 0x61f   :  { %8547 = vrcp.f32 %v1897_v4  ;;  %v10917_v20 = vadd.f32 %v10733_v48, %v1819_v31  ;;  %v8538_v3 = vpop.eup %8537  ;;  %v1898_v12 = vadd.f32 1.0, %v8536_v34 }
 0x620   :  { %v10919_v1 = vmul.f32 0.70710677, %v1957_v40  ;;  %8549 = vpow2.f32 %v7306_v46  ;;  %v7307_v33 = vmul.f32 -1.442695, %v10912_v37  ;;  %v1942_v39 = vmul.f32 %v8538_v3, %v10848_v8 }
 0x621   :  { %v7308_v36 = vmul.f32 -1.442695, %v10917_v20  ;;  %8551 = vrcp.f32 %v1898_v12 }
 0x622   :  { %v8540_v24 = vpop.eup %8539  ;;  %v2005_v27 = vpack.c.bf16 %v10919_v1, %v10914_v52  ;;  %v1958_v18 = vadd.f32 %v1942_v39, %v10574_v61  ;;  %8553 = vpow2.f32 %v7307_v33 }
 0x623   :  { %v8542_v45 = vpop.eup %8541  ;;  %v1899_v55 = vadd.f32 1.0, %v8540_v24 }
 0x624   :  { %v1943_v48 = vmul.f32 %v8542_v45, %v10852_v6  ;;  %7885 = vmatprep.mubr.bf16.mxu1 %v2005_v27  ;;  %v10929_v9 = vmul.f32 0.70710677, %v1958_v18 }
 0x625   :  { %8555 = vrcp.f32 %v1899_v55 }
 0x626   :  { %v1959_v32 = vadd.f32 %v1943_v48, %v10576_v49  ;;  %8557 = vpow2.f32 %v7308_v36  ;;  %v8544_v13 = vpop.eup %8543 }
 0x627   :  { %v8546_v8 = vpop.eup %8545  ;;  %v1944_v11 = vmul.f32 %v8544_v13, %v10862_v30 }
 0x628   :  { %v10931_v51 = vmul.f32 0.70710677, %v1959_v32  ;;  %v1900_v56 = vadd.f32 1.0, %v8546_v8 }
 0x629   :  { %v8548_v2 = vpop.eup %8547  ;;  %v1960_v16 = vadd.f32 %v1944_v11, %v10585_v57 }
 0x62a   :  { %v2006_v6 = vpack.c.bf16 %v10931_v51, %v10929_v9  ;;  %v8550_v61 = vpop.eup %8549  ;;  %v1945_v21 = vmul.f32 %v8548_v2, %v10865_v10  ;;  %8559 = vrcp.f32 %v1900_v56 }
 0x62b   :  { %v1901_v49 = vadd.f32 1.0, %v8550_v61  ;;  %v8552_v35 = vpop.eup %8551  ;;  %v10940_v28 = vmul.f32 0.70710677, %v1960_v16 }
 0x62c   :  { %7886 = vmatmul.mubr.bf16.gmra.mrb[20].mxu1 %v2006_v6  ;;  %v1961_v5 = vadd.f32 %v1945_v21, %v10587_v44  ;;  %v8554_v62 = vpop.eup %8553  ;;  %v1946_v15 = vmul.f32 %v8552_v35, %v10880_v22 }
 0x62d   :  { %8561 = vrcp.f32 %v1901_v49  ;;  %v1902_v42 = vadd.f32 1.0, %v8554_v62 }
 0x62e   :  { %v10942_v29 = vmul.f32 0.70710677, %v1961_v5  ;;  %v1962_v57 = vadd.f32 %v1946_v15, %v10594_v47 }
 0x62f   :  { %v8556_v30 = vpop.eup %8555  ;;  %8563 = vrcp.f32 %v1902_v42 }
 0x630   :  { %v8558_v0 = vpop.eup %8557  ;;  %v1947_v10 = vmul.f32 %v8556_v30, %v10885_v60  ;;  %v2007_v50 = vpack.c.bf16 %v10942_v29, %v10940_v28  ;;  %v10949_v22 = vmul.f32 0.70710677, %v1962_v57 }
 0x631   :  { %v1903_v17 = vadd.f32 1.0, %v8558_v0 }
 0x632   :  { %v1963_v44 = vadd.f32 %v1947_v10, %v10596_v26  ;;  %7889 = vmatprep.mubr.bf16.mxu1 %v2007_v50 }
 0x633   :  { %8565 = vrcp.f32 %v1903_v17 }
 0x634   :  { %v10951_v4 = vmul.f32 0.70710677, %v1963_v44  ;;  %v8560_v46 = vpop.eup %8559 }
 0x635   :  { %v1948_v60 = vmul.f32 %v8560_v46, %v10899_v23 }
 0x636   :  { %v2008_v31 = vpack.c.bf16 %v10951_v4, %v10949_v22 }
 0x637   :  { %v8562_v47 = vpop.eup %8561  ;;  %v1964_v34 = vadd.f32 %v1948_v60, %v10605_v14 }
 0x638   :  { %7890 = vmatmul.mubr.bf16.gmra.mrb[24].mxu1 %v2008_v31  ;;  %v1949_v40 = vmul.f32 %v8562_v47, %v10903_v54 }
 0x639   :  { %v8564_v3 = vpop.eup %8563  ;;  %v10960_v24 = vmul.f32 0.70710677, %v1964_v34 }
 0x63a   :  { %v1965_v26 = vadd.f32 %v1949_v40, %v10607_v7  ;;  %v1950_v12 = vmul.f32 %v8564_v3, %v10912_v37 }
 0x63c   :  { %v10962_v39 = vmul.f32 0.70710677, %v1965_v26  ;;  %v1966_v23 = vadd.f32 %v1950_v12, %v10614_v38 }
 0x63d   :  { %v8566_v33 = vpop.eup %8565 }
 0x63e   :  { %v1951_v36 = vmul.f32 %v8566_v33, %v10917_v20  ;;  %v2009_v45 = vpack.c.bf16 %v10962_v39, %v10960_v24  ;;  %v10969_v14 = vmul.f32 0.70710677, %v1966_v23  ;;  %v10978_v20 = vld [vmem:[%s13776_s4 + $0x8] sm:$0x7] }
 0x63f   :  { %v10982_v38 = vrot.slane %v10978_v20, %v13888_v41 }
 0x640   :  { %v1967_v54 = vadd.f32 %v1951_v36, %v10616_v53  ;;  %7893 = vmatprep.mubr.bf16.mxu1 %v2009_v45 }
 0x642   :  { %v10971_v7 = vmul.f32 0.70710677, %v1967_v54 }
 0x644   :  { %v2010_v37 = vpack.c.bf16 %v10971_v7, %v10969_v14 }
 0x646   :  { %7894 = vmatmul.mubr.bf16.gmra.mrb[28].mxu1 %v2010_v37 }
 0x6e2   :  { %v7883_v27 = vpop.f32.mrb[16].mxu1 }
 0x6e3   :  { %v2097_v53 = vpop.f32.mrb[17].mxu1  ;;  %v10997_v11 = vadd.f32 %v7883_v27, %v10982_v38 }
 0x6e4   :  { %v10985_v55 = vadd.f32 %v2097_v53, %v10982_v38  ;;  %v7884_v48 = vpop.f32.mrb[18].mxu1 }
 0x6e5   :  { %v2100_v18 = vpop.f32.mrb[19].mxu1  ;;  %v11000_v56 = vadd.f32 %v7884_v48, %v10982_v38  ;;  %v2210_v2 = vmul.f32 %v10997_v11, %v10997_v11  ;;  %v8169_v48 = vld [vmem:[#allocation10 + $0x4] ss:$8 sps:$4 sm:$0xff]  }
 0x6e6   :  { %v10988_v32 = vadd.f32 %v2100_v18, %v10982_v38  ;;  %2160 = vadd.xlane.f32.xlu0 %v10985_v55  ;;  %v2208_v13 = vmul.f32 %v10985_v55, %v10985_v55  ;;  %v8167_v18 = vld [vmem:[#allocation10] ss:$8 sps:$4 sm:$0xff]   ;;  %2724 = vmatprep.subr.bf16.mxu0 %v8169_v48 }
 0x6e7   :  { %v2211_v6 = vmul.f32 %v11000_v56, %v11000_v56  ;;  %2725 = vmatpush1.bf16.msra.mxu0 %v8167_v18 }
 0x6e8   :  { %2162 = vadd.xlane.f32.xlu1 %v10988_v32  ;;  %v2209_v8 = vmul.f32 %v10988_v32, %v10988_v32 }
 0x6ea   :  { %2224 = vadd.xlane.f32.xlu0 %v2208_v13 }
 0x6ec   :  { %2226 = vadd.xlane.f32.xlu1 %v2209_v8  ;;  %v8172_v8 = vld [vmem:[#allocation10 + $0x14] ss:$8 sps:$4 sm:$0xff]  }
 0x6ed   :  { %2726 = vmatprep.subr.bf16.mxu0 %v8172_v8 }
 0x6ee   :  { %2164 = vadd.xlane.f32.xlu0 %v10997_v11 }
 0x6f0   :  { %2166 = vadd.xlane.f32.xlu1 %v11000_v56 }
 0x6f2   :  { %2228 = vadd.xlane.f32.xlu0 %v2210_v2  ;;  %v8170_v2 = vld [vmem:[#allocation10 + $0x10] ss:$8 sps:$4 sm:$0xff]  }
 0x6f3   :  { %2727 = vmatpush1.bf16.msra.mxu0 %v8170_v2 }
 0x6f4   :  { %2230 = vadd.xlane.f32.xlu1 %v2211_v6  ;;  %v8175_v6 = vld [vmem:[#allocation10 + $0x24] ss:$8 sps:$4 sm:$0xff]  }
 0x6f5   :  { %2728 = vmatprep.subr.bf16.mxu0 %v8175_v6 }
 0x6ff   :  { %v7887_v61 = vpop.f32.mrb[20].mxu1 }
 0x700   :  { %v2113_v21 = vpop.f32.mrb[21].mxu1  ;;  %v11021_v30 = vadd.f32 %v7887_v61, %v10982_v38  ;;  %v8173_v61 = vld [vmem:[#allocation10 + $0x20] ss:$8 sps:$4 sm:$0xff]  }
 0x701   :  { %v11009_v16 = vadd.f32 %v2113_v21, %v10982_v38  ;;  %v7888_v49 = vpop.f32.mrb[22].mxu1  ;;  %2729 = vmatpush1.bf16.msra.mxu0 %v8173_v61 }
 0x702   :  { %v2116_v35 = vpop.f32.mrb[23].mxu1  ;;  %v11024_v42 = vadd.f32 %v7888_v49, %v10982_v38  ;;  %v2214_v57 = vmul.f32 %v11021_v30, %v11021_v30  ;;  %v8178_v49 = vld [vmem:[#allocation10 + $0x34] ss:$8 sps:$4 sm:$0xff]  }
 0x703   :  { %v11012_v5 = vadd.f32 %v2116_v35, %v10982_v38  ;;  %2168 = vadd.xlane.f32.xlu0 %v11009_v16  ;;  %v2212_v62 = vmul.f32 %v11009_v16, %v11009_v16  ;;  %v8176_v35 = vld [vmem:[#allocation10 + $0x30] ss:$8 sps:$4 sm:$0xff]   ;;  %2730 = vmatprep.subr.bf16.mxu0 %v8178_v49 }
 0x704   :  { %v2215_v46 = vmul.f32 %v11024_v42, %v11024_v42 }
 0x705   :  { %2170 = vadd.xlane.f32.xlu1 %v11012_v5  ;;  %v2213_v15 = vmul.f32 %v11012_v5, %v11012_v5  ;;  %2731 = vmatpush1.bf16.msra.mxu0 %v8176_v35 }
 0x707   :  { %2232 = vadd.xlane.f32.xlu0 %v2212_v62  ;;  %v8181_v62 = vld [vmem:[#allocation10 + $0x44] ss:$8 sps:$4 sm:$0xff]  }
 0x708   :  { %2732 = vmatprep.subr.bf16.mxu0 %v8181_v62 }
 0x709   :  { %2234 = vadd.xlane.f32.xlu1 %v2213_v15  ;;  %v8179_v15 = vld [vmem:[#allocation10 + $0x40] ss:$8 sps:$4 sm:$0xff]  }
 0x70a   :  { %2733 = vmatpush1.bf16.msra.mxu0 %v8179_v15 }
 0x70b   :  { %2172 = vadd.xlane.f32.xlu0 %v11021_v30  ;;  %v7891_v0 = vpop.f32.mrb[24].mxu1 }
 0x70c   :  { %v2129_v10 = vpop.f32.mrb[25].mxu1  ;;  %v11045_v40 = vadd.f32 %v7891_v0, %v10982_v38  ;;  %v8184_v0 = vld [vmem:[#allocation10 + $0x54] ss:$8 sps:$4 sm:$0xff]  }
 0x70d   :  { %2174 = vadd.xlane.f32.xlu1 %v11024_v42  ;;  %v7892_v50 = vpop.f32.mrb[26].mxu1  ;;  %v11031_v44 = vadd.f32 %v2129_v10, %v10982_v38  ;;  %v8182_v10 = vld [vmem:[#allocation10 + $0x50] ss:$8 sps:$4 sm:$0xff]   ;;  %2734 = vmatprep.subr.bf16.mxu0 %v8184_v0 }
 0x70e   :  { %v2132_v17 = vpop.f32.mrb[27].mxu1  ;;  %v11051_v12 = vadd.f32 %v7892_v50, %v10982_v38  ;;  %v2218_v45 = vmul.f32 %v11045_v40, %v11045_v40  ;;  %2735 = vmatpush1.bf16.msra.mxu0 %v8182_v10  ;;  %v8185_v50 = vld [vmem:[#allocation10 + $0x60] ss:$8 sps:$4 sm:$0xff]  }
 0x70f   :  { %2236 = vadd.xlane.f32.xlu0 %v2214_v57  ;;  %v11036_v31 = vadd.f32 %v2132_v17, %v10982_v38  ;;  %v2216_v60 = vmul.f32 %v11031_v44, %v11031_v44  ;;  %v8187_v57 = vld [vmem:[#allocation10 + $0x64] ss:$8 sps:$4 sm:$0xff]   ;;  %v8190_v17 = vld [vmem:[#allocation10 + $0x74] ss:$8 sps:$4 sm:$0xff]  }
 0x710   :  { %v2219_v37 = vmul.f32 %v11051_v12, %v11051_v12  ;;  %2736 = vmatprep.subr.bf16.mxu0 %v8187_v57 }
 0x711   :  { %2238 = vadd.xlane.f32.xlu1 %v2215_v46  ;;  %v2217_v47 = vmul.f32 %v11036_v31, %v11036_v31  ;;  %v8188_v46 = vld [vmem:[#allocation10 + $0x70] ss:$8 sps:$4 sm:$0xff]  }
 0x712   :  { %2737 = vmatpush1.bf16.msra.mxu0 %v8185_v50 }
 0x713   :  { %2176 = vadd.xlane.f32.xlu0 %v11031_v44  ;;  %2738 = vmatprep.subr.bf16.mxu0 %v8190_v17 }
 0x715   :  { %2178 = vadd.xlane.f32.xlu1 %v11036_v31 }
 0x716   :  { %2739 = vmatpush1.bf16.msra.mxu0 %v8188_v46 }
 0x717   :  { %2240 = vadd.xlane.f32.xlu0 %v2216_v60  ;;  %v13814_v60 = vmov 0  }
 0x718   :  { %2756 = vmatprep.mubr.bf16.mxu0 %v13814_v60 }
 0x719   :  { %2242 = vadd.xlane.f32.xlu1 %v2217_v47  ;;  %v7895_v34 = vpop.f32.mrb[28].mxu1 }
 0x71a   :  { %v11048_v3 = vadd.f32 %v7895_v34, %v10982_v38  ;;  %v2145_v26 = vpop.f32.mrb[29].mxu1 }
 0x71b   :  { %2180 = vadd.xlane.f32.xlu0 %v11045_v40  ;;  %v7896_v33 = vpop.f32.mrb[30].mxu1  ;;  %v11061_v54 = vadd.f32 %v2145_v26, %v10982_v38 }
 0x71c   :  { %v11055_v36 = vadd.f32 %v7896_v33, %v10982_v38  ;;  %v2148_v23 = vpop.f32.mrb[31].mxu1 }
 0x71d   :  { %2182 = vadd.xlane.f32.xlu1 %v11051_v12  ;;  %v11066_v27 = vadd.f32 %v2148_v23, %v10982_v38  ;;  %v2220_v53 = vmul.f32 %v11061_v54, %v11061_v54  ;;  %v2222_v38 = vmul.f32 %v11048_v3, %v11048_v3 }
 0x71e   :  { %v2223_v21 = vmul.f32 %v11055_v36, %v11055_v36 }
 0x71f   :  { %2244 = vadd.xlane.f32.xlu0 %v2218_v45  ;;  %v2221_v13 = vmul.f32 %v11066_v27, %v11066_v27 }
 0x721   :  { %2246 = vadd.xlane.f32.xlu1 %v2219_v37 }
 0x723   :  { %2184 = vadd.xlane.f32.xlu0 %v11061_v54 }
 0x725   :  { %2186 = vadd.xlane.f32.xlu1 %v11066_v27 }
 0x727   :  { %2248 = vadd.xlane.f32.xlu0 %v2220_v53 }
 0x729   :  { %2250 = vadd.xlane.f32.xlu1 %v2221_v13 }
 0x72b   :  { %2188 = vadd.xlane.f32.xlu0 %v11048_v3 }
 0x72d   :  { %2190 = vadd.xlane.f32.xlu1 %v11055_v36 }
 0x72f   :  { %2252 = vadd.xlane.f32.xlu0 %v2222_v38 }
 0x731   :  { %2254 = vadd.xlane.f32.xlu1 %v2223_v21 }
 0x773   :  { %v2161_v47 = vpop.xlane.xlu0 %2160 }
 0x774   :  { %v2192_v34 = vmul.f32 0.03125, %v2161_v47 }
 0x775   :  { %v2163_v26 = vpop.xlane.xlu1 %2162 }
 0x776   :  { %v2193_v33 = vmul.f32 0.03125, %v2163_v26  ;;  %v2272_v45 = vmul.f32 %v2192_v34, %v2192_v34 }
 0x777   :  { %v2225_v23 = vpop.xlane.xlu0 %2224 }
 0x778   :  { %v2256_v37 = vmul.f32 0.03125, %v2225_v23  ;;  %v2273_v48 = vmul.f32 %v2193_v33, %v2193_v33 }
 0x779   :  { %v2227_v53 = vpop.xlane.xlu1 %2226 }
 0x77a   :  { %v2288_v18 = vsub.f32 %v2256_v37, %v2272_v45  ;;  %v2257_v13 = vmul.f32 0.03125, %v2227_v53  ;;  %v11083_v53 = vrot.slane %v10978_v20, %v13889_v19 }
 0x77b   :  { %v2165_v8 = vpop.xlane.xlu0 %2164 }
 0x77c   :  { %v2304_v2 = vmax.f32 %v2288_v18, 0.0  ;;  %v2289_v38 = vsub.f32 %v2257_v13, %v2273_v48  ;;  %v2194_v6 = vmul.f32 0.03125, %v2165_v8  ;;  %v2320_v48 = vsub.f32 %v10985_v55, %v2192_v34 }
 0x77d   :  { %v2167_v61 = vpop.xlane.xlu1 %2166  ;;  %v11088_v13 = vrot.slane %v10978_v20, %v13890_v63  ;;  %v2321_v8 = vsub.f32 %v10988_v32, %v2193_v33 }
 0x77e   :  { %v2336_v21 = vadd.f32 1e-05, %v2304_v2  ;;  %v2305_v49 = vmax.f32 %v2289_v38, 0.0  ;;  %v2195_v35 = vmul.f32 0.03125, %v2167_v61  ;;  %v2274_v0 = vmul.f32 %v2194_v6, %v2194_v6 }
 0x77f   :  { %v2229_v62 = vpop.xlane.xlu0 %2228  ;;  %v2322_v32 = vsub.f32 %v10997_v11, %v2194_v6 }
 0x780   :  { %8567 = vrsqrt.f32 %v2336_v21  ;;  %v2337_v15 = vadd.f32 1e-05, %v2305_v49  ;;  %v2258_v10 = vmul.f32 0.03125, %v2229_v62  ;;  %v2275_v50 = vmul.f32 %v2195_v35, %v2195_v35 }
 0x781   :  { %v2231_v57 = vpop.xlane.xlu1 %2230 }
 0x782   :  { %8569 = vrsqrt.f32 %v2337_v15  ;;  %v2290_v17 = vsub.f32 %v2258_v10, %v2274_v0  ;;  %v2259_v46 = vmul.f32 0.03125, %v2231_v57 }
 0x784   :  { %v2306_v47 = vmax.f32 %v2290_v17, 0.0  ;;  %v2291_v26 = vsub.f32 %v2259_v46, %v2275_v50  ;;  %v2323_v50 = vsub.f32 %v11000_v56, %v2195_v35 }
 0x786   :  { %v2338_v23 = vadd.f32 1e-05, %v2306_v47  ;;  %v2307_v45 = vmax.f32 %v2291_v26, 0.0 }
 0x788   :  { %8571 = vrsqrt.f32 %v2338_v23  ;;  %v2339_v37 = vadd.f32 1e-05, %v2307_v45 }
 0x78a   :  { %v8568_v18 = vpop.eup %8567  ;;  %8573 = vrsqrt.f32 %v2339_v37 }
 0x78b   :  { %v2368_v2 = vmul.f32 %v8568_v18, %v2320_v48 }
 0x78c   :  { %v8570_v38 = vpop.eup %8569 }
 0x78d   :  { %v2388_v61 = vmul.f32 %v11083_v53, %v2368_v2  ;;  %v2369_v21 = vmul.f32 %v8570_v38, %v2321_v8 }
 0x78f   :  { %v11093_v49 = vadd.f32 %v11088_v13, %v2388_v61  ;;  %v2389_v62 = vmul.f32 %v11083_v53, %v2369_v21 }
 0x790   :  { %v2169_v15 = vpop.xlane.xlu0 %2168 }
 0x791   :  { %v11096_v55 = vmul.f32 0.03125, %v2169_v15  ;;  %v7318_v34 = vmul.f32 -1.442695, %v11093_v49  ;;  %v11100_v20 = vadd.f32 %v11088_v13, %v2389_v62 }
 0x792   :  { %v2171_v33 = vpop.xlane.xlu1 %2170  ;;  %v8572_v0 = vpop.eup %8571 }
 0x793   :  { %v11103_v10 = vmul.f32 0.03125, %v2171_v33  ;;  %8575 = vpow2.f32 %v7318_v34  ;;  %v7319_v57 = vmul.f32 -1.442695, %v11100_v20  ;;  %v2370_v17 = vmul.f32 %v8572_v0, %v2322_v32 }
 0x794   :  { %v2233_v46 = vpop.xlane.xlu0 %2232  ;;  %v8574_v47 = vpop.eup %8573  ;;  %v2276_v26 = vmul.f32 %v11096_v55, %v11096_v55 }
 0x795   :  { %v2260_v23 = vmul.f32 0.03125, %v2233_v46  ;;  %8577 = vpow2.f32 %v7319_v57  ;;  %v2371_v45 = vmul.f32 %v8574_v47, %v2323_v50  ;;  %v2390_v11 = vmul.f32 %v11083_v53, %v2370_v17 }
 0x796   :  { %v2235_v37 = vpop.xlane.xlu1 %2234  ;;  %v2277_v6 = vmul.f32 %v11103_v10, %v11103_v10 }
 0x797   :  { %v2292_v48 = vsub.f32 %v2260_v23, %v2276_v26  ;;  %v2261_v18 = vmul.f32 0.03125, %v2235_v37  ;;  %v2391_v56 = vmul.f32 %v11083_v53, %v2371_v45  ;;  %v11114_v35 = vadd.f32 %v11088_v13, %v2390_v11 }
 0x798   :  { %v2173_v8 = vpop.xlane.xlu0 %2172 }
 0x799   :  { %v2308_v2 = vmax.f32 %v2292_v48, 0.0  ;;  %v2293_v38 = vsub.f32 %v2261_v18, %v2277_v6  ;;  %v11116_v61 = vmul.f32 0.03125, %v2173_v8  ;;  %v11119_v62 = vadd.f32 %v11088_v13, %v2391_v56 }
 0x79a   :  { %v2175_v21 = vpop.xlane.xlu1 %2174  ;;  %v7320_v15 = vmul.f32 -1.442695, %v11114_v35 }
 0x79b   :  { %v2340_v34 = vadd.f32 1e-05, %v2308_v2  ;;  %v2309_v32 = vmax.f32 %v2293_v38, 0.0  ;;  %v11122_v33 = vmul.f32 0.03125, %v2175_v21  ;;  %v7321_v57 = vmul.f32 -1.442695, %v11119_v62 }
 0x79c   :  { %v2237_v0 = vpop.xlane.xlu0 %2236  ;;  %8579 = vpow2.f32 %v7320_v15  ;;  %v2278_v17 = vmul.f32 %v11116_v61, %v11116_v61 }
 0x79d   :  { %8581 = vrsqrt.f32 %v2340_v34  ;;  %v2341_v50 = vadd.f32 1e-05, %v2309_v32  ;;  %v2262_v46 = vmul.f32 0.03125, %v2237_v0  ;;  %v8576_v47 = vpop.eup %8575  ;;  %v2279_v26 = vmul.f32 %v11122_v33, %v11122_v33 }
 0x79e   :  { %v2239_v23 = vpop.xlane.xlu1 %2238  ;;  %8583 = vpow2.f32 %v7321_v57  ;;  %v2472_v45 = vadd.f32 1.0, %v8576_v47 }
 0x79f   :  { %8585 = vrsqrt.f32 %v2341_v50  ;;  %v2294_v37 = vsub.f32 %v2262_v46, %v2278_v17  ;;  %v2263_v11 = vmul.f32 0.03125, %v2239_v23  ;;  %v8578_v6 = vpop.eup %8577  ;;  %v2324_v50 = vsub.f32 %v11009_v16, %v11096_v55 }
 0x7a0   :  { %v2177_v48 = vpop.xlane.xlu0 %2176  ;;  %8587 = vrcp.f32 %v2472_v45  ;;  %v2473_v18 = vadd.f32 1.0, %v8578_v6  ;;  %v2325_v6 = vsub.f32 %v11012_v5, %v11103_v10  ;;  %v2327_v5 = vsub.f32 %v11024_v42, %v11122_v33 }
 0x7a1   :  { %v2310_v8 = vmax.f32 %v2294_v37, 0.0  ;;  %v2295_v56 = vsub.f32 %v2263_v11, %v2279_v26  ;;  %v11129_v2 = vmul.f32 0.03125, %v2177_v48 }
 0x7a2   :  { %v2179_v38 = vpop.xlane.xlu1 %2178  ;;  %8589 = vrcp.f32 %v2473_v18 }
 0x7a3   :  { %v2342_v21 = vadd.f32 1e-05, %v2310_v8  ;;  %v2311_v15 = vmax.f32 %v2295_v56, 0.0  ;;  %v11131_v34 = vmul.f32 0.03125, %v2179_v38  ;;  %v2280_v17 = vmul.f32 %v11129_v2, %v11129_v2 }
 0x7a4   :  { %v2241_v32 = vpop.xlane.xlu0 %2240 }
 0x7a5   :  { %8591 = vrsqrt.f32 %v2342_v21  ;;  %v2343_v0 = vadd.f32 1e-05, %v2311_v15  ;;  %v2264_v46 = vmul.f32 0.03125, %v2241_v32  ;;  %v2281_v23 = vmul.f32 %v11131_v34, %v11131_v34 }
 0x7a6   :  { %v8580_v57 = vpop.eup %8579  ;;  %v2243_v47 = vpop.xlane.xlu1 %2242 }
 0x7a7   :  { %v8582_v26 = vpop.eup %8581  ;;  %8593 = vrsqrt.f32 %v2343_v0  ;;  %v2265_v45 = vmul.f32 0.03125, %v2243_v47  ;;  %v2474_v37 = vadd.f32 1.0, %v8580_v57  ;;  %v2296_v18 = vsub.f32 %v2264_v46, %v2280_v17 }
 0x7a8   :  { %v8584_v11 = vpop.eup %8583  ;;  %v2372_v48 = vmul.f32 %v8582_v26, %v2324_v50  ;;  %v2181_v8 = vpop.xlane.xlu0 %2180  ;;  %v2326_v57 = vsub.f32 %v11021_v30, %v11116_v61 }
 0x7a9   :  { %v8586_v16 = vpop.eup %8585  ;;  %v2297_v55 = vsub.f32 %v2265_v45, %v2281_v23  ;;  %v11141_v56 = vmul.f32 0.03125, %v2181_v8  ;;  %v2475_v38 = vadd.f32 1.0, %v8584_v11  ;;  %8595 = vrcp.f32 %v2474_v37 }
 0x7aa   :  { %v2373_v21 = vmul.f32 %v8586_v16, %v2325_v6  ;;  %v2312_v15 = vmax.f32 %v2296_v18, 0.0  ;;  %v2183_v32 = vpop.xlane.xlu1 %2182  ;;  %v2392_v0 = vmul.f32 %v11083_v53, %v2372_v48  ;;  %v8588_v47 = vpop.eup %8587 }
 0x7ab   :  { %v2313_v10 = vmax.f32 %v2297_v55, 0.0  ;;  %v11148_v50 = vmul.f32 0.03125, %v2183_v32  ;;  %v2520_v26 = vmul.f32 %v8588_v47, %v11093_v49  ;;  %8597 = vrcp.f32 %v2475_v38 }
 0x7ac   :  { %v2344_v17 = vadd.f32 1e-05, %v2312_v15  ;;  %v2245_v46 = vpop.xlane.xlu0 %2244  ;;  %v2393_v23 = vmul.f32 %v11083_v53, %v2373_v21  ;;  %v8590_v45 = vpop.eup %8589  ;;  %v2282_v11 = vmul.f32 %v11141_v56, %v11141_v56  ;;  %v11159_v49 = vadd.f32 %v11088_v13, %v2392_v0 }
 0x7ad   :  { %v2345_v37 = vadd.f32 1e-05, %v2313_v10  ;;  %v2283_v30 = vmul.f32 %v11148_v50, %v11148_v50  ;;  %v2266_v61 = vmul.f32 0.03125, %v2245_v46  ;;  %v2521_v33 = vmul.f32 %v8590_v45, %v11100_v20 }
 0x7ae   :  { %8599 = vrsqrt.f32 %v2344_v17  ;;  %v2247_v42 = vpop.xlane.xlu1 %2246  ;;  %v2536_v6 = vadd.f32 %v2520_v26, %v10835_v25  ;;  %v11162_v16 = vadd.f32 %v11088_v13, %v2393_v23  ;;  %v2328_v55 = vsub.f32 %v11031_v44, %v11129_v2  ;;  %v13892_v23 = vld [vmem:[#allocation36_spill] sm:$0xff] }
 0x7af   :  { %v8592_v48 = vpop.eup %8591  ;;  %8601 = vrsqrt.f32 %v2345_v37  ;;  %v2298_v18 = vsub.f32 %v2266_v61, %v2282_v11  ;;  %v2267_v8 = vmul.f32 0.03125, %v2247_v42  ;;  %v2537_v21 = vadd.f32 %v2521_v33, %v10837_v59 }
 0x7b0   :  { %v2185_v38 = vpop.xlane.xlu0 %2184  ;;  %v2552_v15 = vmul.f32 0.70710677, %v2536_v6  ;;  %v7322_v20 = vmul.f32 -1.442695, %v11159_v49  ;;  %v2329_v32 = vsub.f32 %v11036_v31, %v11131_v34  ;;  %v2374_v17 = vmul.f32 %v8592_v48, %v2326_v57 }
 0x7b1   :  { %v8594_v25 = vpop.eup %8593  ;;  %v2314_v0 = vmax.f32 %v2298_v18, 0.0  ;;  %v2299_v47 = vsub.f32 %v2267_v8, %v2283_v30  ;;  %v11170_v10 = vmul.f32 0.03125, %v2185_v38  ;;  %v2553_v26 = vmul.f32 0.70710677, %v2537_v21  ;;  %v13893_v30 = vld [vmem:[#allocation35_spill] sm:$0xff] }
 0x7b2   :  { %v2187_v46 = vpop.xlane.xlu1 %2186  ;;  %v2568_v45 = vadd.f32 %v2552_v15, %v13892_v23  ;;  %8603 = vpow2.f32 %v7322_v20  ;;  %v2375_v2 = vmul.f32 %v8594_v25, %v2327_v5  ;;  %v7323_v11 = vmul.f32 -1.442695, %v11162_v16 }
 0x7b3   :  { %v8596_v44 = vpop.eup %8595  ;;  %v2346_v59 = vadd.f32 1e-05, %v2314_v0  ;;  %v2315_v37 = vmax.f32 %v2299_v47, 0.0  ;;  %v2284_v61 = vmul.f32 %v11170_v10, %v11170_v10  ;;  %v11176_v31 = vmul.f32 0.03125, %v2187_v46 }
 0x7b4   :  { %v2249_v34 = vpop.xlane.xlu0 %2248  ;;  %v2569_v42 = vadd.f32 %v2553_v26, %v13893_v30  ;;  %v2522_v57 = vmul.f32 %v8596_v44, %v11114_v35  ;;  %v11180_v48 = vmul.f32 0.70710677, %v2568_v45  ;;  %v2394_v15 = vmul.f32 %v11083_v53, %v2374_v17 }
 0x7b5   :  { %8605 = vrsqrt.f32 %v2346_v59  ;;  %v2347_v33 = vadd.f32 1e-05, %v2315_v37  ;;  %v2268_v6 = vmul.f32 0.03125, %v2249_v34  ;;  %v8598_v5 = vpop.eup %8597  ;;  %v2285_v18 = vmul.f32 %v11176_v31, %v11176_v31  ;;  %v13897_v34 = vld [vmem:[#allocation38_spill] sm:$0xff] }
 0x7b6   :  { %13894 = vst [vmem:[#allocation36_spill] sm:$0xff] %v11180_v48  ;;  %v2251_v8 = vpop.xlane.xlu1 %2250  ;;  %v11184_v38 = vmul.f32 0.70710677, %v2569_v42  ;;  %v2538_v21 = vadd.f32 %v2522_v57, %v10845_v43  ;;  %v2523_v35 = vmul.f32 %v8598_v5, %v11119_v62  ;;  %v2395_v23 = vmul.f32 %v11083_v53, %v2375_v2 }
 0x7b7   :  { %8607 = vrsqrt.f32 %v2347_v33  ;;  %v2300_v20 = vsub.f32 %v2268_v6, %v2284_v61  ;;  %v2269_v25 = vmul.f32 0.03125, %v2251_v8  ;;  %v2330_v43 = vsub.f32 %v11045_v40, %v11141_v56 }
 0x7b8   :  { %13895 = vst [vmem:[#allocation35_spill] sm:$0xff] %v11184_v38  ;;  %v8600_v0 = vpop.eup %8599  ;;  %v2189_v47 = vpop.xlane.xlu0 %2188  ;;  %v11191_v46 = vpack.c.bf16 %v11184_v38, %v11180_v48  ;;  %v2554_v26 = vmul.f32 0.70710677, %v2538_v21  ;;  %8609 = vpow2.f32 %v7323_v11  ;;  %v2331_v62 = vsub.f32 %v11051_v12, %v11148_v50  ;;  %v13898_v21 = vld [vmem:[#allocation37_spill] sm:$0xff] }
 0x7b9   :  { %v8602_v45 = vpop.eup %8601  ;;  %v2316_v17 = vmax.f32 %v2300_v20, 0.0  ;;  %v2301_v44 = vsub.f32 %v2269_v25, %v2285_v18  ;;  %v11196_v59 = vmul.f32 0.03125, %v2189_v47  ;;  %v2539_v61 = vadd.f32 %v2523_v35, %v10859_v58 }
 0x7ba   :  { %13896 = vst [vmem:[#allocation51_spill] sm:$0xff] %v11191_v46  ;;  %v2191_v37 = vpop.xlane.xlu1 %2190  ;;  %2757 = vmatmul.mubr.bf16.vlgmr.msra.gmra.mrb[32].mxu0 %v11191_v46  ;;  %v2570_v11 = vadd.f32 %v2554_v26, %v13897_v34  ;;  %v11204_v2 = vadd.f32 %v11088_v13, %v2394_v15  ;;  %v2376_v30 = vmul.f32 %v8600_v0, %v2328_v55 }
 0x7bb   :  { %v2377_v42 = vmul.f32 %v8602_v45, %v2329_v32  ;;  %v2348_v40 = vadd.f32 1e-05, %v2316_v17  ;;  %v2317_v56 = vmax.f32 %v2301_v44, 0.0  ;;  %2766 = vmatprep.mubr.bf16.mxu0 %v13814_v60  ;;  %v2286_v12 = vmul.f32 %v11196_v59, %v11196_v59 }
 0x7bc   :  { %v8604_v57 = vpop.eup %8603  ;;  %v11209_v50 = vmul.f32 0.03125, %v2191_v37  ;;  %v2253_v33 = vpop.xlane.xlu0 %2252  ;;  %v2555_v6 = vmul.f32 0.70710677, %v2539_v61  ;;  %v11212_v58 = vadd.f32 %v11088_v13, %v2395_v23  ;;  %v11217_v20 = vmul.f32 0.70710677, %v2570_v11 }
 0x7bd   :  { %8611 = vrsqrt.f32 %v2348_v40  ;;  %v2349_v5 = vadd.f32 1e-05, %v2317_v56  ;;  %v2270_v18 = vmul.f32 0.03125, %v2253_v33  ;;  %v2476_v55 = vadd.f32 1.0, %v8604_v57 }
 0x7be   :  { %v2287_v32 = vmul.f32 %v11209_v50, %v11209_v50  ;;  %v2255_v8 = vpop.xlane.xlu1 %2254  ;;  %v2571_v15 = vadd.f32 %v2555_v6, %v13898_v21  ;;  %13899 = vst [vmem:[#allocation38_spill] sm:$0xff] %v11217_v20  ;;  %v7324_v25 = vmul.f32 -1.442695, %v11204_v2  ;;  %v7325_v26 = vmul.f32 -1.442695, %v11212_v58 }
 0x7bf   :  { %v8606_v35 = vpop.eup %8605  ;;  %8613 = vrsqrt.f32 %v2349_v5  ;;  %v2302_v0 = vsub.f32 %v2270_v18, %v2286_v12  ;;  %v2271_v47 = vmul.f32 0.03125, %v2255_v8  ;;  %v2396_v17 = vmul.f32 %v11083_v53, %v2376_v30 }
 0x7c0   :  { %v2378_v23 = vmul.f32 %v8606_v35, %v2330_v43  ;;  %v11221_v45 = vmul.f32 0.70710677, %v2571_v15  ;;  %8615 = vrcp.f32 %v2476_v55  ;;  %v2397_v34 = vmul.f32 %v11083_v53, %v2377_v42 }
 0x7c1   :  { %v8608_v44 = vpop.eup %8607  ;;  %v2318_v37 = vmax.f32 %v2302_v0, 0.0  ;;  %v2303_v61 = vsub.f32 %v2271_v47, %v2287_v32  ;;  %8617 = vpow2.f32 %v7324_v25  ;;  %v11230_v43 = vadd.f32 %v11088_v13, %v2396_v17 }
 0x7c2   :  { %13900 = vst [vmem:[#allocation37_spill] sm:$0xff] %v11221_v45  ;;  %v8610_v11 = vpop.eup %8609  ;;  %v2379_v40 = vmul.f32 %v8608_v44, %v2331_v62  ;;  %v11227_v56 = vpack.c.bf16 %v11221_v45, %v11217_v20  ;;  %8619 = vpow2.f32 %v7325_v26  ;;  %v11233_v30 = vadd.f32 %v11088_v13, %v2397_v34  ;;  %v8205_v45 = vld [vmem:[#allocation13 + $0x78] sm:$0xff]  }
 0x7c3   :  { %v2350_v57 = vadd.f32 1e-05, %v2318_v37  ;;  %v2319_v12 = vmax.f32 %v2303_v61, 0.0  ;;  %v2477_v33 = vadd.f32 1.0, %v8610_v11  ;;  %v7326_v42 = vmul.f32 -1.442695, %v11230_v43 }
 0x7c4   :  { %13901 = vst [vmem:[#allocation52_spill] sm:$0xff] %v11227_v56  ;;  %2767 = vmatmul.mubr.bf16.gmra.mrb[36].mxu0 %v11227_v56  ;;  %v2398_v62 = vmul.f32 %v11083_v53, %v2378_v23  ;;  %v2399_v6 = vmul.f32 %v11083_v53, %v2379_v40  ;;  %v7327_v18 = vmul.f32 -1.442695, %v11233_v30  ;;  %v2332_v55 = vsub.f32 %v11061_v54, %v11170_v10 }
 0x7c5   :  { %8621 = vrsqrt.f32 %v2350_v57  ;;  %v2351_v5 = vadd.f32 1e-05, %v2319_v12  ;;  %2776 = vmatprep.mubr.bf16.mxu0 %v13814_v60  ;;  %v2333_v15 = vsub.f32 %v11066_v27, %v11176_v31  ;;  %v2334_v11 = vsub.f32 %v11048_v3, %v11196_v59 }
 0x7c6   :  { %8623 = vrcp.f32 %v2477_v33  ;;  %v11244_v32 = vadd.f32 %v11088_v13, %v2398_v62  ;;  %v11247_v8 = vadd.f32 %v11088_v13, %v2399_v6  ;;  %v2335_v33 = vsub.f32 %v11055_v36, %v11209_v50 }
 0x7c7   :  { %v8612_v21 = vpop.eup %8611  ;;  %8625 = vrsqrt.f32 %v2351_v5 }
 0x7c8   :  { %v2380_v25 = vmul.f32 %v8612_v21, %v2332_v55  ;;  %8627 = vpow2.f32 %v7326_v42  ;;  %v7328_v35 = vmul.f32 -1.442695, %v11244_v32  ;;  %v7329_v0 = vmul.f32 -1.442695, %v11247_v8 }
 0x7c9   :  { %v8614_v47 = vpop.eup %8613  ;;  %8629 = vpow2.f32 %v7327_v18 }
 0x7ca   :  { %v8616_v54 = vpop.eup %8615  ;;  %v2381_v10 = vmul.f32 %v8614_v47, %v2333_v15  ;;  %8631 = vpow2.f32 %v7328_v35  ;;  %v2400_v26 = vmul.f32 %v11083_v53, %v2380_v25 }
 0x7cb   :  { %v8618_v23 = vpop.eup %8617  ;;  %v2524_v17 = vmul.f32 %v8616_v54, %v11159_v49  ;;  %8633 = vpow2.f32 %v7329_v0 }
 0x7cc   :  { %v8620_v44 = vpop.eup %8619  ;;  %v2478_v27 = vadd.f32 1.0, %v8618_v23  ;;  %v2401_v31 = vmul.f32 %v11083_v53, %v2381_v10  ;;  %v11257_v37 = vadd.f32 %v11088_v13, %v2400_v26 }
 0x7cd   :  { %v2540_v61 = vadd.f32 %v2524_v17, %v10914_v52  ;;  %v2479_v34 = vadd.f32 1.0, %v8620_v44  ;;  %v13903_v17 = vld [vmem:[#allocation40_spill] sm:$0xff] }
 0x7ce   :  { %8635 = vrcp.f32 %v2478_v27  ;;  %v11263_v40 = vadd.f32 %v11088_v13, %v2401_v31  ;;  %v7330_v49 = vmul.f32 -1.442695, %v11257_v37 }
 0x7cf   :  { %v8622_v57 = vpop.eup %8621  ;;  %8637 = vrcp.f32 %v2479_v34  ;;  %v2556_v3 = vmul.f32 0.70710677, %v2540_v61 }
 0x7d0   :  { %v8624_v12 = vpop.eup %8623  ;;  %v2382_v42 = vmul.f32 %v8622_v57, %v2334_v11  ;;  %8639 = vpow2.f32 %v7330_v49  ;;  %v7331_v52 = vmul.f32 -1.442695, %v11263_v40 }
 0x7d1   :  { %v8626_v62 = vpop.eup %8625  ;;  %v2525_v6 = vmul.f32 %v8624_v12, %v11162_v16  ;;  %v13902_v16 = vld [vmem:[#allocation39_spill] sm:$0xff] }
 0x7d2   :  { %v8628_v59 = vpop.eup %8627  ;;  %v2383_v5 = vmul.f32 %v8626_v62, %v2335_v33  ;;  %8641 = vpow2.f32 %v7331_v52  ;;  %v2402_v18 = vmul.f32 %v11083_v53, %v2382_v42  ;;  %v2572_v54 = vadd.f32 %v2556_v3, %v13902_v16  ;;  %v13907_v3 = vld [vmem:[#allocation42_spill] sm:$0xff] }
 0x7d3   :  { %v8630_v55 = vpop.eup %8629  ;;  %v2541_v21 = vadd.f32 %v2525_v6, %v10919_v1  ;;  %v2480_v15 = vadd.f32 1.0, %v8628_v59 }
 0x7d4   :  { %v8632_v25 = vpop.eup %8631  ;;  %v2481_v35 = vadd.f32 1.0, %v8630_v55  ;;  %v2403_v36 = vmul.f32 %v11083_v53, %v2383_v5  ;;  %v11274_v50 = vadd.f32 %v11088_v13, %v2402_v18  ;;  %v11283_v61 = vmul.f32 0.70710677, %v2572_v54  ;;  %v13908_v18 = vld [vmem:[#allocation41_spill] sm:$0xff] }
 0x7d5   :  { %v8634_v0 = vpop.eup %8633  ;;  %v2557_v47 = vmul.f32 0.70710677, %v2541_v21  ;;  %8643 = vrcp.f32 %v2480_v15  ;;  %v2482_v10 = vadd.f32 1.0, %v8632_v25 }
 0x7d6   :  { %8645 = vrcp.f32 %v2481_v35  ;;  %v2483_v26 = vadd.f32 1.0, %v8634_v0  ;;  %v11278_v23 = vadd.f32 %v11088_v13, %v2403_v36  ;;  %v7332_v1 = vmul.f32 -1.442695, %v11274_v50  ;;  %13904 = vst [vmem:[#allocation39_spill] sm:$0xff] %v11283_v61 }
 0x7d7   :  { %v2573_v44 = vadd.f32 %v2557_v47, %v13903_v17  ;;  %8647 = vrcp.f32 %v2482_v10 }
 0x7d8   :  { %v8636_v53 = vpop.eup %8635  ;;  %8649 = vrcp.f32 %v2483_v26  ;;  %v7333_v27 = vmul.f32 -1.442695, %v11278_v23 }
 0x7d9   :  { %v8638_v31 = vpop.eup %8637  ;;  %v11285_v34 = vmul.f32 0.70710677, %v2573_v44  ;;  %v2526_v11 = vmul.f32 %v8636_v53, %v11204_v2  ;;  %8651 = vpow2.f32 %v7332_v1 }
 0x7da   :  { %v8640_v49 = vpop.eup %8639  ;;  %v2527_v13 = vmul.f32 %v8638_v31, %v11212_v58  ;;  %8653 = vpow2.f32 %v7333_v27 }
 0x7db   :  { %13905 = vst [vmem:[#allocation40_spill] sm:$0xff] %v11285_v34  ;;  %v11291_v57 = vpack.c.bf16 %v11285_v34, %v11283_v61  ;;  %v2542_v12 = vadd.f32 %v2526_v11, %v10929_v9  ;;  %v2484_v33 = vadd.f32 1.0, %v8640_v49  ;;  %v8196_v34 = vld [vmem:[#allocation13 + $0x10] sm:$0xff]  }
 0x7dc   :  { %v8642_v42 = vpop.eup %8641  ;;  %v2543_v52 = vadd.f32 %v2527_v13, %v10931_v51 }
 0x7dd   :  { %13906 = vst [vmem:[#allocation53_spill] sm:$0xff] %v11291_v57  ;;  %2777 = vmatmul.mubr.bf16.gmra.mrb[40].mxu0 %v11291_v57  ;;  %v2558_v62 = vmul.f32 0.70710677, %v2542_v12  ;;  %v2485_v6 = vadd.f32 1.0, %v8642_v42  ;;  %8655 = vrcp.f32 %v2484_v33  ;;  %v13916_v12 = vld [vmem:[#allocation46_spill] sm:$0xff] }
 0x7de   :  { %2786 = vmatprep.mubr.bf16.mxu0 %v13814_v60  ;;  %v2559_v2 = vmul.f32 0.70710677, %v2543_v52 }
 0x7df   :  { %v8644_v58 = vpop.eup %8643  ;;  %v2574_v59 = vadd.f32 %v2558_v62, %v13907_v3  ;;  %8657 = vrcp.f32 %v2485_v6  ;;  %v13918_v62 = vld [vmem:[#allocation45_spill] sm:$0xff] }
 0x7e0   :  { %v8646_v5 = vpop.eup %8645  ;;  %v2575_v55 = vadd.f32 %v2559_v2, %v13908_v18  ;;  %v2528_v9 = vmul.f32 %v8644_v58, %v11230_v43 }
 0x7e1   :  { %v8648_v21 = vpop.eup %8647  ;;  %v2529_v51 = vmul.f32 %v8646_v5, %v11233_v30  ;;  %v11301_v25 = vmul.f32 0.70710677, %v2574_v59 }
 0x7e2   :  { %v8650_v15 = vpop.eup %8649  ;;  %v11303_v35 = vmul.f32 0.70710677, %v2575_v55  ;;  %v2544_v36 = vadd.f32 %v2528_v9, %v10940_v28  ;;  %v2530_v0 = vmul.f32 %v8648_v21, %v11244_v32  ;;  %v13912_v32 = vld [vmem:[#allocation43_spill] sm:$0xff] }
 0x7e3   :  { %13909 = vst [vmem:[#allocation42_spill] sm:$0xff] %v11301_v25  ;;  %v8652_v47 = vpop.eup %8651  ;;  %v2545_v16 = vadd.f32 %v2529_v51, %v10942_v29  ;;  %v2531_v54 = vmul.f32 %v8650_v15, %v11247_v8  ;;  %v13913_v8 = vld [vmem:[#allocation44_spill] sm:$0xff] }
 0x7e4   :  { %13910 = vst [vmem:[#allocation41_spill] sm:$0xff] %v11303_v35  ;;  %v8654_v10 = vpop.eup %8653  ;;  %v11311_v43 = vpack.c.bf16 %v11303_v35, %v11301_v25  ;;  %v2560_v30 = vmul.f32 0.70710677, %v2544_v36  ;;  %v2546_v26 = vadd.f32 %v2530_v0, %v10949_v22  ;;  %v2486_v1 = vadd.f32 1.0, %v8652_v47  ;;  %v13923_v51 = vld [vmem:[#allocation48_spill] sm:$0xff] }
 0x7e5   :  { %v2561_v17 = vmul.f32 0.70710677, %v2545_v16  ;;  %v2547_v44 = vadd.f32 %v2531_v54, %v10951_v4  ;;  %v2487_v28 = vadd.f32 1.0, %v8654_v10 }
 0x7e6   :  { %13911 = vst [vmem:[#allocation54_spill] sm:$0xff] %v11311_v43  ;;  %2787 = vmatmul.mubr.bf16.gmra.mrb[44].mxu0 %v11311_v43  ;;  %v2576_v53 = vadd.f32 %v2560_v30, %v13912_v32  ;;  %8659 = vrcp.f32 %v2486_v1  ;;  %v2562_v11 = vmul.f32 0.70710677, %v2546_v26  ;;  %v13928_v26 = vld [vmem:[#allocation49_spill] sm:$0xff] }
 0x7e7   :  { %v8656_v29 = vpop.eup %8655  ;;  %2796 = vmatprep.mubr.bf16.mxu0 %v13814_v60  ;;  %v2577_v27 = vadd.f32 %v2561_v17, %v13913_v8  ;;  %v2563_v31 = vmul.f32 0.70710677, %v2547_v44  ;;  %8661 = vrcp.f32 %v2487_v28  ;;  %v11372_v44 = vld [vmem:[#allocation11] sm:$0x77]  ;;  %v13932_v28 = vld [vmem:[#allocation31_spill] sm:$0xff] }
 0x7e8   :  { %v2532_v22 = vmul.f32 %v8656_v29, %v11257_v37  ;;  %v11320_v13 = vmul.f32 0.70710677, %v2576_v53  ;;  %v2578_v6 = vadd.f32 %v2562_v11, %v13918_v62  ;;  %v2632_v32 = vsub.s32 4, %v13932_v28 }
 0x7e9   :  { %v8658_v49 = vpop.eup %8657  ;;  %v11322_v4 = vmul.f32 0.70710677, %v2577_v27  ;;  %v2579_v33 = vadd.f32 %v2563_v31, %v13916_v12  ;;  %v2629_v53 = vrot.slane %v11372_v44, %v13888_v41 }
 0x7ea   :  { %13914 = vst [vmem:[#allocation43_spill] sm:$0xff] %v11320_v13  ;;  %v2533_v42 = vmul.f32 %v8658_v49, %v11263_v40  ;;  %v2548_v2 = vadd.f32 %v2532_v22, %v10960_v24  ;;  %v11337_v5 = vmul.f32 0.70710677, %v2578_v6  ;;  %v13922_v24 = vld [vmem:[#allocation47_spill] sm:$0xff]  ;;  %v2633_v29 = vrot.slane %v11372_v44, %v2632_v32 }
 0x7eb   :  { %13915 = vst [vmem:[#allocation44_spill] sm:$0xff] %v11322_v4  ;;  %v11328_v52 = vpack.c.bf16 %v11322_v4, %v11320_v13  ;;  %v11334_v37 = vmul.f32 0.70710677, %v2579_v33  ;;  %v11379_v8 = vrot.slane %v2629_v53, %v13888_v41  ;;  %v8195_v13 = vld [vmem:[#allocation13 + $0x50] sm:$0xff]  }
 0x7ec   :  { %v2549_v58 = vadd.f32 %v2533_v42, %v10962_v39  ;;  %13920 = vst [vmem:[#allocation55_spill] sm:$0xff] %v11337_v5  ;;  %v2564_v40 = vmul.f32 0.70710677, %v2548_v2  ;;  %v11382_v27 = vrot.slane %v2633_v29, %v13888_v41 }
 0x7ed   :  { %13917 = vst [vmem:[#allocation46_spill] sm:$0xff] %v11328_v52  ;;  %13919 = vst [vmem:[#allocation45_spill] sm:$0xff] %v11334_v37  ;;  %v11342_v9 = vpack.c.bf16 %v11334_v37, %v11337_v5  ;;  %v8192_v5 = vld [vmem:[#allocation13] sm:$0xff]  }
 0x7ee   :  { %2797 = vmatmul.mubr.bf16.gmra.mrb[48].mxu0 %v11328_v52  ;;  %v2565_v3 = vmul.f32 0.70710677, %v2549_v58  ;;  %v2580_v15 = vadd.f32 %v2564_v40, %v13923_v51 }
 0x7ef   :  { %2806 = vmatprep.mubr.bf16.mxu0 %v13814_v60  ;;  %13921 = vst [vmem:[#allocation56_spill] sm:$0xff] %v11342_v9 }
 0x7f0   :  { %v8660_v59 = vpop.eup %8659  ;;  %v2581_v39 = vadd.f32 %v2565_v3, %v13922_v24 }
 0x7f1   :  { %v8662_v18 = vpop.eup %8661  ;;  %v2534_v55 = vmul.f32 %v8660_v59, %v11274_v50  ;;  %v11353_v50 = vmul.f32 0.70710677, %v2580_v15 }
 0x7f2   :  { %v2535_v21 = vmul.f32 %v8662_v18, %v11278_v23  ;;  %v11350_v47 = vmul.f32 0.70710677, %v2581_v39  ;;  %v13927_v23 = vld [vmem:[#allocation50_spill] sm:$0xff] }
 0x7f3   :  { %v2550_v36 = vadd.f32 %v2534_v55, %v10969_v14  ;;  %13925 = vst [vmem:[#allocation48_spill] sm:$0xff] %v11353_v50 }
 0x7f4   :  { %v2551_v0 = vadd.f32 %v2535_v21, %v10971_v7  ;;  %13924 = vst [vmem:[#allocation47_spill] sm:$0xff] %v11350_v47  ;;  %v11357_v10 = vpack.c.bf16 %v11350_v47, %v11353_v50 }
 0x7f5   :  { %v2566_v54 = vmul.f32 0.70710677, %v2550_v36 }
 0x7f6   :  { %2807 = vmatmul.mubr.bf16.gmra.mrb[52].mxu0 %v11342_v9  ;;  %v2567_v16 = vmul.f32 0.70710677, %v2551_v0  ;;  %13926 = vst [vmem:[#allocation57_spill] sm:$0xff] %v11357_v10 }
 0x7f7   :  { %2816 = vmatprep.mubr.bf16.mxu0 %v13814_v60  ;;  %v2582_v14 = vadd.f32 %v2566_v54, %v13928_v26 }
 0x7f8   :  { %v2583_v30 = vadd.f32 %v2567_v16, %v13927_v23 }
 0x7f9   :  { %v11365_v1 = vmul.f32 0.70710677, %v2582_v14 }
 0x7fa   :  { %v11362_v7 = vmul.f32 0.70710677, %v2583_v30 }
 0x7fb   :  { %13930 = vst [vmem:[#allocation49_spill] sm:$0xff] %v11365_v1 }
 0x7fc   :  { %13929 = vst [vmem:[#allocation50_spill] sm:$0xff] %v11362_v7  ;;  %v11369_v17 = vpack.c.bf16 %v11362_v7, %v11365_v1 }
 0x7fe   :  { %2817 = vmatmul.mubr.bf16.gmra.mrb[56].mxu0 %v11357_v10  ;;  %13931 = vst [vmem:[#allocation58_spill] sm:$0xff] %v11369_v17 }
 0x7ff   :  { %2826 = vmatprep.mubr.bf16.mxu0 %v13814_v60 }
 0x806   :  { %2827 = vmatmul.mubr.bf16.gmra.mrb[60].mxu0 %v11369_v17 }
 0x88d   :  { %v2758_v31 = vpop.f32.mrb[32].mxu0 }
 0x88e   :  { %v11385_v11 = vadd.f32 %v2758_v31, %v11379_v8  ;;  %v2760_v22 = vpop.f32.mrb[33].mxu0 }
 0x88f   :  { %v11388_v49 = vadd.f32 %v2760_v22, %v11382_v27  ;;  %v2762_v12 = vpop.f32.mrb[34].mxu0 }
 0x890   :  { %v11391_v33 = vadd.f32 %v2762_v12, %v11379_v8  ;;  %v2764_v42 = vpop.f32.mrb[35].mxu0  ;;  %v2901_v62 = vmul.f32 %v11385_v11, %v11385_v11 }
 0x891   :  { %v2902_v6 = vmul.f32 %v11388_v49, %v11388_v49  ;;  %v11398_v2 = vadd.f32 %v2764_v42, %v11382_v27  ;;  %v2837_v58 = vadd.f32 %v11388_v49, %v11385_v11 }
 0x892   :  { %v2903_v3 = vmul.f32 %v11391_v33, %v11391_v33 }
 0x893   :  { %v2904_v59 = vmul.f32 %v11398_v2, %v11398_v2  ;;  %2838 = vadd.xlane.f32.xlu0 %v2837_v58  ;;  %v2840_v40 = vadd.f32 %v11398_v2, %v11391_v33  ;;  %v2933_v18 = vadd.f32 %v2902_v6, %v2901_v62 }
 0x895   :  { %2841 = vadd.xlane.f32.xlu1 %v2840_v40  ;;  %v2936_v24 = vadd.f32 %v2904_v59, %v2903_v3 }
 0x897   :  { %v2768_v55 = vpop.f32.mrb[36].mxu0  ;;  %2934 = vadd.xlane.f32.xlu0 %v2933_v18 }
 0x898   :  { %v11409_v39 = vadd.f32 %v2768_v55, %v11379_v8  ;;  %v2770_v21 = vpop.f32.mrb[37].mxu0 }
 0x899   :  { %v11412_v51 = vadd.f32 %v2770_v21, %v11382_v27  ;;  %v2772_v15 = vpop.f32.mrb[38].mxu0  ;;  %2937 = vadd.xlane.f32.xlu1 %v2936_v24 }
 0x89a   :  { %v11415_v36 = vadd.f32 %v2772_v15, %v11379_v8  ;;  %v2774_v0 = vpop.f32.mrb[39].mxu0  ;;  %v2905_v16 = vmul.f32 %v11409_v39, %v11409_v39 }
 0x89b   :  { %v2906_v54 = vmul.f32 %v11412_v51, %v11412_v51  ;;  %v11422_v23 = vadd.f32 %v2774_v0, %v11382_v27  ;;  %v2843_v30 = vadd.f32 %v11412_v51, %v11409_v39 }
 0x89c   :  { %v2907_v26 = vmul.f32 %v11415_v36, %v11415_v36 }
 0x89d   :  { %v2908_v14 = vmul.f32 %v11422_v23, %v11422_v23  ;;  %2844 = vadd.xlane.f32.xlu0 %v2843_v30  ;;  %v2846_v32 = vadd.f32 %v11422_v23, %v11415_v36  ;;  %v2939_v53 = vadd.f32 %v2906_v54, %v2905_v16 }
 0x89f   :  { %2847 = vadd.xlane.f32.xlu1 %v2846_v32  ;;  %v2942_v29 = vadd.f32 %v2908_v14, %v2907_v26 }
 0x8a1   :  { %2940 = vadd.xlane.f32.xlu0 %v2939_v53 }
 0x8a3   :  { %2943 = vadd.xlane.f32.xlu1 %v2942_v29 }
 0x8b0   :  { %v2778_v31 = vpop.f32.mrb[40].mxu0 }
 0x8b1   :  { %v11433_v22 = vadd.f32 %v2778_v31, %v11379_v8  ;;  %v2780_v12 = vpop.f32.mrb[41].mxu0 }
 0x8b2   :  { %v11436_v42 = vadd.f32 %v2780_v12, %v11382_v27  ;;  %v2782_v62 = vpop.f32.mrb[42].mxu0 }
 0x8b3   :  { %v11439_v6 = vadd.f32 %v2782_v62, %v11379_v8  ;;  %v2784_v58 = vpop.f32.mrb[43].mxu0  ;;  %v2909_v3 = vmul.f32 %v11433_v22, %v11433_v22 }
 0x8b4   :  { %v2910_v59 = vmul.f32 %v11436_v42, %v11436_v42  ;;  %v11446_v40 = vadd.f32 %v2784_v58, %v11382_v27  ;;  %v2849_v18 = vadd.f32 %v11436_v42, %v11433_v22 }
 0x8b5   :  { %v2911_v55 = vmul.f32 %v11439_v6, %v11439_v6 }
 0x8b6   :  { %v2912_v24 = vmul.f32 %v11446_v40, %v11446_v40  ;;  %2850 = vadd.xlane.f32.xlu0 %v2849_v18  ;;  %v2852_v21 = vadd.f32 %v11446_v40, %v11439_v6  ;;  %v2945_v15 = vadd.f32 %v2910_v59, %v2909_v3 }
 0x8b8   :  { %2853 = vadd.xlane.f32.xlu1 %v2852_v21  ;;  %v2948_v30 = vadd.f32 %v2912_v24, %v2911_v55 }
 0x8b9   :  { %v2788_v0 = vpop.f32.mrb[44].mxu0 }
 0x8ba   :  { %v11457_v16 = vadd.f32 %v2788_v0, %v11379_v8  ;;  %v2790_v54 = vpop.f32.mrb[45].mxu0  ;;  %2946 = vadd.xlane.f32.xlu0 %v2945_v15 }
 0x8bb   :  { %v11460_v26 = vadd.f32 %v2790_v54, %v11382_v27  ;;  %v2792_v14 = vpop.f32.mrb[46].mxu0 }
 0x8bc   :  { %v11463_v32 = vadd.f32 %v2792_v14, %v11379_v8  ;;  %v2794_v53 = vpop.f32.mrb[47].mxu0  ;;  %2949 = vadd.xlane.f32.xlu1 %v2948_v30  ;;  %v2913_v29 = vmul.f32 %v11457_v16, %v11457_v16 }
 0x8bd   :  { %v2914_v31 = vmul.f32 %v11460_v26, %v11460_v26  ;;  %v11470_v12 = vadd.f32 %v2794_v53, %v11382_v27  ;;  %v2855_v62 = vadd.f32 %v11460_v26, %v11457_v16 }
 0x8be   :  { %v2915_v58 = vmul.f32 %v11463_v32, %v11463_v32 }
 0x8bf   :  { %v2916_v3 = vmul.f32 %v11470_v12, %v11470_v12  ;;  %2856 = vadd.xlane.f32.xlu0 %v2855_v62  ;;  %v2858_v59 = vadd.f32 %v11470_v12, %v11463_v32  ;;  %v2951_v55 = vadd.f32 %v2914_v31, %v2913_v29 }
 0x8c1   :  { %2859 = vadd.xlane.f32.xlu1 %v2858_v59  ;;  %v2798_v18 = vpop.f32.mrb[48].mxu0  ;;  %v2954_v54 = vadd.f32 %v2916_v3, %v2915_v58 }
 0x8c2   :  { %v11481_v24 = vadd.f32 %v2798_v18, %v11379_v8  ;;  %v2800_v21 = vpop.f32.mrb[49].mxu0 }
 0x8c3   :  { %v11484_v15 = vadd.f32 %v2800_v21, %v11382_v27  ;;  %2952 = vadd.xlane.f32.xlu0 %v2951_v55  ;;  %v2802_v0 = vpop.f32.mrb[50].mxu0 }
 0x8c4   :  { %v11487_v30 = vadd.f32 %v2802_v0, %v11379_v8  ;;  %v2804_v14 = vpop.f32.mrb[51].mxu0  ;;  %v2917_v53 = vmul.f32 %v11481_v24, %v11481_v24 }
 0x8c5   :  { %v2918_v29 = vmul.f32 %v11484_v15, %v11484_v15  ;;  %v11494_v31 = vadd.f32 %v2804_v14, %v11382_v27  ;;  %2955 = vadd.xlane.f32.xlu1 %v2954_v54  ;;  %v2861_v62 = vadd.f32 %v11484_v15, %v11481_v24 }
 0x8c6   :  { %v2919_v58 = vmul.f32 %v11487_v30, %v11487_v30 }
 0x8c7   :  { %v2920_v3 = vmul.f32 %v11494_v31, %v11494_v31  ;;  %2862 = vadd.xlane.f32.xlu0 %v2861_v62  ;;  %v2864_v59 = vadd.f32 %v11494_v31, %v11487_v30  ;;  %v2957_v55 = vadd.f32 %v2918_v29, %v2917_v53 }
 0x8c9   :  { %2865 = vadd.xlane.f32.xlu1 %v2864_v59  ;;  %v2808_v18 = vpop.f32.mrb[52].mxu0  ;;  %v2960_v60 = vadd.f32 %v2920_v3, %v2919_v58 }
 0x8ca   :  { %v11505_v21 = vadd.f32 %v2808_v18, %v11379_v8  ;;  %v2810_v0 = vpop.f32.mrb[53].mxu0 }
 0x8cb   :  { %v11508_v54 = vadd.f32 %v2810_v0, %v11382_v27  ;;  %2958 = vadd.xlane.f32.xlu0 %v2957_v55  ;;  %v2812_v14 = vpop.f32.mrb[54].mxu0 }
 0x8cc   :  { %v11511_v7 = vadd.f32 %v2812_v14, %v11379_v8  ;;  %v2814_v62 = vpop.f32.mrb[55].mxu0  ;;  %v2921_v1 = vmul.f32 %v11505_v21, %v11505_v21 }
 0x8cd   :  { %v2922_v53 = vmul.f32 %v11508_v54, %v11508_v54  ;;  %v11518_v29 = vadd.f32 %v2814_v62, %v11382_v27  ;;  %2961 = vadd.xlane.f32.xlu1 %v2960_v60  ;;  %v2867_v59 = vadd.f32 %v11508_v54, %v11505_v21  ;;  %v8191_v62 = vld [vmem:[#allocation13 + $0x40] sm:$0xff]  }
 0x8ce   :  { %v2923_v58 = vmul.f32 %v11511_v7, %v11511_v7  ;;  %7609 = vmatprep.subr.bf16.mxu1 %v8191_v62 }
 0x8cf   :  { %v2924_v3 = vmul.f32 %v11518_v29, %v11518_v29  ;;  %2868 = vadd.xlane.f32.xlu0 %v2867_v59  ;;  %v2870_v18 = vadd.f32 %v11518_v29, %v11511_v7  ;;  %v2963_v0 = vadd.f32 %v2922_v53, %v2921_v1  ;;  %7610 = vmatpush3.bf16.msra.mxu1 %v8192_v5 }
 0x8d1   :  { %2871 = vadd.xlane.f32.xlu1 %v2870_v18  ;;  %v2818_v55 = vpop.f32.mrb[56].mxu0  ;;  %v2966_v37 = vadd.f32 %v2924_v3, %v2923_v58  ;;  %v8193_v58 = vld [vmem:[#allocation13 + $0x48] sm:$0xff]  }
 0x8d2   :  { %v11529_v14 = vadd.f32 %v2818_v55, %v11379_v8  ;;  %v2820_v60 = vpop.f32.mrb[57].mxu0  ;;  %7611 = vmatprep.subr.bf16.mxu1 %v8193_v58 }
 0x8d3   :  { %v11532_v47 = vadd.f32 %v2820_v60, %v11382_v27  ;;  %2964 = vadd.xlane.f32.xlu0 %v2963_v0  ;;  %v2822_v50 = vpop.f32.mrb[58].mxu0  ;;  %v8194_v60 = vld [vmem:[#allocation13 + $0x8] sm:$0xff]  }
 0x8d4   :  { %v2925_v59 = vmul.f32 %v11529_v14, %v11529_v14  ;;  %v11537_v4 = vadd.f32 %v2822_v50, %v11379_v8  ;;  %v2824_v18 = vpop.f32.mrb[59].mxu0  ;;  %7612 = vmatpush3.bf16.msra.mxu1 %v8194_v60 }
 0x8d5   :  { %v2926_v1 = vmul.f32 %v11532_v47, %v11532_v47  ;;  %v11542_v53 = vadd.f32 %v2824_v18, %v11382_v27  ;;  %2967 = vadd.xlane.f32.xlu1 %v2966_v37  ;;  %v2873_v55 = vadd.f32 %v11532_v47, %v11529_v14  ;;  %7613 = vmatprep.subr.bf16.mxu1 %v8195_v13 }
 0x8d6   :  { %v2927_v3 = vmul.f32 %v11537_v4, %v11537_v4 }
 0x8d7   :  { %v2928_v50 = vmul.f32 %v11542_v53, %v11542_v53  ;;  %2874 = vadd.xlane.f32.xlu0 %v2873_v55  ;;  %v2876_v0 = vadd.f32 %v11542_v53, %v11537_v4  ;;  %v2969_v37 = vadd.f32 %v2926_v1, %v2925_v59 }
 0x8d8   :  { %7614 = vmatpush3.bf16.msra.mxu1 %v8196_v34  ;;  %v8200_v34 = vld [vmem:[#allocation13 + $0x20] sm:$0xff]  }
 0x8d9   :  { %2877 = vadd.xlane.f32.xlu1 %v2876_v0  ;;  %v2828_v62 = vpop.f32.mrb[60].mxu0  ;;  %v2972_v55 = vadd.f32 %v2928_v50, %v2927_v3  ;;  %v8197_v3 = vld [vmem:[#allocation13 + $0x58] sm:$0xff]  }
 0x8da   :  { %v11553_v18 = vadd.f32 %v2828_v62, %v11379_v8  ;;  %v2830_v5 = vpop.f32.mrb[61].mxu0  ;;  %7615 = vmatprep.subr.bf16.mxu1 %v8197_v3  ;;  %v8199_v62 = vld [vmem:[#allocation13 + $0x60] sm:$0xff]   ;;  %v8206_v3 = vld [vmem:[#allocation13 + $0x38] sm:$0xff]  }
 0x8db   :  { %v11556_v35 = vadd.f32 %v2830_v5, %v11382_v27  ;;  %2970 = vadd.xlane.f32.xlu0 %v2969_v37  ;;  %v2832_v25 = vpop.f32.mrb[62].mxu0  ;;  %v8201_v5 = vld [vmem:[#allocation13 + $0x68] sm:$0xff]  }
 0x8dc   :  { %v2929_v61 = vmul.f32 %v11553_v18, %v11553_v18  ;;  %v11561_v58 = vadd.f32 %v2832_v25, %v11379_v8  ;;  %v2834_v59 = vpop.f32.mrb[63].mxu0  ;;  %v8198_v8 = vld [vmem:[#allocation13 + $0x18] sm:$0xff]  }
 0x8dd   :  { %v2930_v1 = vmul.f32 %v11556_v35, %v11556_v35  ;;  %v11566_v0 = vadd.f32 %v2834_v59, %v11382_v27  ;;  %2973 = vadd.xlane.f32.xlu1 %v2972_v55  ;;  %v2879_v60 = vadd.f32 %v11556_v35, %v11553_v18  ;;  %7616 = vmatpush3.bf16.msra.mxu1 %v8198_v8  ;;  %v8202_v55 = vld [vmem:[#allocation13 + $0x28] sm:$0xff]   ;;  %v8203_v59 = vld [vmem:[#allocation13 + $0x70] sm:$0xff]  }
 0x8de   :  { %v2931_v50 = vmul.f32 %v11561_v58, %v11561_v58  ;;  %7617 = vmatprep.subr.bf16.mxu1 %v8199_v62 }
 0x8df   :  { %v2932_v25 = vmul.f32 %v11566_v0, %v11566_v0  ;;  %2880 = vadd.xlane.f32.xlu0 %v2879_v60  ;;  %v2882_v13 = vadd.f32 %v11566_v0, %v11561_v58  ;;  %v2975_v27 = vadd.f32 %v2930_v1, %v2929_v61  ;;  %v8204_v60 = vld [vmem:[#allocation13 + $0x30] sm:$0xff]  }
 0x8e1   :  { %2883 = vadd.xlane.f32.xlu1 %v2882_v13  ;;  %v2978_v37 = vadd.f32 %v2932_v25, %v2931_v50  ;;  %7618 = vmatpush3.bf16.msra.mxu1 %v8200_v34 }
 0x8e2   :  { %7619 = vmatprep.subr.bf16.mxu1 %v8201_v5 }
 0x8e3   :  { %2976 = vadd.xlane.f32.xlu0 %v2975_v27 }
 0x8e5   :  { %2979 = vadd.xlane.f32.xlu1 %v2978_v37  ;;  %7620 = vmatpush3.bf16.msra.mxu1 %v8202_v55 }
 0x8e6   :  { %7621 = vmatprep.subr.bf16.mxu1 %v8203_v59 }
 0x8e9   :  { %7622 = vmatpush3.bf16.msra.mxu1 %v8204_v60 }
 0x8ea   :  { %7623 = vmatprep.subr.bf16.mxu1 %v8205_v45 }
 0x8ed   :  { %7624 = vmatpush3.bf16.msra.mxu1 %v8206_v3 }
 0x920   :  { %v2839_v61 = vpop.xlane.xlu0 %2838 }
 0x921   :  { %v2885_v1 = vmul.f32 0.0076923077, %v2839_v61 }
 0x922   :  { %v2842_v13 = vpop.xlane.xlu1 %2841 }
 0x923   :  { %v2886_v50 = vmul.f32 0.0076923077, %v2842_v13  ;;  %v2997_v8 = vmul.f32 %v2885_v1, %v2885_v1  ;;  %v3147_v13 = vsub.s32 5, %v13932_v28 }
 0x924   :  { %v2935_v25 = vpop.xlane.xlu0 %2934 }
 0x925   :  { %v2981_v27 = vmul.f32 0.0076923077, %v2935_v25  ;;  %v2998_v34 = vmul.f32 %v2886_v50, %v2886_v50 }
 0x926   :  { %v2938_v62 = vpop.xlane.xlu1 %2937 }
 0x927   :  { %v3013_v37 = vsub.f32 %v2981_v27, %v2997_v8  ;;  %v2982_v5 = vmul.f32 0.0076923077, %v2938_v62  ;;  %v3197_v8 = vsub.s32 6, %v13932_v28 }
 0x929   :  { %v3029_v55 = vmax.f32 %v3013_v37, 0.0  ;;  %v3014_v20 = vsub.f32 %v2982_v5, %v2998_v34 }
 0x92a   :  { %v2845_v38 = vpop.xlane.xlu0 %2844 }
 0x92b   :  { %v3077_v59 = vadd.f32 1e-05, %v3029_v55  ;;  %v3030_v60 = vmax.f32 %v3014_v20, 0.0  ;;  %v2887_v48 = vmul.f32 0.0076923077, %v2845_v38  ;;  %v3148_v38 = vrot.slane %v11372_v44, %v3147_v13 }
 0x92c   :  { %v2848_v17 = vpop.xlane.xlu1 %2847  ;;  %v3198_v55 = vrot.slane %v11372_v44, %v3197_v8 }
 0x92d   :  { %8663 = vrsqrt.f32 %v3077_v59  ;;  %v3078_v45 = vadd.f32 1e-05, %v3030_v60  ;;  %v11576_v3 = vmul.f32 0.0076923077, %v2848_v17  ;;  %v2999_v25 = vmul.f32 %v2887_v48, %v2887_v48 }
 0x92e   :  { %v2941_v61 = vpop.xlane.xlu0 %2940  ;;  %v3144_v17 = vrot.slane %v11372_v44, %v13889_v19  ;;  %v3194_v59 = vrot.slane %v11372_v44, %v13890_v63  ;;  %v11597_v8 = vrot.slane %v3198_v55, %v13890_v63 }
 0x92f   :  { %8665 = vrsqrt.f32 %v3078_v45  ;;  %v2983_v10 = vmul.f32 0.0076923077, %v2941_v61  ;;  %v3000_v37 = vmul.f32 %v11576_v3, %v11576_v3  ;;  %v3046_v61 = vsub.f32 %v11388_v49, %v2885_v1 }
 0x930   :  { %v2944_v27 = vpop.xlane.xlu1 %2943  ;;  %v11594_v13 = vrot.slane %v3144_v17, %v13889_v19  ;;  %v11600_v44 = vrot.slane %v3194_v59, %v13890_v63 }
 0x931   :  { %v3015_v62 = vsub.f32 %v2983_v10, %v2999_v25  ;;  %v2984_v20 = vmul.f32 0.0076923077, %v2944_v27  ;;  %v3045_v10 = vsub.f32 %v11385_v11, %v2885_v1  ;;  %v11591_v25 = vrot.slane %v3148_v38, %v13889_v19 }
 0x932   :  { %v3048_v11 = vsub.f32 %v11398_v2, %v2886_v50 }
 0x933   :  { %v3031_v34 = vmax.f32 %v3015_v62, 0.0  ;;  %v3016_v5 = vsub.f32 %v2984_v20, %v3000_v37  ;;  %v3047_v37 = vsub.f32 %v11391_v33, %v2886_v50 }
 0x935   :  { %v3079_v60 = vadd.f32 1e-05, %v3031_v34  ;;  %v3032_v45 = vmax.f32 %v3016_v5, 0.0 }
 0x937   :  { %v8664_v27 = vpop.eup %8663  ;;  %8667 = vrsqrt.f32 %v3079_v60  ;;  %v3080_v62 = vadd.f32 1e-05, %v3032_v45 }
 0x938   :  { %v3109_v49 = vmul.f32 %v8664_v27, %v3045_v10  ;;  %v3110_v1 = vmul.f32 %v8664_v27, %v3046_v61  ;;  %v3049_v61 = vsub.f32 %v11409_v39, %v2887_v48  ;;  %v3050_v27 = vsub.f32 %v11412_v51, %v2887_v48 }
 0x939   :  { %v8666_v20 = vpop.eup %8665  ;;  %8669 = vrsqrt.f32 %v3080_v62  ;;  %v3051_v39 = vsub.f32 %v11415_v36, %v11576_v3 }
 0x93a   :  { %v3111_v38 = vmul.f32 %v8666_v20, %v3047_v37  ;;  %v3112_v17 = vmul.f32 %v8666_v20, %v3048_v11  ;;  %v3160_v34 = vmul.f32 %v11591_v25, %v3110_v1  ;;  %v3159_v5 = vmul.f32 %v11594_v13, %v3109_v49 }
 0x93c   :  { %v3162_v55 = vmul.f32 %v11591_v25, %v3112_v17  ;;  %v11608_v60 = vadd.f32 %v11597_v8, %v3160_v34  ;;  %v3161_v59 = vmul.f32 %v11594_v13, %v3111_v38  ;;  %v11612_v33 = vadd.f32 %v11600_v44, %v3159_v5 }
 0x93d   :  { %v3052_v38 = vsub.f32 %v11422_v23, %v11576_v3 }
 0x93e   :  { %v11615_v2 = vadd.f32 %v11597_v8, %v3162_v55  ;;  %v7351_v50 = vmul.f32 -1.442695, %v11608_v60  ;;  %v11619_v45 = vadd.f32 %v11600_v44, %v3161_v59  ;;  %v7350_v10 = vmul.f32 -1.442695, %v11612_v33 }
 0x940   :  { %8671 = vpow2.f32 %v7351_v50  ;;  %v7353_v62 = vmul.f32 -1.442695, %v11615_v2  ;;  %v7352_v37 = vmul.f32 -1.442695, %v11619_v45 }
 0x941   :  { %v8668_v11 = vpop.eup %8667  ;;  %8673 = vpow2.f32 %v7350_v10 }
 0x942   :  { %8675 = vpow2.f32 %v7353_v62  ;;  %v3114_v49 = vmul.f32 %v8668_v11, %v3050_v27  ;;  %v3113_v1 = vmul.f32 %v8668_v11, %v3049_v61 }
 0x943   :  { %v8670_v20 = vpop.eup %8669  ;;  %v2851_v17 = vpop.xlane.xlu0 %2850  ;;  %8677 = vpow2.f32 %v7352_v37 }
 0x944   :  { %v11630_v48 = vmul.f32 0.0076923077, %v2851_v17  ;;  %v3164_v51 = vmul.f32 %v11591_v25, %v3114_v49  ;;  %v3116_v5 = vmul.f32 %v8670_v20, %v3052_v38  ;;  %v3163_v55 = vmul.f32 %v11594_v13, %v3113_v1 }
 0x945   :  { %v2854_v34 = vpop.xlane.xlu1 %2853  ;;  %v3115_v50 = vmul.f32 %v8670_v20, %v3051_v39 }
 0x946   :  { %v11634_v59 = vmul.f32 0.0076923077, %v2854_v34  ;;  %v11637_v61 = vadd.f32 %v11597_v8, %v3164_v51  ;;  %v11640_v23 = vadd.f32 %v11600_v44, %v3163_v55  ;;  %v3001_v36 = vmul.f32 %v11630_v48, %v11630_v48 }
 0x947   :  { %v2947_v10 = vpop.xlane.xlu0 %2946  ;;  %v3166_v62 = vmul.f32 %v11591_v25, %v3116_v5  ;;  %v3165_v17 = vmul.f32 %v11594_v13, %v3115_v50 }
 0x948   :  { %v2985_v3 = vmul.f32 0.0076923077, %v2947_v10  ;;  %v7355_v37 = vmul.f32 -1.442695, %v11637_v61  ;;  %v7354_v11 = vmul.f32 -1.442695, %v11640_v23  ;;  %v3002_v20 = vmul.f32 %v11634_v59, %v11634_v59 }
 0x949   :  { %v2950_v27 = vpop.xlane.xlu1 %2949  ;;  %v11656_v50 = vadd.f32 %v11600_v44, %v3165_v17 }
 0x94a   :  { %v8672_v49 = vpop.eup %8671  ;;  %v3017_v1 = vsub.f32 %v2985_v3, %v3001_v36  ;;  %v2986_v38 = vmul.f32 0.0076923077, %v2950_v27  ;;  %8679 = vpow2.f32 %v7355_v37  ;;  %v11653_v36 = vadd.f32 %v11597_v8, %v3166_v62 }
 0x94b   :  { %v8674_v39 = vpop.eup %8673  ;;  %v3338_v51 = vadd.f32 1.0, %v8672_v49  ;;  %8681 = vpow2.f32 %v7354_v11 }
 0x94c   :  { %v8676_v34 = vpop.eup %8675  ;;  %v3033_v55 = vmax.f32 %v3017_v1, 0.0  ;;  %v3018_v10 = vsub.f32 %v2986_v38, %v3002_v20  ;;  %v2857_v28 = vpop.xlane.xlu0 %2856  ;;  %v3337_v5 = vadd.f32 1.0, %v8674_v39  ;;  %v7357_v62 = vmul.f32 -1.442695, %v11653_v36 }
 0x94d   :  { %v8678_v9 = vpop.eup %8677  ;;  %v11650_v52 = vmul.f32 0.0076923077, %v2857_v28  ;;  %8683 = vrcp.f32 %v3338_v51  ;;  %v3340_v49 = vadd.f32 1.0, %v8676_v34  ;;  %v7356_v51 = vmul.f32 -1.442695, %v11656_v50 }
 0x94e   :  { %v3081_v3 = vadd.f32 1e-05, %v3033_v55  ;;  %v3034_v27 = vmax.f32 %v3018_v10, 0.0  ;;  %v2860_v43 = vpop.xlane.xlu1 %2859  ;;  %8685 = vrcp.f32 %v3337_v5  ;;  %v3339_v20 = vadd.f32 1.0, %v8678_v9 }
 0x94f   :  { %v11658_v37 = vmul.f32 0.0076923077, %v2860_v43  ;;  %v3003_v28 = vmul.f32 %v11650_v52, %v11650_v52  ;;  %v3053_v55 = vsub.f32 %v11433_v22, %v11630_v48  ;;  %v3054_v9 = vsub.f32 %v11436_v42, %v11630_v48 }
 0x950   :  { %8687 = vrsqrt.f32 %v3081_v3  ;;  %v3082_v1 = vadd.f32 1e-05, %v3034_v27  ;;  %v2953_v11 = vpop.xlane.xlu0 %2952 }
 0x951   :  { %v2987_v38 = vmul.f32 0.0076923077, %v2953_v11  ;;  %v3004_v43 = vmul.f32 %v11658_v37, %v11658_v37 }
 0x952   :  { %8689 = vrsqrt.f32 %v3082_v1  ;;  %v2956_v39 = vpop.xlane.xlu1 %2955 }
 0x953   :  { %v3019_v17 = vsub.f32 %v2987_v38, %v3003_v28  ;;  %v2988_v34 = vmul.f32 0.0076923077, %v2956_v39  ;;  %8691 = vrcp.f32 %v3340_v49  ;;  %v3055_v28 = vsub.f32 %v11439_v6, %v11634_v59 }
 0x954   :  { %v2863_v10 = vpop.xlane.xlu0 %2862  ;;  %8693 = vrcp.f32 %v3339_v20  ;;  %v8680_v5 = vpop.eup %8679  ;;  %v3056_v49 = vsub.f32 %v11446_v40, %v11634_v59 }
 0x955   :  { %v3035_v3 = vmax.f32 %v3019_v17, 0.0  ;;  %v3020_v27 = vsub.f32 %v2988_v34, %v3004_v43  ;;  %v11670_v1 = vmul.f32 0.0076923077, %v2863_v10  ;;  %8695 = vpow2.f32 %v7357_v62  ;;  %v8682_v11 = vpop.eup %8681 }
 0x956   :  { %v2866_v38 = vpop.xlane.xlu1 %2865  ;;  %v3342_v42 = vadd.f32 1.0, %v8680_v5  ;;  %8697 = vpow2.f32 %v7356_v51  ;;  %v3341_v6 = vadd.f32 1.0, %v8682_v11 }
 0x957   :  { %v8684_v48 = vpop.eup %8683  ;;  %v3083_v39 = vadd.f32 1e-05, %v3035_v3  ;;  %v3036_v17 = vmax.f32 %v3020_v27, 0.0  ;;  %v11686_v59 = vmul.f32 0.0076923077, %v2866_v38  ;;  %v3005_v5 = vmul.f32 %v11670_v1, %v11670_v1 }
 0x958   :  { %v2959_v43 = vpop.xlane.xlu0 %2958  ;;  %v8686_v34 = vpop.eup %8685  ;;  %8699 = vrcp.f32 %v3342_v42  ;;  %v3434_v22 = vmul.f32 %v8684_v48, %v11608_v60 }
 0x959   :  { %v2989_v51 = vmul.f32 0.0076923077, %v2959_v43  ;;  %8701 = vrsqrt.f32 %v3083_v39  ;;  %v3084_v27 = vadd.f32 1e-05, %v3036_v17  ;;  %v3006_v38 = vmul.f32 %v11686_v59, %v11686_v59 }
 0x95a   :  { %v8688_v3 = vpop.eup %8687  ;;  %v2962_v62 = vpop.xlane.xlu1 %2961  ;;  %v3433_v39 = vmul.f32 %v8686_v34, %v11612_v33  ;;  %8703 = vrcp.f32 %v3341_v6 }
 0x95b   :  { %v3021_v40 = vsub.f32 %v2989_v51, %v3005_v5  ;;  %v2990_v20 = vmul.f32 0.0076923077, %v2962_v62  ;;  %v3118_v57 = vmul.f32 %v8688_v3, %v3054_v9  ;;  %v3117_v17 = vmul.f32 %v8688_v3, %v3053_v55 }
 0x95c   :  { %v8690_v56 = vpop.eup %8689  ;;  %v2869_v43 = vpop.xlane.xlu0 %2868  ;;  %8705 = vrsqrt.f32 %v3084_v27 }
 0x95d   :  { %v8692_v46 = vpop.eup %8691  ;;  %v3037_v60 = vmax.f32 %v3021_v40, 0.0  ;;  %v3022_v11 = vsub.f32 %v2990_v20, %v3006_v38  ;;  %v11700_v48 = vmul.f32 0.0076923077, %v2869_v43  ;;  %v3120_v51 = vmul.f32 %v8690_v56, %v3056_v49 }
 0x95e   :  { %v8694_v5 = vpop.eup %8693  ;;  %v2872_v9 = vpop.xlane.xlu1 %2871  ;;  %v3436_v62 = vmul.f32 %v8692_v46, %v11615_v2  ;;  %v3168_v10 = vmul.f32 %v11591_v25, %v3118_v57  ;;  %v3119_v41 = vmul.f32 %v8690_v56, %v3055_v28  ;;  %v3167_v33 = vmul.f32 %v11594_v13, %v3117_v17 }
 0x95f   :  { %v8696_v63 = vpop.eup %8695  ;;  %v3085_v42 = vadd.f32 1e-05, %v3037_v60  ;;  %v3038_v19 = vmax.f32 %v3022_v11, 0.0  ;;  %v11707_v20 = vmul.f32 0.0076923077, %v2872_v9  ;;  %v3435_v34 = vmul.f32 %v8694_v5, %v11619_v45 }
 0x960   :  { %v2965_v6 = vpop.xlane.xlu0 %2964  ;;  %v3499_v40 = vpack.c.bf16 %v3436_v62, %v3434_v22  ;;  %v8698_v3 = vpop.eup %8697  ;;  %v3007_v57 = vmul.f32 %v11700_v48, %v11700_v48  ;;  %v3344_v49 = vadd.f32 1.0, %v8696_v63  ;;  %v3066_v56 = vsub.f32 %v11508_v54, %v11700_v48 }
 0x961   :  { %v3086_v46 = vadd.f32 1e-05, %v3038_v19  ;;  %v2991_v2 = vmul.f32 0.0076923077, %v2965_v6  ;;  %8707 = vrsqrt.f32 %v3085_v42  ;;  %v3498_v38 = vpack.c.bf16 %v3435_v34, %v3433_v39 }
 0x962   :  { %v2968_v27 = vpop.xlane.xlu1 %2967  ;;  %3646 = vmatprep.mubr.bf16.mxu1 %v3499_v40  ;;  %v8700_v22 = vpop.eup %8699  ;;  %v3068_v45 = vsub.f32 %v11518_v29, %v11707_v20  ;;  %v3008_v43 = vmul.f32 %v11707_v20, %v11707_v20  ;;  %8709 = vrcp.f32 %v3344_v49  ;;  %v3343_v60 = vadd.f32 1.0, %v8698_v3 }
 0x963   :  { %v3023_v19 = vsub.f32 %v2991_v2, %v3007_v57  ;;  %v2992_v17 = vmul.f32 0.0076923077, %v2968_v27  ;;  %v8702_v63 = vpop.eup %8701  ;;  %3647 = vmatmul.mubr.bf16.vlgmr.msra.gmra.mrb[32].mxu1 %v3498_v38  ;;  %v3170_v11 = vmul.f32 %v11591_v25, %v3120_v51  ;;  %v11722_v5 = vadd.f32 %v11597_v8, %v3168_v10 }
 0x964   :  { %v2875_v42 = vpop.xlane.xlu0 %2874  ;;  %8711 = vrsqrt.f32 %v3086_v46  ;;  %v3169_v57 = vmul.f32 %v11594_v13, %v3119_v41  ;;  %v8704_v3 = vpop.eup %8703  ;;  %v11732_v10 = vmul.f32 %v8700_v22, %v11637_v61  ;;  %v11735_v46 = vadd.f32 %v11600_v44, %v3167_v33 }
 0x965   :  { %v3039_v39 = vmax.f32 %v3023_v19, 0.0  ;;  %v3024_v9 = vsub.f32 %v2992_v17, %v3008_v43  ;;  %v11724_v62 = vmul.f32 0.0076923077, %v2875_v42  ;;  %8713 = vrcp.f32 %v3343_v60 }
 0x966   :  { %v2878_v6 = vpop.xlane.xlu1 %2877  ;;  %v11727_v40 = vadd.f32 %v11597_v8, %v3170_v11  ;;  %v7359_v34 = vmul.f32 -1.442695, %v11722_v5  ;;  %v11737_v49 = vpop.eup %8705  ;;  %v3437_v60 = vmul.f32 %v8704_v3, %v11640_v23  ;;  %v11752_v11 = vadd.f32 %v11600_v44, %v3169_v57 }
 0x967   :  { %v3087_v2 = vadd.f32 1e-05, %v3039_v39  ;;  %v3040_v51 = vmax.f32 %v3024_v9, 0.0  ;;  %v11743_v19 = vmul.f32 0.0076923077, %v2878_v6  ;;  %v3009_v61 = vmul.f32 %v11724_v62, %v11724_v62 }
 0x968   :  { %v2971_v41 = vpop.xlane.xlu0 %2970  ;;  %8715 = vpow2.f32 %v7359_v34  ;;  %v7361_v33 = vmul.f32 -1.442695, %v11727_v40  ;;  %v7358_v6 = vmul.f32 -1.442695, %v11735_v46  ;;  %v13934_v23 = vsub.f32 %v11470_v12, %v11658_v37 }
 0x969   :  { %v3088_v43 = vadd.f32 1e-05, %v3040_v51  ;;  %v2993_v22 = vmul.f32 0.0076923077, %v2971_v41  ;;  %8717 = vrsqrt.f32 %v3087_v2  ;;  %v3010_v17 = vmul.f32 %v11743_v19, %v11743_v19 }
 0x96a   :  { %v2974_v42 = vpop.xlane.xlu1 %2973  ;;  %v7360_v2 = vmul.f32 -1.442695, %v11752_v11  ;;  %v13933_v41 = vsub.f32 %v11460_v26, %v11650_v52  ;;  %v3124_v57 = vmul.f32 %v11737_v49, %v13934_v23 }
 0x96b   :  { %8719 = vrsqrt.f32 %v3088_v43  ;;  %v3025_v39 = vsub.f32 %v2993_v22, %v3009_v61  ;;  %v2994_v9 = vmul.f32 0.0076923077, %v2974_v42  ;;  %v11755_v34 = vpop.eup %8707 }
 0x96c   :  { %v2881_v51 = vpop.xlane.xlu0 %2880  ;;  %8721 = vpow2.f32 %v7361_v33  ;;  %v3122_v27 = vmul.f32 %v8702_v63, %v13933_v41  ;;  %v8710_v22 = vpop.eup %8709 }
 0x96d   :  { %v3041_v3 = vmax.f32 %v3025_v39, 0.0  ;;  %v3026_v43 = vsub.f32 %v2994_v9, %v3010_v17  ;;  %v11765_v61 = vmul.f32 0.0076923077, %v2881_v51  ;;  %8723 = vpow2.f32 %v7358_v6 }
 0x96e   :  { %v2884_v38 = vpop.xlane.xlu1 %2883  ;;  %8725 = vpow2.f32 %v7360_v2  ;;  %v3172_v26 = vmul.f32 %v11591_v25, %v3122_v27  ;;  %v11772_v41 = vpop.eup %8711  ;;  %v3174_v17 = vmul.f32 %v11591_v25, %v3124_v57  ;;  %v13935_v39 = vsub.f32 %v11457_v16, %v11650_v52 }
 0x96f   :  { %v3089_v12 = vadd.f32 1e-05, %v3041_v3  ;;  %v3042_v23 = vmax.f32 %v3026_v43, 0.0  ;;  %v8714_v6 = vpop.eup %8713  ;;  %v11780_v33 = vmul.f32 0.0076923077, %v2884_v38  ;;  %v3440_v2 = vmul.f32 %v8710_v22, %v11653_v36 }
 0x970   :  { %v3121_v9 = vmul.f32 %v8702_v63, %v13935_v39  ;;  %v2977_v42 = vpop.xlane.xlu0 %2976  ;;  %v11784_v27 = vadd.f32 %v11597_v8, %v3172_v26  ;;  %v3011_v57 = vmul.f32 %v11765_v61, %v11765_v61  ;;  %v3439_v52 = vmul.f32 %v8714_v6, %v11656_v50 }
 0x971   :  { %v3090_v3 = vadd.f32 1e-05, %v3042_v23  ;;  %v2995_v43 = vmul.f32 0.0076923077, %v2977_v42  ;;  %8727 = vrsqrt.f32 %v3089_v12  ;;  %v3012_v38 = vmul.f32 %v11780_v33, %v11780_v33 }
 0x972   :  { %v8716_v16 = vpop.eup %8715  ;;  %v2980_v39 = vpop.xlane.xlu1 %2979  ;;  %v3501_v36 = vpack.c.bf16 %v3440_v2, %v11732_v10  ;;  %v3500_v23 = vpack.c.bf16 %v3439_v52, %v3437_v60  ;;  %v11795_v50 = vadd.f32 %v11597_v8, %v3174_v17  ;;  %v7363_v12 = vmul.f32 -1.442695, %v11784_v27 }
 0x973   :  { %8729 = vrsqrt.f32 %v3090_v3  ;;  %v3027_v22 = vsub.f32 %v2995_v43, %v3011_v57  ;;  %v2996_v26 = vmul.f32 0.0076923077, %v2980_v39  ;;  %v8718_v51 = vpop.eup %8717  ;;  %v3346_v42 = vadd.f32 1.0, %v8716_v16 }
 0x974   :  { %3654 = vmatprep.mubr.bf16.mxu1 %v3501_v36  ;;  %v13936_v6 = vsub.f32 %v11463_v32, %v11658_v37  ;;  %v3171_v2 = vmul.f32 %v11594_v13, %v3121_v9  ;;  %v13937_v60 = vsub.f32 %v11484_v15, %v11670_v1  ;;  %v7365_v57 = vmul.f32 -1.442695, %v11795_v50 }
 0x975   :  { %v8720_v28 = vpop.eup %8719  ;;  %v3043_v55 = vmax.f32 %v3027_v22, 0.0  ;;  %v3028_v10 = vsub.f32 %v2996_v26, %v3012_v38  ;;  %3655 = vmatmul.mubr.bf16.gmra.mrb[36].mxu1 %v3500_v23  ;;  %8731 = vrcp.f32 %v3346_v42  ;;  %v13938_v32 = vsub.f32 %v11494_v31, %v11686_v59 }
 0x976   :  { %v3123_v63 = vmul.f32 %v11737_v49, %v13936_v6  ;;  %v3126_v3 = vmul.f32 %v11755_v34, %v13937_v60  ;;  %v8722_v17 = vpop.eup %8721  ;;  %8733 = vpow2.f32 %v7363_v12  ;;  %v11814_v39 = vadd.f32 %v11600_v44, %v3171_v2 }
 0x977   :  { %v3128_v37 = vmul.f32 %v11772_v41, %v13938_v32  ;;  %v8724_v49 = vpop.eup %8723  ;;  %v3091_v52 = vadd.f32 1e-05, %v3043_v55  ;;  %v3044_v16 = vmax.f32 %v3028_v10, 0.0  ;;  %v3348_v9 = vadd.f32 1.0, %v8722_v17 }
 0x978   :  { %v3173_v43 = vmul.f32 %v11594_v13, %v3123_v63  ;;  %v8726_v38 = vpop.eup %8725  ;;  %v3345_v15 = vadd.f32 1.0, %v8724_v49  ;;  %8735 = vpow2.f32 %v7365_v57  ;;  %v3176_v31 = vmul.f32 %v11591_v25, %v3126_v3 }
 0x979   :  { %8737 = vrsqrt.f32 %v3091_v52  ;;  %v3092_v63 = vadd.f32 1e-05, %v3044_v16  ;;  %v3347_v22 = vadd.f32 1.0, %v8726_v38  ;;  %v7362_v55 = vmul.f32 -1.442695, %v11814_v39 }
 0x97a   :  { %v11817_v36 = vadd.f32 %v11600_v44, %v3173_v43  ;;  %8739 = vrcp.f32 %v3348_v9  ;;  %v3178_v23 = vmul.f32 %v11591_v25, %v3128_v37  ;;  %v11824_v42 = vadd.f32 %v11597_v8, %v3176_v31 }
 0x97b   :  { %8741 = vrsqrt.f32 %v3092_v63  ;;  %v13939_v12 = vsub.f32 %v11481_v24, %v11670_v1  ;;  %v13940_v10 = vsub.f32 %v11487_v30, %v11686_v59  ;;  %v8728_v60 = vpop.eup %8727  ;;  %v3130_v17 = vmul.f32 %v8718_v51, %v3066_v56 }
 0x97c   :  { %v7364_v26 = vmul.f32 -1.442695, %v11817_v36  ;;  %8743 = vrcp.f32 %v3345_v15  ;;  %v11835_v3 = vadd.f32 %v11597_v8, %v3178_v23  ;;  %v3132_v24 = vmul.f32 %v8720_v28, %v3068_v45 }
 0x97d   :  { %v3125_v6 = vmul.f32 %v11755_v34, %v13939_v12  ;;  %v3127_v2 = vmul.f32 %v11772_v41, %v13940_v10  ;;  %v8730_v1 = vpop.eup %8729  ;;  %8745 = vrcp.f32 %v3347_v22  ;;  %v7367_v34 = vmul.f32 -1.442695, %v11824_v42 }
 0x97e   :  { %8747 = vpow2.f32 %v7362_v55  ;;  %v7369_v41 = vmul.f32 -1.442695, %v11835_v3  ;;  %v3180_v57 = vmul.f32 %v11591_v25, %v3130_v17  ;;  %v3182_v54 = vmul.f32 %v11591_v25, %v3132_v24 }
 0x97f   :  { %v3175_v30 = vmul.f32 %v11594_v13, %v3125_v6  ;;  %v3177_v59 = vmul.f32 %v11594_v13, %v3127_v2  ;;  %8749 = vpow2.f32 %v7364_v26  ;;  %v13941_v45 = vsub.f32 %v11505_v21, %v11700_v48  ;;  %v8732_v32 = vpop.eup %8731 }
 0x980   :  { %8751 = vpow2.f32 %v7367_v34  ;;  %v11859_v37 = vadd.f32 %v11597_v8, %v3180_v57  ;;  %v11862_v49 = vadd.f32 %v11597_v8, %v3182_v54  ;;  %v13942_v52 = vsub.f32 %v11511_v7, %v11707_v20  ;;  %v8734_v9 = vpop.eup %8733 }
 0x981   :  { %v11850_v56 = vadd.f32 %v11600_v44, %v3175_v30  ;;  %v11853_v29 = vadd.f32 %v11600_v44, %v3177_v59  ;;  %v3129_v43 = vmul.f32 %v8718_v51, %v13941_v45  ;;  %v3442_v38 = vmul.f32 %v8732_v32, %v11722_v5 }
 0x982   :  { %v3131_v16 = vmul.f32 %v8720_v28, %v13942_v52  ;;  %8753 = vpow2.f32 %v7369_v41  ;;  %v8736_v48 = vpop.eup %8735  ;;  %v3350_v51 = vadd.f32 1.0, %v8734_v9  ;;  %v7371_v63 = vmul.f32 -1.442695, %v11859_v37 }
 0x983   :  { %v7366_v15 = vmul.f32 -1.442695, %v11850_v56  ;;  %v7368_v21 = vmul.f32 -1.442695, %v11853_v29  ;;  %v7373_v22 = vmul.f32 -1.442695, %v11862_v49  ;;  %v3179_v31 = vmul.f32 %v11594_v13, %v3129_v43  ;;  %v8738_v55 = vpop.eup %8737 }
 0x984   :  { %v3352_v26 = vadd.f32 1.0, %v8736_v48  ;;  %v3181_v7 = vmul.f32 %v11594_v13, %v3131_v16  ;;  %v13943_v20 = vsub.f32 %v11532_v47, %v11724_v62  ;;  %v8740_v5 = vpop.eup %8739  ;;  %v13944_v12 = vsub.f32 %v11542_v53, %v11743_v19 }
 0x985   :  { %8755 = vpow2.f32 %v7366_v15  ;;  %v11878_v23 = vadd.f32 %v11600_v44, %v3179_v31  ;;  %v13945_v10 = vsub.f32 %v11529_v14, %v11724_v62  ;;  %v8742_v17 = vpop.eup %8741  ;;  %v3444_v24 = vmul.f32 %v8740_v5, %v11727_v40 }
 0x986   :  { %v3134_v28 = vmul.f32 %v8728_v60, %v13943_v20  ;;  %8757 = vrcp.f32 %v3350_v51  ;;  %v3136_v6 = vmul.f32 %v8730_v1, %v13944_v12  ;;  %v11888_v47 = vadd.f32 %v11600_v44, %v3181_v7  ;;  %v8744_v30 = vpop.eup %8743 }
 0x987   :  { %v3133_v2 = vmul.f32 %v8728_v60, %v13945_v10  ;;  %8759 = vrcp.f32 %v3352_v26  ;;  %v7370_v59 = vmul.f32 -1.442695, %v11878_v23  ;;  %v13946_v41 = vsub.f32 %v11537_v4, %v11743_v19  ;;  %v8746_v62 = vpop.eup %8745 }
 0x988   :  { %v3184_v34 = vmul.f32 %v11591_v25, %v3134_v28  ;;  %8761 = vpow2.f32 %v7368_v21  ;;  %v3186_v53 = vmul.f32 %v11591_v25, %v3136_v6  ;;  %v3076_v40 = vsub.f32 %v11566_v0, %v11780_v33  ;;  %v8748_v54 = vpop.eup %8747 }
 0x989   :  { %v3135_v14 = vmul.f32 %v8730_v1, %v13946_v41  ;;  %v3503_v60 = vpack.c.bf16 %v3444_v24, %v3442_v38  ;;  %8763 = vpow2.f32 %v7371_v63  ;;  %v7372_v57 = vmul.f32 -1.442695, %v11888_v47  ;;  %v8750_v52 = vpop.eup %8749 }
 0x98a   :  { %v3441_v45 = vmul.f32 %v8744_v30, %v11735_v46  ;;  %v3443_v43 = vmul.f32 %v8746_v62, %v11752_v11  ;;  %8765 = vpow2.f32 %v7373_v22  ;;  %v11902_v32 = vadd.f32 %v11597_v8, %v3184_v34  ;;  %v8752_v1 = vpop.eup %8751 }
 0x98b   :  { %3662 = vmatprep.mubr.bf16.mxu1 %v3503_v60  ;;  %v3349_v4 = vadd.f32 1.0, %v8748_v54  ;;  %8767 = vpow2.f32 %v7370_v59  ;;  %v11905_v19 = vadd.f32 %v11597_v8, %v3186_v53  ;;  %v3183_v0 = vmul.f32 %v11594_v13, %v3133_v2 }
 0x98c   :  { %v3502_v16 = vpack.c.bf16 %v3443_v43, %v3441_v45  ;;  %v3351_v9 = vadd.f32 1.0, %v8750_v52  ;;  %8769 = vpow2.f32 %v7372_v57  ;;  %v3185_v46 = vmul.f32 %v11594_v13, %v3135_v14  ;;  %v8754_v11 = vpop.eup %8753 }
 0x98d   :  { %8771 = vrcp.f32 %v3349_v4  ;;  %v3354_v38 = vadd.f32 1.0, %v8752_v1  ;;  %v7375_v15 = vmul.f32 -1.442695, %v11902_v32  ;;  %v11911_v21 = vadd.f32 %v11600_v44, %v3183_v0 }
 0x98e   :  { %v3075_v48 = vsub.f32 %v11561_v58, %v11780_v33  ;;  %3663 = vmatmul.mubr.bf16.gmra.mrb[40].mxu1 %v3502_v16  ;;  %8773 = vrcp.f32 %v3351_v9  ;;  %v3356_v51 = vadd.f32 1.0, %v8754_v11  ;;  %v13947_v63 = vsub.f32 %v11556_v35, %v11765_v61 }
 0x98f   :  { %v8756_v31 = vpop.eup %8755  ;;  %8775 = vrcp.f32 %v3354_v38  ;;  %v7377_v26 = vmul.f32 -1.442695, %v11905_v19  ;;  %v3140_v7 = vmul.f32 %v8742_v17, %v3076_v40  ;;  %v13948_v20 = vsub.f32 %v11553_v18, %v11765_v61 }
 0x990   :  { %v3138_v22 = vmul.f32 %v8738_v55, %v13947_v63  ;;  %v8758_v5 = vpop.eup %8757  ;;  %8777 = vrcp.f32 %v3356_v51  ;;  %v3353_v12 = vadd.f32 1.0, %v8756_v31  ;;  %v7374_v58 = vmul.f32 -1.442695, %v11911_v21 }
 0x991   :  { %v3137_v28 = vmul.f32 %v8738_v55, %v13948_v20  ;;  %v8760_v6 = vpop.eup %8759  ;;  %8779 = vpow2.f32 %v7375_v15  ;;  %v11925_v35 = vadd.f32 %v11600_v44, %v3185_v46  ;;  %v3190_v10 = vmul.f32 %v11591_v25, %v3140_v7 }
 0x992   :  { %v3188_v33 = vmul.f32 %v11591_v25, %v3138_v22  ;;  %v3139_v2 = vmul.f32 %v8742_v17, %v3075_v48  ;;  %v8762_v24 = vpop.eup %8761  ;;  %v3446_v34 = vmul.f32 %v8758_v5, %v11784_v27  ;;  %v3448_v18 = vmul.f32 %v8760_v6, %v11795_v50 }
 0x993   :  { %8781 = vrcp.f32 %v3353_v12  ;;  %v3187_v61 = vmul.f32 %v11594_v13, %v3137_v28  ;;  %v8764_v55 = vpop.eup %8763  ;;  %v3355_v30 = vadd.f32 1.0, %v8762_v24  ;;  %v11936_v17 = vadd.f32 %v11597_v8, %v3190_v10 }
 0x994   :  { %8783 = vpow2.f32 %v7377_v26  ;;  %v11932_v59 = vadd.f32 %v11597_v8, %v3188_v33  ;;  %v3189_v53 = vmul.f32 %v11594_v13, %v3139_v2  ;;  %v8766_v41 = vpop.eup %8765  ;;  %v3505_v14 = vpack.c.bf16 %v3448_v18, %v3446_v34 }
 0x995   :  { %v3358_v25 = vadd.f32 1.0, %v8764_v55  ;;  %8785 = vpow2.f32 %v7374_v58  ;;  %v8768_v27 = vpop.eup %8767  ;;  %v3360_v50 = vadd.f32 1.0, %v8766_v41  ;;  %v11939_v62 = vadd.f32 %v11600_v44, %v3187_v61 }
 0x996   :  { %8787 = vrcp.f32 %v3355_v30  ;;  %v8770_v40 = vpop.eup %8769  ;;  %3670 = vmatprep.mubr.bf16.mxu1 %v3505_v14  ;;  %v3357_v60 = vadd.f32 1.0, %v8768_v27  ;;  %v7376_v57 = vmul.f32 -1.442695, %v11925_v35  ;;  %v11943_v13 = vadd.f32 %v11600_v44, %v3189_v53 }
 0x997   :  { %8789 = vrcp.f32 %v3358_v25  ;;  %v8772_v54 = vpop.eup %8771  ;;  %v3359_v45 = vadd.f32 1.0, %v8770_v40  ;;  %v7379_v8 = vmul.f32 -1.442695, %v11932_v59  ;;  %v7381_v52 = vmul.f32 -1.442695, %v11936_v17 }
 0x998   :  { %8791 = vrcp.f32 %v3360_v50  ;;  %v8774_v43 = vpop.eup %8773  ;;  %v3445_v0 = vmul.f32 %v8772_v54, %v11814_v39  ;;  %v7378_v16 = vmul.f32 -1.442695, %v11939_v62  ;;  %v7380_v44 = vmul.f32 -1.442695, %v11943_v13 }
 0x999   :  { %8793 = vrcp.f32 %v3357_v60  ;;  %v8776_v4 = vpop.eup %8775  ;;  %v3447_v1 = vmul.f32 %v8774_v43, %v11817_v36 }
 0x99a   :  { %8795 = vrcp.f32 %v3359_v45  ;;  %v8778_v9 = vpop.eup %8777  ;;  %v3450_v38 = vmul.f32 %v8776_v4, %v11824_v42 }
 0x99b   :  { %8797 = vpow2.f32 %v7376_v57  ;;  %v8780_v46 = vpop.eup %8779  ;;  %v3504_v11 = vpack.c.bf16 %v3447_v1, %v3445_v0  ;;  %v3452_v15 = vmul.f32 %v8778_v9, %v11835_v3 }
 0x99c   :  { %8799 = vpow2.f32 %v7379_v8  ;;  %v3362_v51 = vadd.f32 1.0, %v8780_v46 }
 0x99d   :  { %v8782_v48 = vpop.eup %8781  ;;  %8801 = vpow2.f32 %v7381_v52  ;;  %3671 = vmatmul.mubr.bf16.gmra.mrb[44].mxu1 %v3504_v11  ;;  %v3507_v36 = vpack.c.bf16 %v3452_v15, %v3450_v38 }
 0x99e   :  { %v8784_v39 = vpop.eup %8783  ;;  %8803 = vpow2.f32 %v7378_v16  ;;  %v3449_v7 = vmul.f32 %v8782_v48, %v11850_v56  ;;  %v13949_v16 = vld [vmem:[#allocation32_spill] sm:$0xff] }
 0x99f   :  { %v8786_v63 = vpop.eup %8785  ;;  %v3364_v22 = vadd.f32 1.0, %v8784_v39  ;;  %8805 = vrcp.f32 %v3362_v51  ;;  %3678 = vmatprep.mubr.bf16.mxu1 %v3507_v36 }
 0x9a0   :  { %v8788_v31 = vpop.eup %8787  ;;  %8807 = vpow2.f32 %v7380_v44  ;;  %v3361_v20 = vadd.f32 1.0, %v8786_v63 }
 0x9a1   :  { %v8790_v26 = vpop.eup %8789  ;;  %v3451_v42 = vmul.f32 %v8788_v31, %v11853_v29  ;;  %8809 = vrcp.f32 %v3364_v22 }
 0x9a2   :  { %v8792_v3 = vpop.eup %8791  ;;  %v3454_v12 = vmul.f32 %v8790_v26, %v11859_v37  ;;  %8811 = vrcp.f32 %v3361_v20 }
 0x9a3   :  { %v8794_v28 = vpop.eup %8793  ;;  %v3506_v5 = vpack.c.bf16 %v3451_v42, %v3449_v7  ;;  %v3456_v58 = vmul.f32 %v8792_v3, %v11862_v49 }
 0x9a4   :  { %v8796_v33 = vpop.eup %8795  ;;  %v3453_v61 = vmul.f32 %v8794_v28, %v11878_v23 }
 0x9a5   :  { %v8798_v6 = vpop.eup %8797  ;;  %v3509_v10 = vpack.c.bf16 %v3456_v58, %v3454_v12  ;;  %3679 = vmatmul.mubr.bf16.gmra.mrb[48].mxu1 %v3506_v5  ;;  %v3455_v24 = vmul.f32 %v8796_v33, %v11888_v47 }
 0x9a6   :  { %v8800_v2 = vpop.eup %8799  ;;  %v3363_v34 = vadd.f32 1.0, %v8798_v6 }
 0x9a7   :  { %v8802_v56 = vpop.eup %8801  ;;  %3686 = vmatprep.mubr.bf16.mxu1 %v3509_v10  ;;  %v3366_v29 = vadd.f32 1.0, %v8800_v2  ;;  %v3508_v53 = vpack.c.bf16 %v3455_v24, %v3453_v61 }
 0x9a8   :  { %v8804_v18 = vpop.eup %8803  ;;  %8813 = vrcp.f32 %v3363_v34  ;;  %v3368_v55 = vadd.f32 1.0, %v8802_v56 }
 0x9a9   :  { %v8806_v37 = vpop.eup %8805  ;;  %8815 = vrcp.f32 %v3366_v29  ;;  %v3365_v49 = vadd.f32 1.0, %v8804_v18 }
 0x9aa   :  { %v8808_v30 = vpop.eup %8807  ;;  %8817 = vrcp.f32 %v3368_v55  ;;  %v3458_v47 = vmul.f32 %v8806_v37, %v11902_v32 }
 0x9ab   :  { %v8810_v41 = vpop.eup %8809  ;;  %v3367_v14 = vadd.f32 1.0, %v8808_v30  ;;  %8819 = vrcp.f32 %v3365_v49 }
 0x9ac   :  { %v3460_v25 = vmul.f32 %v8810_v41, %v11905_v19  ;;  %v8812_v50 = vpop.eup %8811 }
 0x9ad   :  { %8821 = vrcp.f32 %v3367_v14  ;;  %3687 = vmatmul.mubr.bf16.gmra.mrb[52].mxu1 %v3508_v53  ;;  %v3457_v60 = vmul.f32 %v8812_v50, %v11911_v21  ;;  %v11967_v21 = vld [vmem:[#allocation14] sm:$0x7] }
 0x9ae   :  { %v3511_v27 = vpack.c.bf16 %v3460_v25, %v3458_v47  ;;  %v11971_v9 = vrot.slane %v11967_v21, %v13949_v16 }
 0x9b0   :  { %3694 = vmatprep.mubr.bf16.mxu1 %v3511_v27 }
 0x9b2   :  { %v8814_v23 = vpop.eup %8813 }
 0x9b3   :  { %v8816_v40 = vpop.eup %8815  ;;  %v3459_v57 = vmul.f32 %v8814_v23, %v11925_v35 }
 0x9b4   :  { %v8818_v54 = vpop.eup %8817  ;;  %v3462_v8 = vmul.f32 %v8816_v40, %v11932_v59 }
 0x9b5   :  { %v3510_v45 = vpack.c.bf16 %v3459_v57, %v3457_v60  ;;  %v3464_v32 = vmul.f32 %v8818_v54, %v11936_v17  ;;  %v8820_v43 = vpop.eup %8819 }
 0x9b6   :  { %v3461_v0 = vmul.f32 %v8820_v43, %v11939_v62 }
 0x9b7   :  { %v8822_v19 = vpop.eup %8821  ;;  %3695 = vmatmul.mubr.bf16.gmra.mrb[56].mxu1 %v3510_v45  ;;  %v3513_v52 = vpack.c.bf16 %v3464_v32, %v3462_v8 }
 0x9b8   :  { %v3463_v4 = vmul.f32 %v8822_v19, %v11943_v13 }
 0x9b9   :  { %3702 = vmatprep.mubr.bf16.mxu1 %v3513_v52 }
 0x9ba   :  { %v3512_v1 = vpack.c.bf16 %v3463_v4, %v3461_v0 }
 0x9bf   :  { %3703 = vmatmul.mubr.bf16.gmra.mrb[60].mxu1 %v3512_v1 }
 0xa36   :  { %v7625_v35 = vpop.f32.mrb[32].mxu1 }
 0xa37   :  { %v7626_v59 = vpop.f32.mrb[33].mxu1 }
 0xa38   :  { %v7627_v17 = vadd.f32 %v7626_v59, %v7625_v35  ;;  %v7628_v44 = vpop.f32.mrb[34].mxu1 }
 0xa39   :  { %v7629_v46 = vpop.f32.mrb[35].mxu1 }
 0xa3a   :  { %v11974_v11 = vadd.f32 %v7627_v17, %v11971_v9  ;;  %v7630_v13 = vadd.f32 %v7629_v46, %v7628_v44 }
 0xa3c   :  { %v11977_v38 = vadd.f32 %v7630_v13, %v11971_v9  ;;  %3711 = vadd.xlane.f32.xlu0 %v11974_v11  ;;  %v3759_v62 = vmul.f32 %v11974_v11, %v11974_v11 }
 0xa3e   :  { %3713 = vadd.xlane.f32.xlu1 %v11977_v38  ;;  %v3760_v15 = vmul.f32 %v11977_v38, %v11977_v38 }
 0xa40   :  { %3775 = vadd.xlane.f32.xlu0 %v3759_v62 }
 0xa42   :  { %3777 = vadd.xlane.f32.xlu1 %v3760_v15  ;;  %v8207_v15 = vld [vmem:[#allocation17] sm:$0xff]  }
 0xa43   :  { %7897 = vmatprep.subr.bf16.mxu0 %v8207_v15 }
 0xa44   :  { %7898 = vmatpush3.bf16.msra.mxu0 %v8207_v15  ;;  %v13951_v15 = vld [vmem:[#allocation34_spill] sm:$0xff] }
 0xa48   :  { %v7631_v48 = vpop.f32.mrb[36].mxu1 }
 0xa49   :  { %v7632_v51 = vpop.f32.mrb[37].mxu1 }
 0xa4a   :  { %v7633_v39 = vadd.f32 %v7632_v51, %v7631_v48  ;;  %v7634_v36 = vpop.f32.mrb[38].mxu1 }
 0xa4b   :  { %v7635_v63 = vpop.f32.mrb[39].mxu1 }
 0xa4c   :  { %v11986_v22 = vadd.f32 %v7633_v39, %v11971_v9  ;;  %v7636_v31 = vadd.f32 %v7635_v63, %v7634_v36 }
 0xa4e   :  { %v11989_v26 = vadd.f32 %v7636_v31, %v11971_v9  ;;  %3715 = vadd.xlane.f32.xlu0 %v11986_v22  ;;  %v3761_v7 = vmul.f32 %v11986_v22, %v11986_v22 }
 0xa50   :  { %3717 = vadd.xlane.f32.xlu1 %v11989_v26  ;;  %v3762_v42 = vmul.f32 %v11989_v26, %v11989_v26 }
 0xa52   :  { %3779 = vadd.xlane.f32.xlu0 %v3761_v7 }
 0xa54   :  { %3781 = vadd.xlane.f32.xlu1 %v3762_v42 }
 0xa61   :  { %v7637_v3 = vpop.f32.mrb[40].mxu1 }
 0xa62   :  { %v7638_v20 = vpop.f32.mrb[41].mxu1 }
 0xa63   :  { %v7639_v28 = vadd.f32 %v7638_v20, %v7637_v3  ;;  %v7640_v5 = vpop.f32.mrb[42].mxu1  ;;  %v8208_v20 = vld [vmem:[#allocation17 + $0x8] sm:$0xff]  }
 0xa64   :  { %v7641_v12 = vpop.f32.mrb[43].mxu1  ;;  %7899 = vmatprep.subr.bf16.mxu0 %v8208_v20 }
 0xa65   :  { %v11998_v58 = vadd.f32 %v7639_v28, %v11971_v9  ;;  %v7642_v33 = vadd.f32 %v7641_v12, %v7640_v5  ;;  %7900 = vmatpush3.bf16.msra.mxu0 %v8208_v20  ;;  %v8209_v12 = vld [vmem:[#allocation17 + $0x10] sm:$0xff]  }
 0xa66   :  { %7901 = vmatprep.subr.bf16.mxu0 %v8209_v12 }
 0xa67   :  { %v12001_v6 = vadd.f32 %v7642_v33, %v11971_v9  ;;  %3719 = vadd.xlane.f32.xlu0 %v11998_v58  ;;  %v3763_v10 = vmul.f32 %v11998_v58, %v11998_v58 }
 0xa69   :  { %3721 = vadd.xlane.f32.xlu1 %v12001_v6  ;;  %v3764_v2 = vmul.f32 %v12001_v6, %v12001_v6  ;;  %7902 = vmatpush3.bf16.msra.mxu0 %v8209_v12 }
 0xa6b   :  { %3783 = vadd.xlane.f32.xlu0 %v3763_v10  ;;  %v8210_v10 = vld [vmem:[#allocation17 + $0x18] sm:$0xff]  }
 0xa6c   :  { %7903 = vmatprep.subr.bf16.mxu0 %v8210_v10 }
 0xa6d   :  { %3785 = vadd.xlane.f32.xlu1 %v3764_v2  ;;  %7904 = vmatpush3.bf16.msra.mxu0 %v8210_v10  ;;  %v8212_v2 = vld [vmem:[#allocation17 + $0x28] sm:$0xff]  }
 0xa70   :  { %v7643_v24 = vpop.f32.mrb[44].mxu1 }
 0xa71   :  { %v7644_v34 = vpop.f32.mrb[45].mxu1 }
 0xa72   :  { %v7645_v56 = vadd.f32 %v7644_v34, %v7643_v24  ;;  %v7646_v29 = vpop.f32.mrb[46].mxu1  ;;  %v8213_v24 = vld [vmem:[#allocation17 + $0x30] sm:$0xff]   ;;  %v8214_v34 = vld [vmem:[#allocation17 + $0x38] sm:$0xff]  }
 0xa73   :  { %v7647_v18 = vpop.f32.mrb[47].mxu1 }
 0xa74   :  { %v12010_v61 = vadd.f32 %v7645_v56, %v11971_v9  ;;  %v7648_v55 = vadd.f32 %v7647_v18, %v7646_v29  ;;  %v12069_v56 = vld [vmem:[#allocation16] sm:$0xff]  }
 0xa76   :  { %v12013_v37 = vadd.f32 %v7648_v55, %v11971_v9  ;;  %3723 = vadd.xlane.f32.xlu0 %v12010_v61  ;;  %v3765_v30 = vmul.f32 %v12010_v61, %v12010_v61 }
 0xa78   :  { %3725 = vadd.xlane.f32.xlu1 %v12013_v37  ;;  %v7649_v49 = vpop.f32.mrb[48].mxu1  ;;  %v3766_v47 = vmul.f32 %v12013_v37, %v12013_v37 }
 0xa79   :  { %v7650_v53 = vpop.f32.mrb[49].mxu1 }
 0xa7a   :  { %v7651_v41 = vadd.f32 %v7650_v53, %v7649_v49  ;;  %3787 = vadd.xlane.f32.xlu0 %v3765_v30  ;;  %v7652_v14 = vpop.f32.mrb[50].mxu1 }
 0xa7b   :  { %v7653_v25 = vpop.f32.mrb[51].mxu1 }
 0xa7c   :  { %v12022_v27 = vadd.f32 %v7651_v41, %v11971_v9  ;;  %v7654_v50 = vadd.f32 %v7653_v25, %v7652_v14  ;;  %3789 = vadd.xlane.f32.xlu1 %v3766_v47 }
 0xa7e   :  { %v12025_v23 = vadd.f32 %v7654_v50, %v11971_v9  ;;  %3727 = vadd.xlane.f32.xlu0 %v12022_v27  ;;  %v3767_v60 = vmul.f32 %v12022_v27, %v12022_v27 }
 0xa80   :  { %3729 = vadd.xlane.f32.xlu1 %v12025_v23  ;;  %v7655_v40 = vpop.f32.mrb[52].mxu1  ;;  %v3768_v8 = vmul.f32 %v12025_v23, %v12025_v23 }
 0xa81   :  { %v7656_v57 = vpop.f32.mrb[53].mxu1 }
 0xa82   :  { %v7657_v54 = vadd.f32 %v7656_v57, %v7655_v40  ;;  %3791 = vadd.xlane.f32.xlu0 %v3767_v60  ;;  %v7658_v45 = vpop.f32.mrb[54].mxu1 }
 0xa83   :  { %v7659_v32 = vpop.f32.mrb[55].mxu1 }
 0xa84   :  { %v12034_v43 = vadd.f32 %v7657_v54, %v11971_v9  ;;  %v7660_v19 = vadd.f32 %v7659_v32, %v7658_v45  ;;  %3793 = vadd.xlane.f32.xlu1 %v3768_v8 }
 0xa86   :  { %v12037_v52 = vadd.f32 %v7660_v19, %v11971_v9  ;;  %3731 = vadd.xlane.f32.xlu0 %v12034_v43  ;;  %v3769_v4 = vmul.f32 %v12034_v43, %v12034_v43 }
 0xa88   :  { %3733 = vadd.xlane.f32.xlu1 %v12037_v52  ;;  %v3770_v35 = vmul.f32 %v12037_v52, %v12037_v52 }
 0xa8a   :  { %v7661_v0 = vpop.f32.mrb[56].mxu1  ;;  %3795 = vadd.xlane.f32.xlu0 %v3769_v4 }
 0xa8b   :  { %v7662_v1 = vpop.f32.mrb[57].mxu1 }
 0xa8c   :  { %v7663_v59 = vadd.f32 %v7662_v1, %v7661_v0  ;;  %v7664_v17 = vpop.f32.mrb[58].mxu1  ;;  %3797 = vadd.xlane.f32.xlu1 %v3770_v35  ;;  %v13950_v1 = vld [vmem:[#allocation33_spill] sm:$0xff] }
 0xa8d   :  { %v7665_v44 = vpop.f32.mrb[59].mxu1  ;;  %v12074_v35 = vrot.slane %v11967_v21, %v13950_v1 }
 0xa8e   :  { %v12046_v46 = vadd.f32 %v7663_v59, %v11971_v9  ;;  %v7666_v13 = vadd.f32 %v7665_v44, %v7664_v17 }
 0xa90   :  { %v12049_v62 = vadd.f32 %v7666_v13, %v11971_v9  ;;  %3735 = vadd.xlane.f32.xlu0 %v12046_v46  ;;  %v3771_v51 = vmul.f32 %v12046_v46, %v12046_v46 }
 0xa92   :  { %3737 = vadd.xlane.f32.xlu1 %v12049_v62  ;;  %v7667_v48 = vpop.f32.mrb[60].mxu1  ;;  %v3772_v31 = vmul.f32 %v12049_v62, %v12049_v62 }
 0xa93   :  { %v7668_v39 = vpop.f32.mrb[61].mxu1 }
 0xa94   :  { %v7669_v36 = vadd.f32 %v7668_v39, %v7667_v48  ;;  %3799 = vadd.xlane.f32.xlu0 %v3771_v51  ;;  %v7670_v63 = vpop.f32.mrb[62].mxu1  ;;  %v12079_v48 = vrot.slane %v11967_v21, %v13951_v15 }
 0xa95   :  { %v7671_v7 = vpop.f32.mrb[63].mxu1 }
 0xa96   :  { %v12058_v42 = vadd.f32 %v7669_v36, %v11971_v9  ;;  %v7672_v3 = vadd.f32 %v7671_v7, %v7670_v63  ;;  %3801 = vadd.xlane.f32.xlu1 %v3772_v31 }
 0xa98   :  { %v12061_v28 = vadd.f32 %v7672_v3, %v11971_v9  ;;  %3739 = vadd.xlane.f32.xlu0 %v12058_v42  ;;  %v3773_v5 = vmul.f32 %v12058_v42, %v12058_v42  ;;  %v8211_v9 = vld [vmem:[#allocation17 + $0x20] sm:$0xff]  }
 0xa99   :  { %7905 = vmatprep.subr.bf16.mxu0 %v8211_v9 }
 0xa9a   :  { %3741 = vadd.xlane.f32.xlu1 %v12061_v28  ;;  %v3774_v33 = vmul.f32 %v12061_v28, %v12061_v28  ;;  %7906 = vmatpush3.bf16.msra.mxu0 %v8211_v9 }
 0xa9b   :  { %7907 = vmatprep.subr.bf16.mxu0 %v8212_v2 }
 0xa9c   :  { %3803 = vadd.xlane.f32.xlu0 %v3773_v5 }
 0xa9e   :  { %3805 = vadd.xlane.f32.xlu1 %v3774_v33  ;;  %7908 = vmatpush3.bf16.msra.mxu0 %v8212_v2 }
 0xa9f   :  { %7909 = vmatprep.subr.bf16.mxu0 %v8213_v24 }
 0xaa2   :  { %7910 = vmatpush3.bf16.msra.mxu0 %v8213_v24 }
 0xaa3   :  { %7911 = vmatprep.subr.bf16.mxu0 %v8214_v34 }
 0xaa6   :  { %7912 = vmatpush3.bf16.msra.mxu0 %v8214_v34 }
 0xaa7   :  { %7929 = vmatprep.subr.bf16.mxu0 %v12069_v56 }
 0xac9   :  { %v3712_v29 = vpop.xlane.xlu0 %3711 }
 0xaca   :  { %v3743_v18 = vmul.f32 0.03125, %v3712_v29 }
 0xacb   :  { %v3714_v55 = vpop.xlane.xlu1 %3713 }
 0xacc   :  { %v3744_v49 = vmul.f32 0.03125, %v3714_v55  ;;  %v3823_v53 = vmul.f32 %v3743_v18, %v3743_v18  ;;  %v3871_v59 = vsub.f32 %v11974_v11, %v3743_v18 }
 0xacd   :  { %v3776_v30 = vpop.xlane.xlu0 %3775 }
 0xace   :  { %v3807_v41 = vmul.f32 0.03125, %v3776_v30  ;;  %v3824_v47 = vmul.f32 %v3744_v49, %v3744_v49  ;;  %v3872_v51 = vsub.f32 %v11977_v38, %v3744_v49 }
 0xacf   :  { %v3778_v14 = vpop.xlane.xlu1 %3777 }
 0xad0   :  { %v3839_v25 = vsub.f32 %v3807_v41, %v3823_v53  ;;  %v3808_v50 = vmul.f32 0.03125, %v3778_v14 }
 0xad2   :  { %v3855_v40 = vmax.f32 %v3839_v25, 0.0  ;;  %v3840_v60 = vsub.f32 %v3808_v50, %v3824_v47 }
 0xad4   :  { %v3887_v57 = vadd.f32 1e-05, %v3855_v40  ;;  %v3856_v54 = vmax.f32 %v3840_v60, 0.0 }
 0xad6   :  { %8823 = vrsqrt.f32 %v3887_v57  ;;  %v3888_v45 = vadd.f32 1e-05, %v3856_v54 }
 0xad8   :  { %8825 = vrsqrt.f32 %v3888_v45 }
 0xadb   :  { %v3716_v8 = vpop.xlane.xlu0 %3715 }
 0xadc   :  { %v3745_v32 = vmul.f32 0.03125, %v3716_v8 }
 0xadd   :  { %v3718_v19 = vpop.xlane.xlu1 %3717 }
 0xade   :  { %v3746_v4 = vmul.f32 0.03125, %v3718_v19  ;;  %v3825_v17 = vmul.f32 %v3745_v32, %v3745_v32  ;;  %v3873_v29 = vsub.f32 %v11986_v22, %v3745_v32 }
 0xadf   :  { %v3780_v0 = vpop.xlane.xlu0 %3779 }
 0xae0   :  { %v3809_v44 = vmul.f32 0.03125, %v3780_v0  ;;  %v8824_v13 = vpop.eup %8823  ;;  %v3826_v36 = vmul.f32 %v3746_v4, %v3746_v4  ;;  %v3874_v49 = vsub.f32 %v11989_v26, %v3746_v4 }
 0xae1   :  { %v3782_v39 = vpop.xlane.xlu1 %3781  ;;  %v3919_v7 = vmul.f32 %v8824_v13, %v3871_v59 }
 0xae2   :  { %v3841_v63 = vsub.f32 %v3809_v44, %v3825_v17  ;;  %v3810_v31 = vmul.f32 0.03125, %v3782_v39  ;;  %v8826_v3 = vpop.eup %8825 }
 0xae3   :  { %v3920_v12 = vmul.f32 %v8826_v3, %v3872_v51  ;;  %v3939_v11 = vmul.f32 %v12074_v35, %v3919_v7 }
 0xae4   :  { %v3857_v20 = vmax.f32 %v3841_v63, 0.0  ;;  %v3842_v5 = vsub.f32 %v3810_v31, %v3826_v36 }
 0xae5   :  { %v3940_v9 = vmul.f32 %v12074_v35, %v3920_v12  ;;  %v3959_v21 = vadd.f32 %v12079_v48, %v3939_v11 }
 0xae6   :  { %v3889_v33 = vadd.f32 1e-05, %v3857_v20  ;;  %v3858_v10 = vmax.f32 %v3842_v5, 0.0 }
 0xae7   :  { %v3960_v38 = vadd.f32 %v12079_v48, %v3940_v9  ;;  %v7398_v24 = vmul.f32 -1.442695, %v3959_v21 }
 0xae8   :  { %8827 = vrsqrt.f32 %v3889_v33  ;;  %v3890_v2 = vadd.f32 1e-05, %v3858_v10 }
 0xae9   :  { %v7399_v34 = vmul.f32 -1.442695, %v3960_v38 }
 0xaea   :  { %8829 = vrsqrt.f32 %v3890_v2 }
 0xaeb   :  { %8831 = vpow2.f32 %v7398_v24 }
 0xaec   :  { %8833 = vpow2.f32 %v7399_v34 }
 0xaf2   :  { %v8828_v18 = vpop.eup %8827 }
 0xaf3   :  { %v3921_v30 = vmul.f32 %v8828_v18, %v3873_v29 }
 0xaf4   :  { %v3720_v55 = vpop.xlane.xlu0 %3719  ;;  %v8830_v41 = vpop.eup %8829 }
 0xaf5   :  { %v3747_v53 = vmul.f32 0.03125, %v3720_v55  ;;  %v8832_v47 = vpop.eup %8831  ;;  %v3922_v25 = vmul.f32 %v8830_v41, %v3874_v49  ;;  %v3941_v54 = vmul.f32 %v12074_v35, %v3921_v30 }
 0xaf6   :  { %v3722_v14 = vpop.xlane.xlu1 %3721  ;;  %v8834_v40 = vpop.eup %8833  ;;  %v4023_v57 = vadd.f32 1.0, %v8832_v47 }
 0xaf7   :  { %v12088_v50 = vmul.f32 0.03125, %v3722_v14  ;;  %v3827_v45 = vmul.f32 %v3747_v53, %v3747_v53  ;;  %v4024_v22 = vadd.f32 1.0, %v8834_v40  ;;  %v3942_v26 = vmul.f32 %v12074_v35, %v3922_v25 }
 0xaf8   :  { %v3784_v60 = vpop.xlane.xlu0 %3783  ;;  %8835 = vrcp.f32 %v4023_v57  ;;  %v12093_v19 = vadd.f32 %v12079_v48, %v3941_v54  ;;  %v3875_v30 = vsub.f32 %v11998_v58, %v3747_v53 }
 0xaf9   :  { %v3811_v8 = vmul.f32 0.03125, %v3784_v60  ;;  %v3828_v4 = vmul.f32 %v12088_v50, %v12088_v50  ;;  %8837 = vrcp.f32 %v4024_v22  ;;  %v12098_v17 = vadd.f32 %v12079_v48, %v3942_v26 }
 0xafa   :  { %v3786_v32 = vpop.xlane.xlu1 %3785  ;;  %v7400_v44 = vmul.f32 -1.442695, %v12093_v19 }
 0xafb   :  { %v3843_v0 = vsub.f32 %v3811_v8, %v3827_v45  ;;  %v3812_v59 = vmul.f32 0.03125, %v3786_v32  ;;  %v7401_v39 = vmul.f32 -1.442695, %v12098_v17  ;;  %v3876_v8 = vsub.f32 %v12001_v6, %v12088_v50 }
 0xafc   :  { %8839 = vpow2.f32 %v7400_v44 }
 0xafd   :  { %v3859_v13 = vmax.f32 %v3843_v0, 0.0  ;;  %v3844_v51 = vsub.f32 %v3812_v59, %v3828_v4  ;;  %8841 = vpow2.f32 %v7401_v39 }
 0xaff   :  { %v3891_v36 = vadd.f32 1e-05, %v3859_v13  ;;  %v3860_v63 = vmax.f32 %v3844_v51, 0.0 }
 0xb01   :  { %8843 = vrsqrt.f32 %v3891_v36  ;;  %v3892_v31 = vadd.f32 1e-05, %v3860_v63 }
 0xb02   :  { %v8836_v3 = vpop.eup %8835 }
 0xb03   :  { %8845 = vrsqrt.f32 %v3892_v31  ;;  %v3724_v7 = vpop.xlane.xlu0 %3723  ;;  %v8838_v5 = vpop.eup %8837  ;;  %v4071_v33 = vmul.f32 %v8836_v3, %v3959_v21 }
 0xb04   :  { %v12102_v20 = vmul.f32 0.03125, %v3724_v7  ;;  %v4072_v10 = vmul.f32 %v8838_v5, %v3960_v38 }
 0xb05   :  { %v3726_v12 = vpop.xlane.xlu1 %3725 }
 0xb06   :  { %v12104_v11 = vmul.f32 0.03125, %v3726_v12  ;;  %v8840_v2 = vpop.eup %8839  ;;  %v3829_v24 = vmul.f32 %v12102_v20, %v12102_v20  ;;  %v4104_v29 = vpack.c.bf16 %v4072_v10, %v4071_v33 }
 0xb07   :  { %v3788_v9 = vpop.xlane.xlu0 %3787  ;;  %v4025_v55 = vadd.f32 1.0, %v8840_v2  ;;  %v8842_v49 = vpop.eup %8841 }
 0xb08   :  { %v3813_v34 = vmul.f32 0.03125, %v3788_v9  ;;  %v3830_v41 = vmul.f32 %v12104_v11, %v12104_v11  ;;  %7913 = vmatprep.mubr.bf16.mxu0 %v4104_v29  ;;  %v4026_v25 = vadd.f32 1.0, %v8842_v49 }
 0xb09   :  { %v3790_v18 = vpop.xlane.xlu1 %3789  ;;  %8847 = vrcp.f32 %v4025_v55 }
 0xb0a   :  { %v3845_v14 = vsub.f32 %v3813_v34, %v3829_v24  ;;  %v3814_v47 = vmul.f32 0.03125, %v3790_v18  ;;  %8849 = vrcp.f32 %v4026_v25 }
 0xb0b   :  { %v8844_v21 = vpop.eup %8843  ;;  %v3728_v38 = vpop.xlane.xlu0 %3727 }
 0xb0c   :  { %v3861_v40 = vmax.f32 %v3845_v14, 0.0  ;;  %v3846_v60 = vsub.f32 %v3814_v47, %v3830_v41  ;;  %v12111_v57 = vmul.f32 0.03125, %v3728_v38  ;;  %v3923_v54 = vmul.f32 %v8844_v21, %v3875_v30 }
 0xb0d   :  { %v8846_v45 = vpop.eup %8845  ;;  %v3730_v58 = vpop.xlane.xlu1 %3729  ;;  %v3877_v21 = vsub.f32 %v12010_v61, %v12102_v20 }
 0xb0e   :  { %v3893_v53 = vadd.f32 1e-05, %v3861_v40  ;;  %v3862_v22 = vmax.f32 %v3846_v60, 0.0  ;;  %v12115_v32 = vmul.f32 0.03125, %v3730_v58  ;;  %v3924_v4 = vmul.f32 %v8846_v45, %v3876_v8  ;;  %v8216_v8 = vld [vmem:[#allocation16 + $0x8] sm:$0xff]  }
 0xb0f   :  { %v3792_v26 = vpop.xlane.xlu0 %3791  ;;  %v3943_v0 = vmul.f32 %v12074_v35, %v3923_v54  ;;  %v3831_v44 = vmul.f32 %v12111_v57, %v12111_v57 }
 0xb10   :  { %8851 = vrsqrt.f32 %v3893_v53  ;;  %v3894_v59 = vadd.f32 1e-05, %v3862_v22  ;;  %v3815_v13 = vmul.f32 0.03125, %v3792_v26  ;;  %v3944_v39 = vmul.f32 %v12074_v35, %v3924_v4 }
 0xb11   :  { %v3794_v51 = vpop.xlane.xlu1 %3793  ;;  %v12122_v6 = vadd.f32 %v12079_v48, %v3943_v0  ;;  %v3832_v50 = vmul.f32 %v12115_v32, %v12115_v32 }
 0xb12   :  { %8853 = vrsqrt.f32 %v3894_v59  ;;  %v3847_v36 = vsub.f32 %v3815_v13, %v3831_v44  ;;  %v3816_v63 = vmul.f32 0.03125, %v3794_v51  ;;  %v12127_v7 = vadd.f32 %v12079_v48, %v3944_v39  ;;  %v8217_v13 = vld [vmem:[#allocation16 + $0x10] sm:$0xff]  }
 0xb13   :  { %v3732_v31 = vpop.xlane.xlu0 %3731  ;;  %v7402_v3 = vmul.f32 -1.442695, %v12122_v6  ;;  %v8848_v10 = vpop.eup %8847 }
 0xb14   :  { %v3863_v5 = vmax.f32 %v3847_v36, 0.0  ;;  %v3848_v12 = vsub.f32 %v3816_v63, %v3832_v50  ;;  %v12130_v33 = vmul.f32 0.03125, %v3732_v31  ;;  %v7403_v2 = vmul.f32 -1.442695, %v12127_v7  ;;  %v8850_v29 = vpop.eup %8849 }
 0xb15   :  { %v3734_v9 = vpop.xlane.xlu1 %3733  ;;  %8855 = vpow2.f32 %v7402_v3  ;;  %v4073_v30 = vmul.f32 %v8848_v10, %v12093_v19  ;;  %v4074_v47 = vmul.f32 %v8850_v29, %v12098_v17  ;;  %v3878_v19 = vsub.f32 %v12013_v37, %v12104_v11  ;;  %v8218_v29 = vld [vmem:[#allocation16 + $0x18] sm:$0xff]  }
 0xb16   :  { %v3895_v24 = vadd.f32 1e-05, %v3863_v5  ;;  %v3864_v34 = vmax.f32 %v3848_v12, 0.0  ;;  %v3833_v18 = vmul.f32 %v12130_v33, %v12130_v33  ;;  %v12135_v55 = vmul.f32 0.03125, %v3734_v9 }
 0xb17   :  { %v3796_v49 = vpop.xlane.xlu0 %3795  ;;  %8857 = vpow2.f32 %v7403_v2  ;;  %v4105_v45 = vpack.c.bf16 %v4074_v47, %v4073_v30  ;;  %v3880_v30 = vsub.f32 %v12025_v23, %v12115_v32  ;;  %v3881_v23 = vsub.f32 %v12034_v43, %v12130_v33 }
 0xb18   :  { %8859 = vrsqrt.f32 %v3895_v24  ;;  %v3896_v41 = vadd.f32 1e-05, %v3864_v34  ;;  %v3817_v14 = vmul.f32 0.03125, %v3796_v49  ;;  %v3834_v38 = vmul.f32 %v12135_v55, %v12135_v55 }
 0xb19   :  { %v3798_v25 = vpop.xlane.xlu1 %3797  ;;  %7914 = vmatmul.mubr.bf16.vlgmr.msra.gmra.mrb[64].mxu0 %v4105_v45 }
 0xb1a   :  { %v8852_v40 = vpop.eup %8851  ;;  %8861 = vrsqrt.f32 %v3896_v41  ;;  %v3849_v60 = vsub.f32 %v3817_v14, %v3833_v18  ;;  %v3818_v54 = vmul.f32 0.03125, %v3798_v25  ;;  %7930 = vmatpush3.bf16.msra.mxu0 %v12069_v56  ;;  %v3879_v56 = vsub.f32 %v12022_v27, %v12111_v57 }
 0xb1b   :  { %v3925_v58 = vmul.f32 %v8852_v40, %v3877_v21  ;;  %7931 = vmatprep.subr.bf16.mxu0 %v8216_v8 }
 0xb1c   :  { %v8854_v53 = vpop.eup %8853  ;;  %v3865_v22 = vmax.f32 %v3849_v60, 0.0  ;;  %v3850_v17 = vsub.f32 %v3818_v54, %v3834_v38  ;;  %v8219_v54 = vld [vmem:[#allocation16 + $0x20] sm:$0xff]  }
 0xb1d   :  { %v3736_v26 = vpop.xlane.xlu0 %3735  ;;  %v3926_v20 = vmul.f32 %v8854_v53, %v3878_v19  ;;  %v3945_v4 = vmul.f32 %v12074_v35, %v3925_v58 }
 0xb1e   :  { %v12145_v61 = vmul.f32 0.03125, %v3736_v26  ;;  %v3897_v0 = vadd.f32 1e-05, %v3865_v22  ;;  %v3866_v59 = vmax.f32 %v3850_v17, 0.0  ;;  %7932 = vmatpush3.bf16.msra.mxu0 %v8216_v8 }
 0xb1f   :  { %v3738_v44 = vpop.xlane.xlu1 %3737  ;;  %v8856_v51 = vpop.eup %8855  ;;  %v3946_v11 = vmul.f32 %v12074_v35, %v3926_v20  ;;  %v12153_v63 = vadd.f32 %v12079_v48, %v3945_v4  ;;  %7933 = vmatprep.subr.bf16.mxu0 %v8217_v13  ;;  %v3882_v4 = vsub.f32 %v12037_v52, %v12135_v55 }
 0xb20   :  { %v12149_v37 = vmul.f32 0.03125, %v3738_v44  ;;  %8863 = vrsqrt.f32 %v3897_v0  ;;  %v3898_v39 = vadd.f32 1e-05, %v3866_v59  ;;  %v4027_v36 = vadd.f32 1.0, %v8856_v51  ;;  %v8220_v44 = vld [vmem:[#allocation16 + $0x28] sm:$0xff]  }
 0xb21   :  { %v3800_v50 = vpop.xlane.xlu0 %3799  ;;  %v8858_v31 = vpop.eup %8857  ;;  %v3835_v3 = vmul.f32 %v12145_v61, %v12145_v61  ;;  %v12160_v12 = vadd.f32 %v12079_v48, %v3946_v11  ;;  %v7404_v34 = vmul.f32 -1.442695, %v12153_v63 }
 0xb22   :  { %v3819_v5 = vmul.f32 0.03125, %v3800_v50  ;;  %v8860_v10 = vpop.eup %8859  ;;  %8865 = vrsqrt.f32 %v3898_v39  ;;  %v3836_v9 = vmul.f32 %v12149_v37, %v12149_v37  ;;  %v4028_v24 = vadd.f32 1.0, %v8858_v31  ;;  %7934 = vmatpush3.bf16.msra.mxu0 %v8217_v13 }
 0xb23   :  { %v3802_v2 = vpop.xlane.xlu1 %3801  ;;  %8867 = vrcp.f32 %v4027_v36  ;;  %v7405_v18 = vmul.f32 -1.442695, %v12160_v12  ;;  %v3927_v14 = vmul.f32 %v8860_v10, %v3879_v56  ;;  %7935 = vmatprep.subr.bf16.mxu0 %v8218_v29  ;;  %v8221_v10 = vld [vmem:[#allocation16 + $0x30] sm:$0xff]  }
 0xb24   :  { %v3851_v27 = vsub.f32 %v3819_v5, %v3835_v3  ;;  %v3820_v57 = vmul.f32 0.03125, %v3802_v2  ;;  %v8862_v49 = vpop.eup %8861  ;;  %8869 = vrcp.f32 %v4028_v24 }
 0xb25   :  { %v3740_v41 = vpop.xlane.xlu0 %3739  ;;  %8871 = vpow2.f32 %v7404_v34  ;;  %v3928_v40 = vmul.f32 %v8862_v49, %v3880_v30  ;;  %v3947_v60 = vmul.f32 %v12074_v35, %v3927_v14 }
 0xb26   :  { %v3867_v47 = vmax.f32 %v3851_v27, 0.0  ;;  %v3852_v21 = vsub.f32 %v3820_v57, %v3836_v9  ;;  %v12168_v38 = vmul.f32 0.03125, %v3740_v41  ;;  %8873 = vpow2.f32 %v7405_v18  ;;  %7936 = vmatpush3.bf16.msra.mxu0 %v8218_v29 }
 0xb27   :  { %v3742_v25 = vpop.xlane.xlu1 %3741  ;;  %v3948_v58 = vmul.f32 %v12074_v35, %v3928_v40  ;;  %v12177_v53 = vadd.f32 %v12079_v48, %v3947_v60  ;;  %7937 = vmatprep.subr.bf16.mxu0 %v8219_v54 }
 0xb28   :  { %v3899_v45 = vadd.f32 1e-05, %v3867_v47  ;;  %v3868_v8 = vmax.f32 %v3852_v21, 0.0  ;;  %v12173_v32 = vmul.f32 0.03125, %v3742_v25  ;;  %v3837_v17 = vmul.f32 %v12168_v38, %v12168_v38  ;;  %v8222_v47 = vld [vmem:[#allocation16 + $0x38] sm:$0xff]  }
 0xb29   :  { %v3804_v19 = vpop.xlane.xlu0 %3803  ;;  %v12186_v0 = vadd.f32 %v12079_v48, %v3948_v58  ;;  %v7406_v59 = vmul.f32 -1.442695, %v12177_v53  ;;  %v3884_v25 = vsub.f32 %v12049_v62, %v12149_v37  ;;  %v3885_v37 = vsub.f32 %v12058_v42, %v12168_v38 }
 0xb2a   :  { %8875 = vrsqrt.f32 %v3899_v45  ;;  %v3900_v22 = vadd.f32 1e-05, %v3868_v8  ;;  %v3821_v26 = vmul.f32 0.03125, %v3804_v19  ;;  %v8864_v20 = vpop.eup %8863  ;;  %v3838_v43 = vmul.f32 %v12173_v32, %v12173_v32  ;;  %7938 = vmatpush3.bf16.msra.mxu0 %v8219_v54 }
 0xb2b   :  { %v3806_v33 = vpop.xlane.xlu1 %3805  ;;  %v3929_v11 = vmul.f32 %v8864_v20, %v3881_v23  ;;  %v7407_v50 = vmul.f32 -1.442695, %v12186_v0  ;;  %7939 = vmatprep.subr.bf16.mxu0 %v8220_v44 }
 0xb2c   :  { %8877 = vrsqrt.f32 %v3900_v22  ;;  %v3853_v13 = vsub.f32 %v3821_v26, %v3837_v17  ;;  %v3822_v51 = vmul.f32 0.03125, %v3806_v33  ;;  %v8866_v39 = vpop.eup %8865 }
 0xb2d   :  { %8879 = vpow2.f32 %v7406_v59  ;;  %v8868_v52 = vpop.eup %8867  ;;  %v3930_v31 = vmul.f32 %v8866_v39, %v3882_v4  ;;  %v3949_v56 = vmul.f32 %v12074_v35, %v3929_v11  ;;  %v3886_v4 = vsub.f32 %v12061_v28, %v12173_v32 }
 0xb2e   :  { %v3869_v55 = vmax.f32 %v3853_v13, 0.0  ;;  %v3854_v36 = vsub.f32 %v3822_v51, %v3838_v43  ;;  %v8870_v3 = vpop.eup %8869  ;;  %v4075_v5 = vmul.f32 %v8868_v52, %v12122_v6  ;;  %8881 = vpow2.f32 %v7407_v50  ;;  %7940 = vmatpush3.bf16.msra.mxu0 %v8220_v44 }
 0xb2f   :  { %v8872_v9 = vpop.eup %8871  ;;  %v4076_v34 = vmul.f32 %v8870_v3, %v12127_v7  ;;  %v3950_v29 = vmul.f32 %v12074_v35, %v3930_v31  ;;  %v12195_v18 = vadd.f32 %v12079_v48, %v3949_v56  ;;  %v3883_v6 = vsub.f32 %v12046_v46, %v12145_v61  ;;  %7941 = vmatprep.subr.bf16.mxu0 %v8221_v10 }
 0xb30   :  { %v3901_v2 = vadd.f32 1e-05, %v3869_v55  ;;  %v3870_v24 = vmax.f32 %v3854_v36, 0.0  ;;  %v8874_v27 = vpop.eup %8873  ;;  %v4029_v57 = vadd.f32 1.0, %v8872_v9 }
 0xb31   :  { %v4106_v30 = vpack.c.bf16 %v4076_v34, %v4075_v5  ;;  %v4030_v41 = vadd.f32 1.0, %v8874_v27  ;;  %v12200_v14 = vadd.f32 %v12079_v48, %v3950_v29  ;;  %v7408_v7 = vmul.f32 -1.442695, %v12195_v18 }
 0xb32   :  { %8883 = vrsqrt.f32 %v3901_v2  ;;  %v3902_v49 = vadd.f32 1e-05, %v3870_v24  ;;  %7942 = vmatpush3.bf16.msra.mxu0 %v8221_v10 }
 0xb33   :  { %8885 = vrcp.f32 %v4029_v57  ;;  %7917 = vmatprep.mubr.bf16.mxu0 %v4106_v30  ;;  %v7409_v40 = vmul.f32 -1.442695, %v12200_v14  ;;  %7943 = vmatprep.subr.bf16.mxu0 %v8222_v47 }
 0xb34   :  { %v8876_v21 = vpop.eup %8875  ;;  %8887 = vrsqrt.f32 %v3902_v49 }
 0xb35   :  { %8889 = vrcp.f32 %v4030_v41  ;;  %v3931_v60 = vmul.f32 %v8876_v21, %v3883_v6 }
 0xb36   :  { %v8878_v54 = vpop.eup %8877  ;;  %8891 = vpow2.f32 %v7408_v7  ;;  %7944 = vmatpush3.bf16.msra.mxu0 %v8222_v47 }
 0xb37   :  { %v8880_v46 = vpop.eup %8879  ;;  %8893 = vpow2.f32 %v7409_v40  ;;  %v3932_v61 = vmul.f32 %v8878_v54, %v3884_v25  ;;  %v3951_v45 = vmul.f32 %v12074_v35, %v3931_v60 }
 0xb38   :  { %v4031_v8 = vadd.f32 1.0, %v8880_v46  ;;  %v8882_v23 = vpop.eup %8881  ;;  %v13953_v46 = vld [vmem:[#allocation52_spill] sm:$0xff] }
 0xb39   :  { %v3952_v19 = vmul.f32 %v12074_v35, %v3932_v61  ;;  %v3971_v58 = vadd.f32 %v12079_v48, %v3951_v45  ;;  %v4032_v62 = vadd.f32 1.0, %v8882_v23  ;;  %v13954_v61 = vld [vmem:[#allocation53_spill] sm:$0xff]  ;;  %v13955_v45 = vld [vmem:[#allocation54_spill] sm:$0xff]  ;;  %v13957_v23 = vld [vmem:[#allocation56_spill] sm:$0xff] }
 0xb3a   :  { %8895 = vrcp.f32 %v4031_v8  ;;  %v13956_v8 = vld [vmem:[#allocation46_spill] sm:$0xff] }
 0xb3b   :  { %v3972_v22 = vadd.f32 %v12079_v48, %v3952_v19  ;;  %v7410_v17 = vmul.f32 -1.442695, %v3971_v58  ;;  %8897 = vrcp.f32 %v4032_v62  ;;  %v13958_v19 = vld [vmem:[#allocation57_spill] sm:$0xff] }
 0xb3c   :  { %v8884_v26 = vpop.eup %8883  ;;  %v12235_v62 = vld [vmem:[%s13783_s11] sm:$0x7] }
 0xb3d   :  { %v8886_v20 = vpop.eup %8885  ;;  %8899 = vpow2.f32 %v7410_v17  ;;  %v7411_v43 = vmul.f32 -1.442695, %v3972_v22  ;;  %v3933_v33 = vmul.f32 %v8884_v26, %v3885_v37  ;;  %v12239_v37 = vrot.slane %v12235_v62, %v13949_v16 }
 0xb3e   :  { %v8888_v59 = vpop.eup %8887  ;;  %v4077_v42 = vmul.f32 %v8886_v20, %v12153_v63 }
 0xb3f   :  { %v8890_v44 = vpop.eup %8889  ;;  %8901 = vpow2.f32 %v7411_v43  ;;  %v3934_v13 = vmul.f32 %v8888_v59, %v3886_v4  ;;  %v3953_v51 = vmul.f32 %v12074_v35, %v3933_v33 }
 0xb40   :  { %v8892_v11 = vpop.eup %8891  ;;  %v4078_v38 = vmul.f32 %v8890_v44, %v12160_v12 }
 0xb41   :  { %v8894_v39 = vpop.eup %8893  ;;  %v4033_v50 = vadd.f32 1.0, %v8892_v11  ;;  %v3954_v52 = vmul.f32 %v12074_v35, %v3934_v13  ;;  %v3973_v28 = vadd.f32 %v12079_v48, %v3953_v51 }
 0xb42   :  { %v4107_v32 = vpack.c.bf16 %v4078_v38, %v4077_v42  ;;  %v4034_v55 = vadd.f32 1.0, %v8894_v39 }
 0xb43   :  { %8903 = vrcp.f32 %v4033_v50  ;;  %v3974_v36 = vadd.f32 %v12079_v48, %v3954_v52  ;;  %v7412_v31 = vmul.f32 -1.442695, %v3973_v28 }
 0xb44   :  { %v8896_v56 = vpop.eup %8895  ;;  %7918 = vmatmul.mubr.bf16.gmra.mrb[68].mxu0 %v4107_v32  ;;  %8905 = vrcp.f32 %v4034_v55 }
 0xb45   :  { %8907 = vpow2.f32 %v7412_v31  ;;  %v7413_v3 = vmul.f32 -1.442695, %v3974_v36  ;;  %v8898_v63 = vpop.eup %8897  ;;  %v4079_v12 = vmul.f32 %v8896_v56, %v12177_v53 }
 0xb46   :  { %v4080_v10 = vmul.f32 %v8898_v63, %v12186_v0  ;;  %v8223_v63 = vld [vmem:[#allocation19] sm:$0xff]  }
 0xb47   :  { %v8900_v5 = vpop.eup %8899  ;;  %8909 = vpow2.f32 %v7413_v3  ;;  %7961 = vmatprep.subr.bf16.mxu1 %v8223_v63 }
 0xb48   :  { %v4035_v35 = vadd.f32 1.0, %v8900_v5  ;;  %v4108_v2 = vpack.c.bf16 %v4080_v10, %v4079_v12  ;;  %7962 = vmatpush3.bf16.msra.mxu1 %v8223_v63 }
 0xb49   :  { %v8902_v9 = vpop.eup %8901 }
 0xb4a   :  { %v4036_v24 = vadd.f32 1.0, %v8902_v9  ;;  %8911 = vrcp.f32 %v4035_v35  ;;  %7921 = vmatprep.mubr.bf16.mxu0 %v4108_v2 }
 0xb4c   :  { %8913 = vrcp.f32 %v4036_v24 }
 0xb4d   :  { %v8904_v48 = vpop.eup %8903 }
 0xb4e   :  { %v8906_v34 = vpop.eup %8905  ;;  %v4081_v27 = vmul.f32 %v8904_v48, %v12195_v18 }
 0xb4f   :  { %v8908_v29 = vpop.eup %8907  ;;  %v4082_v57 = vmul.f32 %v8906_v34, %v12200_v14  ;;  %v13952_v14 = vld [vmem:[#allocation51_spill] sm:$0xff] }
 0xb50   :  { %v4037_v49 = vadd.f32 1.0, %v8908_v29 }
 0xb51   :  { %v8910_v30 = vpop.eup %8909  ;;  %v4109_v53 = vpack.c.bf16 %v4082_v57, %v4081_v27 }
 0xb52   :  { %v4038_v41 = vadd.f32 1.0, %v8910_v30  ;;  %8915 = vrcp.f32 %v4037_v49 }
 0xb53   :  { %7922 = vmatmul.mubr.bf16.gmra.mrb[72].mxu0 %v4109_v53 }
 0xb54   :  { %v8912_v0 = vpop.eup %8911  ;;  %8917 = vrcp.f32 %v4038_v41 }
 0xb55   :  { %v4083_v7 = vmul.f32 %v8912_v0, %v3971_v58  ;;  %v13959_v58 = vld [vmem:[#allocation58_spill] sm:$0xff] }
 0xb56   :  { %v8914_v6 = vpop.eup %8913 }
 0xb57   :  { %v4084_v47 = vmul.f32 %v8914_v6, %v3972_v22  ;;  %v8224_v6 = vld [vmem:[#allocation19 + $0x8] sm:$0xff]  }
 0xb58   :  { %7963 = vmatprep.subr.bf16.mxu1 %v8224_v6 }
 0xb59   :  { %v4110_v21 = vpack.c.bf16 %v4084_v47, %v4083_v7  ;;  %v8225_v47 = vld [vmem:[#allocation19 + $0x10] sm:$0xff]   ;;  %7964 = vmatpush3.bf16.msra.mxu1 %v8224_v6 }
 0xb5a   :  { %7965 = vmatprep.subr.bf16.mxu1 %v8225_v47 }
 0xb5b   :  { %7925 = vmatprep.mubr.bf16.mxu0 %v4110_v21 }
 0xb5c   :  { %v8916_v25 = vpop.eup %8915 }
 0xb5d   :  { %v4085_v60 = vmul.f32 %v8916_v25, %v3973_v28  ;;  %v8226_v25 = vld [vmem:[#allocation19 + $0x18] sm:$0xff]   ;;  %7966 = vmatpush3.bf16.msra.mxu1 %v8225_v47 }
 0xb5e   :  { %v8918_v40 = vpop.eup %8917  ;;  %7967 = vmatprep.subr.bf16.mxu1 %v8226_v25 }
 0xb5f   :  { %v4086_v54 = vmul.f32 %v8918_v40, %v3974_v36 }
 0xb61   :  { %v4111_v18 = vpack.c.bf16 %v4086_v54, %v4085_v60  ;;  %v8227_v54 = vld [vmem:[#allocation19 + $0x20] sm:$0xff]   ;;  %7968 = vmatpush3.bf16.msra.mxu1 %v8226_v25 }
 0xb62   :  { %7969 = vmatprep.subr.bf16.mxu1 %v8227_v54 }
 0xb63   :  { %7926 = vmatmul.mubr.bf16.gmra.mrb[76].mxu0 %v4111_v18 }
 0xb64   :  { %7945 = vmatprep.mubr.bf16.mxu0 %v13952_v14 }
 0xb65   :  { %7970 = vmatpush3.bf16.msra.mxu1 %v8227_v54 }
 0xb6b   :  { %7946 = vmatmul.mubr.bf16.vlgmr.msra.gmra.mrb[64].mxu0 %v13953_v46 }
 0xb6c   :  { %7949 = vmatprep.mubr.bf16.mxu0 %v13954_v61  ;;  %v8228_v61 = vld [vmem:[#allocation19 + $0x28] sm:$0xff]  }
 0xb6d   :  { %7971 = vmatprep.subr.bf16.mxu1 %v8228_v61 }
 0xb6e   :  { %7972 = vmatpush3.bf16.msra.mxu1 %v8228_v61 }
 0xb73   :  { %7950 = vmatmul.mubr.bf16.gmra.mrb[68].mxu0 %v13955_v45  ;;  %v8229_v45 = vld [vmem:[#allocation19 + $0x30] sm:$0xff]  }
 0xb74   :  { %7953 = vmatprep.mubr.bf16.mxu0 %v13956_v8  ;;  %7973 = vmatprep.subr.bf16.mxu1 %v8229_v45  ;;  %v8230_v8 = vld [vmem:[#allocation19 + $0x38] sm:$0xff]  }
 0xb75   :  { %7974 = vmatpush3.bf16.msra.mxu1 %v8229_v45  ;;  %v12355_v45 = vrot.slane %v12235_v62, %v13950_v1 }
 0xb76   :  { %7975 = vmatprep.subr.bf16.mxu1 %v8230_v8 }
 0xb79   :  { %7976 = vmatpush3.bf16.msra.mxu1 %v8230_v8 }
 0xb7b   :  { %7954 = vmatmul.mubr.bf16.gmra.mrb[72].mxu0 %v13957_v23 }
 0xb7c   :  { %7957 = vmatprep.mubr.bf16.mxu0 %v13958_v19 }
 0xb83   :  { %7958 = vmatmul.mubr.bf16.gmra.mrb[76].mxu0 %v13959_v58 }
 0xc3e   :  { %v7947_v22 = vpop.f32.mrb[64].mxu0 }
 0xc3f   :  { %v12242_v17 = vadd.f32 %v7947_v22, %v12239_v37  ;;  %v4355_v26 = vpop.f32.mrb[65].mxu0 }
 0xc40   :  { %v7948_v20 = vpop.f32.mrb[66].mxu0  ;;  %v12249_v33 = vadd.f32 %v12239_v37, %v4355_v26 }
 0xc41   :  { %v12245_v4 = vadd.f32 %v7948_v20, %v12239_v37  ;;  %4442 = vadd.xlane.f32.xlu0 %v12242_v17  ;;  %v4358_v43 = vpop.f32.mrb[67].mxu0  ;;  %v4488_v39 = vmul.f32 %v12242_v17, %v12242_v17 }
 0xc42   :  { %v12253_v59 = vadd.f32 %v12239_v37, %v4358_v43  ;;  %v4486_v51 = vmul.f32 %v12249_v33, %v12249_v33 }
 0xc43   :  { %4444 = vadd.xlane.f32.xlu1 %v12245_v4  ;;  %v4489_v50 = vmul.f32 %v12245_v4, %v12245_v4 }
 0xc44   :  { %v4487_v38 = vmul.f32 %v12253_v59, %v12253_v59 }
 0xc45   :  { %4438 = vadd.xlane.f32.xlu0 %v12249_v33 }
 0xc46   :  { %v7951_v44 = vpop.f32.mrb[68].mxu0 }
 0xc47   :  { %4440 = vadd.xlane.f32.xlu1 %v12253_v59  ;;  %v4371_v13 = vpop.f32.mrb[69].mxu0  ;;  %v12266_v28 = vadd.f32 %v7951_v44, %v12239_v37 }
 0xc48   :  { %v7952_v11 = vpop.f32.mrb[70].mxu0  ;;  %v12273_v56 = vadd.f32 %v12239_v37, %v4371_v13 }
 0xc49   :  { %4502 = vadd.xlane.f32.xlu0 %v4486_v51  ;;  %v4374_v42 = vpop.f32.mrb[71].mxu0  ;;  %v12269_v36 = vadd.f32 %v7952_v11, %v12239_v37  ;;  %v4492_v24 = vmul.f32 %v12266_v28, %v12266_v28 }
 0xc4a   :  { %v12277_v3 = vadd.f32 %v12239_v37, %v4374_v42  ;;  %v4490_v10 = vmul.f32 %v12273_v56, %v12273_v56 }
 0xc4b   :  { %4504 = vadd.xlane.f32.xlu1 %v4487_v38  ;;  %v4493_v48 = vmul.f32 %v12269_v36, %v12269_v36 }
 0xc4c   :  { %v4491_v2 = vmul.f32 %v12277_v3, %v12277_v3 }
 0xc4d   :  { %4506 = vadd.xlane.f32.xlu0 %v4488_v39 }
 0xc4e   :  { %v7955_v52 = vpop.f32.mrb[72].mxu0 }
 0xc4f   :  { %4508 = vadd.xlane.f32.xlu1 %v4489_v50  ;;  %v4387_v32 = vpop.f32.mrb[73].mxu0  ;;  %v12290_v34 = vadd.f32 %v7955_v52, %v12239_v37 }
 0xc50   :  { %v7956_v55 = vpop.f32.mrb[74].mxu0  ;;  %v12297_v27 = vadd.f32 %v12239_v37, %v4387_v32 }
 0xc51   :  { %4450 = vadd.xlane.f32.xlu0 %v12266_v28  ;;  %v4390_v31 = vpop.f32.mrb[75].mxu0  ;;  %v12293_v29 = vadd.f32 %v7956_v55, %v12239_v37  ;;  %v4496_v53 = vmul.f32 %v12290_v34, %v12290_v34 }
 0xc52   :  { %v12301_v57 = vadd.f32 %v12239_v37, %v4390_v31  ;;  %v4494_v49 = vmul.f32 %v12297_v27, %v12297_v27 }
 0xc53   :  { %4452 = vadd.xlane.f32.xlu1 %v12269_v36  ;;  %v4497_v41 = vmul.f32 %v12293_v29, %v12293_v29 }
 0xc54   :  { %v4495_v30 = vmul.f32 %v12301_v57, %v12301_v57 }
 0xc55   :  { %4446 = vadd.xlane.f32.xlu0 %v12273_v56 }
 0xc56   :  { %v7959_v5 = vpop.f32.mrb[76].mxu0 }
 0xc57   :  { %4448 = vadd.xlane.f32.xlu1 %v12277_v3  ;;  %v4403_v12 = vpop.f32.mrb[77].mxu0  ;;  %v12314_v0 = vadd.f32 %v7959_v5, %v12239_v37 }
 0xc58   :  { %v7960_v35 = vpop.f32.mrb[78].mxu0  ;;  %v12321_v21 = vadd.f32 %v12239_v37, %v4403_v12 }
 0xc59   :  { %4510 = vadd.xlane.f32.xlu0 %v4490_v10  ;;  %v4406_v9 = vpop.f32.mrb[79].mxu0  ;;  %v12317_v7 = vadd.f32 %v7960_v35, %v12239_v37  ;;  %v4500_v14 = vmul.f32 %v12314_v0, %v12314_v0 }
 0xc5a   :  { %v12325_v40 = vadd.f32 %v12239_v37, %v4406_v9  ;;  %v4498_v60 = vmul.f32 %v12321_v21, %v12321_v21 }
 0xc5b   :  { %4512 = vadd.xlane.f32.xlu1 %v4491_v2  ;;  %v4501_v46 = vmul.f32 %v12317_v7, %v12317_v7 }
 0xc5c   :  { %v4499_v18 = vmul.f32 %v12325_v40, %v12325_v40 }
 0xc5d   :  { %4514 = vadd.xlane.f32.xlu0 %v4492_v24 }
 0xc5f   :  { %4516 = vadd.xlane.f32.xlu1 %v4493_v48 }
 0xc61   :  { %4458 = vadd.xlane.f32.xlu0 %v12290_v34 }
 0xc63   :  { %4460 = vadd.xlane.f32.xlu1 %v12293_v29 }
 0xc65   :  { %4454 = vadd.xlane.f32.xlu0 %v12297_v27 }
 0xc67   :  { %4456 = vadd.xlane.f32.xlu1 %v12301_v57 }
 0xc69   :  { %4518 = vadd.xlane.f32.xlu0 %v4494_v49 }
 0xc6b   :  { %4520 = vadd.xlane.f32.xlu1 %v4495_v30 }
 0xc6d   :  { %4522 = vadd.xlane.f32.xlu0 %v4496_v53 }
 0xc6f   :  { %4524 = vadd.xlane.f32.xlu1 %v4497_v41 }
 0xc71   :  { %4466 = vadd.xlane.f32.xlu0 %v12314_v0 }
 0xc73   :  { %4468 = vadd.xlane.f32.xlu1 %v12317_v7 }
 0xc75   :  { %4462 = vadd.xlane.f32.xlu0 %v12321_v21 }
 0xc77   :  { %4464 = vadd.xlane.f32.xlu1 %v12325_v40 }
 0xc79   :  { %4526 = vadd.xlane.f32.xlu0 %v4498_v60 }
 0xc7b   :  { %4528 = vadd.xlane.f32.xlu1 %v4499_v18 }
 0xc7d   :  { %4530 = vadd.xlane.f32.xlu0 %v4500_v14 }
 0xc7f   :  { %4532 = vadd.xlane.f32.xlu1 %v4501_v46 }
 0xcce   :  { %v4443_v23 = vpop.xlane.xlu0 %4442 }
 0xccf   :  { %v12337_v43 = vmul.f32 0.03125, %v4443_v23 }
 0xcd0   :  { %v4445_v19 = vpop.xlane.xlu1 %4444 }
 0xcd1   :  { %v12339_v51 = vmul.f32 0.03125, %v4445_v19  ;;  %v4552_v52 = vmul.f32 %v12337_v43, %v12337_v43 }
 0xcd2   :  { %v4439_v58 = vpop.xlane.xlu0 %4438 }
 0xcd3   :  { %v4470_v37 = vmul.f32 0.03125, %v4439_v58  ;;  %v4553_v63 = vmul.f32 %v12339_v51, %v12339_v51 }
 0xcd4   :  { %v4441_v22 = vpop.xlane.xlu1 %4440 }
 0xcd5   :  { %v4471_v26 = vmul.f32 0.03125, %v4441_v22  ;;  %v4550_v44 = vmul.f32 %v4470_v37, %v4470_v37  ;;  %v4598_v8 = vsub.f32 %v12249_v33, %v4470_v37 }
 0xcd6   :  { %v4503_v20 = vpop.xlane.xlu0 %4502 }
 0xcd7   :  { %v4534_v13 = vmul.f32 0.03125, %v4503_v20  ;;  %v4551_v42 = vmul.f32 %v4471_v26, %v4471_v26 }
 0xcd8   :  { %v4505_v11 = vpop.xlane.xlu1 %4504 }
 0xcd9   :  { %v4566_v38 = vsub.f32 %v4534_v13, %v4550_v44  ;;  %v4535_v39 = vmul.f32 0.03125, %v4505_v11  ;;  %v12364_v13 = vrot.slane %v12235_v62, %v13951_v15  ;;  %v4599_v11 = vsub.f32 %v12253_v59, %v4471_v26 }
 0xcda   :  { %v4507_v50 = vpop.xlane.xlu0 %4506 }
 0xcdb   :  { %v4582_v32 = vmax.f32 %v4566_v38, 0.0  ;;  %v4567_v55 = vsub.f32 %v4535_v39, %v4551_v42  ;;  %v4536_v31 = vmul.f32 0.03125, %v4507_v50 }
 0xcdc   :  { %v4509_v5 = vpop.xlane.xlu1 %4508 }
 0xcdd   :  { %v4614_v12 = vadd.f32 1e-05, %v4582_v32  ;;  %v4583_v10 = vmax.f32 %v4567_v55, 0.0  ;;  %v4568_v35 = vsub.f32 %v4536_v31, %v4552_v52  ;;  %v4537_v9 = vmul.f32 0.03125, %v4509_v5 }
 0xcde   :  { %v4451_v2 = vpop.xlane.xlu0 %4450  ;;  %v4600_v32 = vsub.f32 %v12242_v17, %v12337_v43 }
 0xcdf   :  { %8919 = vrsqrt.f32 %v4614_v12  ;;  %v4615_v24 = vadd.f32 1e-05, %v4583_v10  ;;  %v4584_v48 = vmax.f32 %v4568_v35, 0.0  ;;  %v4569_v49 = vsub.f32 %v4537_v9, %v4553_v63 }
 0xce0   :  { %v4453_v30 = vpop.xlane.xlu1 %4452  ;;  %v12349_v14 = vmul.f32 0.03125, %v4451_v2  ;;  %v4601_v35 = vsub.f32 %v12245_v4, %v12339_v51 }
 0xce1   :  { %8921 = vrsqrt.f32 %v4615_v24  ;;  %v4616_v53 = vadd.f32 1e-05, %v4584_v48  ;;  %v4585_v41 = vmax.f32 %v4569_v49, 0.0  ;;  %v12358_v23 = vmul.f32 0.03125, %v4453_v30 }
 0xce2   :  { %v4447_v6 = vpop.xlane.xlu0 %4446  ;;  %v4556_v33 = vmul.f32 %v12349_v14, %v12349_v14 }
 0xce3   :  { %8923 = vrsqrt.f32 %v4616_v53  ;;  %v4617_v47 = vadd.f32 1e-05, %v4585_v41  ;;  %v12345_v25 = vmul.f32 0.03125, %v4447_v6  ;;  %v4557_v55 = vmul.f32 %v12358_v23, %v12358_v23 }
 0xce4   :  { %v4449_v60 = vpop.xlane.xlu1 %4448 }
 0xce5   :  { %8925 = vrsqrt.f32 %v4617_v47  ;;  %v12347_v54 = vmul.f32 0.03125, %v4449_v60  ;;  %v4554_v46 = vmul.f32 %v12345_v25, %v12345_v25 }
 0xce6   :  { %v4511_v18 = vpop.xlane.xlu0 %4510 }
 0xce7   :  { %v4538_v61 = vmul.f32 0.03125, %v4511_v18  ;;  %v4555_v22 = vmul.f32 %v12347_v54, %v12347_v54 }
 0xce8   :  { %v4513_v19 = vpop.xlane.xlu1 %4512 }
 0xce9   :  { %v8920_v58 = vpop.eup %8919  ;;  %v4570_v20 = vsub.f32 %v4538_v61, %v4554_v46  ;;  %v4539_v44 = vmul.f32 0.03125, %v4513_v19 }
 0xcea   :  { %v4515_v42 = vpop.xlane.xlu0 %4514  ;;  %v4646_v38 = vmul.f32 %v8920_v58, %v4598_v8 }
 0xceb   :  { %v8922_v39 = vpop.eup %8921  ;;  %v4586_v37 = vmax.f32 %v4570_v20, 0.0  ;;  %v4571_v50 = vsub.f32 %v4539_v44, %v4555_v22  ;;  %v4540_v52 = vmul.f32 0.03125, %v4515_v42 }
 0xcec   :  { %v4517_v31 = vpop.xlane.xlu1 %4516  ;;  %v4647_v62 = vmul.f32 %v8922_v39, %v4599_v11  ;;  %v4666_v63 = vmul.f32 %v12355_v45, %v4646_v38 }
 0xced   :  { %v8924_v59 = vpop.eup %8923  ;;  %v4618_v26 = vadd.f32 1e-05, %v4586_v37  ;;  %v4587_v5 = vmax.f32 %v4571_v50, 0.0  ;;  %v4572_v12 = vsub.f32 %v4540_v52, %v4556_v33  ;;  %v4541_v10 = vmul.f32 0.03125, %v4517_v31 }
 0xcee   :  { %v4648_v9 = vmul.f32 %v8924_v59, %v4600_v32  ;;  %v4459_v2 = vpop.xlane.xlu0 %4458  ;;  %v4667_v24 = vmul.f32 %v12355_v45, %v4647_v62  ;;  %v12378_v17 = vadd.f32 %v12364_v13, %v4666_v63  ;;  %v4602_v50 = vsub.f32 %v12273_v56, %v12345_v25 }
 0xcef   :  { %v8926_v43 = vpop.eup %8925  ;;  %8927 = vrsqrt.f32 %v4618_v26  ;;  %v4619_v48 = vadd.f32 1e-05, %v4587_v5  ;;  %v4588_v49 = vmax.f32 %v4572_v12, 0.0  ;;  %v4573_v30 = vsub.f32 %v4541_v10, %v4557_v55 }
 0xcf0   :  { %v4668_v53 = vmul.f32 %v12355_v45, %v4648_v9  ;;  %v4649_v41 = vmul.f32 %v8926_v43, %v4601_v35  ;;  %v4461_v6 = vpop.xlane.xlu1 %4460  ;;  %v12382_v47 = vadd.f32 %v12364_v13, %v4667_v24  ;;  %v7430_v46 = vmul.f32 -1.442695, %v12378_v17 }
 0xcf1   :  { %8929 = vrsqrt.f32 %v4619_v48  ;;  %v4620_v4 = vadd.f32 1e-05, %v4588_v49  ;;  %v4589_v51 = vmax.f32 %v4573_v30, 0.0  ;;  %v12397_v11 = vmul.f32 0.03125, %v4459_v2 }
 0xcf2   :  { %v4669_v60 = vmul.f32 %v12355_v45, %v4649_v41  ;;  %v4455_v18 = vpop.xlane.xlu0 %4454  ;;  %8931 = vpow2.f32 %v7430_v46  ;;  %v7431_v58 = vmul.f32 -1.442695, %v12382_v47  ;;  %v12390_v22 = vadd.f32 %v12364_v13, %v4668_v53 }
 0xcf3   :  { %v4621_v61 = vadd.f32 1e-05, %v4589_v51  ;;  %v12386_v8 = vmul.f32 0.03125, %v4455_v18  ;;  %8933 = vrsqrt.f32 %v4620_v4  ;;  %v12405_v52 = vmul.f32 0.03125, %v4461_v6 }
 0xcf4   :  { %v4457_v19 = vpop.xlane.xlu1 %4456  ;;  %v12395_v44 = vadd.f32 %v12364_v13, %v4669_v60  ;;  %8935 = vpow2.f32 %v7431_v58  ;;  %v7432_v38 = vmul.f32 -1.442695, %v12390_v22  ;;  %v4603_v59 = vsub.f32 %v12277_v3, %v12347_v54 }
 0xcf5   :  { %v12392_v20 = vmul.f32 0.03125, %v4457_v19  ;;  %8937 = vrsqrt.f32 %v4621_v61  ;;  %v4558_v39 = vmul.f32 %v12386_v8, %v12386_v8  ;;  %v4560_v56 = vmul.f32 %v12397_v11, %v12397_v11 }
 0xcf6   :  { %v4519_v42 = vpop.xlane.xlu0 %4518  ;;  %v7433_v37 = vmul.f32 -1.442695, %v12395_v44  ;;  %8939 = vpow2.f32 %v7432_v38  ;;  %v4561_v9 = vmul.f32 %v12405_v52, %v12405_v52  ;;  %v4604_v61 = vsub.f32 %v12266_v28, %v12349_v14 }
 0xcf7   :  { %v4542_v33 = vmul.f32 0.03125, %v4519_v42  ;;  %v4559_v31 = vmul.f32 %v12392_v20, %v12392_v20  ;;  %v4605_v19 = vsub.f32 %v12269_v36, %v12358_v23  ;;  %v4609_v36 = vsub.f32 %v12293_v29, %v12405_v52 }
 0xcf8   :  { %v4521_v32 = vpop.xlane.xlu1 %4520  ;;  %8941 = vpow2.f32 %v7433_v37 }
 0xcf9   :  { %v8928_v55 = vpop.eup %8927  ;;  %v4574_v62 = vsub.f32 %v4542_v33, %v4558_v39  ;;  %v4543_v63 = vmul.f32 0.03125, %v4521_v32  ;;  %v4608_v32 = vsub.f32 %v12290_v34, %v12397_v11 }
 0xcfa   :  { %v4523_v26 = vpop.xlane.xlu0 %4522  ;;  %v4650_v5 = vmul.f32 %v8928_v55, %v4602_v50 }
 0xcfb   :  { %v8930_v12 = vpop.eup %8929  ;;  %v4590_v25 = vmax.f32 %v4574_v62, 0.0  ;;  %v4575_v10 = vsub.f32 %v4543_v63, %v4559_v31  ;;  %v4544_v35 = vmul.f32 0.03125, %v4523_v26 }
 0xcfc   :  { %v4525_v2 = vpop.xlane.xlu1 %4524  ;;  %v4651_v24 = vmul.f32 %v8930_v12, %v4603_v59  ;;  %v4670_v43 = vmul.f32 %v12355_v45, %v4650_v5  ;;  %v8932_v54 = vpop.eup %8931 }
 0xcfd   :  { %v4622_v48 = vadd.f32 1e-05, %v4590_v25  ;;  %v4591_v49 = vmax.f32 %v4575_v10, 0.0  ;;  %v4576_v30 = vsub.f32 %v4544_v35, %v4560_v56  ;;  %v4545_v3 = vmul.f32 0.03125, %v4525_v2  ;;  %v8934_v4 = vpop.eup %8933 }
 0xcfe   :  { %v4467_v53 = vpop.xlane.xlu0 %4466  ;;  %v4671_v41 = vmul.f32 %v12355_v45, %v4651_v24  ;;  %v12418_v6 = vadd.f32 %v12364_v13, %v4670_v43  ;;  %v8936_v46 = vpop.eup %8935  ;;  %v4750_v42 = vadd.f32 1.0, %v8932_v54  ;;  %v4652_v28 = vmul.f32 %v8934_v4, %v4604_v61 }
 0xcff   :  { %8943 = vrsqrt.f32 %v4622_v48  ;;  %v4623_v51 = vadd.f32 1e-05, %v4591_v49  ;;  %v4592_v60 = vmax.f32 %v4576_v30, 0.0  ;;  %v4577_v18 = vsub.f32 %v4545_v3, %v4561_v9  ;;  %v8938_v38 = vpop.eup %8937 }
 0xd00   :  { %v4469_v58 = vpop.xlane.xlu1 %4468  ;;  %v12425_v37 = vadd.f32 %v12364_v13, %v4671_v41  ;;  %v8940_v50 = vpop.eup %8939  ;;  %v4751_v31 = vadd.f32 1.0, %v8936_v46  ;;  %v7434_v62 = vmul.f32 -1.442695, %v12418_v6  ;;  %v4653_v25 = vmul.f32 %v8938_v38, %v4605_v19 }
 0xd01   :  { %8945 = vrsqrt.f32 %v4623_v51  ;;  %v4624_v39 = vadd.f32 1e-05, %v4592_v60  ;;  %v4593_v33 = vmax.f32 %v4577_v18, 0.0  ;;  %v4752_v26 = vadd.f32 1.0, %v8940_v50 }
 0xd02   :  { %v4463_v55 = vpop.xlane.xlu0 %4462  ;;  %8947 = vrcp.f32 %v4750_v42  ;;  %v8942_v14 = vpop.eup %8941  ;;  %v7435_v56 = vmul.f32 -1.442695, %v12425_v37  ;;  %v4606_v10 = vsub.f32 %v12297_v27, %v12386_v8  ;;  %v12439_v35 = vmul.f32 0.03125, %v4467_v53 }
 0xd03   :  { %8949 = vrsqrt.f32 %v4624_v39  ;;  %v4625_v23 = vadd.f32 1e-05, %v4593_v33  ;;  %v12432_v63 = vmul.f32 0.03125, %v4463_v55  ;;  %v4753_v5 = vadd.f32 1.0, %v8942_v14 }
 0xd04   :  { %v4465_v59 = vpop.xlane.xlu1 %4464  ;;  %8951 = vrcp.f32 %v4751_v31  ;;  %v4672_v2 = vmul.f32 %v12355_v45, %v4652_v28  ;;  %v12442_v24 = vmul.f32 0.03125, %v4469_v58  ;;  %v4607_v49 = vsub.f32 %v12301_v57, %v12392_v20 }
 0xd05   :  { %8953 = vrsqrt.f32 %v4625_v23  ;;  %v12434_v12 = vmul.f32 0.03125, %v4465_v59  ;;  %v4562_v43 = vmul.f32 %v12432_v63, %v12432_v63  ;;  %v4673_v27 = vmul.f32 %v12355_v45, %v4653_v25 }
 0xd06   :  { %v4527_v9 = vpop.xlane.xlu0 %4526  ;;  %8955 = vrcp.f32 %v4752_v26  ;;  %v12450_v8 = vadd.f32 %v12364_v13, %v4672_v2  ;;  %v4564_v4 = vmul.f32 %v12439_v35, %v12439_v35  ;;  %v4565_v46 = vmul.f32 %v12442_v24, %v12442_v24 }
 0xd07   :  { %v4546_v48 = vmul.f32 0.03125, %v4527_v9  ;;  %8957 = vrcp.f32 %v4753_v5  ;;  %v4563_v54 = vmul.f32 %v12434_v12, %v12434_v12  ;;  %v12457_v57 = vadd.f32 %v12364_v13, %v4673_v27 }
 0xd08   :  { %v4529_v30 = vpop.xlane.xlu1 %4528  ;;  %8959 = vpow2.f32 %v7434_v62  ;;  %v7436_v20 = vmul.f32 -1.442695, %v12450_v8 }
 0xd09   :  { %v8944_v3 = vpop.eup %8943  ;;  %v4578_v53 = vsub.f32 %v4546_v48, %v4562_v43  ;;  %v4547_v41 = vmul.f32 0.03125, %v4529_v30  ;;  %8961 = vpow2.f32 %v7435_v56  ;;  %v7437_v39 = vmul.f32 -1.442695, %v12457_v57 }
 0xd0a   :  { %v4531_v51 = vpop.xlane.xlu0 %4530  ;;  %v4654_v60 = vmul.f32 %v8944_v3, %v4606_v10  ;;  %8963 = vpow2.f32 %v7436_v20 }
 0xd0b   :  { %v8946_v18 = vpop.eup %8945  ;;  %v4594_v61 = vmax.f32 %v4578_v53, 0.0  ;;  %v4579_v19 = vsub.f32 %v4547_v41, %v4563_v54  ;;  %v4548_v58 = vmul.f32 0.03125, %v4531_v51  ;;  %8965 = vpow2.f32 %v7437_v39 }
 0xd0c   :  { %v8948_v42 = vpop.eup %8947  ;;  %v4533_v38 = vpop.xlane.xlu1 %4532  ;;  %v4655_v33 = vmul.f32 %v8946_v18, %v4607_v49  ;;  %v4674_v50 = vmul.f32 %v12355_v45, %v4654_v60  ;;  %v4611_v39 = vsub.f32 %v12325_v40, %v12434_v12 }
 0xd0d   :  { %v8950_v55 = vpop.eup %8949  ;;  %v4626_v31 = vadd.f32 1e-05, %v4594_v61  ;;  %v4595_v28 = vmax.f32 %v4579_v19, 0.0  ;;  %v4580_v14 = vsub.f32 %v4548_v58, %v4564_v4  ;;  %v4549_v23 = vmul.f32 0.03125, %v4533_v38 }
 0xd0e   :  { %v8952_v62 = vpop.eup %8951  ;;  %v12465_v59 = vmul.f32 %v8948_v42, %v12378_v17  ;;  %v4675_v26 = vmul.f32 %v12355_v45, %v4655_v33  ;;  %v12469_v5 = vadd.f32 %v12364_v13, %v4674_v50  ;;  %v4656_v49 = vmul.f32 %v8950_v55, %v4608_v32 }
 0xd0f   :  { %v8954_v56 = vpop.eup %8953  ;;  %8967 = vrsqrt.f32 %v4626_v31  ;;  %v4627_v25 = vadd.f32 1e-05, %v4595_v28  ;;  %v4596_v10 = vmax.f32 %v4580_v14, 0.0  ;;  %v4581_v9 = vsub.f32 %v4549_v23, %v4565_v46 }
 0xd10   :  { %13960 = vst [vmem:[#allocation51_spill] sm:$0xff] %v12465_v59  ;;  %v8956_v2 = vpop.eup %8955  ;;  %v12472_v43 = vmul.f32 %v8952_v62, %v12382_v47  ;;  %v12475_v48 = vadd.f32 %v12364_v13, %v4675_v26  ;;  %v7438_v17 = vmul.f32 -1.442695, %v12469_v5  ;;  %v4657_v32 = vmul.f32 %v8954_v56, %v4609_v36 }
 0xd11   :  { %v8958_v30 = vpop.eup %8957  ;;  %8969 = vrsqrt.f32 %v4627_v25  ;;  %v4628_v27 = vadd.f32 1e-05, %v4596_v10  ;;  %v4597_v3 = vmax.f32 %v4581_v9, 0.0  ;;  %v12482_v54 = vmul.f32 %v8956_v2, %v12390_v22 }
 0xd12   :  { %13961 = vst [vmem:[#allocation52_spill] sm:$0xff] %v12472_v43  ;;  %v8960_v53 = vpop.eup %8959  ;;  %v4831_v47 = vpack.c.bf16 %v12472_v43, %v12465_v59  ;;  %v12487_v41 = vmul.f32 %v8958_v30, %v12395_v44  ;;  %8971 = vpow2.f32 %v7438_v17  ;;  %v7439_v4 = vmul.f32 -1.442695, %v12475_v48 }
 0xd13   :  { %13962 = vst [vmem:[#allocation53_spill] sm:$0xff] %v12482_v54  ;;  %v8962_v51 = vpop.eup %8961  ;;  %8973 = vrsqrt.f32 %v4628_v27  ;;  %v4629_v34 = vadd.f32 1e-05, %v4597_v3  ;;  %v4754_v11 = vadd.f32 1.0, %v8960_v53  ;;  %v4676_v44 = vmul.f32 %v12355_v45, %v4656_v49 }
 0xd14   :  { %13963 = vst [vmem:[#allocation54_spill] sm:$0xff] %v12487_v41  ;;  %7977 = vmatprep.mubr.bf16.mxu1 %v4831_v47  ;;  %v4832_v22 = vpack.c.bf16 %v12487_v41, %v12482_v54  ;;  %v4755_v20 = vadd.f32 1.0, %v8962_v51  ;;  %8975 = vpow2.f32 %v7439_v4  ;;  %v4677_v60 = vmul.f32 %v12355_v45, %v4657_v32  ;;  %v8964_v18 = vpop.eup %8963 }
 0xd15   :  { %8977 = vrsqrt.f32 %v4629_v34  ;;  %v12498_v46 = vadd.f32 %v12364_v13, %v4676_v44  ;;  %v4756_v29 = vadd.f32 1.0, %v8964_v18  ;;  %v8966_v36 = vpop.eup %8965  ;;  %v4610_v61 = vsub.f32 %v12321_v21, %v12432_v63 }
 0xd16   :  { %7978 = vmatmul.mubr.bf16.vlgmr.msra.gmra.mrb[64].mxu1 %v4832_v22  ;;  %8979 = vrcp.f32 %v4754_v11  ;;  %v12501_v52 = vadd.f32 %v12364_v13, %v4677_v60  ;;  %v4757_v42 = vadd.f32 1.0, %v8966_v36  ;;  %v4612_v31 = vsub.f32 %v12314_v0, %v12439_v35 }
 0xd17   :  { %8981 = vrcp.f32 %v4755_v20  ;;  %v7440_v19 = vmul.f32 -1.442695, %v12498_v46  ;;  %v4613_v62 = vsub.f32 %v12317_v7, %v12442_v24 }
 0xd18   :  { %8983 = vrcp.f32 %v4756_v29  ;;  %v7441_v38 = vmul.f32 -1.442695, %v12501_v52 }
 0xd19   :  { %v8968_v58 = vpop.eup %8967  ;;  %8985 = vpow2.f32 %v7440_v19 }
 0xd1a   :  { %v4658_v33 = vmul.f32 %v8968_v58, %v4610_v61  ;;  %8987 = vrcp.f32 %v4757_v42 }
 0xd1b   :  { %v8970_v50 = vpop.eup %8969  ;;  %8989 = vpow2.f32 %v7441_v38 }
 0xd1c   :  { %v8972_v55 = vpop.eup %8971  ;;  %v4659_v21 = vmul.f32 %v8970_v50, %v4611_v39  ;;  %v4678_v63 = vmul.f32 %v12355_v45, %v4658_v33 }
 0xd1d   :  { %v8974_v28 = vpop.eup %8973  ;;  %v4758_v14 = vadd.f32 1.0, %v8972_v55 }
 0xd1e   :  { %v8976_v23 = vpop.eup %8975  ;;  %v4679_v40 = vmul.f32 %v12355_v45, %v4659_v21  ;;  %v12516_v12 = vadd.f32 %v12364_v13, %v4678_v63  ;;  %v4660_v26 = vmul.f32 %v8974_v28, %v4612_v31 }
 0xd1f   :  { %v8978_v56 = vpop.eup %8977  ;;  %v4759_v25 = vadd.f32 1.0, %v8976_v23  ;;  %8991 = vrcp.f32 %v4758_v14 }
 0xd20   :  { %v8980_v0 = vpop.eup %8979  ;;  %v4699_v35 = vadd.f32 %v12364_v13, %v4679_v40  ;;  %v7442_v10 = vmul.f32 -1.442695, %v12516_v12  ;;  %v4661_v9 = vmul.f32 %v8978_v56, %v4613_v62  ;;  %v4680_v2 = vmul.f32 %v12355_v45, %v4660_v26  ;;  %v12572_v40 = vld [vmem:[%s13785_s13] sm:$0x7] }
 0xd21   :  { %v8982_v17 = vpop.eup %8981  ;;  %v12522_v7 = vmul.f32 %v8980_v0, %v12418_v6  ;;  %8993 = vrcp.f32 %v4759_v25 }
 0xd22   :  { %v12525_v24 = vmul.f32 %v8982_v17, %v12425_v37  ;;  %8995 = vpow2.f32 %v7442_v10  ;;  %v7443_v49 = vmul.f32 -1.442695, %v4699_v35  ;;  %v4681_v30 = vmul.f32 %v12355_v45, %v4661_v9  ;;  %v8984_v27 = vpop.eup %8983 }
 0xd23   :  { %13964 = vst [vmem:[#allocation46_spill] sm:$0xff] %v12522_v7  ;;  %v4700_v3 = vadd.f32 %v12364_v13, %v4680_v2  ;;  %v8986_v53 = vpop.eup %8985  ;;  %v12533_v37 = vmul.f32 %v8984_v27, %v12450_v8 }
 0xd24   :  { %13965 = vst [vmem:[#allocation56_spill] sm:$0xff] %v12525_v24  ;;  %v4833_v47 = vpack.c.bf16 %v12525_v24, %v12522_v7  ;;  %8997 = vpow2.f32 %v7443_v49  ;;  %v4701_v4 = vadd.f32 %v12364_v13, %v4681_v30  ;;  %v8988_v6 = vpop.eup %8987  ;;  %v4760_v51 = vadd.f32 1.0, %v8986_v53 }
 0xd25   :  { %v7444_v34 = vmul.f32 -1.442695, %v4700_v3  ;;  %v8990_v11 = vpop.eup %8989  ;;  %13966 = vst [vmem:[#allocation57_spill] sm:$0xff] %v12533_v37  ;;  %v12536_v45 = vmul.f32 %v8988_v6, %v12457_v57 }
 0xd26   :  { %7981 = vmatprep.mubr.bf16.mxu1 %v4833_v47  ;;  %v7445_v32 = vmul.f32 -1.442695, %v4701_v4  ;;  %v4761_v22 = vadd.f32 1.0, %v8990_v11  ;;  %8999 = vrcp.f32 %v4760_v51 }
 0xd27   :  { %13967 = vst [vmem:[#allocation58_spill] sm:$0xff] %v12536_v45  ;;  %v4834_v20 = vpack.c.bf16 %v12536_v45, %v12533_v37  ;;  %9001 = vpow2.f32 %v7444_v34 }
 0xd28   :  { %9003 = vrcp.f32 %v4761_v22 }
 0xd29   :  { %v8992_v44 = vpop.eup %8991  ;;  %7982 = vmatmul.mubr.bf16.gmra.mrb[68].mxu1 %v4834_v20  ;;  %9005 = vpow2.f32 %v7445_v32 }
 0xd2a   :  { %v12541_v18 = vmul.f32 %v8992_v44, %v12469_v5 }
 0xd2b   :  { %v8994_v13 = vpop.eup %8993 }
 0xd2c   :  { %v8996_v60 = vpop.eup %8995  ;;  %13968 = vst [vmem:[#allocation59_spill] sm:$0xff] %v12541_v18  ;;  %v12544_v8 = vmul.f32 %v8994_v13, %v12475_v48 }
 0xd2d   :  { %v4762_v57 = vadd.f32 1.0, %v8996_v60 }
 0xd2e   :  { %13969 = vst [vmem:[#allocation60_spill] sm:$0xff] %v12544_v8  ;;  %v8998_v29 = vpop.eup %8997  ;;  %v4835_v36 = vpack.c.bf16 %v12544_v8, %v12541_v18 }
 0xd2f   :  { %v4763_v61 = vadd.f32 1.0, %v8998_v29  ;;  %9007 = vrcp.f32 %v4762_v57 }
 0xd30   :  { %7985 = vmatprep.mubr.bf16.mxu1 %v4835_v36  ;;  %v9000_v19 = vpop.eup %8999 }
 0xd31   :  { %9009 = vrcp.f32 %v4763_v61  ;;  %v9002_v58 = vpop.eup %9001  ;;  %v12549_v5 = vmul.f32 %v9000_v19, %v12498_v46 }
 0xd32   :  { %v9004_v42 = vpop.eup %9003  ;;  %v4764_v38 = vadd.f32 1.0, %v9002_v58 }
 0xd33   :  { %v9006_v39 = vpop.eup %9005  ;;  %13970 = vst [vmem:[#allocation61_spill] sm:$0xff] %v12549_v5  ;;  %v12552_v48 = vmul.f32 %v9004_v42, %v12501_v52 }
 0xd34   :  { %v4765_v33 = vadd.f32 1.0, %v9006_v39  ;;  %9011 = vrcp.f32 %v4764_v38 }
 0xd35   :  { %13971 = vst [vmem:[#allocation62_spill] sm:$0xff] %v12552_v48  ;;  %v4836_v50 = vpack.c.bf16 %v12552_v48, %v12549_v5 }
 0xd36   :  { %9013 = vrcp.f32 %v4765_v33 }
 0xd37   :  { %7986 = vmatmul.mubr.bf16.gmra.mrb[72].mxu1 %v4836_v50 }
 0xd39   :  { %v9008_v55 = vpop.eup %9007 }
 0xd3a   :  { %v12557_v21 = vmul.f32 %v9008_v55, %v12516_v12  ;;  %v12576_v12 = vrot.slane %v12572_v40, %v13949_v16 }
 0xd3b   :  { %v9010_v31 = vpop.eup %9009 }
 0xd3c   :  { %13972 = vst [vmem:[#allocation63_spill] sm:$0xff] %v12557_v21  ;;  %v12559_v63 = vmul.f32 %v9010_v31, %v4699_v35 }
 0xd3e   :  { %13973 = vst [vmem:[#allocation64_spill] sm:$0xff] %v12559_v63  ;;  %v4837_v46 = vpack.c.bf16 %v12559_v63, %v12557_v21  ;;  %v9012_v28 = vpop.eup %9011 }
 0xd3f   :  { %v12563_v14 = vmul.f32 %v9012_v28, %v4700_v3 }
 0xd40   :  { %7989 = vmatprep.mubr.bf16.mxu1 %v4837_v46  ;;  %v9014_v52 = vpop.eup %9013 }
 0xd41   :  { %13974 = vst [vmem:[#allocation65_spill] sm:$0xff] %v12563_v14  ;;  %v12565_v23 = vmul.f32 %v9014_v52, %v4701_v4 }
 0xd43   :  { %13975 = vst [vmem:[#allocation66_spill] sm:$0xff] %v12565_v23  ;;  %v4838_v62 = vpack.c.bf16 %v12565_v23, %v12563_v14 }
 0xd45   :  { %7990 = vmatmul.mubr.bf16.gmra.mrb[76].mxu1 %v4838_v62 }
 0xde9   :  { %v7979_v26 = vpop.f32.mrb[64].mxu1 }
 0xdea   :  { %v12579_v56 = vadd.f32 %v7979_v26, %v12576_v12  ;;  %v4925_v25 = vpop.f32.mrb[65].mxu1 }
 0xdeb   :  { %v7980_v0 = vpop.f32.mrb[66].mxu1  ;;  %v12586_v9 = vadd.f32 %v4925_v25, %v12576_v12 }
 0xdec   :  { %v12582_v35 = vadd.f32 %v7980_v0, %v12576_v12  ;;  %v4928_v10 = vpop.f32.mrb[67].mxu1  ;;  %4992 = vadd.xlane.f32.xlu0 %v12579_v56  ;;  %v5038_v30 = vmul.f32 %v12579_v56, %v12579_v56  ;;  %v8231_v0 = vld [vmem:[#allocation19 + $0x40] sm:$0xff]  }
 0xded   :  { %v12590_v2 = vadd.f32 %v4928_v10, %v12576_v12  ;;  %v5036_v17 = vmul.f32 %v12586_v9, %v12586_v9  ;;  %7993 = vmatprep.subr.bf16.mxu1 %v8231_v0 }
 0xdee   :  { %4994 = vadd.xlane.f32.xlu1 %v12582_v35  ;;  %v5039_v27 = vmul.f32 %v12582_v35, %v12582_v35  ;;  %7994 = vmatpush3.bf16.msra.mxu1 %v8231_v0 }
 0xdef   :  { %v5037_v49 = vmul.f32 %v12590_v2, %v12590_v2 }
 0xdf0   :  { %4988 = vadd.xlane.f32.xlu0 %v12586_v9 }
 0xdf2   :  { %4990 = vadd.xlane.f32.xlu1 %v12590_v2 }
 0xdf4   :  { %5052 = vadd.xlane.f32.xlu0 %v5036_v17 }
 0xdf6   :  { %5054 = vadd.xlane.f32.xlu1 %v5037_v49 }
 0xdf8   :  { %5056 = vadd.xlane.f32.xlu0 %v5038_v30  ;;  %v8233_v30 = vld [vmem:[#allocation19 + $0x50] sm:$0xff]  }
 0xdfa   :  { %5058 = vadd.xlane.f32.xlu1 %v5039_v27  ;;  %v8234_v27 = vld [vmem:[#allocation19 + $0x58] sm:$0xff]  }
 0xdfc   :  { %v7983_v3 = vpop.f32.mrb[68].mxu1 }
 0xdfd   :  { %v12603_v53 = vadd.f32 %v7983_v3, %v12576_v12  ;;  %v4941_v47 = vpop.f32.mrb[69].mxu1  ;;  %v8235_v3 = vld [vmem:[#allocation19 + $0x60] sm:$0xff]  }
 0xdfe   :  { %v7984_v4 = vpop.f32.mrb[70].mxu1  ;;  %v12610_v34 = vadd.f32 %v4941_v47, %v12576_v12  ;;  %v8236_v47 = vld [vmem:[#allocation19 + $0x68] sm:$0xff]  }
 0xdff   :  { %v12606_v6 = vadd.f32 %v7984_v4, %v12576_v12  ;;  %v4944_v51 = vpop.f32.mrb[71].mxu1  ;;  %5000 = vadd.xlane.f32.xlu0 %v12603_v53  ;;  %v5042_v20 = vmul.f32 %v12603_v53, %v12603_v53  ;;  %v8237_v4 = vld [vmem:[#allocation19 + $0x70] sm:$0xff]  }
 0xe00   :  { %v12614_v11 = vadd.f32 %v4944_v51, %v12576_v12  ;;  %v5040_v32 = vmul.f32 %v12610_v34, %v12610_v34  ;;  %v8238_v51 = vld [vmem:[#allocation19 + $0x78] sm:$0xff]  }
 0xe01   :  { %5002 = vadd.xlane.f32.xlu1 %v12606_v6  ;;  %v5043_v57 = vmul.f32 %v12606_v6, %v12606_v6 }
 0xe02   :  { %v5041_v22 = vmul.f32 %v12614_v11, %v12614_v11 }
 0xe03   :  { %4996 = vadd.xlane.f32.xlu0 %v12610_v34 }
 0xe05   :  { %4998 = vadd.xlane.f32.xlu1 %v12614_v11 }
 0xe07   :  { %5060 = vadd.xlane.f32.xlu0 %v5040_v32 }
 0xe09   :  { %5062 = vadd.xlane.f32.xlu1 %v5041_v22 }
 0xe0a   :  { %v7987_v44 = vpop.f32.mrb[72].mxu1 }
 0xe0b   :  { %5064 = vadd.xlane.f32.xlu0 %v5042_v20  ;;  %v12625_v13 = vadd.f32 %v7987_v44, %v12576_v12  ;;  %v4957_v60 = vpop.f32.mrb[73].mxu1 }
 0xe0c   :  { %v7988_v29 = vpop.f32.mrb[74].mxu1  ;;  %v12634_v19 = vadd.f32 %v4957_v60, %v12576_v12 }
 0xe0d   :  { %5066 = vadd.xlane.f32.xlu1 %v5043_v57  ;;  %v12630_v36 = vadd.f32 %v7988_v29, %v12576_v12  ;;  %v4960_v61 = vpop.f32.mrb[75].mxu1  ;;  %v5046_v33 = vmul.f32 %v12625_v13, %v12625_v13 }
 0xe0e   :  { %v12638_v58 = vadd.f32 %v4960_v61, %v12576_v12  ;;  %v5044_v42 = vmul.f32 %v12634_v19, %v12634_v19 }
 0xe0f   :  { %5008 = vadd.xlane.f32.xlu0 %v12625_v13  ;;  %v5047_v46 = vmul.f32 %v12630_v36, %v12630_v36 }
 0xe10   :  { %v5045_v38 = vmul.f32 %v12638_v58, %v12638_v58 }
 0xe11   :  { %5010 = vadd.xlane.f32.xlu1 %v12630_v36 }
 0xe13   :  { %5004 = vadd.xlane.f32.xlu0 %v12634_v19 }
 0xe15   :  { %5006 = vadd.xlane.f32.xlu1 %v12638_v58 }
 0xe17   :  { %5068 = vadd.xlane.f32.xlu0 %v5044_v42 }
 0xe18   :  { %v7991_v39 = vpop.f32.mrb[76].mxu1 }
 0xe19   :  { %5070 = vadd.xlane.f32.xlu1 %v5045_v38  ;;  %v4973_v50 = vpop.f32.mrb[77].mxu1  ;;  %v12649_v31 = vadd.f32 %v7991_v39, %v12576_v12 }
 0xe1a   :  { %v7992_v55 = vpop.f32.mrb[78].mxu1  ;;  %v12658_v62 = vadd.f32 %v4973_v50, %v12576_v12 }
 0xe1b   :  { %5072 = vadd.xlane.f32.xlu0 %v5046_v33  ;;  %v4976_v28 = vpop.f32.mrb[79].mxu1  ;;  %v12654_v52 = vadd.f32 %v7992_v55, %v12576_v12  ;;  %v5050_v17 = vmul.f32 %v12649_v31, %v12649_v31 }
 0xe1c   :  { %v12662_v26 = vadd.f32 %v4976_v28, %v12576_v12  ;;  %v5048_v25 = vmul.f32 %v12658_v62, %v12658_v62  ;;  %v8232_v12 = vld [vmem:[#allocation19 + $0x48] sm:$0xff]  }
 0xe1d   :  { %5074 = vadd.xlane.f32.xlu1 %v5047_v46  ;;  %v5051_v49 = vmul.f32 %v12654_v52, %v12654_v52  ;;  %7995 = vmatprep.subr.bf16.mxu1 %v8232_v12 }
 0xe1e   :  { %v5049_v10 = vmul.f32 %v12662_v26, %v12662_v26  ;;  %7996 = vmatpush3.bf16.msra.mxu1 %v8232_v12 }
 0xe1f   :  { %5016 = vadd.xlane.f32.xlu0 %v12649_v31  ;;  %7997 = vmatprep.subr.bf16.mxu1 %v8233_v30 }
 0xe21   :  { %5018 = vadd.xlane.f32.xlu1 %v12654_v52 }
 0xe22   :  { %7998 = vmatpush3.bf16.msra.mxu1 %v8233_v30 }
 0xe23   :  { %5012 = vadd.xlane.f32.xlu0 %v12658_v62  ;;  %7999 = vmatprep.subr.bf16.mxu1 %v8234_v27 }
 0xe25   :  { %5014 = vadd.xlane.f32.xlu1 %v12662_v26 }
 0xe26   :  { %8000 = vmatpush3.bf16.msra.mxu1 %v8234_v27 }
 0xe27   :  { %5076 = vadd.xlane.f32.xlu0 %v5048_v25  ;;  %8001 = vmatprep.subr.bf16.mxu1 %v8235_v3 }
 0xe29   :  { %5078 = vadd.xlane.f32.xlu1 %v5049_v10 }
 0xe2a   :  { %8002 = vmatpush3.bf16.msra.mxu1 %v8235_v3 }
 0xe2b   :  { %5080 = vadd.xlane.f32.xlu0 %v5050_v17  ;;  %8003 = vmatprep.subr.bf16.mxu1 %v8236_v47 }
 0xe2d   :  { %5082 = vadd.xlane.f32.xlu1 %v5051_v49 }
 0xe2e   :  { %8004 = vmatpush3.bf16.msra.mxu1 %v8236_v47 }
 0xe2f   :  { %8005 = vmatprep.subr.bf16.mxu1 %v8237_v4 }
 0xe32   :  { %8006 = vmatpush3.bf16.msra.mxu1 %v8237_v4 }
 0xe33   :  { %8007 = vmatprep.subr.bf16.mxu1 %v8238_v51 }
 0xe36   :  { %8008 = vmatpush3.bf16.msra.mxu1 %v8238_v51 }
 0xe79   :  { %v4993_v32 = vpop.xlane.xlu0 %4992 }
 0xe7a   :  { %v5022_v61 = vmul.f32 0.03125, %v4993_v32 }
 0xe7b   :  { %v4995_v22 = vpop.xlane.xlu1 %4994 }
 0xe7c   :  { %v12674_v39 = vmul.f32 0.03125, %v4995_v22  ;;  %v5102_v25 = vmul.f32 %v5022_v61, %v5022_v61 }
 0xe7d   :  { %v4989_v20 = vpop.xlane.xlu0 %4988 }
 0xe7e   :  { %v5020_v44 = vmul.f32 0.03125, %v4989_v20  ;;  %v5103_v12 = vmul.f32 %v12674_v39, %v12674_v39 }
 0xe7f   :  { %v4991_v60 = vpop.xlane.xlu1 %4990 }
 0xe80   :  { %v5021_v57 = vmul.f32 0.03125, %v4991_v60  ;;  %v5100_v42 = vmul.f32 %v5020_v44, %v5020_v44 }
 0xe81   :  { %v5053_v29 = vpop.xlane.xlu0 %5052 }
 0xe82   :  { %v5084_v38 = vmul.f32 0.03125, %v5053_v29  ;;  %v5101_v50 = vmul.f32 %v5021_v57, %v5021_v57 }
 0xe83   :  { %v5055_v33 = vpop.xlane.xlu1 %5054 }
 0xe84   :  { %v5116_v55 = vsub.f32 %v5084_v38, %v5100_v42  ;;  %v5085_v46 = vmul.f32 0.03125, %v5055_v33 }
 0xe85   :  { %v5057_v28 = vpop.xlane.xlu0 %5056 }
 0xe86   :  { %v5132_v0 = vmax.f32 %v5116_v55, 0.0  ;;  %v5117_v10 = vsub.f32 %v5085_v46, %v5101_v50  ;;  %v5086_v17 = vmul.f32 0.03125, %v5057_v28  ;;  %v12682_v50 = vrot.slane %v12572_v40, %v13950_v1 }
 0xe87   :  { %v5059_v49 = vpop.xlane.xlu1 %5058  ;;  %v5148_v55 = vsub.f32 %v12586_v9, %v5020_v44 }
 0xe88   :  { %v5164_v30 = vadd.f32 1e-05, %v5132_v0  ;;  %v5133_v27 = vmax.f32 %v5117_v10, 0.0  ;;  %v5118_v3 = vsub.f32 %v5086_v17, %v5102_v25  ;;  %v5087_v47 = vmul.f32 0.03125, %v5059_v49 }
 0xe89   :  { %v12689_v0 = vrot.slane %v12572_v40, %v13951_v15  ;;  %v5149_v10 = vsub.f32 %v12590_v2, %v5021_v57  ;;  %v5151_v2 = vsub.f32 %v12582_v35, %v12674_v39 }
 0xe8a   :  { %9015 = vrsqrt.f32 %v5164_v30  ;;  %v5165_v4 = vadd.f32 1e-05, %v5133_v27  ;;  %v5134_v51 = vmax.f32 %v5118_v3, 0.0  ;;  %v5119_v32 = vsub.f32 %v5087_v47, %v5103_v12 }
 0xe8b   :  { %v5150_v3 = vsub.f32 %v12579_v56, %v5022_v61 }
 0xe8c   :  { %9017 = vrsqrt.f32 %v5165_v4  ;;  %v5166_v22 = vadd.f32 1e-05, %v5134_v51  ;;  %v5135_v20 = vmax.f32 %v5119_v32, 0.0  ;;  %v5001_v60 = vpop.xlane.xlu0 %5000 }
 0xe8d   :  { %v12692_v17 = vmul.f32 0.03125, %v5001_v60 }
 0xe8e   :  { %9019 = vrsqrt.f32 %v5166_v22  ;;  %v5167_v29 = vadd.f32 1e-05, %v5135_v20  ;;  %v5003_v42 = vpop.xlane.xlu1 %5002 }
 0xe8f   :  { %v12694_v27 = vmul.f32 0.03125, %v5003_v42  ;;  %v5106_v60 = vmul.f32 %v12692_v17, %v12692_v17 }
 0xe90   :  { %9021 = vrsqrt.f32 %v5167_v29  ;;  %v4997_v38 = vpop.xlane.xlu0 %4996 }
 0xe91   :  { %v12678_v33 = vmul.f32 0.03125, %v4997_v38  ;;  %v5107_v38 = vmul.f32 %v12694_v27, %v12694_v27 }
 0xe92   :  { %v4999_v46 = vpop.xlane.xlu1 %4998 }
 0xe93   :  { %v12685_v25 = vmul.f32 0.03125, %v4999_v46  ;;  %v5104_v9 = vmul.f32 %v12678_v33, %v12678_v33 }
 0xe94   :  { %v9016_v28 = vpop.eup %9015  ;;  %v5061_v12 = vpop.xlane.xlu0 %5060 }
 0xe95   :  { %v5196_v49 = vmul.f32 %v9016_v28, %v5148_v55  ;;  %v5088_v44 = vmul.f32 0.03125, %v5061_v12  ;;  %v5105_v57 = vmul.f32 %v12685_v25, %v12685_v25 }
 0xe96   :  { %v9018_v30 = vpop.eup %9017  ;;  %v5063_v47 = vpop.xlane.xlu1 %5062 }
 0xe97   :  { %v5197_v4 = vmul.f32 %v9018_v30, %v5149_v10  ;;  %v5216_v40 = vmul.f32 %v12682_v50, %v5196_v49  ;;  %v5120_v32 = vsub.f32 %v5088_v44, %v5104_v9  ;;  %v5089_v22 = vmul.f32 0.03125, %v5063_v47 }
 0xe98   :  { %v9020_v51 = vpop.eup %9019  ;;  %v5065_v29 = vpop.xlane.xlu0 %5064 }
 0xe99   :  { %v5198_v20 = vmul.f32 %v9020_v51, %v5150_v3  ;;  %v5217_v56 = vmul.f32 %v12682_v50, %v5197_v4  ;;  %v12708_v61 = vadd.f32 %v12689_v0, %v5216_v40  ;;  %v5136_v35 = vmax.f32 %v5120_v32, 0.0 }
 0xe9a   :  { %v9022_v42 = vpop.eup %9021  ;;  %v5121_v39 = vsub.f32 %v5089_v22, %v5105_v57  ;;  %v5090_v55 = vmul.f32 0.03125, %v5065_v29  ;;  %v5067_v10 = vpop.xlane.xlu1 %5066 }
 0xe9b   :  { %v5218_v46 = vmul.f32 %v12682_v50, %v5198_v20  ;;  %v5199_v28 = vmul.f32 %v9022_v42, %v5151_v2  ;;  %v12714_v12 = vadd.f32 %v12689_v0, %v5217_v56  ;;  %v7454_v49 = vmul.f32 -1.442695, %v12708_v61 }
 0xe9c   :  { %v5168_v30 = vadd.f32 1e-05, %v5136_v35  ;;  %v5137_v9 = vmax.f32 %v5121_v39, 0.0  ;;  %v5122_v44 = vsub.f32 %v5090_v55, %v5106_v60  ;;  %v5091_v3 = vmul.f32 0.03125, %v5067_v10  ;;  %v5009_v4 = vpop.xlane.xlu0 %5008 }
 0xe9d   :  { %v5219_v47 = vmul.f32 %v12682_v50, %v5199_v28  ;;  %9023 = vpow2.f32 %v7454_v49  ;;  %v7455_v40 = vmul.f32 -1.442695, %v12714_v12  ;;  %v12720_v51 = vadd.f32 %v12689_v0, %v5218_v46 }
 0xe9e   :  { %9025 = vrsqrt.f32 %v5168_v30  ;;  %v5169_v2 = vadd.f32 1e-05, %v5137_v9  ;;  %v5138_v57 = vmax.f32 %v5122_v44, 0.0  ;;  %v5123_v32 = vsub.f32 %v5091_v3, %v5107_v38  ;;  %v5011_v22 = vpop.xlane.xlu1 %5010 }
 0xe9f   :  { %9027 = vpow2.f32 %v7455_v40  ;;  %v12723_v20 = vadd.f32 %v12689_v0, %v5219_v47  ;;  %v7456_v60 = vmul.f32 -1.442695, %v12720_v51  ;;  %v12731_v28 = vmul.f32 0.03125, %v5009_v4 }
 0xea0   :  { %9029 = vrsqrt.f32 %v5169_v2  ;;  %v5139_v29 = vmax.f32 %v5123_v32, 0.0  ;;  %v5005_v56 = vpop.xlane.xlu0 %5004  ;;  %v5170_v35 = vadd.f32 1e-05, %v5138_v57  ;;  %v5152_v44 = vsub.f32 %v12610_v34, %v12678_v33 }
 0xea1   :  { %9031 = vpow2.f32 %v7456_v60  ;;  %v7457_v42 = vmul.f32 -1.442695, %v12723_v20  ;;  %v12727_v55 = vmul.f32 0.03125, %v5005_v56  ;;  %v12737_v3 = vmul.f32 0.03125, %v5011_v22 }
 0xea2   :  { %v5171_v39 = vadd.f32 1e-05, %v5139_v29  ;;  %v5007_v46 = vpop.xlane.xlu1 %5006  ;;  %v5153_v29 = vsub.f32 %v12614_v11, %v12685_v25  ;;  %v5110_v56 = vmul.f32 %v12731_v28, %v12731_v28 }
 0xea3   :  { %9033 = vpow2.f32 %v7457_v42  ;;  %v12729_v38 = vmul.f32 0.03125, %v5007_v46  ;;  %v5108_v49 = vmul.f32 %v12727_v55, %v12727_v55 }
 0xea4   :  { %v5069_v10 = vpop.xlane.xlu0 %5068  ;;  %9035 = vrsqrt.f32 %v5170_v35 }
 0xea5   :  { %v5092_v30 = vmul.f32 0.03125, %v5069_v10  ;;  %9037 = vrsqrt.f32 %v5171_v39  ;;  %v5109_v2 = vmul.f32 %v12729_v38, %v12729_v38 }
 0xea6   :  { %v5071_v47 = vpop.xlane.xlu1 %5070 }
 0xea7   :  { %v9024_v9 = vpop.eup %9023  ;;  %v5124_v4 = vsub.f32 %v5092_v30, %v5108_v49  ;;  %v5093_v57 = vmul.f32 0.03125, %v5071_v47  ;;  %v5111_v49 = vmul.f32 %v12737_v3, %v12737_v3 }
 0xea8   :  { %v9026_v40 = vpop.eup %9025  ;;  %v5300_v32 = vadd.f32 1.0, %v9024_v9  ;;  %v5073_v42 = vpop.xlane.xlu0 %5072 }
 0xea9   :  { %v9028_v60 = vpop.eup %9027  ;;  %v5200_v34 = vmul.f32 %v9026_v40, %v5152_v44  ;;  %v5140_v22 = vmax.f32 %v5124_v4, 0.0  ;;  %v5125_v35 = vsub.f32 %v5093_v57, %v5109_v2  ;;  %v5094_v39 = vmul.f32 0.03125, %v5073_v42 }
 0xeaa   :  { %v9030_v33 = vpop.eup %9029  ;;  %v5301_v46 = vadd.f32 1.0, %v9028_v60  ;;  %v5075_v30 = vpop.xlane.xlu1 %5074  ;;  %9039 = vrcp.f32 %v5300_v32 }
 0xeab   :  { %v9032_v10 = vpop.eup %9031  ;;  %v5201_v9 = vmul.f32 %v9030_v33, %v5153_v29  ;;  %v5220_v47 = vmul.f32 %v12682_v50, %v5200_v34  ;;  %v5172_v11 = vadd.f32 1e-05, %v5140_v22  ;;  %v5141_v25 = vmax.f32 %v5125_v35, 0.0 }
 0xeac   :  { %v5126_v15 = vsub.f32 %v5094_v39, %v5110_v56  ;;  %v5095_v1 = vmul.f32 0.03125, %v5075_v30  ;;  %v5017_v44 = vpop.xlane.xlu0 %5016  ;;  %9041 = vrcp.f32 %v5301_v46  ;;  %v5302_v40 = vadd.f32 1.0, %v9032_v10 }
 0xead   :  { %v9034_v16 = vpop.eup %9033  ;;  %v5221_v2 = vmul.f32 %v12682_v50, %v5201_v9  ;;  %v12750_v4 = vadd.f32 %v12689_v0, %v5220_v47  ;;  %9043 = vrsqrt.f32 %v5172_v11  ;;  %v5173_v57 = vadd.f32 1e-05, %v5141_v25 }
 0xeae   :  { %v5142_v60 = vmax.f32 %v5126_v15, 0.0  ;;  %v5127_v32 = vsub.f32 %v5095_v1, %v5111_v49  ;;  %v5019_v29 = vpop.xlane.xlu1 %5018  ;;  %v5303_v42 = vadd.f32 1.0, %v9034_v16  ;;  %9045 = vrcp.f32 %v5302_v40  ;;  %v9036_v56 = vpop.eup %9035 }
 0xeaf   :  { %v12753_v34 = vadd.f32 %v12689_v0, %v5221_v2  ;;  %9047 = vrsqrt.f32 %v5173_v57  ;;  %v9038_v35 = vpop.eup %9037  ;;  %v5154_v39 = vsub.f32 %v12603_v53, %v12692_v17  ;;  %v5155_v46 = vsub.f32 %v12606_v6, %v12694_v27 }
 0xeb0   :  { %v5174_v33 = vadd.f32 1e-05, %v5142_v60  ;;  %v5143_v22 = vmax.f32 %v5127_v32, 0.0  ;;  %v5013_v10 = vpop.xlane.xlu0 %5012  ;;  %9049 = vrcp.f32 %v5303_v42  ;;  %v7458_v1 = vmul.f32 -1.442695, %v12750_v4 }
 0xeb1   :  { %v12762_v49 = vmul.f32 0.03125, %v5017_v44  ;;  %v12764_v30 = vmul.f32 0.03125, %v5013_v10  ;;  %v7459_v53 = vmul.f32 -1.442695, %v12753_v34  ;;  %v5202_v17 = vmul.f32 %v9036_v56, %v5154_v39 }
 0xeb2   :  { %9051 = vrsqrt.f32 %v5174_v33  ;;  %v5175_v15 = vadd.f32 1e-05, %v5143_v22  ;;  %v5015_v9 = vpop.xlane.xlu1 %5014  ;;  %v5203_v47 = vmul.f32 %v9038_v35, %v5155_v46  ;;  %v5156_v25 = vsub.f32 %v12634_v19, %v12727_v55 }
 0xeb3   :  { %9053 = vpow2.f32 %v7458_v1  ;;  %v12769_v27 = vmul.f32 0.03125, %v5015_v9  ;;  %v12773_v44 = vmul.f32 0.03125, %v5019_v29  ;;  %v5222_v2 = vmul.f32 %v12682_v50, %v5202_v17 }
 0xeb4   :  { %9055 = vrsqrt.f32 %v5175_v15  ;;  %v9040_v11 = vpop.eup %9039  ;;  %v5077_v40 = vpop.xlane.xlu0 %5076  ;;  %v5157_v57 = vsub.f32 %v12638_v58, %v12729_v38  ;;  %v5112_v60 = vmul.f32 %v12764_v30, %v12764_v30  ;;  %v5114_v33 = vmul.f32 %v12762_v49, %v12762_v49 }
 0xeb5   :  { %9057 = vpow2.f32 %v7459_v53  ;;  %v5096_v32 = vmul.f32 0.03125, %v5077_v40  ;;  %v5348_v42 = vmul.f32 %v9040_v11, %v12708_v61  ;;  %v5113_v19 = vmul.f32 %v12769_v27, %v12769_v27 }
 0xeb6   :  { %v9042_v56 = vpop.eup %9041  ;;  %v5079_v55 = vpop.xlane.xlu1 %5078  ;;  %v5223_v29 = vmul.f32 %v12682_v50, %v5203_v47  ;;  %v12787_v22 = vadd.f32 %v12689_v0, %v5222_v2  ;;  %v5115_v10 = vmul.f32 %v12773_v44, %v12773_v44 }
 0xeb7   :  { %v9044_v58 = vpop.eup %9043  ;;  %v5128_v38 = vsub.f32 %v5096_v32, %v5112_v60  ;;  %v5097_v35 = vmul.f32 0.03125, %v5079_v55  ;;  %v5349_v39 = vmul.f32 %v9042_v56, %v12714_v12  ;;  %v5364_v61 = vadd.f32 %v5348_v42, %v12465_v59 }
 0xeb8   :  { %v9046_v46 = vpop.eup %9045  ;;  %v5081_v1 = vpop.xlane.xlu0 %5080  ;;  %v12794_v15 = vadd.f32 %v12689_v0, %v5223_v29  ;;  %v7460_v9 = vmul.f32 -1.442695, %v12787_v22  ;;  %v5204_v53 = vmul.f32 %v9044_v58, %v5156_v25 }
 0xeb9   :  { %v9048_v17 = vpop.eup %9047  ;;  %v5144_v47 = vmax.f32 %v5128_v38, 0.0  ;;  %v5129_v11 = vsub.f32 %v5097_v35, %v5113_v19  ;;  %v5098_v40 = vmul.f32 0.03125, %v5081_v1  ;;  %v5365_v2 = vadd.f32 %v5349_v39, %v12472_v43 }
 0xeba   :  { %v9050_v12 = vpop.eup %9049  ;;  %v5083_v60 = vpop.xlane.xlu1 %5082  ;;  %v12798_v32 = vmul.f32 0.70710677, %v5364_v61  ;;  %v5350_v42 = vmul.f32 %v9046_v46, %v12720_v51  ;;  %9059 = vpow2.f32 %v7460_v9  ;;  %v7461_v56 = vmul.f32 -1.442695, %v12794_v15 }
 0xebb   :  { %v5176_v29 = vadd.f32 1e-05, %v5144_v47  ;;  %v5145_v6 = vmax.f32 %v5129_v11, 0.0  ;;  %v5130_v16 = vsub.f32 %v5098_v40, %v5114_v33  ;;  %v5099_v25 = vmul.f32 0.03125, %v5083_v60 }
 0xebc   :  { %v9052_v55 = vpop.eup %9051  ;;  %v12802_v38 = vmul.f32 0.70710677, %v5365_v2  ;;  %v5351_v19 = vmul.f32 %v9050_v12, %v12723_v20  ;;  %v5366_v35 = vadd.f32 %v5350_v42, %v12482_v54  ;;  %9061 = vpow2.f32 %v7461_v56 }
 0xebd   :  { %v9054_v58 = vpop.eup %9053  ;;  %9063 = vrsqrt.f32 %v5176_v29  ;;  %v5177_v61 = vadd.f32 1e-05, %v5145_v6  ;;  %v5146_v51 = vmax.f32 %v5130_v16, 0.0  ;;  %v5131_v46 = vsub.f32 %v5099_v25, %v5115_v10 }
 0xebe   :  { %v9056_v39 = vpop.eup %9055  ;;  %v5415_v9 = vpack.c.bf16 %v12802_v38, %v12798_v32  ;;  %v5367_v33 = vadd.f32 %v5351_v19, %v12487_v41  ;;  %v12809_v47 = vmul.f32 0.70710677, %v5366_v35  ;;  %v5304_v11 = vadd.f32 1.0, %v9054_v58 }
 0xebf   :  { %v9058_v1 = vpop.eup %9057  ;;  %9065 = vrsqrt.f32 %v5177_v61  ;;  %v5178_v40 = vadd.f32 1e-05, %v5146_v51  ;;  %v5147_v20 = vmax.f32 %v5131_v46, 0.0  ;;  %v5205_v6 = vmul.f32 %v9048_v17, %v5157_v57 }
 0xec0   :  { %v5305_v2 = vadd.f32 1.0, %v9058_v1  ;;  %8009 = vmatprep.mubr.bf16.mxu1 %v5415_v9  ;;  %v12811_v12 = vmul.f32 0.70710677, %v5367_v33  ;;  %9067 = vrcp.f32 %v5304_v11  ;;  %v5224_v16 = vmul.f32 %v12682_v50, %v5204_v53 }
 0xec1   :  { %9069 = vrsqrt.f32 %v5178_v40  ;;  %v5179_v10 = vadd.f32 1e-05, %v5147_v20  ;;  %v13976_v60 = vsub.f32 %v12625_v13, %v12731_v28  ;;  %v13977_v56 = vsub.f32 %v12630_v36, %v12737_v3 }
 0xec2   :  { %v5416_v25 = vpack.c.bf16 %v12811_v12, %v12809_v47  ;;  %9071 = vrcp.f32 %v5305_v2  ;;  %v5225_v58 = vmul.f32 %v12682_v50, %v5205_v6  ;;  %v12824_v57 = vadd.f32 %v12689_v0, %v5224_v16 }
 0xec3   :  { %v5206_v42 = vmul.f32 %v9052_v55, %v13976_v60  ;;  %v5207_v29 = vmul.f32 %v9056_v39, %v13977_v56  ;;  %9073 = vrsqrt.f32 %v5179_v10  ;;  %v5160_v39 = vsub.f32 %v12658_v62, %v12764_v30 }
 0xec4   :  { %v9060_v13 = vpop.eup %9059  ;;  %8010 = vmatmul.mubr.bf16.vlgmr.msra.gmra.mrb[80].mxu1 %v5416_v25  ;;  %v12829_v28 = vadd.f32 %v12689_v0, %v5225_v58  ;;  %v7462_v36 = vmul.f32 -1.442695, %v12824_v57  ;;  %v5161_v33 = vsub.f32 %v12662_v26, %v12769_v27  ;;  %v5162_v62 = vsub.f32 %v12649_v31, %v12762_v49 }
 0xec5   :  { %v5226_v53 = vmul.f32 %v12682_v50, %v5206_v42  ;;  %v5227_v17 = vmul.f32 %v12682_v50, %v5207_v29  ;;  %v5306_v3 = vadd.f32 1.0, %v9060_v13  ;;  %v5163_v26 = vsub.f32 %v12654_v52, %v12773_v44 }
 0xec6   :  { %v9062_v35 = vpop.eup %9061  ;;  %9075 = vpow2.f32 %v7462_v36  ;;  %v7463_v61 = vmul.f32 -1.442695, %v12829_v28 }
 0xec7   :  { %v12833_v55 = vadd.f32 %v12689_v0, %v5226_v53  ;;  %v12836_v19 = vadd.f32 %v12689_v0, %v5227_v17  ;;  %v9064_v51 = vpop.eup %9063  ;;  %v5307_v46 = vadd.f32 1.0, %v9062_v35  ;;  %9077 = vrcp.f32 %v5306_v3 }
 0xec8   :  { %9079 = vpow2.f32 %v7463_v61  ;;  %v5208_v11 = vmul.f32 %v9064_v51, %v5160_v39 }
 0xec9   :  { %v7464_v1 = vmul.f32 -1.442695, %v12833_v55  ;;  %v7465_v9 = vmul.f32 -1.442695, %v12836_v19  ;;  %v9066_v40 = vpop.eup %9065  ;;  %9081 = vrcp.f32 %v5307_v46 }
 0xeca   :  { %v9068_v20 = vpop.eup %9067  ;;  %v5209_v30 = vmul.f32 %v9066_v40, %v5161_v33  ;;  %v5228_v2 = vmul.f32 %v12682_v50, %v5208_v11 }
 0xecb   :  { %9083 = vpow2.f32 %v7464_v1  ;;  %v9070_v6 = vpop.eup %9069  ;;  %v5352_v16 = vmul.f32 %v9068_v20, %v12750_v4 }
 0xecc   :  { %9085 = vpow2.f32 %v7465_v9  ;;  %v9072_v10 = vpop.eup %9071  ;;  %v5229_v27 = vmul.f32 %v12682_v50, %v5209_v30  ;;  %v12853_v60 = vadd.f32 %v12689_v0, %v5228_v2  ;;  %v5210_v42 = vmul.f32 %v9070_v6, %v5162_v62 }
 0xecd   :  { %v9074_v56 = vpop.eup %9073  ;;  %v5353_v31 = vmul.f32 %v9072_v10, %v12753_v34  ;;  %v5368_v49 = vadd.f32 %v5352_v16, %v12522_v7 }
 0xece   :  { %v12858_v29 = vadd.f32 %v12689_v0, %v5229_v27  ;;  %v7466_v4 = vmul.f32 -1.442695, %v12853_v60  ;;  %v5211_v25 = vmul.f32 %v9074_v56, %v5163_v26  ;;  %v5230_v58 = vmul.f32 %v12682_v50, %v5210_v42 }
 0xecf   :  { %v5369_v52 = vadd.f32 %v5353_v31, %v12525_v24  ;;  %v12868_v36 = vmul.f32 0.70710677, %v5368_v49 }
 0xed0   :  { %v9076_v44 = vpop.eup %9075  ;;  %9087 = vpow2.f32 %v7466_v4  ;;  %v7467_v53 = vmul.f32 -1.442695, %v12858_v29  ;;  %v5231_v17 = vmul.f32 %v12682_v50, %v5211_v25  ;;  %v12866_v34 = vadd.f32 %v12689_v0, %v5230_v58 }
 0xed1   :  { %v9078_v13 = vpop.eup %9077  ;;  %v12870_v3 = vmul.f32 0.70710677, %v5369_v52  ;;  %v5308_v35 = vadd.f32 1.0, %v9076_v44 }
 0xed2   :  { %v9080_v39 = vpop.eup %9079  ;;  %v5354_v61 = vmul.f32 %v9078_v13, %v12787_v22  ;;  %9089 = vpow2.f32 %v7467_v53  ;;  %v12874_v51 = vadd.f32 %v12689_v0, %v5231_v17  ;;  %v7468_v46 = vmul.f32 -1.442695, %v12866_v34 }
 0xed3   :  { %v9082_v1 = vpop.eup %9081  ;;  %v5417_v50 = vpack.c.bf16 %v12870_v3, %v12868_v36  ;;  %v5309_v9 = vadd.f32 1.0, %v9080_v39  ;;  %9091 = vrcp.f32 %v5308_v35 }
 0xed4   :  { %v5355_v11 = vmul.f32 %v9082_v1, %v12794_v15  ;;  %v5370_v40 = vadd.f32 %v5354_v61, %v12533_v37  ;;  %9093 = vpow2.f32 %v7468_v46  ;;  %v7469_v22 = vmul.f32 -1.442695, %v12874_v51 }
 0xed5   :  { %v9084_v33 = vpop.eup %9083  ;;  %8013 = vmatprep.mubr.bf16.mxu1 %v5417_v50  ;;  %9095 = vrcp.f32 %v5309_v9 }
 0xed6   :  { %v9086_v20 = vpop.eup %9085  ;;  %v5310_v0 = vadd.f32 1.0, %v9084_v33  ;;  %v5371_v62 = vadd.f32 %v5355_v11, %v12536_v45  ;;  %9097 = vpow2.f32 %v7469_v22  ;;  %v12883_v2 = vmul.f32 0.70710677, %v5370_v40 }
 0xed7   :  { %v5311_v30 = vadd.f32 1.0, %v9086_v20 }
 0xed8   :  { %9099 = vrcp.f32 %v5310_v0  ;;  %v12885_v6 = vmul.f32 0.70710677, %v5371_v62 }
 0xed9   :  { %9101 = vrcp.f32 %v5311_v30 }
 0xeda   :  { %v9088_v15 = vpop.eup %9087  ;;  %v5418_v16 = vpack.c.bf16 %v12885_v6, %v12883_v2 }
 0xedb   :  { %v5312_v10 = vadd.f32 1.0, %v9088_v15 }
 0xedc   :  { %v9090_v26 = vpop.eup %9089  ;;  %8014 = vmatmul.mubr.bf16.gmra.mrb[84].mxu1 %v5418_v16 }
 0xedd   :  { %v9092_v27 = vpop.eup %9091  ;;  %v5313_v42 = vadd.f32 1.0, %v9090_v26  ;;  %9103 = vrcp.f32 %v5312_v10 }
 0xede   :  { %v9094_v56 = vpop.eup %9093  ;;  %v5356_v31 = vmul.f32 %v9092_v27, %v12824_v57 }
 0xedf   :  { %v9096_v49 = vpop.eup %9095  ;;  %9105 = vrcp.f32 %v5313_v42  ;;  %v5314_v4 = vadd.f32 1.0, %v9094_v56  ;;  %v13978_v56 = vmov 0  }
 0xee0   :  { %v9098_v25 = vpop.eup %9097  ;;  %v5357_v58 = vmul.f32 %v9096_v49, %v12829_v28  ;;  %v5372_v52 = vadd.f32 %v5356_v31, %v12541_v18  ;;  %v13979_v31 = vld [vmem:[#allocation32_spill] sm:$0xff] }
 0xee1   :  { %v5315_v53 = vadd.f32 1.0, %v9098_v25  ;;  %9107 = vrcp.f32 %v5314_v4 }
 0xee2   :  { %v9100_v44 = vpop.eup %9099  ;;  %v5373_v13 = vadd.f32 %v5357_v58, %v12544_v8  ;;  %v12895_v57 = vmul.f32 0.70710677, %v5372_v52 }
 0xee3   :  { %v9102_v17 = vpop.eup %9101  ;;  %v5358_v35 = vmul.f32 %v9100_v44, %v12833_v55  ;;  %9109 = vrcp.f32 %v5315_v53 }
 0xee4   :  { %v5359_v39 = vmul.f32 %v9102_v17, %v12836_v19  ;;  %v12897_v61 = vmul.f32 0.70710677, %v5373_v13 }
 0xee5   :  { %v5374_v46 = vadd.f32 %v5358_v35, %v12549_v5 }
 0xee6   :  { %v5375_v28 = vadd.f32 %v5359_v39, %v12552_v48  ;;  %v5419_v1 = vpack.c.bf16 %v12897_v61, %v12895_v57 }
 0xee7   :  { %v9104_v50 = vpop.eup %9103  ;;  %v12903_v9 = vmul.f32 0.70710677, %v5374_v46 }
 0xee8   :  { %v12905_v33 = vmul.f32 0.70710677, %v5375_v28  ;;  %8017 = vmatprep.mubr.bf16.mxu1 %v5419_v1  ;;  %v5360_v55 = vmul.f32 %v9104_v50, %v12853_v60 }
 0xee9   :  { %v9106_v19 = vpop.eup %9105 }
 0xeea   :  { %v5420_v11 = vpack.c.bf16 %v12905_v33, %v12903_v9  ;;  %v5361_v40 = vmul.f32 %v9106_v19, %v12858_v29  ;;  %v5376_v22 = vadd.f32 %v5360_v55, %v12557_v21 }
 0xeeb   :  { %v9108_v20 = vpop.eup %9107 }
 0xeec   :  { %8018 = vmatmul.mubr.bf16.gmra.mrb[88].mxu1 %v5420_v11  ;;  %v5377_v0 = vadd.f32 %v5361_v40, %v12559_v63  ;;  %v5362_v62 = vmul.f32 %v9108_v20, %v12866_v34  ;;  %v12914_v15 = vmul.f32 0.70710677, %v5376_v22 }
 0xeed   :  { %v9110_v30 = vpop.eup %9109 }
 0xeee   :  { %v12916_v16 = vmul.f32 0.70710677, %v5377_v0  ;;  %v5363_v60 = vmul.f32 %v9110_v30, %v12874_v51  ;;  %v5378_v10 = vadd.f32 %v5362_v62, %v12563_v14  ;;  %v12933_v51 = vld [vmem:[%s13785_s13 + $0x4] sm:$0x7] }
 0xeef   :  { %v12937_v49 = vrot.slane %v12933_v51, %v13979_v31 }
 0xef0   :  { %v5421_v29 = vpack.c.bf16 %v12916_v16, %v12914_v15  ;;  %v5379_v26 = vadd.f32 %v5363_v60, %v12565_v23  ;;  %v12923_v27 = vmul.f32 0.70710677, %v5378_v10 }
 0xef2   :  { %8021 = vmatprep.mubr.bf16.mxu1 %v5421_v29  ;;  %v12925_v42 = vmul.f32 0.70710677, %v5379_v26 }
 0xef4   :  { %v5422_v34 = vpack.c.bf16 %v12925_v42, %v12923_v27 }
 0xef6   :  { %8022 = vmatmul.mubr.bf16.gmra.mrb[92].mxu1 %v5422_v34 }
 0xef7   :  { %6865 = vmatprep.mubr.bf16.mxu1 %v13978_v56 }
 0xf97   :  { %v8011_v4 = vpop.f32.mrb[80].mxu1 }
 0xf98   :  { %v12940_v25 = vadd.f32 %v8011_v4, %v12937_v49  ;;  %v5509_v58 = vpop.f32.mrb[81].mxu1 }
 0xf99   :  { %v8012_v52 = vpop.f32.mrb[82].mxu1  ;;  %v12947_v17 = vadd.f32 %v5509_v58, %v12937_v49 }
 0xf9a   :  { %v12943_v44 = vadd.f32 %v8012_v52, %v12937_v49  ;;  %5576 = vadd.xlane.f32.xlu0 %v12940_v25  ;;  %v5512_v53 = vpop.f32.mrb[83].mxu1  ;;  %v5622_v46 = vmul.f32 %v12940_v25, %v12940_v25 }
 0xf9b   :  { %v12951_v13 = vadd.f32 %v5512_v53, %v12937_v49  ;;  %v5620_v35 = vmul.f32 %v12947_v17, %v12947_v17 }
 0xf9c   :  { %5578 = vadd.xlane.f32.xlu1 %v12943_v44  ;;  %v5623_v28 = vmul.f32 %v12943_v44, %v12943_v44 }
 0xf9d   :  { %v5621_v39 = vmul.f32 %v12951_v13, %v12951_v13 }
 0xf9e   :  { %5572 = vadd.xlane.f32.xlu0 %v12947_v17 }
 0xfa0   :  { %5574 = vadd.xlane.f32.xlu1 %v12951_v13 }
 0xfa2   :  { %5636 = vadd.xlane.f32.xlu0 %v5620_v35 }
 0xfa4   :  { %5638 = vadd.xlane.f32.xlu1 %v5621_v39 }
 0xfa6   :  { %5640 = vadd.xlane.f32.xlu0 %v5622_v46 }
 0xfa8   :  { %5642 = vadd.xlane.f32.xlu1 %v5623_v28 }
 0xfaf   :  { %v8015_v1 = vpop.f32.mrb[84].mxu1 }
 0xfb0   :  { %v12964_v50 = vadd.f32 %v8015_v1, %v12937_v49  ;;  %v5525_v55 = vpop.f32.mrb[85].mxu1 }
 0xfb1   :  { %v8016_v19 = vpop.f32.mrb[86].mxu1  ;;  %v12971_v22 = vadd.f32 %v5525_v55, %v12937_v49 }
 0xfb2   :  { %v12967_v11 = vadd.f32 %v8016_v19, %v12937_v49  ;;  %5584 = vadd.xlane.f32.xlu0 %v12964_v50  ;;  %v5528_v40 = vpop.f32.mrb[87].mxu1  ;;  %v5626_v30 = vmul.f32 %v12964_v50, %v12964_v50 }
 0xfb3   :  { %v12975_v20 = vadd.f32 %v5528_v40, %v12937_v49  ;;  %v5624_v0 = vmul.f32 %v12971_v22, %v12971_v22 }
 0xfb4   :  { %5586 = vadd.xlane.f32.xlu1 %v12967_v11  ;;  %v5627_v10 = vmul.f32 %v12967_v11, %v12967_v11 }
 0xfb5   :  { %v5625_v62 = vmul.f32 %v12975_v20, %v12975_v20 }
 0xfb6   :  { %5580 = vadd.xlane.f32.xlu0 %v12971_v22 }
 0xfb8   :  { %5582 = vadd.xlane.f32.xlu1 %v12975_v20 }
 0xfba   :  { %5644 = vadd.xlane.f32.xlu0 %v5624_v0 }
 0xfbc   :  { %5646 = vadd.xlane.f32.xlu1 %v5625_v62 }
 0xfbe   :  { %5648 = vadd.xlane.f32.xlu0 %v5626_v30 }
 0xfbf   :  { %v8019_v60 = vpop.f32.mrb[88].mxu1 }
 0xfc0   :  { %v12988_v29 = vadd.f32 %v8019_v60, %v12937_v49  ;;  %v5541_v26 = vpop.f32.mrb[89].mxu1  ;;  %5650 = vadd.xlane.f32.xlu1 %v5627_v10 }
 0xfc1   :  { %v8020_v34 = vpop.f32.mrb[90].mxu1  ;;  %v12995_v52 = vadd.f32 %v5541_v26, %v12937_v49  ;;  %v8239_v26 = vld [vmem:[#allocation19 + $0x80] sm:$0xff]  }
 0xfc2   :  { %v12991_v4 = vadd.f32 %v8020_v34, %v12937_v49  ;;  %v5544_v58 = vpop.f32.mrb[91].mxu1  ;;  %5592 = vadd.xlane.f32.xlu0 %v12988_v29  ;;  %v5630_v55 = vmul.f32 %v12988_v29, %v12988_v29  ;;  %8025 = vmatprep.subr.bf16.mxu0 %v8239_v26 }
 0xfc3   :  { %v12999_v53 = vadd.f32 %v5544_v58, %v12937_v49  ;;  %v5628_v35 = vmul.f32 %v12995_v52, %v12995_v52  ;;  %8026 = vmatpush3.bf16.msra.mxu0 %v8239_v26 }
 0xfc4   :  { %5594 = vadd.xlane.f32.xlu1 %v12991_v4  ;;  %v5631_v0 = vmul.f32 %v12991_v4, %v12991_v4 }
 0xfc5   :  { %v5629_v46 = vmul.f32 %v12999_v53, %v12999_v53 }
 0xfc6   :  { %5588 = vadd.xlane.f32.xlu0 %v12995_v52 }
 0xfc8   :  { %5590 = vadd.xlane.f32.xlu1 %v12999_v53 }
 0xfc9   :  { %v8023_v39 = vpop.f32.mrb[92].mxu1 }
 0xfca   :  { %5652 = vadd.xlane.f32.xlu0 %v5628_v35  ;;  %v5557_v28 = vpop.f32.mrb[93].mxu1  ;;  %v13010_v40 = vadd.f32 %v8023_v39, %v12937_v49  ;;  %v8241_v39 = vld [vmem:[#allocation19 + $0x90] sm:$0xff]  }
 0xfcb   :  { %v8024_v1 = vpop.f32.mrb[94].mxu1  ;;  %v13019_v30 = vadd.f32 %v5557_v28, %v12937_v49  ;;  %v8243_v28 = vld [vmem:[#allocation19 + $0xa0] sm:$0xff]  }
 0xfcc   :  { %5654 = vadd.xlane.f32.xlu1 %v5629_v46  ;;  %v5560_v19 = vpop.f32.mrb[95].mxu1  ;;  %v13015_v62 = vadd.f32 %v8024_v1, %v12937_v49  ;;  %v5634_v58 = vmul.f32 %v13010_v40, %v13010_v40  ;;  %v8242_v46 = vld [vmem:[#allocation19 + $0x98] sm:$0xff]   ;;  %v8244_v1 = vld [vmem:[#allocation19 + $0xa8] sm:$0xff]  }
 0xfcd   :  { %v13023_v60 = vadd.f32 %v5560_v19, %v12937_v49  ;;  %v5632_v10 = vmul.f32 %v13019_v30, %v13019_v30  ;;  %v8240_v49 = vld [vmem:[#allocation19 + $0x88] sm:$0xff]   ;;  %v8246_v19 = vld [vmem:[#allocation19 + $0xb8] sm:$0xff]  }
 0xfce   :  { %5656 = vadd.xlane.f32.xlu0 %v5630_v55  ;;  %v5635_v35 = vmul.f32 %v13015_v62, %v13015_v62  ;;  %8027 = vmatprep.subr.bf16.mxu0 %v8240_v49  ;;  %v8245_v55 = vld [vmem:[#allocation19 + $0xb0] sm:$0xff]  }
 0xfcf   :  { %v5633_v34 = vmul.f32 %v13023_v60, %v13023_v60  ;;  %8028 = vmatpush3.bf16.msra.mxu0 %v8240_v49 }
 0xfd0   :  { %5658 = vadd.xlane.f32.xlu1 %v5631_v0  ;;  %8029 = vmatprep.subr.bf16.mxu0 %v8241_v39 }
 0xfd2   :  { %5600 = vadd.xlane.f32.xlu0 %v13010_v40 }
 0xfd3   :  { %8030 = vmatpush3.bf16.msra.mxu0 %v8241_v39 }
 0xfd4   :  { %5602 = vadd.xlane.f32.xlu1 %v13015_v62  ;;  %8031 = vmatprep.subr.bf16.mxu0 %v8242_v46 }
 0xfd6   :  { %5596 = vadd.xlane.f32.xlu0 %v13019_v30 }
 0xfd7   :  { %8032 = vmatpush3.bf16.msra.mxu0 %v8242_v46 }
 0xfd8   :  { %5598 = vadd.xlane.f32.xlu1 %v13023_v60  ;;  %8033 = vmatprep.subr.bf16.mxu0 %v8243_v28 }
 0xfda   :  { %5660 = vadd.xlane.f32.xlu0 %v5632_v10 }
 0xfdb   :  { %8034 = vmatpush3.bf16.msra.mxu0 %v8243_v28 }
 0xfdc   :  { %5662 = vadd.xlane.f32.xlu1 %v5633_v34  ;;  %8035 = vmatprep.subr.bf16.mxu0 %v8244_v1 }
 0xfde   :  { %5664 = vadd.xlane.f32.xlu0 %v5634_v58 }
 0xfdf   :  { %8036 = vmatpush3.bf16.msra.mxu0 %v8244_v1 }
 0xfe0   :  { %5666 = vadd.xlane.f32.xlu1 %v5635_v35  ;;  %8037 = vmatprep.subr.bf16.mxu0 %v8245_v55 }
 0xfe3   :  { %8038 = vmatpush3.bf16.msra.mxu0 %v8245_v55 }
 0xfe4   :  { %8039 = vmatprep.subr.bf16.mxu0 %v8246_v19 }
 0xfe7   :  { %8040 = vmatpush3.bf16.msra.mxu0 %v8246_v19 }
0x1027   :  { %v5577_v0 = vpop.xlane.xlu0 %5576 }
0x1028   :  { %v5606_v39 = vmul.f32 0.03125, %v5577_v0 }
0x1029   :  { %v5579_v10 = vpop.xlane.xlu1 %5578 }
0x102a   :  { %v5607_v28 = vmul.f32 0.03125, %v5579_v10  ;;  %v5686_v55 = vmul.f32 %v5606_v39, %v5606_v39 }
0x102b   :  { %v5573_v26 = vpop.xlane.xlu0 %5572 }
0x102c   :  { %v5604_v34 = vmul.f32 0.03125, %v5573_v26  ;;  %v5687_v18 = vmul.f32 %v5607_v28, %v5607_v28 }
0x102d   :  { %v5575_v58 = vpop.xlane.xlu1 %5574 }
0x102e   :  { %v5605_v49 = vmul.f32 0.03125, %v5575_v58  ;;  %v5684_v46 = vmul.f32 %v5604_v34, %v5604_v34 }
0x102f   :  { %v5637_v35 = vpop.xlane.xlu0 %5636 }
0x1030   :  { %v5668_v23 = vmul.f32 0.03125, %v5637_v35  ;;  %v5685_v63 = vmul.f32 %v5605_v49, %v5605_v49 }
0x1031   :  { %v5639_v14 = vpop.xlane.xlu1 %5638 }
0x1032   :  { %v5700_v1 = vsub.f32 %v5668_v23, %v5684_v46  ;;  %v5669_v21 = vmul.f32 0.03125, %v5639_v14  ;;  %v13980_v46 = vld [vmem:[#allocation33_spill] sm:$0xff] }
0x1033   :  { %v5641_v48 = vpop.xlane.xlu0 %5640 }
0x1034   :  { %v5716_v5 = vmax.f32 %v5700_v1, 0.0  ;;  %v5701_v8 = vsub.f32 %v5669_v21, %v5685_v63  ;;  %v5670_v19 = vmul.f32 0.03125, %v5641_v48  ;;  %v13037_v48 = vrot.slane %v12933_v51, %v13980_v46 }
0x1035   :  { %v5643_v45 = vpop.xlane.xlu1 %5642  ;;  %v5734_v1 = vsub.f32 %v12940_v25, %v5606_v39 }
0x1036   :  { %v5748_v37 = vadd.f32 1e-05, %v5716_v5  ;;  %v5717_v26 = vmax.f32 %v5701_v8, 0.0  ;;  %v5702_v24 = vsub.f32 %v5670_v19, %v5686_v55  ;;  %v5671_v58 = vmul.f32 0.03125, %v5643_v45  ;;  %v13981_v45 = vld [vmem:[#allocation34_spill] sm:$0xff] }
0x1037   :  { %v5732_v5 = vsub.f32 %v12947_v17, %v5604_v34 }
0x1038   :  { %9111 = vrsqrt.f32 %v5748_v37  ;;  %v5749_v0 = vadd.f32 1e-05, %v5717_v26  ;;  %v5718_v7 = vmax.f32 %v5702_v24, 0.0  ;;  %v5703_v35 = vsub.f32 %v5671_v58, %v5687_v18 }
0x1039   :  { %v13042_v37 = vrot.slane %v12933_v51, %v13981_v45  ;;  %v5733_v24 = vsub.f32 %v12951_v13, %v5605_v49  ;;  %v5735_v58 = vsub.f32 %v12943_v44, %v5607_v28 }
0x103a   :  { %9113 = vrsqrt.f32 %v5749_v0  ;;  %v5750_v10 = vadd.f32 1e-05, %v5718_v7  ;;  %v5719_v41 = vmax.f32 %v5703_v35, 0.0 }
0x103c   :  { %9115 = vrsqrt.f32 %v5750_v10  ;;  %v5751_v14 = vadd.f32 1e-05, %v5719_v41 }
0x103e   :  { %9117 = vrsqrt.f32 %v5751_v14 }
0x103f   :  { %v5585_v23 = vpop.xlane.xlu0 %5584 }
0x1040   :  { %v13056_v10 = vmul.f32 0.03125, %v5585_v23 }
0x1041   :  { %v5587_v8 = vpop.xlane.xlu1 %5586 }
0x1042   :  { %v9112_v21 = vpop.eup %9111  ;;  %v13058_v25 = vmul.f32 0.03125, %v5587_v8 }
0x1043   :  { %v5581_v7 = vpop.xlane.xlu0 %5580  ;;  %v5780_v18 = vmul.f32 %v9112_v21, %v5732_v5 }
0x1044   :  { %v9114_v63 = vpop.eup %9113  ;;  %v13045_v41 = vmul.f32 0.03125, %v5581_v7 }
0x1045   :  { %v5583_v55 = vpop.xlane.xlu1 %5582  ;;  %v5781_v19 = vmul.f32 %v9114_v63, %v5733_v24  ;;  %v5800_v26 = vmul.f32 %v13037_v48, %v5780_v18 }
0x1046   :  { %v9116_v17 = vpop.eup %9115  ;;  %v13049_v34 = vmul.f32 0.03125, %v5583_v55  ;;  %v5688_v39 = vmul.f32 %v13045_v41, %v13045_v41 }
0x1047   :  { %v5782_v51 = vmul.f32 %v9116_v17, %v5734_v1  ;;  %v5645_v0 = vpop.xlane.xlu0 %5644  ;;  %v5801_v13 = vmul.f32 %v13037_v48, %v5781_v19  ;;  %v13054_v49 = vadd.f32 %v13042_v37, %v5800_v26  ;;  %v5690_v19 = vmul.f32 %v13056_v10, %v13056_v10 }
0x1048   :  { %v9118_v35 = vpop.eup %9117  ;;  %v5672_v14 = vmul.f32 0.03125, %v5645_v0  ;;  %v5689_v7 = vmul.f32 %v13049_v34, %v13049_v34 }
0x1049   :  { %v5802_v5 = vmul.f32 %v13037_v48, %v5782_v51  ;;  %v5783_v21 = vmul.f32 %v9118_v35, %v5735_v58  ;;  %v5647_v44 = vpop.xlane.xlu1 %5646  ;;  %v13064_v28 = vadd.f32 %v13042_v37, %v5801_v13  ;;  %v7479_v24 = vmul.f32 -1.442695, %v13054_v49 }
0x104a   :  { %v5704_v23 = vsub.f32 %v5672_v14, %v5688_v39  ;;  %v5673_v18 = vmul.f32 0.03125, %v5647_v44  ;;  %v5691_v51 = vmul.f32 %v13058_v25, %v13058_v25 }
0x104b   :  { %v5803_v8 = vmul.f32 %v13037_v48, %v5783_v21  ;;  %v5649_v63 = vpop.xlane.xlu0 %5648  ;;  %9119 = vpow2.f32 %v7479_v24  ;;  %v7480_v1 = vmul.f32 -1.442695, %v13064_v28  ;;  %v13072_v55 = vadd.f32 %v13042_v37, %v5802_v5 }
0x104c   :  { %v5720_v26 = vmax.f32 %v5704_v23, 0.0  ;;  %v5705_v17 = vsub.f32 %v5673_v18, %v5689_v7  ;;  %v5674_v58 = vmul.f32 0.03125, %v5649_v63 }
0x104d   :  { %v5651_v0 = vpop.xlane.xlu1 %5650  ;;  %9121 = vpow2.f32 %v7480_v1  ;;  %v13079_v13 = vadd.f32 %v13042_v37, %v5803_v8  ;;  %v7481_v35 = vmul.f32 -1.442695, %v13072_v55 }
0x104e   :  { %v5752_v39 = vadd.f32 1e-05, %v5720_v26  ;;  %v5721_v14 = vmax.f32 %v5705_v17, 0.0  ;;  %v5706_v5 = vsub.f32 %v5674_v58, %v5690_v19  ;;  %v5675_v21 = vmul.f32 0.03125, %v5651_v0 }
0x104f   :  { %v5593_v44 = vpop.xlane.xlu0 %5592  ;;  %9123 = vpow2.f32 %v7481_v35  ;;  %v7482_v24 = vmul.f32 -1.442695, %v13079_v13 }
0x1050   :  { %9125 = vrsqrt.f32 %v5752_v39  ;;  %v5753_v7 = vadd.f32 1e-05, %v5721_v14  ;;  %v5722_v23 = vmax.f32 %v5706_v5, 0.0  ;;  %v5707_v18 = vsub.f32 %v5675_v21, %v5691_v51 }
0x1051   :  { %v5595_v63 = vpop.xlane.xlu1 %5594  ;;  %9127 = vpow2.f32 %v7482_v24  ;;  %v13087_v39 = vmul.f32 0.03125, %v5593_v44  ;;  %v5738_v14 = vsub.f32 %v12964_v50, %v13056_v10 }
0x1052   :  { %9129 = vrsqrt.f32 %v5753_v7  ;;  %v5754_v1 = vadd.f32 1e-05, %v5722_v23  ;;  %v5723_v8 = vmax.f32 %v5707_v18, 0.0 }
0x1053   :  { %v5589_v54 = vpop.xlane.xlu0 %5588 }
0x1054   :  { %9131 = vrsqrt.f32 %v5754_v1  ;;  %v5755_v56 = vadd.f32 1e-05, %v5723_v8  ;;  %v13083_v17 = vmul.f32 0.03125, %v5589_v54  ;;  %v5736_v54 = vsub.f32 %v12971_v22, %v13045_v41 }
0x1055   :  { %v9120_v26 = vpop.eup %9119  ;;  %v5591_v19 = vpop.xlane.xlu1 %5590  ;;  %v5694_v22 = vmul.f32 %v13087_v39, %v13087_v39 }
0x1056   :  { %9133 = vrsqrt.f32 %v5755_v56  ;;  %v13085_v58 = vmul.f32 0.03125, %v5591_v19  ;;  %v5884_v0 = vadd.f32 1.0, %v9120_v26  ;;  %v5692_v5 = vmul.f32 %v13083_v17, %v13083_v17 }
0x1057   :  { %v9122_v35 = vpop.eup %9121  ;;  %v5653_v51 = vpop.xlane.xlu0 %5652  ;;  %v13095_v56 = vmul.f32 0.03125, %v5595_v63  ;;  %v5739_v26 = vsub.f32 %v12967_v11, %v13058_v25  ;;  %v5737_v19 = vsub.f32 %v12975_v20, %v13049_v34 }
0x1058   :  { %v5676_v21 = vmul.f32 0.03125, %v5653_v51  ;;  %v5885_v24 = vadd.f32 1.0, %v9122_v35  ;;  %v5693_v23 = vmul.f32 %v13085_v58, %v13085_v58  ;;  %9135 = vrcp.f32 %v5884_v0 }
0x1059   :  { %v9124_v7 = vpop.eup %9123  ;;  %v5655_v44 = vpop.xlane.xlu1 %5654 }
0x105a   :  { %v9126_v18 = vpop.eup %9125  ;;  %v5708_v1 = vsub.f32 %v5676_v21, %v5692_v5  ;;  %v5677_v8 = vmul.f32 0.03125, %v5655_v44  ;;  %9137 = vrcp.f32 %v5885_v24  ;;  %v5886_v50 = vadd.f32 1.0, %v9124_v7 }
0x105b   :  { %v9128_v10 = vpop.eup %9127  ;;  %v5657_v41 = vpop.xlane.xlu0 %5656  ;;  %v5784_v63 = vmul.f32 %v9126_v18, %v5736_v54  ;;  %v5695_v21 = vmul.f32 %v13095_v56, %v13095_v56 }
0x105c   :  { %v9130_v35 = vpop.eup %9129  ;;  %v5724_v51 = vmax.f32 %v5708_v1, 0.0  ;;  %v5709_v0 = vsub.f32 %v5677_v8, %v5693_v23  ;;  %v5678_v43 = vmul.f32 0.03125, %v5657_v41  ;;  %v5887_v5 = vadd.f32 1.0, %v9128_v10 }
0x105d   :  { %v5659_v24 = vpop.xlane.xlu1 %5658  ;;  %9139 = vrcp.f32 %v5886_v50  ;;  %v5785_v7 = vmul.f32 %v9130_v35, %v5737_v19  ;;  %v5804_v11 = vmul.f32 %v13037_v48, %v5784_v63 }
0x105e   :  { %v9132_v25 = vpop.eup %9131  ;;  %v5756_v20 = vadd.f32 1e-05, %v5724_v51  ;;  %v5725_v34 = vmax.f32 %v5709_v0, 0.0  ;;  %v5710_v44 = vsub.f32 %v5678_v43, %v5694_v22  ;;  %v5679_v59 = vmul.f32 0.03125, %v5659_v24 }
0x105f   :  { %v5601_v18 = vpop.xlane.xlu0 %5600  ;;  %9141 = vrcp.f32 %v5887_v5  ;;  %v5805_v23 = vmul.f32 %v13037_v48, %v5785_v7  ;;  %v13112_v1 = vadd.f32 %v13042_v37, %v5804_v11  ;;  %v5786_v35 = vmul.f32 %v9132_v25, %v5738_v14 }
0x1060   :  { %v9134_v8 = vpop.eup %9133  ;;  %9143 = vrsqrt.f32 %v5756_v20  ;;  %v5757_v50 = vadd.f32 1e-05, %v5725_v34  ;;  %v5726_v10 = vmax.f32 %v5710_v44, 0.0  ;;  %v5711_v19 = vsub.f32 %v5679_v59, %v5695_v21 }
0x1061   :  { %v5603_v43 = vpop.xlane.xlu1 %5602  ;;  %v13117_v22 = vadd.f32 %v13042_v37, %v5805_v23  ;;  %v7483_v63 = vmul.f32 -1.442695, %v13112_v1  ;;  %v5787_v5 = vmul.f32 %v9134_v8, %v5739_v26  ;;  %v13120_v7 = vmul.f32 0.03125, %v5601_v18 }
0x1062   :  { %9145 = vrsqrt.f32 %v5757_v50  ;;  %v5758_v51 = vadd.f32 1e-05, %v5726_v10  ;;  %v5727_v0 = vmax.f32 %v5711_v19, 0.0  ;;  %v9136_v24 = vpop.eup %9135  ;;  %v13122_v11 = vmul.f32 0.03125, %v5603_v43 }
0x1063   :  { %v5597_v59 = vpop.xlane.xlu0 %5596  ;;  %9147 = vpow2.f32 %v7483_v63  ;;  %v7484_v21 = vmul.f32 -1.442695, %v13117_v22  ;;  %v5740_v34 = vsub.f32 %v12995_v52, %v13083_v17  ;;  %v5741_v14 = vsub.f32 %v12999_v53, %v13085_v58 }
0x1064   :  { %v9138_v20 = vpop.eup %9137  ;;  %9149 = vrsqrt.f32 %v5758_v51  ;;  %v5759_v25 = vadd.f32 1e-05, %v5727_v0  ;;  %v13129_v44 = vmul.f32 0.03125, %v5597_v59  ;;  %v5932_v18 = vmul.f32 %v9136_v24, %v13054_v49 }
0x1065   :  { %v5599_v26 = vpop.xlane.xlu1 %5598  ;;  %v5933_v23 = vmul.f32 %v9138_v20, %v13064_v28  ;;  %9151 = vpow2.f32 %v7484_v21  ;;  %v5806_v50 = vmul.f32 %v13037_v48, %v5786_v35  ;;  %v5807_v52 = vmul.f32 %v13037_v48, %v5787_v5 }
0x1066   :  { %9153 = vrsqrt.f32 %v5759_v25  ;;  %v13133_v8 = vmul.f32 0.03125, %v5599_v26  ;;  %v5698_v53 = vmul.f32 %v13120_v7, %v13120_v7  ;;  %v5699_v58 = vmul.f32 %v13122_v11, %v13122_v11 }
0x1067   :  { %v9140_v17 = vpop.eup %9139  ;;  %v5661_v10 = vpop.xlane.xlu0 %5660  ;;  %v5948_v49 = vadd.f32 %v5932_v18, %v12798_v32  ;;  %v5949_v28 = vadd.f32 %v5933_v23, %v12802_v38  ;;  %v5696_v19 = vmul.f32 %v13129_v44, %v13129_v44  ;;  %v13153_v59 = vadd.f32 %v13042_v37, %v5806_v50 }
0x1068   :  { %v5697_v43 = vmul.f32 %v13133_v8, %v13133_v8  ;;  %v5680_v63 = vmul.f32 0.03125, %v5661_v10  ;;  %v5934_v35 = vmul.f32 %v9140_v17, %v13072_v55  ;;  %v13156_v32 = vadd.f32 %v13042_v37, %v5807_v52 }
0x1069   :  { %v9142_v51 = vpop.eup %9141  ;;  %v5663_v0 = vpop.xlane.xlu1 %5662  ;;  %v13148_v5 = vmul.f32 0.70710677, %v5948_v49  ;;  %v13150_v24 = vmul.f32 0.70710677, %v5949_v28  ;;  %v7485_v23 = vmul.f32 -1.442695, %v13153_v59 }
0x106a   :  { %v9144_v38 = vpop.eup %9143  ;;  %v5712_v21 = vsub.f32 %v5680_v63, %v5696_v19  ;;  %v5681_v20 = vmul.f32 0.03125, %v5663_v0  ;;  %v5935_v25 = vmul.f32 %v9142_v51, %v13079_v13  ;;  %v5950_v26 = vadd.f32 %v5934_v35, %v12809_v47 }
0x106b   :  { %13982 = vst [vmem:[#allocation32_spill] sm:$0xff] %v13150_v24  ;;  %v5665_v55 = vpop.xlane.xlu0 %5664  ;;  %v5999_v18 = vpack.c.bf16 %v13150_v24, %v13148_v5  ;;  %v7486_v17 = vmul.f32 -1.442695, %v13156_v32  ;;  %v5788_v50 = vmul.f32 %v9144_v38, %v5740_v34  ;;  %9155 = vpow2.f32 %v7485_v23 }
0x106c   :  { %v9146_v10 = vpop.eup %9145  ;;  %v5728_v49 = vmax.f32 %v5712_v21, 0.0  ;;  %v5713_v52 = vsub.f32 %v5681_v20, %v5697_v43  ;;  %v5682_v28 = vmul.f32 0.03125, %v5665_v55  ;;  %v5951_v19 = vadd.f32 %v5935_v25, %v12811_v12 }
0x106d   :  { %v9148_v63 = vpop.eup %9147  ;;  %v5667_v0 = vpop.xlane.xlu1 %5666  ;;  %8041 = vmatprep.mubr.bf16.mxu0 %v5999_v18  ;;  %v13165_v13 = vmul.f32 0.70710677, %v5950_v26  ;;  %v5789_v47 = vmul.f32 %v9146_v10, %v5741_v14  ;;  %v5808_v35 = vmul.f32 %v13037_v48, %v5788_v50  ;;  %9157 = vpow2.f32 %v7486_v17 }
0x106e   :  { %v9150_v51 = vpop.eup %9149  ;;  %v5760_v41 = vadd.f32 1e-05, %v5728_v49  ;;  %v5729_v54 = vmax.f32 %v5713_v52, 0.0  ;;  %v5714_v24 = vsub.f32 %v5682_v28, %v5698_v53  ;;  %v5683_v34 = vmul.f32 0.03125, %v5667_v0 }
0x106f   :  { %v9152_v38 = vpop.eup %9151  ;;  %v13168_v21 = vmul.f32 0.70710677, %v5951_v19  ;;  %v5888_v43 = vadd.f32 1.0, %v9148_v63  ;;  %v5809_v12 = vmul.f32 %v13037_v48, %v5789_v47  ;;  %v13174_v53 = vadd.f32 %v13042_v37, %v5808_v35 }
0x1070   :  { %v9154_v20 = vpop.eup %9153  ;;  %9159 = vrsqrt.f32 %v5760_v41  ;;  %v5761_v25 = vadd.f32 1e-05, %v5729_v54  ;;  %v5730_v26 = vmax.f32 %v5714_v24, 0.0  ;;  %v5715_v55 = vsub.f32 %v5683_v34, %v5699_v58 }
0x1071   :  { %v6000_v14 = vpack.c.bf16 %v13168_v21, %v13165_v13  ;;  %v5889_v18 = vadd.f32 1.0, %v9152_v38  ;;  %9161 = vrcp.f32 %v5888_v43  ;;  %v13177_v17 = vadd.f32 %v13042_v37, %v5809_v12 }
0x1072   :  { %9163 = vrsqrt.f32 %v5761_v25  ;;  %v5762_v23 = vadd.f32 1e-05, %v5730_v26  ;;  %v5731_v50 = vmax.f32 %v5715_v55, 0.0  ;;  %v7487_v54 = vmul.f32 -1.442695, %v13174_v53 }
0x1073   :  { %8042 = vmatmul.mubr.bf16.vlgmr.msra.gmra.mrb[80].mxu0 %v6000_v14  ;;  %9165 = vrcp.f32 %v5889_v18  ;;  %v13983_v41 = vsub.f32 %v12988_v29, %v13087_v39  ;;  %v13984_v24 = vsub.f32 %v12991_v4, %v13095_v56  ;;  %v7488_v52 = vmul.f32 -1.442695, %v13177_v17 }
0x1074   :  { %9167 = vrsqrt.f32 %v5762_v23  ;;  %v5763_v49 = vadd.f32 1e-05, %v5731_v50  ;;  %v5744_v56 = vsub.f32 %v13019_v30, %v13129_v44  ;;  %v5745_v43 = vsub.f32 %v13023_v60, %v13133_v8 }
0x1075   :  { %v5790_v58 = vmul.f32 %v9150_v51, %v13983_v41  ;;  %v5791_v10 = vmul.f32 %v9154_v20, %v13984_v24  ;;  %9169 = vpow2.f32 %v7487_v54  ;;  %v9156_v63 = vpop.eup %9155  ;;  %v5746_v30 = vsub.f32 %v13010_v40, %v13120_v7 }
0x1076   :  { %9171 = vrsqrt.f32 %v5763_v49  ;;  %v5890_v4 = vadd.f32 1.0, %v9156_v63  ;;  %v5747_v8 = vsub.f32 %v13015_v62, %v13122_v11 }
0x1077   :  { %v5810_v28 = vmul.f32 %v13037_v48, %v5790_v58  ;;  %v5811_v19 = vmul.f32 %v13037_v48, %v5791_v10  ;;  %9173 = vpow2.f32 %v7488_v52  ;;  %v9158_v39 = vpop.eup %9157 }
0x1078   :  { %v5891_v34 = vadd.f32 1.0, %v9158_v39  ;;  %9175 = vrcp.f32 %v5890_v4 }
0x1079   :  { %v13190_v0 = vadd.f32 %v13042_v37, %v5810_v28  ;;  %v13193_v29 = vadd.f32 %v13042_v37, %v5811_v19 }
0x107a   :  { %v9160_v51 = vpop.eup %9159 }
0x107b   :  { %v7489_v47 = vmul.f32 -1.442695, %v13190_v0  ;;  %v7490_v35 = vmul.f32 -1.442695, %v13193_v29  ;;  %v9162_v38 = vpop.eup %9161  ;;  %v5792_v12 = vmul.f32 %v9160_v51, %v5744_v56 }
0x107c   :  { %v9164_v20 = vpop.eup %9163  ;;  %v5936_v25 = vmul.f32 %v9162_v38, %v13112_v1 }
0x107d   :  { %9177 = vpow2.f32 %v7489_v47  ;;  %v9166_v26 = vpop.eup %9165  ;;  %v5793_v44 = vmul.f32 %v9164_v20, %v5745_v43  ;;  %v5812_v55 = vmul.f32 %v13037_v48, %v5792_v12 }
0x107e   :  { %9179 = vrcp.f32 %v5891_v34  ;;  %v9168_v14 = vpop.eup %9167  ;;  %v5937_v18 = vmul.f32 %v9166_v26, %v13117_v22  ;;  %v5952_v23 = vadd.f32 %v5936_v25, %v12868_v36 }
0x107f   :  { %9181 = vpow2.f32 %v7490_v35  ;;  %v9170_v60 = vpop.eup %9169  ;;  %v5813_v1 = vmul.f32 %v13037_v48, %v5793_v44  ;;  %v13211_v50 = vadd.f32 %v13042_v37, %v5812_v55  ;;  %v5794_v54 = vmul.f32 %v9168_v14, %v5746_v30 }
0x1080   :  { %v9172_v40 = vpop.eup %9171  ;;  %v5953_v7 = vadd.f32 %v5937_v18, %v12870_v3  ;;  %v5892_v41 = vadd.f32 1.0, %v9170_v60  ;;  %v13219_v62 = vmul.f32 0.70710677, %v5952_v23 }
0x1081   :  { %v9174_v58 = vpop.eup %9173  ;;  %v13215_v24 = vadd.f32 %v13042_v37, %v5813_v1  ;;  %v7491_v36 = vmul.f32 -1.442695, %v13211_v50  ;;  %v5795_v22 = vmul.f32 %v9172_v40, %v5747_v8  ;;  %v5814_v10 = vmul.f32 %v13037_v48, %v5794_v54 }
0x1082   :  { %v13221_v11 = vmul.f32 0.70710677, %v5953_v7  ;;  %v5893_v49 = vadd.f32 1.0, %v9174_v58  ;;  %9183 = vrcp.f32 %v5892_v41  ;;  %v9176_v19 = vpop.eup %9175 }
0x1083   :  { %9185 = vpow2.f32 %v7491_v36  ;;  %v7492_v52 = vmul.f32 -1.442695, %v13215_v24  ;;  %v5815_v3 = vmul.f32 %v13037_v48, %v5795_v22  ;;  %v13226_v28 = vadd.f32 %v13042_v37, %v5814_v10 }
0x1084   :  { %v6001_v63 = vpack.c.bf16 %v13221_v11, %v13219_v62  ;;  %9187 = vrcp.f32 %v5893_v49  ;;  %v5938_v39 = vmul.f32 %v9176_v19, %v13153_v59 }
0x1085   :  { %9189 = vpow2.f32 %v7492_v52  ;;  %v5835_v56 = vadd.f32 %v13042_v37, %v5815_v3  ;;  %v7493_v47 = vmul.f32 -1.442695, %v13226_v28 }
0x1086   :  { %8045 = vmatprep.mubr.bf16.mxu0 %v6001_v63  ;;  %v5954_v38 = vadd.f32 %v5938_v39, %v12883_v2 }
0x1087   :  { %v9178_v4 = vpop.eup %9177  ;;  %9191 = vpow2.f32 %v7493_v47  ;;  %v7494_v43 = vmul.f32 -1.442695, %v5835_v56 }
0x1088   :  { %v9180_v35 = vpop.eup %9179  ;;  %v5894_v51 = vadd.f32 1.0, %v9178_v4  ;;  %v13236_v59 = vmul.f32 0.70710677, %v5954_v38 }
0x1089   :  { %v9182_v48 = vpop.eup %9181  ;;  %v5939_v34 = vmul.f32 %v9180_v35, %v13156_v32 }
0x108a   :  { %v5895_v12 = vadd.f32 1.0, %v9182_v48  ;;  %9193 = vrcp.f32 %v5894_v51 }
0x108b   :  { %v5955_v20 = vadd.f32 %v5939_v34, %v12885_v6  ;;  %9195 = vpow2.f32 %v7494_v43 }
0x108c   :  { %9197 = vrcp.f32 %v5895_v12  ;;  %v9184_v25 = vpop.eup %9183 }
0x108d   :  { %v13238_v37 = vmul.f32 0.70710677, %v5955_v20  ;;  %v9186_v26 = vpop.eup %9185  ;;  %v5940_v32 = vmul.f32 %v9184_v25, %v13174_v53 }
0x108e   :  { %v9188_v2 = vpop.eup %9187  ;;  %v5896_v44 = vadd.f32 1.0, %v9186_v26 }
0x108f   :  { %v6002_v30 = vpack.c.bf16 %v13238_v37, %v13236_v59  ;;  %v9190_v55 = vpop.eup %9189  ;;  %v5941_v14 = vmul.f32 %v9188_v2, %v13177_v17  ;;  %v5956_v6 = vadd.f32 %v5940_v32, %v12895_v57 }
0x1090   :  { %v5897_v18 = vadd.f32 1.0, %v9190_v55  ;;  %9199 = vrcp.f32 %v5896_v44 }
0x1091   :  { %8046 = vmatmul.mubr.bf16.gmra.mrb[84].mxu0 %v6002_v30  ;;  %v9192_v23 = vpop.eup %9191  ;;  %v5957_v60 = vadd.f32 %v5941_v14, %v12897_v61  ;;  %v13246_v40 = vmul.f32 0.70710677, %v5956_v6 }
0x1092   :  { %9201 = vrcp.f32 %v5897_v18  ;;  %v5898_v1 = vadd.f32 1.0, %v9192_v23 }
0x1093   :  { %v13248_v53 = vmul.f32 0.70710677, %v5957_v60 }
0x1094   :  { %v9194_v8 = vpop.eup %9193  ;;  %9203 = vrcp.f32 %v5898_v1 }
0x1095   :  { %v9196_v54 = vpop.eup %9195  ;;  %v5942_v7 = vmul.f32 %v9194_v8, %v13190_v0  ;;  %v6003_v57 = vpack.c.bf16 %v13248_v53, %v13246_v40 }
0x1096   :  { %v9198_v41 = vpop.eup %9197  ;;  %v5899_v58 = vadd.f32 1.0, %v9196_v54 }
0x1097   :  { %v5943_v17 = vmul.f32 %v9198_v41, %v13193_v29  ;;  %v5958_v61 = vadd.f32 %v5942_v7, %v12903_v9  ;;  %8049 = vmatprep.mubr.bf16.mxu0 %v6003_v57 }
0x1098   :  { %9205 = vrcp.f32 %v5899_v58 }
0x1099   :  { %v5959_v36 = vadd.f32 %v5943_v17, %v12905_v33  ;;  %v13256_v22 = vmul.f32 0.70710677, %v5958_v61 }
0x109a   :  { %v9200_v49 = vpop.eup %9199 }
0x109b   :  { %v13258_v10 = vmul.f32 0.70710677, %v5959_v36  ;;  %v5944_v52 = vmul.f32 %v9200_v49, %v13211_v50 }
0x109c   :  { %v9202_v3 = vpop.eup %9201 }
0x109d   :  { %v6004_v0 = vpack.c.bf16 %v13258_v10, %v13256_v22  ;;  %v5945_v29 = vmul.f32 %v9202_v3, %v13215_v24  ;;  %v5960_v9 = vadd.f32 %v5944_v52, %v12914_v15 }
0x109e   :  { %v9204_v19 = vpop.eup %9203 }
0x109f   :  { %8050 = vmatmul.mubr.bf16.gmra.mrb[88].mxu0 %v6004_v0  ;;  %v5961_v63 = vadd.f32 %v5945_v29, %v12916_v16  ;;  %v5946_v33 = vmul.f32 %v9204_v19, %v13226_v28  ;;  %v13267_v39 = vmul.f32 0.70710677, %v5960_v9  ;;  %v13284_v28 = vld [vmem:[%s13785_s13 + $0x8] sm:$0x7] }
0x10a1   :  { %v13269_v47 = vmul.f32 0.70710677, %v5961_v63  ;;  %v5962_v51 = vadd.f32 %v5946_v33, %v12923_v27  ;;  %v13288_v27 = vrot.slane %v13284_v28, %v13979_v31 }
0x10a2   :  { %v9206_v4 = vpop.eup %9205 }
0x10a3   :  { %v5947_v35 = vmul.f32 %v9206_v4, %v5835_v56  ;;  %v6005_v50 = vpack.c.bf16 %v13269_v47, %v13267_v39  ;;  %v13275_v15 = vmul.f32 0.70710677, %v5962_v51 }
0x10a5   :  { %v5963_v24 = vadd.f32 %v5947_v35, %v12925_v42  ;;  %8053 = vmatprep.mubr.bf16.mxu0 %v6005_v50 }
0x10a7   :  { %v13277_v48 = vmul.f32 0.70710677, %v5963_v24 }
0x10a9   :  { %v6006_v16 = vpack.c.bf16 %v13277_v48, %v13275_v15 }
0x10ab   :  { %8054 = vmatmul.mubr.bf16.gmra.mrb[92].mxu0 %v6006_v16 }
0x1146   :  { %v8043_v56 = vpop.f32.mrb[80].mxu0 }
0x1147   :  { %v6093_v42 = vpop.f32.mrb[81].mxu0  ;;  %v13303_v26 = vadd.f32 %v8043_v56, %v13288_v27 }
0x1148   :  { %v13291_v34 = vadd.f32 %v6093_v42, %v13288_v27  ;;  %v8044_v38 = vpop.f32.mrb[82].mxu0  ;;  %v8249_v42 = vld [vmem:[#allocation20 + $0x4] ss:$12 sps:$4 sm:$0xff]  }
0x1149   :  { %v6096_v43 = vpop.f32.mrb[83].mxu0  ;;  %v13306_v30 = vadd.f32 %v8044_v38, %v13288_v27  ;;  %v6206_v32 = vmul.f32 %v13303_v26, %v13303_v26  ;;  %v8247_v38 = vld [vmem:[#allocation20] ss:$12 sps:$4 sm:$0xff]   ;;  %6833 = vmatprep.subr.bf16.mxu1 %v8249_v42 }
0x114a   :  { %v13294_v12 = vadd.f32 %v6096_v43, %v13288_v27  ;;  %6156 = vadd.xlane.f32.xlu0 %v13291_v34  ;;  %v6204_v20 = vmul.f32 %v13291_v34, %v13291_v34  ;;  %6834 = vmatpush1.bf16.msra.mxu1 %v8247_v38  ;;  %v8267_v38 = vld [vmem:[#allocation20 + $0x7c] ss:$12 sps:$4 sm:$0xff]  }
0x114b   :  { %v6207_v2 = vmul.f32 %v13306_v30, %v13306_v30 }
0x114c   :  { %6158 = vadd.xlane.f32.xlu1 %v13294_v12  ;;  %v6205_v25 = vmul.f32 %v13294_v12, %v13294_v12 }
0x114e   :  { %6220 = vadd.xlane.f32.xlu0 %v6204_v20  ;;  %v13985_v20 = vld [vmem:[#allocation31_spill] sm:$0xff] }
0x1150   :  { %6222 = vadd.xlane.f32.xlu1 %v6205_v25  ;;  %v6598_v25 = vsub.s32 3, %v13985_v20  ;;  %v8265_v20 = vld [vmem:[#allocation20 + $0x78] ss:$12 sps:$4 sm:$0xff]  }
0x1152   :  { %6160 = vadd.xlane.f32.xlu0 %v13303_v26 }
0x1154   :  { %6162 = vadd.xlane.f32.xlu1 %v13306_v30 }
0x1156   :  { %6224 = vadd.xlane.f32.xlu0 %v6206_v32  ;;  %v8250_v32 = vld [vmem:[#allocation20 + $0x18] ss:$12 sps:$4 sm:$0xff]  }
0x1158   :  { %6226 = vadd.xlane.f32.xlu1 %v6207_v2 }
0x1164   :  { %v8047_v44 = vpop.f32.mrb[84].mxu0 }
0x1165   :  { %v6109_v55 = vpop.f32.mrb[85].mxu0  ;;  %v13327_v1 = vadd.f32 %v8047_v44, %v13288_v27  ;;  %v9303_v44 = vld [vmem:[#allocation7] sm:$0xf] }
0x1166   :  { %v13315_v14 = vadd.f32 %v6109_v55, %v13288_v27  ;;  %v8048_v6 = vpop.f32.mrb[86].mxu0  ;;  %v13385_v55 = vrot.slane %v9303_v44, %v6598_v25  ;;  %v13991_v25 = vld [vmem:[#allocation40_spill] sm:$0xff]  ;;  %v8271_v44 = vld [vmem:[#allocation20 + $0x94] ss:$12 sps:$4 sm:$0xff]  }
0x1167   :  { %v6112_v18 = vpop.f32.mrb[87].mxu0  ;;  %v13330_v54 = vadd.f32 %v8048_v6, %v13288_v27  ;;  %v6210_v7 = vmul.f32 %v13327_v1, %v13327_v1  ;;  %v8255_v6 = vld [vmem:[#allocation20 + $0x34] ss:$12 sps:$4 sm:$0xff]  }
0x1168   :  { %v13318_v23 = vadd.f32 %v6112_v18, %v13288_v27  ;;  %6164 = vadd.xlane.f32.xlu0 %v13315_v14  ;;  %v6208_v60 = vmul.f32 %v13315_v14, %v13315_v14  ;;  %v8256_v18 = vld [vmem:[#allocation20 + $0x8] ss:$12 sps:$4 sm:$0xff]  }
0x1169   :  { %v6211_v17 = vmul.f32 %v13330_v54, %v13330_v54  ;;  %8057 = vmatprep.subr.bf16.mxu0 %v8256_v18 }
0x116a   :  { %6166 = vadd.xlane.f32.xlu1 %v13318_v23  ;;  %v6209_v8 = vmul.f32 %v13318_v23, %v13318_v23  ;;  %8058 = vmatpush3.bf16.msra.mxu0 %v8256_v18  ;;  %v8269_v18 = vld [vmem:[#allocation20 + $0x90] ss:$12 sps:$4 sm:$0xff]  }
0x116c   :  { %6228 = vadd.xlane.f32.xlu0 %v6208_v60  ;;  %v8253_v60 = vld [vmem:[#allocation20 + $0x30] ss:$12 sps:$4 sm:$0xff]  }
0x116e   :  { %6230 = vadd.xlane.f32.xlu1 %v6209_v8 }
0x1170   :  { %6168 = vadd.xlane.f32.xlu0 %v13327_v1 }
0x1172   :  { %6170 = vadd.xlane.f32.xlu1 %v13330_v54  ;;  %v8051_v41 = vpop.f32.mrb[88].mxu0 }
0x1173   :  { %v6125_v58 = vpop.f32.mrb[89].mxu0  ;;  %v13351_v3 = vadd.f32 %v8051_v41, %v13288_v27 }
0x1174   :  { %6232 = vadd.xlane.f32.xlu0 %v6210_v7  ;;  %v13337_v57 = vadd.f32 %v6125_v58, %v13288_v27  ;;  %v8052_v61 = vpop.f32.mrb[90].mxu0  ;;  %v13986_v7 = vld [vmem:[#allocation36_spill] sm:$0xff] }
0x1175   :  { %v6128_v36 = vpop.f32.mrb[91].mxu0  ;;  %v13357_v63 = vadd.f32 %v8052_v61, %v13288_v27  ;;  %v6214_v51 = vmul.f32 %v13351_v3, %v13351_v3  ;;  %v6600_v41 = vmul.f32 %v13385_v55, %v13986_v7  ;;  %v8259_v58 = vld [vmem:[#allocation20 + $0x4c] ss:$12 sps:$4 sm:$0xff]   ;;  %v8257_v61 = vld [vmem:[#allocation20 + $0x48] ss:$12 sps:$4 sm:$0xff]   ;;  %v13994_v7 = vld [vmem:[#allocation43_spill] sm:$0xff] }
0x1176   :  { %6234 = vadd.xlane.f32.xlu1 %v6211_v17  ;;  %v13342_v49 = vadd.f32 %v6128_v36, %v13288_v27  ;;  %v6212_v0 = vmul.f32 %v13337_v57, %v13337_v57  ;;  %v8260_v17 = vld [vmem:[#allocation20 + $0x20] ss:$12 sps:$4 sm:$0xff]  }
0x1177   :  { %v6215_v24 = vmul.f32 %v13357_v63, %v13357_v63  ;;  %v13987_v36 = vld [vmem:[#allocation35_spill] sm:$0xff]  ;;  %8059 = vmatprep.subr.bf16.mxu0 %v8260_v17 }
0x1178   :  { %6172 = vadd.xlane.f32.xlu0 %v13337_v57  ;;  %v6213_v52 = vmul.f32 %v13342_v49, %v13342_v49  ;;  %8060 = vmatpush3.bf16.msra.mxu0 %v8260_v17  ;;  %v8276_v17 = vld [vmem:[#allocation20 + $0x80] ss:$12 sps:$4 sm:$0xff]  }
0x117a   :  { %6174 = vadd.xlane.f32.xlu1 %v13342_v49 }
0x117c   :  { %6236 = vadd.xlane.f32.xlu0 %v6212_v0  ;;  %v6601_v0 = vmul.f32 %v13385_v55, %v13987_v36  ;;  %v13995_v36 = vld [vmem:[#allocation44_spill] sm:$0xff] }
0x117e   :  { %6238 = vadd.xlane.f32.xlu1 %v6213_v52  ;;  %v8055_v29 = vpop.f32.mrb[92].mxu0  ;;  %v13988_v52 = vld [vmem:[#allocation38_spill] sm:$0xff] }
0x117f   :  { %v13354_v9 = vadd.f32 %v8055_v29, %v13288_v27  ;;  %v6141_v19 = vpop.f32.mrb[93].mxu0  ;;  %v6602_v29 = vmul.f32 %v13385_v55, %v13988_v52  ;;  %v13996_v52 = vld [vmem:[#allocation55_spill] sm:$0xff] }
0x1180   :  { %6176 = vadd.xlane.f32.xlu0 %v13351_v3  ;;  %v8056_v33 = vpop.f32.mrb[94].mxu0  ;;  %v13367_v50 = vadd.f32 %v6141_v19, %v13288_v27  ;;  %v8263_v19 = vld [vmem:[#allocation20 + $0x64] ss:$12 sps:$4 sm:$0xff]  }
0x1181   :  { %v13361_v4 = vadd.f32 %v8056_v33, %v13288_v27  ;;  %v6144_v35 = vpop.f32.mrb[95].mxu0  ;;  %v6218_v2 = vmul.f32 %v13354_v9, %v13354_v9  ;;  %v8264_v33 = vld [vmem:[#allocation20 + $0x38] ss:$12 sps:$4 sm:$0xff]  }
0x1182   :  { %6178 = vadd.xlane.f32.xlu1 %v13357_v63  ;;  %v13372_v16 = vadd.f32 %v6144_v35, %v13288_v27  ;;  %v6216_v56 = vmul.f32 %v13367_v50, %v13367_v50  ;;  %v8252_v27 = vld [vmem:[#allocation20 + $0x1c] ss:$12 sps:$4 sm:$0xff]   ;;  %v8261_v35 = vld [vmem:[#allocation20 + $0x60] ss:$12 sps:$4 sm:$0xff]   ;;  %8061 = vmatprep.subr.bf16.mxu0 %v8264_v33 }
0x1183   :  { %6835 = vmatprep.subr.bf16.mxu1 %v8252_v27  ;;  %v6219_v8 = vmul.f32 %v13361_v4, %v13361_v4  ;;  %8062 = vmatpush3.bf16.msra.mxu0 %v8264_v33  ;;  %v6605_v27 = vmul.f32 %v13385_v55, %v13991_v25  ;;  %v13997_v33 = vld [vmem:[#allocation45_spill] sm:$0xff]  ;;  %v14001_v25 = vld [vmem:[#allocation50_spill] sm:$0xff] }
0x1184   :  { %6240 = vadd.xlane.f32.xlu0 %v6214_v51  ;;  %v6217_v43 = vmul.f32 %v13372_v16, %v13372_v16  ;;  %6836 = vmatpush1.bf16.msra.mxu1 %v8250_v32  ;;  %v13989_v51 = vld [vmem:[#allocation37_spill] sm:$0xff]  ;;  %v13992_v32 = vld [vmem:[#allocation42_spill] sm:$0xff] }
0x1185   :  { %6837 = vmatprep.subr.bf16.mxu1 %v8255_v6  ;;  %v8272_v6 = vld [vmem:[#allocation20 + $0x68] ss:$12 sps:$4 sm:$0xff]  }
0x1186   :  { %6242 = vadd.xlane.f32.xlu1 %v6215_v24  ;;  %v6603_v24 = vmul.f32 %v13385_v55, %v13989_v51  ;;  %v13998_v51 = vld [vmem:[#allocation48_spill] sm:$0xff] }
0x1188   :  { %6180 = vadd.xlane.f32.xlu0 %v13367_v50  ;;  %6838 = vmatpush1.bf16.msra.mxu1 %v8253_v60  ;;  %v13993_v60 = vld [vmem:[#allocation41_spill] sm:$0xff] }
0x1189   :  { %6839 = vmatprep.subr.bf16.mxu1 %v8259_v58  ;;  %v8275_v58 = vld [vmem:[#allocation20 + $0xac] ss:$12 sps:$4 sm:$0xff]  }
0x118a   :  { %6182 = vadd.xlane.f32.xlu1 %v13372_v16 }
0x118c   :  { %6244 = vadd.xlane.f32.xlu0 %v6216_v56  ;;  %6840 = vmatpush1.bf16.msra.mxu1 %v8257_v61  ;;  %v13990_v56 = vld [vmem:[#allocation39_spill] sm:$0xff]  ;;  %v8273_v61 = vld [vmem:[#allocation20 + $0xa8] ss:$12 sps:$4 sm:$0xff]  }
0x118d   :  { %6841 = vmatprep.subr.bf16.mxu1 %v8263_v19  ;;  %v6604_v42 = vmul.f32 %v13385_v55, %v13990_v56  ;;  %v8277_v19 = vld [vmem:[#allocation20 + $0x98] ss:$12 sps:$4 sm:$0xff]   ;;  %v8278_v56 = vld [vmem:[#allocation20 + $0xb0] ss:$12 sps:$4 sm:$0xff]  }
0x118e   :  { %6246 = vadd.xlane.f32.xlu1 %v6217_v43  ;;  %v8268_v43 = vld [vmem:[#allocation20 + $0x50] ss:$12 sps:$4 sm:$0xff]  }
0x118f   :  { %8063 = vmatprep.subr.bf16.mxu0 %v8268_v43 }
0x1190   :  { %6184 = vadd.xlane.f32.xlu0 %v13354_v9  ;;  %6842 = vmatpush1.bf16.msra.mxu1 %v8261_v35  ;;  %v6611_v35 = vmul.f32 %v13385_v55, %v13997_v33 }
0x1191   :  { %6843 = vmatprep.subr.bf16.mxu1 %v8267_v38  ;;  %8064 = vmatpush3.bf16.msra.mxu0 %v8268_v43  ;;  %v14000_v43 = vld [vmem:[#allocation49_spill] sm:$0xff] }
0x1192   :  { %6186 = vadd.xlane.f32.xlu1 %v13361_v4  ;;  %8065 = vmatprep.subr.bf16.mxu0 %v8272_v6 }
0x1194   :  { %6248 = vadd.xlane.f32.xlu0 %v6218_v2  ;;  %6844 = vmatpush1.bf16.msra.mxu1 %v8265_v20  ;;  %v6606_v2 = vmul.f32 %v13385_v55, %v13992_v32  ;;  %v6614_v20 = vmul.f32 %v13385_v55, %v14000_v43 }
0x1195   :  { %6845 = vmatprep.subr.bf16.mxu1 %v8271_v44  ;;  %8066 = vmatpush3.bf16.msra.mxu0 %v8272_v6 }
0x1196   :  { %6250 = vadd.xlane.f32.xlu1 %v6219_v8  ;;  %v6607_v8 = vmul.f32 %v13385_v55, %v13993_v60  ;;  %8067 = vmatprep.subr.bf16.mxu0 %v8276_v17 }
0x1198   :  { %6616 = vadd.xlane.f32.xlu0 %v6600_v41  ;;  %6846 = vmatpush1.bf16.msra.mxu1 %v8269_v18  ;;  %v6608_v41 = vmul.f32 %v13385_v55, %v13994_v7 }
0x1199   :  { %6847 = vmatprep.subr.bf16.mxu1 %v8275_v58  ;;  %8068 = vmatpush3.bf16.msra.mxu0 %v8276_v17 }
0x119a   :  { %6618 = vadd.xlane.f32.xlu1 %v6601_v0  ;;  %v6609_v0 = vmul.f32 %v13385_v55, %v13995_v36  ;;  %8069 = vmatprep.subr.bf16.mxu0 %v8277_v19 }
0x119c   :  { %6620 = vadd.xlane.f32.xlu0 %v6602_v29  ;;  %6848 = vmatpush1.bf16.msra.mxu1 %v8273_v61  ;;  %v6610_v29 = vmul.f32 %v13385_v55, %v13996_v52 }
0x119d   :  { %8070 = vmatpush3.bf16.msra.mxu0 %v8277_v19 }
0x119e   :  { %6622 = vadd.xlane.f32.xlu1 %v6603_v24  ;;  %v6612_v24 = vmul.f32 %v13385_v55, %v13998_v51  ;;  %8071 = vmatprep.subr.bf16.mxu0 %v8278_v56 }
0x11a0   :  { %6624 = vadd.xlane.f32.xlu0 %v6604_v42  ;;  %v13999_v42 = vld [vmem:[#allocation47_spill] sm:$0xff] }
0x11a1   :  { %v6613_v38 = vmul.f32 %v13385_v55, %v13999_v42  ;;  %8072 = vmatpush3.bf16.msra.mxu0 %v8278_v56 }
0x11a2   :  { %6626 = vadd.xlane.f32.xlu1 %v6605_v27  ;;  %v6615_v27 = vmul.f32 %v13385_v55, %v14001_v25 }
0x11a4   :  { %6628 = vadd.xlane.f32.xlu0 %v6606_v2 }
0x11a6   :  { %6630 = vadd.xlane.f32.xlu1 %v6607_v8 }
0x11a8   :  { %6632 = vadd.xlane.f32.xlu0 %v6608_v41 }
0x11aa   :  { %6634 = vadd.xlane.f32.xlu1 %v6609_v0 }
0x11ac   :  { %6636 = vadd.xlane.f32.xlu0 %v6610_v29 }
0x11ae   :  { %6638 = vadd.xlane.f32.xlu1 %v6611_v35 }
0x11b0   :  { %6640 = vadd.xlane.f32.xlu0 %v6612_v24 }
0x11b2   :  { %6642 = vadd.xlane.f32.xlu1 %v6613_v38 }
0x11b4   :  { %6644 = vadd.xlane.f32.xlu0 %v6614_v20 }
0x11b6   :  { %6646 = vadd.xlane.f32.xlu1 %v6615_v27 }
0x11d7   :  { %v6157_v32 = vpop.xlane.xlu0 %6156 }
0x11d8   :  { %v6188_v2 = vmul.f32 0.03125, %v6157_v32 }
0x11d9   :  { %v6159_v44 = vpop.xlane.xlu1 %6158 }
0x11da   :  { %v6189_v6 = vmul.f32 0.03125, %v6159_v44  ;;  %v6268_v60 = vmul.f32 %v6188_v2, %v6188_v2 }
0x11db   :  { %v6221_v18 = vpop.xlane.xlu0 %6220 }
0x11dc   :  { %v6252_v8 = vmul.f32 0.03125, %v6221_v18  ;;  %v6269_v41 = vmul.f32 %v6189_v6, %v6189_v6 }
0x11dd   :  { %v6223_v7 = vpop.xlane.xlu1 %6222 }
0x11de   :  { %v6284_v58 = vsub.f32 %v6252_v8, %v6268_v60  ;;  %v6253_v17 = vmul.f32 0.03125, %v6223_v7  ;;  %v13423_v60 = vrot.slane %v13284_v28, %v13980_v46  ;;  %v6316_v8 = vsub.f32 %v13291_v34, %v6188_v2 }
0x11df   :  { %v6161_v61 = vpop.xlane.xlu0 %6160 }
0x11e0   :  { %v6300_v36 = vmax.f32 %v6284_v58, 0.0  ;;  %v6285_v0 = vsub.f32 %v6253_v17, %v6269_v41  ;;  %v6190_v52 = vmul.f32 0.03125, %v6161_v61  ;;  %v13428_v41 = vrot.slane %v13284_v28, %v13981_v45 }
0x11e1   :  { %v6163_v29 = vpop.xlane.xlu1 %6162  ;;  %v6317_v58 = vsub.f32 %v13294_v12, %v6189_v6 }
0x11e2   :  { %v6332_v19 = vadd.f32 1e-05, %v6300_v36  ;;  %v6301_v33 = vmax.f32 %v6285_v0, 0.0  ;;  %v6191_v55 = vmul.f32 0.03125, %v6163_v29  ;;  %v6270_v24 = vmul.f32 %v6190_v52, %v6190_v52 }
0x11e3   :  { %v6225_v35 = vpop.xlane.xlu0 %6224  ;;  %v6318_v12 = vsub.f32 %v13303_v26, %v6190_v52 }
0x11e4   :  { %9207 = vrsqrt.f32 %v6332_v19  ;;  %v6333_v51 = vadd.f32 1e-05, %v6301_v33  ;;  %v6254_v56 = vmul.f32 0.03125, %v6225_v35  ;;  %v6271_v38 = vmul.f32 %v6191_v55, %v6191_v55 }
0x11e5   :  { %v6227_v42 = vpop.xlane.xlu1 %6226 }
0x11e6   :  { %9209 = vrsqrt.f32 %v6333_v51  ;;  %v6286_v43 = vsub.f32 %v6254_v56, %v6270_v24  ;;  %v6255_v20 = vmul.f32 0.03125, %v6227_v42  ;;  %v6319_v56 = vsub.f32 %v13306_v30, %v6191_v55 }
0x11e8   :  { %v6302_v25 = vmax.f32 %v6286_v43, 0.0  ;;  %v6287_v27 = vsub.f32 %v6255_v20, %v6271_v38 }
0x11ea   :  { %v6334_v32 = vadd.f32 1e-05, %v6302_v25  ;;  %v6303_v44 = vmax.f32 %v6287_v27, 0.0 }
0x11ec   :  { %9211 = vrsqrt.f32 %v6334_v32  ;;  %v6335_v18 = vadd.f32 1e-05, %v6303_v44 }
0x11ee   :  { %v9208_v7 = vpop.eup %9207  ;;  %9213 = vrsqrt.f32 %v6335_v18 }
0x11ef   :  { %v6364_v17 = vmul.f32 %v9208_v7, %v6316_v8 }
0x11f0   :  { %v9210_v61 = vpop.eup %9209 }
0x11f1   :  { %v6384_v36 = vmul.f32 %v13423_v60, %v6364_v17  ;;  %v6365_v0 = vmul.f32 %v9210_v61, %v6317_v58 }
0x11f3   :  { %v13433_v29 = vadd.f32 %v13428_v41, %v6384_v36  ;;  %v6385_v19 = vmul.f32 %v13423_v60, %v6365_v0 }
0x11f5   :  { %v6165_v33 = vpop.xlane.xlu0 %6164  ;;  %v7504_v2 = vmul.f32 -1.442695, %v13433_v29  ;;  %v13440_v28 = vadd.f32 %v13428_v41, %v6385_v19 }
0x11f6   :  { %v13436_v34 = vmul.f32 0.03125, %v6165_v33  ;;  %v9212_v35 = vpop.eup %9211 }
0x11f7   :  { %v6167_v6 = vpop.xlane.xlu1 %6166  ;;  %9215 = vpow2.f32 %v7504_v2  ;;  %v7505_v24 = vmul.f32 -1.442695, %v13440_v28  ;;  %v6366_v42 = vmul.f32 %v9212_v35, %v6318_v12 }
0x11f8   :  { %v13443_v51 = vmul.f32 0.03125, %v6167_v6  ;;  %v9214_v43 = vpop.eup %9213  ;;  %v6272_v20 = vmul.f32 %v13436_v34, %v13436_v34 }
0x11f9   :  { %v6229_v38 = vpop.xlane.xlu0 %6228  ;;  %9217 = vpow2.f32 %v7505_v24  ;;  %v6367_v27 = vmul.f32 %v9214_v43, %v6319_v56  ;;  %v6386_v26 = vmul.f32 %v13423_v60, %v6366_v42 }
0x11fa   :  { %v6256_v25 = vmul.f32 0.03125, %v6229_v38  ;;  %v6273_v52 = vmul.f32 %v13443_v51, %v13443_v51 }
0x11fb   :  { %v6231_v32 = vpop.xlane.xlu1 %6230  ;;  %v6387_v30 = vmul.f32 %v13423_v60, %v6367_v27  ;;  %v13454_v55 = vadd.f32 %v13428_v41, %v6386_v26 }
0x11fc   :  { %v6288_v44 = vsub.f32 %v6256_v25, %v6272_v20  ;;  %v6257_v18 = vmul.f32 0.03125, %v6231_v32 }
0x11fd   :  { %v6169_v8 = vpop.xlane.xlu0 %6168  ;;  %v13459_v36 = vadd.f32 %v13428_v41, %v6387_v30  ;;  %v7506_v0 = vmul.f32 -1.442695, %v13454_v55 }
0x11fe   :  { %v6304_v7 = vmax.f32 %v6288_v44, 0.0  ;;  %v6289_v58 = vsub.f32 %v6257_v18, %v6273_v52  ;;  %v13456_v17 = vmul.f32 0.03125, %v6169_v8 }
0x11ff   :  { %v6171_v61 = vpop.xlane.xlu1 %6170  ;;  %9219 = vpow2.f32 %v7506_v0  ;;  %v7507_v6 = vmul.f32 -1.442695, %v13459_v36 }
0x1200   :  { %v6336_v19 = vadd.f32 1e-05, %v6304_v7  ;;  %v6305_v33 = vmax.f32 %v6289_v58, 0.0  ;;  %v13462_v2 = vmul.f32 0.03125, %v6171_v61  ;;  %v6274_v24 = vmul.f32 %v13456_v17, %v13456_v17 }
0x1201   :  { %v6233_v12 = vpop.xlane.xlu0 %6232  ;;  %v9216_v42 = vpop.eup %9215 }
0x1202   :  { %9221 = vrsqrt.f32 %v6336_v19  ;;  %v6337_v35 = vadd.f32 1e-05, %v6305_v33  ;;  %v6258_v56 = vmul.f32 0.03125, %v6233_v12  ;;  %v6275_v38 = vmul.f32 %v13462_v2, %v13462_v2 }
0x1203   :  { %v6235_v43 = vpop.xlane.xlu1 %6234  ;;  %9223 = vpow2.f32 %v7507_v6  ;;  %v6468_v20 = vadd.f32 1.0, %v9216_v42  ;;  %v9218_v32 = vpop.eup %9217  ;;  %v6320_v12 = vsub.f32 %v13315_v14, %v13436_v34 }
0x1204   :  { %9225 = vrsqrt.f32 %v6337_v35  ;;  %v6290_v25 = vsub.f32 %v6258_v56, %v6274_v24  ;;  %v6259_v27 = vmul.f32 0.03125, %v6235_v43  ;;  %v6469_v52 = vadd.f32 1.0, %v9218_v32 }
0x1205   :  { %v6173_v26 = vpop.xlane.xlu0 %6172  ;;  %9227 = vrcp.f32 %v6468_v20 }
0x1206   :  { %v6306_v44 = vmax.f32 %v6290_v25, 0.0  ;;  %v6291_v18 = vsub.f32 %v6259_v27, %v6275_v38  ;;  %v13469_v8 = vmul.f32 0.03125, %v6173_v26  ;;  %9229 = vrcp.f32 %v6469_v52 }
0x1207   :  { %v6175_v30 = vpop.xlane.xlu1 %6174  ;;  %v6321_v25 = vsub.f32 %v13318_v23, %v13443_v51 }
0x1208   :  { %v6338_v7 = vadd.f32 1e-05, %v6306_v44  ;;  %v6307_v58 = vmax.f32 %v6291_v18, 0.0  ;;  %v13471_v61 = vmul.f32 0.03125, %v6175_v30  ;;  %v6276_v6 = vmul.f32 %v13469_v8, %v13469_v8 }
0x1209   :  { %v6237_v0 = vpop.xlane.xlu0 %6236  ;;  %v9220_v33 = vpop.eup %9219 }
0x120a   :  { %v6339_v19 = vadd.f32 1e-05, %v6307_v58  ;;  %9231 = vrsqrt.f32 %v6338_v7  ;;  %v6260_v35 = vmul.f32 0.03125, %v6237_v0  ;;  %v6277_v42 = vmul.f32 %v13471_v61, %v13471_v61 }
0x120b   :  { %v6239_v24 = vpop.xlane.xlu1 %6238  ;;  %v6470_v43 = vadd.f32 1.0, %v9220_v33 }
0x120c   :  { %v9222_v56 = vpop.eup %9221  ;;  %9233 = vrsqrt.f32 %v6339_v19  ;;  %v6261_v38 = vmul.f32 0.03125, %v6239_v24  ;;  %v6292_v32 = vsub.f32 %v6260_v35, %v6276_v6 }
0x120d   :  { %v9224_v20 = vpop.eup %9223  ;;  %v6368_v27 = vmul.f32 %v9222_v56, %v6320_v12  ;;  %v6177_v14 = vpop.xlane.xlu0 %6176  ;;  %9235 = vrcp.f32 %v6470_v43 }
0x120e   :  { %v9226_v34 = vpop.eup %9225  ;;  %v6293_v26 = vsub.f32 %v6261_v38, %v6277_v42  ;;  %v13481_v52 = vmul.f32 0.03125, %v6177_v14  ;;  %v6471_v44 = vadd.f32 1.0, %v9224_v20  ;;  %v6308_v30 = vmax.f32 %v6292_v32, 0.0 }
0x120f   :  { %v6369_v18 = vmul.f32 %v9226_v34, %v6321_v25  ;;  %v6179_v7 = vpop.xlane.xlu1 %6178  ;;  %v6388_v58 = vmul.f32 %v13423_v60, %v6368_v27  ;;  %v9228_v0 = vpop.eup %9227  ;;  %v6322_v38 = vsub.f32 %v13327_v1, %v13456_v17  ;;  %v14002_v1 = vld [vmem:[#allocation32_spill] sm:$0xff] }
0x1210   :  { %v6309_v19 = vmax.f32 %v6293_v26, 0.0  ;;  %v13484_v33 = vmul.f32 0.03125, %v6179_v7  ;;  %v6340_v24 = vadd.f32 1e-05, %v6308_v30  ;;  %v6516_v51 = vmul.f32 %v9228_v0, %v13433_v29  ;;  %v9230_v6 = vpop.eup %9229 }
0x1211   :  { %v6241_v23 = vpop.xlane.xlu0 %6240  ;;  %9237 = vrcp.f32 %v6471_v44  ;;  %v6389_v12 = vmul.f32 %v13423_v60, %v6369_v18  ;;  %v6278_v56 = vmul.f32 %v13481_v52, %v13481_v52  ;;  %v6517_v20 = vmul.f32 %v9230_v6, %v13440_v28 }
0x1212   :  { %v6341_v35 = vadd.f32 1e-05, %v6309_v19  ;;  %v6262_v42 = vmul.f32 0.03125, %v6241_v23  ;;  %v6532_v25 = vadd.f32 %v6516_v51, %v13148_v5  ;;  %v13495_v27 = vadd.f32 %v13428_v41, %v6388_v58  ;;  %v14003_v51 = vld [vmem:[#allocation51_spill] sm:$0xff] }
0x1213   :  { %v6243_v43 = vpop.xlane.xlu1 %6242  ;;  %v6279_v29 = vmul.f32 %v13484_v33, %v13484_v33  ;;  %v13500_v34 = vadd.f32 %v13428_v41, %v6389_v12  ;;  %9239 = vrsqrt.f32 %v6340_v24  ;;  %v6533_v17 = vadd.f32 %v6517_v20, %v14002_v1 }
0x1214   :  { %v6294_v32 = vsub.f32 %v6262_v42, %v6278_v56  ;;  %v6263_v14 = vmul.f32 0.03125, %v6243_v43  ;;  %v9232_v26 = vpop.eup %9231  ;;  %v6548_v18 = vmul.f32 0.70710677, %v6532_v25  ;;  %v7508_v28 = vmul.f32 -1.442695, %v13495_v27 }
0x1215   :  { %v6181_v44 = vpop.xlane.xlu0 %6180  ;;  %9241 = vrsqrt.f32 %v6341_v35  ;;  %v6323_v0 = vsub.f32 %v13330_v54, %v13462_v2  ;;  %v6549_v23 = vmul.f32 0.70710677, %v6533_v17  ;;  %v6370_v6 = vmul.f32 %v9232_v26, %v6322_v38 }
0x1216   :  { %v9234_v5 = vpop.eup %9233  ;;  %v6310_v30 = vmax.f32 %v6294_v32, 0.0  ;;  %v6295_v7 = vsub.f32 %v6263_v14, %v6279_v29  ;;  %v13504_v58 = vmul.f32 0.03125, %v6181_v44  ;;  %v6564_v12 = vadd.f32 %v6548_v18, %v14003_v51  ;;  %v14004_v29 = vld [vmem:[#allocation52_spill] sm:$0xff] }
0x1217   :  { %v6183_v19 = vpop.xlane.xlu1 %6182  ;;  %9243 = vpow2.f32 %v7508_v28  ;;  %v9236_v24 = vpop.eup %9235  ;;  %v7509_v43 = vmul.f32 -1.442695, %v13500_v34  ;;  %v6371_v20 = vmul.f32 %v9234_v5, %v6323_v0  ;;  %v6565_v32 = vadd.f32 %v6549_v23, %v14004_v29 }
0x1218   :  { %v6342_v56 = vadd.f32 1e-05, %v6310_v30  ;;  %v6311_v42 = vmax.f32 %v6295_v7, 0.0  ;;  %v13510_v35 = vmul.f32 0.03125, %v6183_v19  ;;  %v6518_v14 = vmul.f32 %v9236_v24, %v13454_v55 }
0x1219   :  { %v6245_v25 = vpop.xlane.xlu0 %6244  ;;  %v6280_v2 = vmul.f32 %v13504_v58, %v13504_v58  ;;  %v6580_v1 = vmul.f32 0.70710677, %v6564_v12  ;;  %v6581_v18 = vmul.f32 0.70710677, %v6565_v32  ;;  %v6390_v23 = vmul.f32 %v13423_v60, %v6370_v6 }
0x121a   :  { %v6343_v54 = vadd.f32 1e-05, %v6311_v42  ;;  %v6264_v44 = vmul.f32 0.03125, %v6245_v25  ;;  %9245 = vrsqrt.f32 %v6342_v56  ;;  %v6281_v38 = vmul.f32 %v13510_v35, %v13510_v35 }
0x121b   :  { %v9238_v17 = vpop.eup %9237  ;;  %v6247_v26 = vpop.xlane.xlu1 %6246  ;;  %v6534_v28 = vadd.f32 %v6518_v14, %v13165_v13  ;;  %v6648_v0 = vpack.c.bf16 %v6581_v18, %v6580_v1  ;;  %v6324_v42 = vsub.f32 %v13337_v57, %v13469_v8  ;;  %v14005_v14 = vmov 0  }
0x121c   :  { %9247 = vrsqrt.f32 %v6343_v54  ;;  %v6296_v5 = vsub.f32 %v6264_v44, %v6280_v2  ;;  %v6265_v30 = vmul.f32 0.03125, %v6247_v26  ;;  %v6519_v55 = vmul.f32 %v9238_v17, %v13459_v36  ;;  %v14006_v54 = vld [vmem:[#allocation53_spill] sm:$0xff] }
0x121d   :  { %v6185_v7 = vpop.xlane.xlu0 %6184  ;;  %v6550_v19 = vmul.f32 0.70710677, %v6534_v28  ;;  %9249 = vpow2.f32 %v7509_v43  ;;  %v9240_v56 = vpop.eup %9239  ;;  %6866 = vmatmul.mubr.bf16.vlgmr.msra.gmra.mrb[96].mxu1 %v6648_v0  ;;  %8073 = vmatprep.mubr.bf16.mxu0 %v6648_v0  ;;  %v6391_v36 = vmul.f32 %v13423_v60, %v6371_v20  ;;  %v6325_v43 = vsub.f32 %v13342_v49, %v13471_v61  ;;  %v14007_v28 = vld [vmem:[#allocation54_spill] sm:$0xff] }
0x121e   :  { %v6312_v51 = vmax.f32 %v6296_v5, 0.0  ;;  %v6297_v12 = vsub.f32 %v6265_v30, %v6281_v38  ;;  %v13521_v24 = vmul.f32 0.03125, %v6185_v7  ;;  %v6535_v25 = vadd.f32 %v6519_v55, %v13168_v21  ;;  %6875 = vmatprep.mubr.bf16.mxu1 %v14005_v14 }
0x121f   :  { %v6187_v13 = vpop.xlane.xlu1 %6186  ;;  %v9242_v29 = vpop.eup %9241  ;;  %v6566_v2 = vadd.f32 %v6550_v19, %v14006_v54  ;;  %v13536_v20 = vadd.f32 %v13428_v41, %v6390_v23  ;;  %v6372_v38 = vmul.f32 %v9240_v56, %v6324_v42  ;;  %v13542_v30 = vadd.f32 %v13428_v41, %v6391_v36 }
0x1220   :  { %v6344_v6 = vadd.f32 1e-05, %v6312_v51  ;;  %v6313_v32 = vmax.f32 %v6297_v12, 0.0  ;;  %v6282_v57 = vmul.f32 %v13521_v24, %v13521_v24  ;;  %v13533_v8 = vmul.f32 0.03125, %v6187_v13 }
0x1221   :  { %v9244_v44 = vpop.eup %9243  ;;  %v6249_v1 = vpop.xlane.xlu0 %6248  ;;  %v6551_v21 = vmul.f32 0.70710677, %v6535_v25  ;;  %v7510_v0 = vmul.f32 -1.442695, %v13536_v20  ;;  %v6582_v23 = vmul.f32 0.70710677, %v6566_v2  ;;  %v6326_v36 = vsub.f32 %v13351_v3, %v13481_v52 }
0x1222   :  { %9251 = vrsqrt.f32 %v6344_v6  ;;  %v6345_v17 = vadd.f32 1e-05, %v6313_v32  ;;  %v6266_v49 = vmul.f32 0.03125, %v6249_v1  ;;  %v6472_v61 = vadd.f32 1.0, %v9244_v44 }
0x1223   :  { %v6283_v26 = vmul.f32 %v13533_v8, %v13533_v8  ;;  %v6251_v18 = vpop.xlane.xlu1 %6250  ;;  %v6567_v5 = vadd.f32 %v6551_v21, %v14007_v28  ;;  %v7511_v12 = vmul.f32 -1.442695, %v13542_v30  ;;  %v6373_v6 = vmul.f32 %v9242_v29, %v6325_v43 }
0x1224   :  { %9253 = vrsqrt.f32 %v6345_v17  ;;  %v6298_v55 = vsub.f32 %v6266_v49, %v6282_v57  ;;  %v6267_v7 = vmul.f32 0.03125, %v6251_v18  ;;  %v9246_v19 = vpop.eup %9245  ;;  %v6327_v54 = vsub.f32 %v13357_v63, %v13484_v33 }
0x1225   :  { %v6583_v51 = vmul.f32 0.70710677, %v6567_v5  ;;  %9255 = vrcp.f32 %v6472_v61  ;;  %v6374_v2 = vmul.f32 %v9246_v19, %v6326_v36  ;;  %v6392_v21 = vmul.f32 %v13423_v60, %v6372_v38 }
0x1226   :  { %v9248_v56 = vpop.eup %9247  ;;  %v6314_v42 = vmax.f32 %v6298_v55, 0.0  ;;  %v6299_v13 = vsub.f32 %v6267_v7, %v6283_v26  ;;  %9257 = vpow2.f32 %v7510_v0  ;;  %v6328_v3 = vsub.f32 %v13367_v50, %v13504_v58 }
0x1227   :  { %v9250_v25 = vpop.eup %9249  ;;  %v6649_v32 = vpack.c.bf16 %v6583_v51, %v6582_v23  ;;  %9259 = vpow2.f32 %v7511_v12  ;;  %v6375_v17 = vmul.f32 %v9248_v56, %v6327_v54  ;;  %v6393_v63 = vmul.f32 %v13423_v60, %v6373_v6 }
0x1228   :  { %v6346_v44 = vadd.f32 1e-05, %v6314_v42  ;;  %v6315_v57 = vmax.f32 %v6299_v13, 0.0  ;;  %v6473_v1 = vadd.f32 1.0, %v9250_v25  ;;  %v13556_v52 = vadd.f32 %v13428_v41, %v6392_v21 }
0x1229   :  { %6876 = vmatmul.mubr.bf16.gmra.mrb[100].mxu1 %v6649_v32  ;;  %8074 = vmatmul.mubr.bf16.vlgmr.msra.gmra.mrb[96].mxu0 %v6649_v32  ;;  %v13559_v49 = vadd.f32 %v13428_v41, %v6393_v63  ;;  %v6394_v38 = vmul.f32 %v13423_v60, %v6374_v2  ;;  %v6395_v18 = vmul.f32 %v13423_v60, %v6375_v17 }
0x122a   :  { %9261 = vrsqrt.f32 %v6346_v44  ;;  %v6347_v29 = vadd.f32 1e-05, %v6315_v57  ;;  %6885 = vmatprep.mubr.bf16.mxu1 %v14005_v14  ;;  %v7512_v61 = vmul.f32 -1.442695, %v13556_v52  ;;  %v6329_v5 = vsub.f32 %v13372_v16, %v13510_v35 }
0x122b   :  { %9263 = vrcp.f32 %v6473_v1  ;;  %v7513_v58 = vmul.f32 -1.442695, %v13559_v49  ;;  %v13566_v28 = vadd.f32 %v13428_v41, %v6394_v38  ;;  %v13572_v0 = vadd.f32 %v13428_v41, %v6395_v18  ;;  %v14008_v1 = vld [vmem:[#allocation46_spill] sm:$0xff] }
0x122c   :  { %v9252_v33 = vpop.eup %9251  ;;  %9265 = vrsqrt.f32 %v6347_v29  ;;  %v6330_v16 = vsub.f32 %v13354_v9, %v13521_v24 }
0x122d   :  { %v6376_v43 = vmul.f32 %v9252_v33, %v6328_v3  ;;  %9267 = vpow2.f32 %v7512_v61  ;;  %v7514_v19 = vmul.f32 -1.442695, %v13566_v28  ;;  %v7515_v6 = vmul.f32 -1.442695, %v13572_v0  ;;  %v14009_v33 = vld [vmem:[#allocation56_spill] sm:$0xff] }
0x122e   :  { %v9254_v26 = vpop.eup %9253  ;;  %9269 = vpow2.f32 %v7513_v58 }
0x122f   :  { %v9256_v50 = vpop.eup %9255  ;;  %v6396_v23 = vmul.f32 %v13423_v60, %v6376_v43  ;;  %v6377_v51 = vmul.f32 %v9254_v26, %v6329_v5  ;;  %9271 = vpow2.f32 %v7514_v19 }
0x1230   :  { %v6520_v55 = vmul.f32 %v9256_v50, %v13495_v27  ;;  %v9258_v7 = vpop.eup %9257  ;;  %v6331_v27 = vsub.f32 %v13361_v4, %v13533_v8 }
0x1231   :  { %v9260_v56 = vpop.eup %9259  ;;  %v6474_v42 = vadd.f32 1.0, %v9258_v7  ;;  %v13583_v36 = vadd.f32 %v13428_v41, %v6396_v23  ;;  %v6397_v44 = vmul.f32 %v13423_v60, %v6377_v51 }
0x1232   :  { %v6536_v12 = vadd.f32 %v6520_v55, %v13219_v62  ;;  %v6475_v25 = vadd.f32 1.0, %v9260_v56 }
0x1233   :  { %9273 = vrcp.f32 %v6474_v42  ;;  %v7516_v24 = vmul.f32 -1.442695, %v13583_v36  ;;  %v13591_v17 = vadd.f32 %v13428_v41, %v6397_v44 }
0x1234   :  { %v9262_v13 = vpop.eup %9261  ;;  %v6552_v54 = vmul.f32 0.70710677, %v6536_v12  ;;  %9275 = vrcp.f32 %v6475_v25 }
0x1235   :  { %v9264_v35 = vpop.eup %9263  ;;  %v6378_v57 = vmul.f32 %v9262_v13, %v6330_v16  ;;  %9277 = vpow2.f32 %v7515_v6  ;;  %v7517_v58 = vmul.f32 -1.442695, %v13591_v17  ;;  %v14010_v6 = vld [vmem:[#allocation57_spill] sm:$0xff] }
0x1236   :  { %v9266_v32 = vpop.eup %9265  ;;  %v6521_v62 = vmul.f32 %v9264_v35, %v13500_v34  ;;  %v6568_v21 = vadd.f32 %v6552_v54, %v14008_v1  ;;  %9279 = vpow2.f32 %v7516_v24 }
0x1237   :  { %v6379_v2 = vmul.f32 %v9266_v32, %v6331_v27  ;;  %v9268_v4 = vpop.eup %9267  ;;  %v6398_v3 = vmul.f32 %v13423_v60, %v6378_v57 }
0x1238   :  { %v6537_v9 = vadd.f32 %v6521_v62, %v13221_v11  ;;  %v9270_v29 = vpop.eup %9269  ;;  %v6476_v34 = vadd.f32 1.0, %v9268_v4  ;;  %v6584_v18 = vmul.f32 0.70710677, %v6568_v21 }
0x1239   :  { %v6399_v63 = vmul.f32 %v13423_v60, %v6379_v2  ;;  %v9272_v11 = vpop.eup %9271  ;;  %v6477_v61 = vadd.f32 1.0, %v9270_v29  ;;  %v13597_v38 = vadd.f32 %v13428_v41, %v6398_v3  ;;  %v14012_v3 = vld [vmem:[#allocation59_spill] sm:$0xff] }
0x123a   :  { %v6553_v8 = vmul.f32 0.70710677, %v6537_v9  ;;  %9281 = vrcp.f32 %v6476_v34  ;;  %v6478_v55 = vadd.f32 1.0, %v9272_v11 }
0x123b   :  { %v13600_v26 = vadd.f32 %v13428_v41, %v6399_v63  ;;  %9283 = vrcp.f32 %v6477_v61  ;;  %v7518_v60 = vmul.f32 -1.442695, %v13597_v38 }
0x123c   :  { %v6569_v43 = vadd.f32 %v6553_v8, %v14009_v33  ;;  %9285 = vrcp.f32 %v6478_v55 }
0x123d   :  { %v9274_v5 = vpop.eup %9273  ;;  %v7519_v51 = vmul.f32 -1.442695, %v13600_v26  ;;  %9287 = vpow2.f32 %v7517_v58 }
0x123e   :  { %v6585_v50 = vmul.f32 0.70710677, %v6569_v43  ;;  %v9276_v19 = vpop.eup %9275  ;;  %v6522_v23 = vmul.f32 %v9274_v5, %v13536_v20  ;;  %9289 = vpow2.f32 %v7518_v60 }
0x123f   :  { %v9278_v41 = vpop.eup %9277  ;;  %v6523_v12 = vmul.f32 %v9276_v19, %v13542_v30  ;;  %9291 = vpow2.f32 %v7519_v51  ;;  %v14011_v30 = vld [vmem:[#allocation58_spill] sm:$0xff]  ;;  %v14014_v19 = vld [vmem:[#allocation61_spill] sm:$0xff] }
0x1240   :  { %v6650_v7 = vpack.c.bf16 %v6585_v50, %v6584_v18  ;;  %v6538_v56 = vadd.f32 %v6522_v23, %v13236_v59  ;;  %v6479_v42 = vadd.f32 1.0, %v9278_v41  ;;  %v9280_v13 = vpop.eup %9279  ;;  %v14015_v41 = vld [vmem:[#allocation62_spill] sm:$0xff] }
0x1241   :  { %v6539_v16 = vadd.f32 %v6523_v12, %v13238_v37  ;;  %v6480_v20 = vadd.f32 1.0, %v9280_v13 }
0x1242   :  { %6886 = vmatmul.mubr.bf16.gmra.mrb[104].mxu1 %v6650_v7  ;;  %8077 = vmatprep.mubr.bf16.mxu0 %v6650_v7  ;;  %v6554_v27 = vmul.f32 0.70710677, %v6538_v56  ;;  %9293 = vrcp.f32 %v6479_v42 }
0x1243   :  { %6895 = vmatprep.mubr.bf16.mxu1 %v14005_v14  ;;  %v6555_v25 = vmul.f32 0.70710677, %v6539_v16  ;;  %9295 = vrcp.f32 %v6480_v20 }
0x1244   :  { %v9282_v35 = vpop.eup %9281  ;;  %v6570_v32 = vadd.f32 %v6554_v27, %v14010_v6  ;;  %v14016_v6 = vld [vmem:[#allocation63_spill] sm:$0xff] }
0x1245   :  { %v6524_v62 = vmul.f32 %v9282_v35, %v13556_v52  ;;  %v9284_v54 = vpop.eup %9283  ;;  %v6571_v44 = vadd.f32 %v6555_v25, %v14011_v30 }
0x1246   :  { %v6525_v59 = vmul.f32 %v9284_v54, %v13559_v49  ;;  %v9286_v2 = vpop.eup %9285  ;;  %v6586_v37 = vmul.f32 0.70710677, %v6570_v32 }
0x1247   :  { %v6540_v57 = vadd.f32 %v6524_v62, %v13246_v40  ;;  %v6587_v9 = vmul.f32 0.70710677, %v6571_v44  ;;  %v9288_v4 = vpop.eup %9287  ;;  %v6526_v1 = vmul.f32 %v9286_v2, %v13566_v28 }
0x1248   :  { %v6541_v24 = vadd.f32 %v6525_v59, %v13248_v53  ;;  %v9290_v21 = vpop.eup %9289  ;;  %v6481_v52 = vadd.f32 1.0, %v9288_v4  ;;  %v14013_v53 = vld [vmem:[#allocation60_spill] sm:$0xff] }
0x1249   :  { %v6556_v8 = vmul.f32 0.70710677, %v6540_v57  ;;  %v6651_v29 = vpack.c.bf16 %v6587_v9, %v6586_v37  ;;  %v6542_v33 = vadd.f32 %v6526_v1, %v13256_v22  ;;  %v6482_v49 = vadd.f32 1.0, %v9290_v21  ;;  %v9292_v43 = vpop.eup %9291  ;;  %v14019_v37 = vld [vmem:[#allocation66_spill] sm:$0xff] }
0x124a   :  { %v6557_v34 = vmul.f32 0.70710677, %v6541_v24  ;;  %9297 = vrcp.f32 %v6481_v52  ;;  %v6483_v61 = vadd.f32 1.0, %v9292_v43 }
0x124b   :  { %v6572_v63 = vadd.f32 %v6556_v8, %v14012_v3  ;;  %6896 = vmatmul.mubr.bf16.gmra.mrb[108].mxu1 %v6651_v29  ;;  %8078 = vmatmul.mubr.bf16.gmra.mrb[100].mxu0 %v6651_v29  ;;  %v6558_v18 = vmul.f32 0.70710677, %v6542_v33  ;;  %9299 = vrcp.f32 %v6482_v49  ;;  %v6688_v8 = vld [vmem:[%s13787_s15] ss:$2 sm:$0x7] }
0x124c   :  { %v9294_v40 = vpop.eup %9293  ;;  %6905 = vmatprep.mubr.bf16.mxu1 %v14005_v14  ;;  %v6573_v11 = vadd.f32 %v6557_v34, %v14013_v53  ;;  %9301 = vrcp.f32 %v6483_v61  ;;  %v13650_v21 = vrot.slane %v6688_v8, %v13979_v31  ;;  %v13656_v52 = vrot.slane %v6688_v8, %v13980_v46  ;;  %v6619_v34 = vpop.xlane.xlu1 %6618 }
0x124d   :  { %v6527_v28 = vmul.f32 %v9294_v40, %v13572_v0  ;;  %v9296_v50 = vpop.eup %9295  ;;  %v6588_v58 = vmul.f32 0.70710677, %v6572_v63  ;;  %v6574_v23 = vadd.f32 %v6558_v18, %v14014_v19 }
0x124e   :  { %v6589_v5 = vmul.f32 0.70710677, %v6573_v11  ;;  %v6528_v55 = vmul.f32 %v9296_v50, %v13583_v36 }
0x124f   :  { %v6543_v22 = vadd.f32 %v6527_v28, %v13258_v10  ;;  %v6590_v56 = vmul.f32 0.70710677, %v6574_v23 }
0x1250   :  { %v6652_v60 = vpack.c.bf16 %v6589_v5, %v6588_v58  ;;  %v6544_v51 = vadd.f32 %v6528_v55, %v13267_v39 }
0x1251   :  { %v6559_v7 = vmul.f32 0.70710677, %v6543_v22 }
0x1252   :  { %8081 = vmatprep.mubr.bf16.mxu0 %v6652_v60  ;;  %v6560_v10 = vmul.f32 0.70710677, %v6544_v51 }
0x1253   :  { %6906 = vmatmul.mubr.bf16.gmra.mrb[112].mxu1 %v6652_v60  ;;  %v6575_v0 = vadd.f32 %v6559_v7, %v14015_v41  ;;  %v13670_v60 = vrot.slane %v6688_v8, %v13981_v45  ;;  %v6623_v7 = vpop.xlane.xlu1 %6622 }
0x1254   :  { %6915 = vmatprep.mubr.bf16.mxu1 %v14005_v14  ;;  %v9298_v12 = vpop.eup %9297  ;;  %v6576_v32 = vadd.f32 %v6560_v10, %v14016_v6 }
0x1255   :  { %v6591_v42 = vmul.f32 0.70710677, %v6575_v0  ;;  %v6529_v13 = vmul.f32 %v9298_v12, %v13591_v17  ;;  %v9300_v16 = vpop.eup %9299  ;;  %v14017_v17 = vld [vmem:[#allocation64_spill] sm:$0xff] }
0x1256   :  { %v9302_v27 = vpop.eup %9301  ;;  %v6530_v35 = vmul.f32 %v9300_v16, %v13597_v38  ;;  %v14018_v38 = vld [vmem:[#allocation65_spill] sm:$0xff] }
0x1257   :  { %v6653_v36 = vpack.c.bf16 %v6591_v42, %v6590_v56  ;;  %v6545_v20 = vadd.f32 %v6529_v13, %v13269_v47  ;;  %v6531_v39 = vmul.f32 %v9302_v27, %v13600_v26  ;;  %v6592_v47 = vmul.f32 0.70710677, %v6576_v32 }
0x1258   :  { %v6546_v62 = vadd.f32 %v6530_v35, %v13275_v15 }
0x1259   :  { %8082 = vmatmul.mubr.bf16.gmra.mrb[104].mxu0 %v6653_v36  ;;  %v6561_v25 = vmul.f32 0.70710677, %v6545_v20  ;;  %v6547_v54 = vadd.f32 %v6531_v39, %v13277_v48  ;;  %v7544_v48 = vld [vmem:[%s13787_s15 + $0x1] ss:$2 sm:$0x7]  ;;  %s9625_s15 = smov [#allocation22]  }
0x125a   :  { %v6562_v44 = vmul.f32 0.70710677, %v6546_v62  ;;  %v13647_v1 = vrot.slane %v7544_v48, %v13979_v31  ;;  %v13653_v29 = vrot.slane %v7544_v48, %v13980_v46  ;;  %v13667_v5 = vrot.slane %v7544_v48, %v13981_v45  ;;  %s7210_s26 = sshll.u32 %s9625_s15, 4  ;;  %s7211_s26 = int_to_ptr.vmem [resolvable:$true] %s7210_s26 }
0x125b   :  { %6916 = vmatmul.mubr.bf16.gmra.mrb[116].mxu1 %v6653_v36  ;;  %v6577_v30 = vadd.f32 %v6561_v25, %v14017_v17  ;;  %v6563_v59 = vmul.f32 0.70710677, %v6547_v54  ;;  %s9568_s29 = scalar_lea.vmem %s7211_s26, 6144  ;;  %p9573_p13 = scmp.lt.s32.totalorder %s7211_s26, %s7211_s26 }
0x125c   :  { %6925 = vmatprep.mubr.bf16.mxu1 %v14005_v14  ;;  %v6578_v2 = vadd.f32 %v6562_v44, %v14018_v38  ;;  %v7064_v53 = vmul.f32 %v13647_v1, %v6619_v34  ;;  %v7065_v46 = vmul.f32 %v13653_v29, %v6619_v34  ;;  %v7066_v23 = vmul.f32 %v13667_v5, %v6619_v34  ;;  %p9569_p12 = scmp.ne.s32.totalorder %s7211_s26, %s9568_s29  ;;  %p9574_p0 = scmp.lt.s32.totalorder %s9568_s29, %s9568_s29 }
0x125d   :  { %v6593_v57 = vmul.f32 0.70710677, %v6577_v30  ;;  %v6579_v26 = vadd.f32 %v6563_v59, %v14019_v37  ;;  %v7070_v42 = vmul.f32 %v13647_v1, %v6623_v7  ;;  %v7071_v36 = vmul.f32 %v13653_v29, %v6623_v7 }
0x125e   :  { %v6594_v4 = vmul.f32 0.70710677, %v6578_v2  ;;  %v7072_v27 = vmul.f32 %v13667_v5, %v6623_v7  ;;  %p9575_p1 = por %p9574_p0, %p9573_p13 }
0x125f   :  { %v6654_v9 = vpack.c.bf16 %v6593_v57, %v6592_v47  ;;  %v6595_v24 = vmul.f32 0.70710677, %v6579_v26 }
0x1260   :  { %p9576_p2 = pnand %p9575_p1, %p9569_p12 }
0x1261   :  { %8085 = vmatprep.mubr.bf16.mxu0 %v6654_v9  ;;  %v6655_v15 = vpack.c.bf16 %v6595_v24, %v6594_v4  ;;  %v6627_v4 = vpop.xlane.xlu1 %6626 }
0x1263   :  { %6926 = vmatmul.mubr.bf16.gmra.mrb[120].mxu1 %v6654_v9  ;;  %8086 = vmatmul.mubr.bf16.gmra.mrb[108].mxu0 %v6655_v15 }
0x1264   :  { %6935 = vmatprep.mubr.bf16.mxu1 %v14005_v14  ;;  %v6617_v14 = vpop.xlane.xlu0 %6616 }
0x1265   :  { %v7061_v63 = vmul.f32 %v13647_v1, %v6617_v14  ;;  %v7062_v43 = vmul.f32 %v13653_v29, %v6617_v14  ;;  %v7063_v19 = vmul.f32 %v13667_v5, %v6617_v14 }
0x1268   :  { %v6621_v55 = vpop.xlane.xlu0 %6620 }
0x1269   :  { %v7067_v51 = vmul.f32 %v13647_v1, %v6621_v55  ;;  %v7068_v41 = vmul.f32 %v13653_v29, %v6621_v55  ;;  %v7069_v56 = vmul.f32 %v13667_v5, %v6621_v55 }
0x126b   :  { %6936 = vmatmul.mubr.bf16.gmra.mrb[124].mxu1 %v6655_v15 }
0x126c   :  { %v6625_v9 = vpop.xlane.xlu0 %6624 }
0x126d   :  { %v7073_v15 = vmul.f32 %v13647_v1, %v6625_v9  ;;  %v7074_v14 = vmul.f32 %v13653_v29, %v6625_v9 }
0x12f0   :  { %v6867_v3 = vpop.f32.mrb[96].mxu1 }
0x12f1   :  { %v6868_v33 = vadd.f32 %v6867_v3, %v13650_v21  ;;  %v6869_v49 = vpop.f32.mrb[97].mxu1 }
0x12f2   :  { %v6870_v40 = vadd.f32 %v6869_v49, %v13656_v52  ;;  %v6871_v31 = vpop.f32.mrb[98].mxu1 }
0x12f3   :  { %v7109_v11 = vadd.f32 %v7061_v63, %v6868_v33  ;;  %v6872_v61 = vadd.f32 %v6871_v31, %v13650_v21  ;;  %v6873_v28 = vpop.f32.mrb[99].mxu1  ;;  %v7076_v63 = vmul.f32 %v13647_v1, %v6627_v4 }
0x12f4   :  { %v7110_v18 = vadd.f32 %v7062_v43, %v6870_v40  ;;  %v6874_v50 = vadd.f32 %v6873_v28, %v13656_v52  ;;  %v7077_v40 = vmul.f32 %v13653_v29, %v6627_v4  ;;  %v6629_v28 = vpop.xlane.xlu0 %6628 }
0x12f5   :  { %7157 = vst [vmem:[#allocation22] sm:$0xff] %v7109_v11  ;;  %v7112_v58 = vadd.f32 %v7064_v53, %v6872_v61 }
0x12f6   :  { %7158 = vst [vmem:[#allocation22 + $0x8] sm:$0xff] %v7110_v18  ;;  %v7113_v22 = vadd.f32 %v7065_v46, %v6874_v50  ;;  %v6631_v46 = vpop.xlane.xlu1 %6630  ;;  %v7075_v18 = vmul.f32 %v13667_v5, %v6625_v9  ;;  %v7078_v50 = vmul.f32 %v13667_v5, %v6627_v4 }
0x12f7   :  { %7160 = vst [vmem:[#allocation22 + $0x18] sm:$0xff] %v7112_v58  ;;  %v7079_v58 = vmul.f32 %v13647_v1, %v6629_v28 }
0x12f8   :  { %7161 = vst [vmem:[#allocation22 + $0x20] sm:$0xff] %v7113_v22  ;;  %v7080_v22 = vmul.f32 %v13653_v29, %v6629_v28 }
0x12fc   :  { %v6877_v0 = vpop.f32.mrb[100].mxu1  ;;  %v8075_v12 = vpop.f32.mrb[96].mxu0 }
0x12fd   :  { %v6878_v13 = vadd.f32 %v6877_v0, %v13650_v21  ;;  %v6989_v45 = vadd.f32 %v8075_v12, %v13670_v60  ;;  %v6879_v10 = vpop.f32.mrb[101].mxu1  ;;  %v6980_v16 = vpop.f32.mrb[97].mxu0 }
0x12fe   :  { %v6880_v20 = vadd.f32 %v6879_v10, %v13656_v52  ;;  %v6981_v35 = vadd.f32 %v6980_v16, %v13670_v60  ;;  %v6881_v39 = vpop.f32.mrb[102].mxu1  ;;  %v8076_v25 = vpop.f32.mrb[98].mxu0 }
0x12ff   :  { %v7115_v6 = vadd.f32 %v7067_v51, %v6878_v13  ;;  %v7117_v32 = vadd.f32 %v7069_v56, %v6989_v45  ;;  %v6882_v62 = vadd.f32 %v6881_v39, %v13650_v21  ;;  %v6992_v54 = vadd.f32 %v8076_v25, %v13670_v60  ;;  %v6883_v17 = vpop.f32.mrb[103].mxu1  ;;  %v6983_v30 = vpop.f32.mrb[99].mxu0 }
0x1300   :  { %v7116_v44 = vadd.f32 %v7068_v41, %v6880_v20  ;;  %v7111_v59 = vadd.f32 %v7063_v19, %v6981_v35  ;;  %v6884_v47 = vadd.f32 %v6883_v17, %v13656_v52  ;;  %v6984_v57 = vadd.f32 %v6983_v30, %v13670_v60 }
0x1301   :  { %7163 = vst [vmem:[#allocation22 + $0x30] sm:$0xff] %v7115_v6  ;;  %7165 = vst [vmem:[#allocation22 + $0x40] sm:$0xff] %v7117_v32  ;;  %v7118_v38 = vadd.f32 %v7070_v42, %v6882_v62  ;;  %v7120_v2 = vadd.f32 %v7072_v27, %v6992_v54  ;;  %v7081_v19 = vmul.f32 %v13667_v5, %v6629_v28 }
0x1302   :  { %7164 = vst [vmem:[#allocation22 + $0x38] sm:$0xff] %v7116_v44  ;;  %7159 = vst [vmem:[#allocation22 + $0x10] sm:$0xff] %v7111_v59  ;;  %v7119_v37 = vadd.f32 %v7071_v36, %v6884_v47  ;;  %v7114_v26 = vadd.f32 %v7066_v23, %v6984_v57  ;;  %v7082_v23 = vmul.f32 %v13647_v1, %v6631_v46  ;;  %v6633_v44 = vpop.xlane.xlu0 %6632  ;;  %v6635_v57 = vpop.xlane.xlu1 %6634 }
0x1303   :  { %7166 = vst [vmem:[#allocation22 + $0x48] sm:$0xff] %v7118_v38  ;;  %7168 = vst [vmem:[#allocation22 + $0x58] sm:$0xff] %v7120_v2  ;;  %v7083_v56 = vmul.f32 %v13653_v29, %v6631_v46  ;;  %v7084_v42 = vmul.f32 %v13667_v5, %v6631_v46  ;;  %v7085_v2 = vmul.f32 %v13647_v1, %v6633_v44 }
0x1304   :  { %7167 = vst [vmem:[#allocation22 + $0x50] sm:$0xff] %v7119_v37  ;;  %7162 = vst [vmem:[#allocation22 + $0x28] sm:$0xff] %v7114_v26  ;;  %v7086_v9 = vmul.f32 %v13653_v29, %v6633_v44  ;;  %v7087_v28 = vmul.f32 %v13667_v5, %v6633_v44  ;;  %v7090_v46 = vmul.f32 %v13667_v5, %v6635_v57 }
0x1315   :  { %v6887_v24 = vpop.f32.mrb[104].mxu1 }
0x1316   :  { %v6888_v48 = vadd.f32 %v6887_v24, %v13650_v21  ;;  %v6889_v8 = vpop.f32.mrb[105].mxu1 }
0x1317   :  { %v6890_v34 = vadd.f32 %v6889_v8, %v13656_v52  ;;  %v6891_v3 = vpop.f32.mrb[106].mxu1 }
0x1318   :  { %v7121_v33 = vadd.f32 %v7073_v15, %v6888_v48  ;;  %v6892_v49 = vadd.f32 %v6891_v3, %v13650_v21  ;;  %v6893_v43 = vpop.f32.mrb[107].mxu1  ;;  %v7088_v15 = vmul.f32 %v13647_v1, %v6635_v57  ;;  %v6637_v3 = vpop.xlane.xlu0 %6636 }
0x1319   :  { %v7122_v31 = vadd.f32 %v7074_v14, %v6890_v34  ;;  %v6894_v53 = vadd.f32 %v6893_v43, %v13656_v52  ;;  %v7089_v34 = vmul.f32 %v13653_v29, %v6635_v57 }
0x131a   :  { %7169 = vst [vmem:[#allocation22 + $0x60] sm:$0xff] %v7121_v33  ;;  %v7124_v11 = vadd.f32 %v7076_v63, %v6892_v49  ;;  %v6639_v49 = vpop.xlane.xlu1 %6638 }
0x131b   :  { %7170 = vst [vmem:[#allocation22 + $0x68] sm:$0xff] %v7122_v31  ;;  %v7125_v61 = vadd.f32 %v7077_v40, %v6894_v53  ;;  %v7093_v53 = vmul.f32 %v13667_v5, %v6637_v3 }
0x131c   :  { %7172 = vst [vmem:[#allocation22 + $0x78] sm:$0xff] %v7124_v11 }
0x131d   :  { %7173 = vst [vmem:[#allocation22 + $0x80] sm:$0xff] %v7125_v61 }
0x131e   :  { %v6897_v55 = vpop.f32.mrb[108].mxu1  ;;  %v8079_v7 = vpop.f32.mrb[100].mxu0 }
0x131f   :  { %v6898_v51 = vadd.f32 %v6897_v55, %v13650_v21  ;;  %v7005_v41 = vadd.f32 %v8079_v7, %v13670_v60  ;;  %v6899_v0 = vpop.f32.mrb[109].mxu1  ;;  %v6996_v12 = vpop.f32.mrb[101].mxu0  ;;  %v7096_v55 = vmul.f32 %v13667_v5, %v6639_v49 }
0x1320   :  { %v6900_v13 = vadd.f32 %v6899_v0, %v13656_v52  ;;  %v6997_v45 = vadd.f32 %v6996_v12, %v13670_v60  ;;  %v6901_v10 = vpop.f32.mrb[110].mxu1  ;;  %v8080_v16 = vpop.f32.mrb[102].mxu0  ;;  %v7092_v0 = vmul.f32 %v13653_v29, %v6637_v3 }
0x1321   :  { %v7127_v36 = vadd.f32 %v7079_v58, %v6898_v51  ;;  %v7129_v27 = vadd.f32 %v7081_v19, %v7005_v41  ;;  %v6902_v20 = vadd.f32 %v6901_v10, %v13650_v21  ;;  %v7008_v35 = vadd.f32 %v8080_v16, %v13670_v60  ;;  %v6903_v39 = vpop.f32.mrb[111].mxu1  ;;  %v6999_v25 = vpop.f32.mrb[103].mxu0 }
0x1322   :  { %v7128_v6 = vadd.f32 %v7080_v22, %v6900_v13  ;;  %v7123_v32 = vadd.f32 %v7075_v18, %v6997_v45  ;;  %v6904_v62 = vadd.f32 %v6903_v39, %v13656_v52  ;;  %v7000_v54 = vadd.f32 %v6999_v25, %v13670_v60  ;;  %v6641_v12 = vpop.xlane.xlu0 %6640  ;;  %v6643_v16 = vpop.xlane.xlu1 %6642 }
0x1323   :  { %7175 = vst [vmem:[#allocation22 + $0x90] sm:$0xff] %v7127_v36  ;;  %7177 = vst [vmem:[#allocation22 + $0xa0] sm:$0xff] %v7129_v27  ;;  %v7130_v17 = vadd.f32 %v7082_v23, %v6902_v20  ;;  %v7132_v30 = vadd.f32 %v7084_v42, %v7008_v35  ;;  %v7091_v18 = vmul.f32 %v13647_v1, %v6637_v3 }
0x1324   :  { %7176 = vst [vmem:[#allocation22 + $0x98] sm:$0xff] %v7128_v6  ;;  %7171 = vst [vmem:[#allocation22 + $0x70] sm:$0xff] %v7123_v32  ;;  %v7131_v59 = vadd.f32 %v7083_v56, %v6904_v62  ;;  %v7126_v47 = vadd.f32 %v7078_v50, %v7000_v54  ;;  %v7094_v10 = vmul.f32 %v13647_v1, %v6639_v49 }
0x1325   :  { %7178 = vst [vmem:[#allocation22 + $0xa8] sm:$0xff] %v7130_v17  ;;  %7180 = vst [vmem:[#allocation22 + $0xb8] sm:$0xff] %v7132_v30  ;;  %v7095_v39 = vmul.f32 %v13653_v29, %v6639_v49  ;;  %v7097_v44 = vmul.f32 %v13647_v1, %v6641_v12  ;;  %v7101_v3 = vmul.f32 %v13653_v29, %v6643_v16 }
0x1326   :  { %7179 = vst [vmem:[#allocation22 + $0xb0] sm:$0xff] %v7131_v59  ;;  %7174 = vst [vmem:[#allocation22 + $0x88] sm:$0xff] %v7126_v47  ;;  %v6907_v38 = vpop.f32.mrb[112].mxu1  ;;  %v6645_v17 = vpop.xlane.xlu0 %6644 }
0x1327   :  { %v6908_v37 = vadd.f32 %v6907_v38, %v13650_v21  ;;  %v6909_v26 = vpop.f32.mrb[113].mxu1  ;;  %v6647_v59 = vpop.xlane.xlu1 %6646  ;;  %v7098_v38 = vmul.f32 %v13653_v29, %v6641_v12 }
0x1328   :  { %v6910_v4 = vadd.f32 %v6909_v26, %v13656_v52  ;;  %v6911_v24 = vpop.f32.mrb[114].mxu1 }
0x1329   :  { %v7133_v48 = vadd.f32 %v7085_v2, %v6908_v37  ;;  %v6912_v8 = vadd.f32 %v6911_v24, %v13650_v21  ;;  %v6913_v14 = vpop.f32.mrb[115].mxu1  ;;  %v7099_v2 = vmul.f32 %v13667_v5, %v6641_v12  ;;  %v7100_v37 = vmul.f32 %v13647_v1, %v6643_v16 }
0x132a   :  { %v7134_v63 = vadd.f32 %v7086_v9, %v6910_v4  ;;  %v6914_v33 = vadd.f32 %v6913_v14, %v13656_v52  ;;  %v7105_v24 = vmul.f32 %v13667_v5, %v6645_v17 }
0x132b   :  { %7181 = vst [vmem:[#allocation22 + $0xc0] sm:$0xff] %v7133_v48  ;;  %v7136_v43 = vadd.f32 %v7088_v15, %v6912_v8 }
0x132c   :  { %7182 = vst [vmem:[#allocation22 + $0xc8] sm:$0xff] %v7134_v63  ;;  %v7137_v40 = vadd.f32 %v7089_v34, %v6914_v33  ;;  %v8083_v31 = vpop.f32.mrb[104].mxu0 }
0x132d   :  { %7184 = vst [vmem:[#allocation22 + $0xd8] sm:$0xff] %v7136_v43  ;;  %v7021_v11 = vadd.f32 %v8083_v31, %v13670_v60  ;;  %v7012_v61 = vpop.f32.mrb[105].mxu0 }
0x132e   :  { %7185 = vst [vmem:[#allocation22 + $0xe0] sm:$0xff] %v7137_v40  ;;  %v6917_v50 = vpop.f32.mrb[116].mxu1  ;;  %v7013_v58 = vadd.f32 %v7012_v61, %v13670_v60  ;;  %v8084_v22 = vpop.f32.mrb[106].mxu0  ;;  %v7108_v40 = vmul.f32 %v13667_v5, %v6647_v59 }
0x132f   :  { %v6918_v7 = vadd.f32 %v6917_v50, %v13650_v21  ;;  %v7141_v19 = vadd.f32 %v7093_v53, %v7021_v11  ;;  %v6919_v23 = vpop.f32.mrb[117].mxu1  ;;  %v7024_v51 = vadd.f32 %v8084_v22, %v13670_v60  ;;  %v7015_v41 = vpop.f32.mrb[107].mxu0 }
0x1330   :  { %v6920_v56 = vadd.f32 %v6919_v23, %v13656_v52  ;;  %v7135_v42 = vadd.f32 %v7087_v28, %v7013_v58  ;;  %v6921_v13 = vpop.f32.mrb[118].mxu1  ;;  %v7016_v45 = vadd.f32 %v7015_v41, %v13670_v60  ;;  %v7102_v28 = vmul.f32 %v13667_v5, %v6643_v16 }
0x1331   :  { %v7139_v36 = vadd.f32 %v7091_v18, %v6918_v7  ;;  %7189 = vst [vmem:[#allocation22 + $0x100] sm:$0xff] %v7141_v19  ;;  %v6922_v27 = vadd.f32 %v6921_v13, %v13650_v21  ;;  %v7144_v20 = vadd.f32 %v7096_v55, %v7024_v51  ;;  %v6923_v35 = vpop.f32.mrb[119].mxu1  ;;  %v7103_v7 = vmul.f32 %v13647_v1, %v6645_v17 }
0x1332   :  { %v7140_v25 = vadd.f32 %v7092_v0, %v6920_v56  ;;  %7183 = vst [vmem:[#allocation22 + $0xd0] sm:$0xff] %v7135_v42  ;;  %v6924_v6 = vadd.f32 %v6923_v35, %v13656_v52  ;;  %v7138_v32 = vadd.f32 %v7090_v46, %v7016_v45  ;;  %v7104_v5 = vmul.f32 %v13653_v29, %v6645_v17 }
0x1333   :  { %7187 = vst [vmem:[#allocation22 + $0xf0] sm:$0xff] %v7139_v36  ;;  %v7142_v62 = vadd.f32 %v7094_v10, %v6922_v27  ;;  %7192 = vst [vmem:[#allocation22 + $0x118] sm:$0xff] %v7144_v20  ;;  %v7107_v42 = vmul.f32 %v13653_v29, %v6647_v59 }
0x1334   :  { %7188 = vst [vmem:[#allocation22 + $0xf8] sm:$0xff] %v7140_v25  ;;  %v7143_v54 = vadd.f32 %v7095_v39, %v6924_v6  ;;  %7186 = vst [vmem:[#allocation22 + $0xe8] sm:$0xff] %v7138_v32 }
0x1335   :  { %7190 = vst [vmem:[#allocation22 + $0x108] sm:$0xff] %v7142_v62 }
0x1336   :  { %7191 = vst [vmem:[#allocation22 + $0x110] sm:$0xff] %v7143_v54  ;;  %v6927_v30 = vpop.f32.mrb[120].mxu1  ;;  %v8087_v4 = vpop.f32.mrb[108].mxu0 }
0x1337   :  { %v6928_v47 = vadd.f32 %v6927_v30, %v13650_v21  ;;  %v6929_v57 = vpop.f32.mrb[121].mxu1  ;;  %v7037_v14 = vadd.f32 %v8087_v4, %v13670_v60  ;;  %v7028_v34 = vpop.f32.mrb[109].mxu0 }
0x1338   :  { %v6930_v26 = vadd.f32 %v6929_v57, %v13656_v52  ;;  %v6931_v9 = vpop.f32.mrb[122].mxu1  ;;  %v7029_v49 = vadd.f32 %v7028_v34, %v13670_v60  ;;  %v8088_v43 = vpop.f32.mrb[110].mxu0 }
0x1339   :  { %v7145_v15 = vadd.f32 %v7097_v44, %v6928_v47  ;;  %v6932_v48 = vadd.f32 %v6931_v9, %v13650_v21  ;;  %v6933_v8 = vpop.f32.mrb[123].mxu1  ;;  %v7153_v53 = vadd.f32 %v7105_v24, %v7037_v14  ;;  %v7040_v11 = vadd.f32 %v8088_v43, %v13670_v60  ;;  %v7031_v61 = vpop.f32.mrb[111].mxu0 }
0x133a   :  { %v7146_v63 = vadd.f32 %v7098_v38, %v6930_v26  ;;  %v6934_v33 = vadd.f32 %v6933_v8, %v13656_v52  ;;  %v7147_v18 = vadd.f32 %v7099_v2, %v7029_v49  ;;  %v7032_v50 = vadd.f32 %v7031_v61, %v13670_v60 }
0x133b   :  { %7193 = vst [vmem:[#allocation22 + $0x120] sm:$0xff] %v7145_v15  ;;  %v7148_v31 = vadd.f32 %v7100_v37, %v6932_v48  ;;  %7201 = vst [vmem:[#allocation22 + $0x160] sm:$0xff] %v7153_v53  ;;  %v7156_v58 = vadd.f32 %v7108_v40, %v7040_v11  ;;  %v7106_v60 = vmul.f32 %v13647_v1, %v6647_v59 }
0x133c   :  { %7194 = vst [vmem:[#allocation22 + $0x128] sm:$0xff] %v7146_v63  ;;  %v7149_v46 = vadd.f32 %v7101_v3, %v6934_v33  ;;  %7195 = vst [vmem:[#allocation22 + $0x130] sm:$0xff] %v7147_v18  ;;  %v7150_v55 = vadd.f32 %v7102_v28, %v7032_v50 }
0x133d   :  { %7196 = vst [vmem:[#allocation22 + $0x138] sm:$0xff] %v7148_v31  ;;  %7204 = vst [vmem:[#allocation22 + $0x178] sm:$0xff] %v7156_v58 }
0x133e   :  { %7197 = vst [vmem:[#allocation22 + $0x140] sm:$0xff] %v7149_v46  ;;  %v6937_v22 = vpop.f32.mrb[124].mxu1  ;;  %7198 = vst [vmem:[#allocation22 + $0x148] sm:$0xff] %v7150_v55 }
0x133f   :  { %v6938_v19 = vadd.f32 %v6937_v22, %v13650_v21  ;;  %v6939_v23 = vpop.f32.mrb[125].mxu1 }
0x1340   :  { %v6940_v51 = vadd.f32 %v6939_v23, %v13656_v52  ;;  %v6941_v41 = vpop.f32.mrb[126].mxu1 }
0x1341   :  { %v7151_v0 = vadd.f32 %v7103_v7, %v6938_v19  ;;  %v6942_v12 = vadd.f32 %v6941_v41, %v13650_v21  ;;  %v6943_v56 = vpop.f32.mrb[127].mxu1 }
0x1342   :  { %v7152_v13 = vadd.f32 %v7104_v5, %v6940_v51  ;;  %v6944_v45 = vadd.f32 %v6943_v56, %v13656_v52 }
0x1343   :  { %7199 = vst [vmem:[#allocation22 + $0x150] sm:$0xff] %v7151_v0  ;;  %v7154_v10 = vadd.f32 %v7106_v60, %v6942_v12 }
0x1344   :  { %7200 = vst [vmem:[#allocation22 + $0x158] sm:$0xff] %v7152_v13  ;;  %v7155_v16 = vadd.f32 %v7107_v42, %v6944_v45 }
0x1345   :  { %7202 = vst [vmem:[#allocation22 + $0x168] sm:$0xff] %v7154_v10 }
0x1346   :  { %7203 = vst [vmem:[#allocation22 + $0x170] sm:$0xff] %v7155_v16 }
0x1347   :  { %9579 = shalt.err (!%p9576_p2)
}
0x1348   :  { %s9580_s1 = scalar_lea.hbm %s13788_s16, 6144 }
0x1349   :  { %p9581_p3 = scmp.ne.s32.totalorder %s13788_s16, %s9580_s1  ;;  %p9584_p4 = scmp.lt.u32.totalorder %s9580_s1, %s13788_s16 }
0x134b   :  { %p9586_p5 = pnand %p9584_p4, %p9581_p3 }
0x134d   :  { %9589 = shalt.err (!%p9586_p5)
}
0x134e   :  { %s9626_s19 = smov 384   ;;  %s9627_s20 = smov 24  }
0x134f   :  { %7216 = dma.vmem_to_hbm [thread:$0]  %s7211_s26, 6144, %s13788_s16, [#allocation4], %s9626_s19, %s9626_s19, %s9627_s20  }
0x1350   :  { %9604 = dma.done.wait [#allocation4], 6144  }
0x1351   :  { %9605 = vsyncadd [#allocation4], 4294961152 }
0x1352   :  { %7220 = vsyncpa [#allocation3], 1 }
0x1353   :  { %7221 = vsyncpa [#allocation6], 1 }
0x1354   :  { %7222 = vsyncpa [#allocation9], 1 }
0x1355   :  { %7223 = vsyncpa [#allocation12], 1 }
0x1356   :  { %7224 = vsyncpa [#allocation15], 1 }
0x1357   :  { %7225 = vsyncpa [#allocation18], 1 }
0x1358   :  { %7226 = vsyncpa [#allocation21], 1 }
0x1359   :  { %7227 = vsyncpa [#allocation4], 1 }

</bundles_post_ra>
